<compile_context>
chip_gen: v7x
topology: tpu7x:2x2x1
jax: 0.10.0
libtpu: 0.0.40
codegen_flags: <defaults>
</compile_context>

<pallas_src>
import functools

import jax
import jax.numpy as jnp
from jax.experimental import pallas as pl
from jax.experimental.pallas import tpu as pltpu


HIDDEN = 512      # self.hidden_size in the PyTorch module
_LANE = 128       # output last dim padded to a multiple of the lane width
_ROW_ALIGN = 16   # batch-tile granularity (native bf16 sublane tile height)


def _round_up(x, m):
    return ((x + m - 1) // m) * m


def _mlp_kernel(x_ref,
                w1_ref, b1_ref,
                w2_ref, b2_ref,
                w3_ref, b3_ref,
                w4_ref, b4_ref,
                o_ref):
    """Fused 4-layer MLP forward for one batch tile.

    All matmuls are bf16 x bf16 on the MXU with f32 accumulation; bias adds and
    ReLUs stay in f32 on the VPU, then the activation is cast back to bf16 to
    feed the next MXU matmul.
    """
    h = jnp.dot(x_ref[...], w1_ref[...], preferred_element_type=jnp.float32)
    h = jnp.maximum(h + b1_ref[...], 0.0).astype(w2_ref.dtype)

    h = jnp.dot(h, w2_ref[...], preferred_element_type=jnp.float32)
    h = jnp.maximum(h + b2_ref[...], 0.0).astype(w3_ref.dtype)

    h = jnp.dot(h, w3_ref[...], preferred_element_type=jnp.float32)
    h = jnp.maximum(h + b3_ref[...], 0.0).astype(w4_ref.dtype)

    out = jnp.dot(h, w4_ref[...], preferred_element_type=jnp.float32) + b4_ref[...]
    o_ref[...] = out.astype(o_ref.dtype)


def prepare_params(params):
    """One-time (outside jit) weight prep for the kernel.

    Casts weights to bf16, biases to f32 [1, out], and lane-pads the last
    layer's weight/bias columns to a multiple of 128 so the kernel's output
    stores are lane-dense.  Call this once and reuse the result — doing the
    cast/pad per forward call costs ~36 MB of HBM traffic.

    Returns (prepared_params_dict, true_output_dim).
    """
    output_dim = params["w4"].shape[1]
    out_pad = _round_up(output_dim, _LANE)

    prepared = {}
    for idx in range(1, 5):
        w = jnp.asarray(params[f"w{idx}"], jnp.bfloat16)
        b = jnp.asarray(params[f"b{idx}"], jnp.float32).reshape(1, -1)
        if idx == 4 and out_pad != output_dim:
            w = jnp.pad(w, ((0, 0), (0, out_pad - output_dim)))
            b = jnp.pad(b, ((0, 0), (0, out_pad - output_dim)))
        prepared[f"w{idx}"] = w
        prepared[f"b{idx}"] = b
    return prepared, output_dim


@functools.partial(jax.jit, static_argnames=("output_dim", "block_b"))
def neighborhood_dynamics_forward(vocab, center, action, prepared, *,
                                  output_dim, block_b=512):
    """Equivalent of NeighborhoodDynamics.forward (eval mode).

    vocab:  [B, Dv], center: [B, Dc], action: [B, Da]  (float32)
    prepared: output of prepare_params() (bf16 weights, f32 biases,
              last layer lane-padded).
    returns [B, output_dim] float32.
    """
    # Cast to bf16 *before* the concat so the concatenated activation is never
    # materialized in f32 (one fewer HBM pass over the input).
    x = jnp.concatenate((vocab.astype(jnp.bfloat16),
                         center.astype(jnp.bfloat16),
                         action.astype(jnp.bfloat16)), axis=-1)
    B, input_dim = x.shape
    out_pad = prepared["w4"].shape[1]

    # ---- batch tile sizing & ragged-batch padding (all static at trace) ----
    block_b = min(block_b, _round_up(B, _ROW_ALIGN))
    n_blocks = -(-B // block_b)
    # v7x megacore: prefer an even block count so both TensorCores get work.
    # One halving attempt only (keeps block_b a multiple of 16, no extra
    # padded compute); on v5e/v6e (single TC) this is harmless.
    if n_blocks > 1 and n_blocks % 2 == 1 and block_b % (2 * _ROW_ALIGN) == 0:
        block_b //= 2
        n_blocks = -(-B // block_b)
    b_pad = n_blocks * block_b
    if b_pad != B:
        x = jnp.pad(x, ((0, b_pad - B), (0, 0)))

    w1, b1 = prepared["w1"], prepared["b1"]
    w2, b2 = prepared["w2"], prepared["b2"]
    w3, b3 = prepared["w3"], prepared["b3"]
    w4, b4 = prepared["w4"], prepared["b4"]

    # Weight-stationary operands: constant index_map (DMA'd once) and
    # single-buffered so they don't waste a second VMEM copy.
    def stationary(arr):
        return pl.BlockSpec(arr.shape, lambda i: (0, 0),
                            pipeline_mode=pl.Buffered(1))

    flops = 2 * b_pad * (w1.size + w2.size + w3.size + w4.size)
    bytes_accessed = (
        x.size * 2
        + (w1.size + w2.size + w3.size + w4.size) * 2
        + (b1.size + b2.size + b3.size + b4.size) * 4
        + b_pad * out_pad * 4
    )

    out = pl.pallas_call(
        _mlp_kernel,
        out_shape=jax.ShapeDtypeStruct((b_pad, out_pad), jnp.float32),
        grid_spec=pltpu.PrefetchScalarGridSpec(
            num_scalar_prefetch=0,
            grid=(n_blocks,),
            in_specs=[
                pl.BlockSpec((block_b, input_dim), lambda i: (i, 0)),  # x tile
                stationary(w1), stationary(b1),
                stationary(w2), stationary(b2),
                stationary(w3), stationary(b3),
                stationary(w4), stationary(b4),
            ],
            out_specs=pl.BlockSpec((block_b, out_pad), lambda i: (i, 0)),
        ),
        compiler_params=pltpu.CompilerParams(
            # Batch grid axis is embarrassingly parallel (megacore-shardable on
            # multi-TC chips; harmless no-op on single-TC v5e/v6e).
            dimension_semantics=("parallel",),
            # <= 75% of v7x physical VMEM (64 MiB); also covers the working
            # set on v5e/v6e, whose default scoped limits are smaller.
            vmem_limit_bytes=48 << 20,
        ),
        cost_estimate=pl.CostEstimate(
            flops=flops, transcendentals=0, bytes_accessed=bytes_accessed),
    )(x, w1, b1, w2, b2, w3, b3, w4, b4)

    # Strip batch padding and lane padding.
    return out[:B, :output_dim]


def init_params(key, input_dim, output_dim, hidden=HIDDEN):
    """Deterministic synthetic parameters (PyTorch-Linear-like uniform init)."""
    dims = [(input_dim, hidden),
            (hidden, 2 * hidden),
            (2 * hidden, 4 * hidden),
            (4 * hidden, output_dim)]
    params = {}
    for idx, (fan_in, fan_out) in enumerate(dims, start=1):
        key, kw, kb = jax.random.split(key, 3)
        bound = 1.0 / jnp.sqrt(fan_in)
        # stored as [in, out] so the kernel computes x @ W + b
        params[f"w{idx}"] = jax.random.uniform(
            kw, (fan_in, fan_out), jnp.float32, -bound, bound)
        params[f"b{idx}"] = jax.random.uniform(
            kb, (1, fan_out), jnp.float32, -bound, bound)
    return params


def reference_forward_f32(vocab, center, action, params):
    """Pure-JAX f32 reference (matches the PyTorch eval-mode forward)."""
    x = jnp.concatenate((vocab, center, action), axis=-1)
    h = jax.nn.relu(x @ params["w1"] + params["b1"])
    h = jax.nn.relu(h @ params["w2"] + params["b2"])
    h = jax.nn.relu(h @ params["w3"] + params["b3"])
    return h @ params["w4"] + params["b4"]


def reference_forward_bf16(vocab, center, action, params):
    """Pure-JAX reference with the kernel's exact mixed precision
    (bf16 matmul operands, f32 accumulation / bias / ReLU)."""
    def layer(h, w, b, relu=True):
        y = jnp.dot(h, w.astype(jnp.bfloat16),
                    preferred_element_type=jnp.float32) + b
        if relu:
            y = jnp.maximum(y, 0.0).astype(jnp.bfloat16)
        return y

    x = jnp.concatenate((vocab, center, action), axis=-1).astype(jnp.bfloat16)
    h = layer(x, params["w1"], params["b1"])
    h = layer(h, params["w2"], params["b2"])
    h = layer(h, params["w3"], params["b3"])
    return layer(h, params["w4"], params["b4"], relu=False)


if __name__ == "__main__":
    key = jax.random.PRNGKey(0)
    k_v, k_c, k_a, k_p = jax.random.split(key, 4)

    # Small shapes: batch=8, vocab_dim=16, center_dim=8, action_dim=8
    # -> input_dim = 32, output_dim = 32
    B, Dv, Dc, Da = 8, 16, 8, 8
    input_dim = Dv + Dc + Da
    output_dim = 32

    vocab = jax.random.normal(k_v, (B, Dv), jnp.float32)
    center = jax.random.normal(k_c, (B, Dc), jnp.float32)
    action = jax.random.normal(k_a, (B, Da), jnp.float32)

    params = init_params(k_p, input_dim, output_dim)

    # One-time weight prep (bf16 cast + lane pad) outside the jitted forward.
    prepared, out_dim = prepare_params(params)
    prepared = jax.tree_util.tree_map(jax.block_until_ready, prepared)

    out = neighborhood_dynamics_forward(
        vocab, center, action, prepared, output_dim=out_dim)
    out = jax.block_until_ready(out)
    assert out.shape == (B, output_dim)

    # Primary check: comparison against a pure-JAX path with identical mixed
    # precision (bf16 MXU operands, f32 accumulation).
    ref_bf16 = reference_forward_bf16(vocab, center, action, params)
    assert jnp.allclose(out, ref_bf16, atol=2e-3, rtol=2e-3), \
        "mismatch vs mixed-precision reference"

    # Sanity check: close to the full-f32 reference within bf16 rounding error.
    ref_f32 = reference_forward_f32(vocab, center, action, params)
    assert jnp.allclose(out, ref_f32, atol=1e-1, rtol=1e-1), \
        "mismatch vs f32 reference"

    print("KERNEL_OK")
</pallas_src>

<mosaic_0001>
module attributes {stable_mosaic.version = 11 : i64} {
  func.func @_mlp_kernel(%arg0: i32, %arg1: memref<16x32xbf16, #tpu.memory_space<vmem>>, %arg2: memref<32x512xbf16, #tpu.memory_space<vmem>>, %arg3: memref<1x512xf32, #tpu.memory_space<vmem>>, %arg4: memref<512x1024xbf16, #tpu.memory_space<vmem>>, %arg5: memref<1x1024xf32, #tpu.memory_space<vmem>>, %arg6: memref<1024x2048xbf16, #tpu.memory_space<vmem>>, %arg7: memref<1x2048xf32, #tpu.memory_space<vmem>>, %arg8: memref<2048x128xbf16, #tpu.memory_space<vmem>>, %arg9: memref<1x128xf32, #tpu.memory_space<vmem>>, %arg10: memref<16x128xf32, #tpu.memory_space<vmem>>) attributes {dimension_semantics = [#tpu.dimension_semantics<parallel>], iteration_bounds = array<i64: 1>, scalar_prefetch = 0 : i64, scratch_operands = 0 : i64, tpu.core_type = #tpu.core_type<tc>, window_params = [{transform_indices = @transform_0, window_bounds = array<i64: 16, 32>}, {pipeline_mode = #tpu.pipeline_mode<synchronous>, transform_indices = @transform_1, window_bounds = array<i64: 32, 512>}, {pipeline_mode = #tpu.pipeline_mode<synchronous>, transform_indices = @transform_2, window_bounds = array<i64: 1, 512>}, {pipeline_mode = #tpu.pipeline_mode<synchronous>, transform_indices = @transform_3, window_bounds = array<i64: 512, 1024>}, {pipeline_mode = #tpu.pipeline_mode<synchronous>, transform_indices = @transform_4, window_bounds = array<i64: 1, 1024>}, {pipeline_mode = #tpu.pipeline_mode<synchronous>, transform_indices = @transform_5, window_bounds = array<i64: 1024, 2048>}, {pipeline_mode = #tpu.pipeline_mode<synchronous>, transform_indices = @transform_6, window_bounds = array<i64: 1, 2048>}, {pipeline_mode = #tpu.pipeline_mode<synchronous>, transform_indices = @transform_7, window_bounds = array<i64: 2048, 128>}, {pipeline_mode = #tpu.pipeline_mode<synchronous>, transform_indices = @transform_8, window_bounds = array<i64: 1, 128>}, {transform_indices = @transform_9, window_bounds = array<i64: 16, 128>}]} {
    %c0 = arith.constant 0 : index
    %c0_0 = arith.constant 0 : index
    %0 = vector.load %arg1[%c0, %c0_0] : memref<16x32xbf16, #tpu.memory_space<vmem>>, vector<16x32xbf16>
    %c0_1 = arith.constant 0 : index
    %c0_2 = arith.constant 0 : index
    %1 = vector.load %arg2[%c0_1, %c0_2] : memref<32x512xbf16, #tpu.memory_space<vmem>>, vector<32x512xbf16>
    %cst = arith.constant dense<0.000000e+00> : vector<16x512xf32>
    %2 = tpu.matmul %0, %1, %cst {dimension_numbers = #tpu.dot_dimension_numbers<[1], [0], [0], [1], [0, 0, 1, 1], [], []>} : vector<16x32xbf16>, vector<32x512xbf16>, vector<16x512xf32> -> vector<16x512xf32>
    %c0_3 = arith.constant 0 : index
    %c0_4 = arith.constant 0 : index
    %3 = vector.load %arg3[%c0_3, %c0_4] : memref<1x512xf32, #tpu.memory_space<vmem>>, vector<1x512xf32>
    %4 = vector.broadcast %3 : vector<1x512xf32> to vector<16x512xf32>
    %5 = arith.addf %2, %4 : vector<16x512xf32>
    %cst_5 = arith.constant 0.000000e+00 : f32
    %6 = vector.broadcast %cst_5 : f32 to vector<16x512xf32>
    %7 = arith.maximumf %5, %6 : vector<16x512xf32>
    %8 = arith.truncf %7 : vector<16x512xf32> to vector<16x512xbf16>
    %c0_6 = arith.constant 0 : index
    %c0_7 = arith.constant 0 : index
    %9 = vector.load %arg4[%c0_6, %c0_7] : memref<512x1024xbf16, #tpu.memory_space<vmem>>, vector<512x1024xbf16>
    %cst_8 = arith.constant dense<0.000000e+00> : vector<16x1024xf32>
    %10 = tpu.matmul %8, %9, %cst_8 {dimension_numbers = #tpu.dot_dimension_numbers<[1], [0], [0], [1], [0, 0, 1, 1], [], []>} : vector<16x512xbf16>, vector<512x1024xbf16>, vector<16x1024xf32> -> vector<16x1024xf32>
    %c0_9 = arith.constant 0 : index
    %c0_10 = arith.constant 0 : index
    %11 = vector.load %arg5[%c0_9, %c0_10] : memref<1x1024xf32, #tpu.memory_space<vmem>>, vector<1x1024xf32>
    %12 = vector.broadcast %11 : vector<1x1024xf32> to vector<16x1024xf32>
    %13 = arith.addf %10, %12 : vector<16x1024xf32>
    %cst_11 = arith.constant 0.000000e+00 : f32
    %14 = vector.broadcast %cst_11 : f32 to vector<16x1024xf32>
    %15 = arith.maximumf %13, %14 : vector<16x1024xf32>
    %16 = arith.truncf %15 : vector<16x1024xf32> to vector<16x1024xbf16>
    %c0_12 = arith.constant 0 : index
    %c0_13 = arith.constant 0 : index
    %17 = vector.load %arg6[%c0_12, %c0_13] : memref<1024x2048xbf16, #tpu.memory_space<vmem>>, vector<1024x2048xbf16>
    %cst_14 = arith.constant dense<0.000000e+00> : vector<16x2048xf32>
    %18 = tpu.matmul %16, %17, %cst_14 {dimension_numbers = #tpu.dot_dimension_numbers<[1], [0], [0], [1], [0, 0, 1, 1], [], []>} : vector<16x1024xbf16>, vector<1024x2048xbf16>, vector<16x2048xf32> -> vector<16x2048xf32>
    %c0_15 = arith.constant 0 : index
    %c0_16 = arith.constant 0 : index
    %19 = vector.load %arg7[%c0_15, %c0_16] : memref<1x2048xf32, #tpu.memory_space<vmem>>, vector<1x2048xf32>
    %20 = vector.broadcast %19 : vector<1x2048xf32> to vector<16x2048xf32>
    %21 = arith.addf %18, %20 : vector<16x2048xf32>
    %cst_17 = arith.constant 0.000000e+00 : f32
    %22 = vector.broadcast %cst_17 : f32 to vector<16x2048xf32>
    %23 = arith.maximumf %21, %22 : vector<16x2048xf32>
    %24 = arith.truncf %23 : vector<16x2048xf32> to vector<16x2048xbf16>
    %c0_18 = arith.constant 0 : index
    %c0_19 = arith.constant 0 : index
    %25 = vector.load %arg8[%c0_18, %c0_19] : memref<2048x128xbf16, #tpu.memory_space<vmem>>, vector<2048x128xbf16>
    %cst_20 = arith.constant dense<0.000000e+00> : vector<16x128xf32>
    %26 = tpu.matmul %24, %25, %cst_20 {dimension_numbers = #tpu.dot_dimension_numbers<[1], [0], [0], [1], [0, 0, 1, 1], [], []>} : vector<16x2048xbf16>, vector<2048x128xbf16>, vector<16x128xf32> -> vector<16x128xf32>
    %c0_21 = arith.constant 0 : index
    %c0_22 = arith.constant 0 : index
    %27 = vector.load %arg9[%c0_21, %c0_22] : memref<1x128xf32, #tpu.memory_space<vmem>>, vector<1x128xf32>
    %28 = vector.broadcast %27 : vector<1x128xf32> to vector<16x128xf32>
    %29 = arith.addf %26, %28 : vector<16x128xf32>
    %c0_23 = arith.constant 0 : index
    %c0_24 = arith.constant 0 : index
    %30 = vector.load %arg10[%c0_23, %c0_24] : memref<16x128xf32, #tpu.memory_space<vmem>>, vector<16x128xf32>
    tpu.vector_store %arg10[%c0_23, %c0_24], %29 {strides = array<i32>} : memref<16x128xf32, #tpu.memory_space<vmem>>, vector<16x128xf32>,
    return
  }
  func.func @transform_0(%arg0: i32) -> (i32, i32) {
    %c0_i32 = arith.constant 0 : i32
    %c0_i32_0 = arith.constant 0 : i32
    return %arg0, %c0_i32 : i32, i32
  }
  func.func @transform_1(%arg0: i32) -> (i32, i32) {
    %c0_i32 = arith.constant 0 : i32
    %c0_i32_0 = arith.constant 0 : i32
    %c0_i32_1 = arith.constant 0 : i32
    return %c0_i32, %c0_i32_0 : i32, i32
  }
  func.func @transform_2(%arg0: i32) -> (i32, i32) {
    %c0_i32 = arith.constant 0 : i32
    %c0_i32_0 = arith.constant 0 : i32
    %c0_i32_1 = arith.constant 0 : i32
    return %c0_i32, %c0_i32_0 : i32, i32
  }
  func.func @transform_3(%arg0: i32) -> (i32, i32) {
    %c0_i32 = arith.constant 0 : i32
    %c0_i32_0 = arith.constant 0 : i32
    %c0_i32_1 = arith.constant 0 : i32
    return %c0_i32, %c0_i32_0 : i32, i32
  }
  func.func @transform_4(%arg0: i32) -> (i32, i32) {
    %c0_i32 = arith.constant 0 : i32
    %c0_i32_0 = arith.constant 0 : i32
    %c0_i32_1 = arith.constant 0 : i32
    return %c0_i32, %c0_i32_0 : i32, i32
  }
  func.func @transform_5(%arg0: i32) -> (i32, i32) {
    %c0_i32 = arith.constant 0 : i32
    %c0_i32_0 = arith.constant 0 : i32
    %c0_i32_1 = arith.constant 0 : i32
    return %c0_i32, %c0_i32_0 : i32, i32
  }
  func.func @transform_6(%arg0: i32) -> (i32, i32) {
    %c0_i32 = arith.constant 0 : i32
    %c0_i32_0 = arith.constant 0 : i32
    %c0_i32_1 = arith.constant 0 : i32
    return %c0_i32, %c0_i32_0 : i32, i32
  }
  func.func @transform_7(%arg0: i32) -> (i32, i32) {
    %c0_i32 = arith.constant 0 : i32
    %c0_i32_0 = arith.constant 0 : i32
    %c0_i32_1 = arith.constant 0 : i32
    return %c0_i32, %c0_i32_0 : i32, i32
  }
  func.func @transform_8(%arg0: i32) -> (i32, i32) {
    %c0_i32 = arith.constant 0 : i32
    %c0_i32_0 = arith.constant 0 : i32
    %c0_i32_1 = arith.constant 0 : i32
    return %c0_i32, %c0_i32_0 : i32, i32
  }
  func.func @transform_9(%arg0: i32) -> (i32, i32) {
    %c0_i32 = arith.constant 0 : i32
    %c0_i32_0 = arith.constant 0 : i32
    return %arg0, %c0_i32 : i32, i32
  }
}

</mosaic_0001>

<bundles_post_ra>
// kernel: neighborhood_dynamics_forward.1
= control target key start
LH: loop header
LB: loop body
LE: loop exit
PB: predicated region body
PF: predicated region fallthrough
CT: control target
= control target key end

     0   :  { %14 = vsyncpa [#allocation3], 0  ;;  %s13795_s0 = inlined_call_operand.vmem [shape: bf16[16,32], index: 0, kind: input, shape index: {}]   ;;  %s13796_s1 = inlined_call_operand.hbm [shape: bf16[32,512], index: 1, kind: input, shape index: {}]   ;;  %s13797_s2 = inlined_call_operand.hbm [shape: f32[1,512], index: 2, kind: input, shape index: {}]   ;;  %s13798_s3 = inlined_call_operand.hbm [shape: bf16[512,1024], index: 3, kind: input, shape index: {}]   ;;  %s13799_s4 = inlined_call_operand.hbm [shape: f32[1,1024], index: 4, kind: input, shape index: {}]   ;;  %s13800_s5 = inlined_call_operand.hbm [shape: bf16[1024,2048], index: 5, kind: input, shape index: {}]   ;;  %s13801_s6 = inlined_call_operand.hbm [shape: f32[1,2048], index: 6, kind: input, shape index: {}]   ;;  %s13802_s7 = inlined_call_operand.hbm [shape: bf16[2048,128], index: 7, kind: input, shape index: {}]   ;;  %s13803_s8 = inlined_call_operand.hbm [shape: f32[1,128], index: 8, kind: input, shape index: {}]   ;;  %s13804_s9 = inlined_call_operand.vmem [shape: f32[16,128], index: 9, kind: output, shape index: {}]  }
   0x1   :  { %15 = vsyncpa [#allocation5], 0 }
   0x2   :  { %16 = vsyncpa [#allocation8], 0 }
   0x3   :  { %17 = vsyncpa [#allocation11], 0 }
   0x4   :  { %18 = vsyncpa [#allocation14], 0  ;;  %s13381_s30 = smov [#allocation4]   ;;  %s13382_s11 = smov [#allocation7]  }
   0x5   :  { %s39_s10 = sshll.u32 %s13381_s30, 4  ;;  %s61_s12 = sshll.u32 %s13382_s11, 4  ;;  %s40_s10 = int_to_ptr.vmem [resolvable:$true] %s39_s10  ;;  %s62_s12 = int_to_ptr.vmem [resolvable:$true] %s61_s12 }
   0x6   :  { %s13195_s15 = scalar_lea.hbm %s13797_s2, 64 }
   0x7   :  { %p13196_p0 = scmp.ne.s32.totalorder %s13797_s2, %s13195_s15  ;;  %p13199_p1 = scmp.lt.u32.totalorder %s13195_s15, %s13797_s2 }
   0x9   :  { %p13201_p2 = pnand %p13199_p1, %p13196_p0 }
   0xb   :  { %13204 = shalt.err (!%p13201_p2)
}
   0xc   :  { %s13205_s20 = scalar_lea.vmem %s40_s10, 64  ;;  %p13210_p4 = scmp.lt.s32.totalorder %s40_s10, %s40_s10 }
   0xd   :  { %p13206_p3 = scmp.ne.s32.totalorder %s40_s10, %s13205_s20  ;;  %p13211_p5 = scmp.lt.s32.totalorder %s13205_s20, %s13205_s20 }
   0xf   :  { %p13212_p6 = por %p13211_p5, %p13210_p4 }
  0x11   :  { %p13213_p7 = pnand %p13212_p6, %p13206_p3 }
  0x13   :  { %13216 = shalt.err (!%p13213_p7)
}
  0x14   :  { %42 = dma.hbm_to_vmem [thread:$0]  %s13797_s2, 64, %s40_s10, [#allocation5]  }
  0x15   :  { %s13217_s25 = scalar_lea.hbm %s13799_s4, 128 }
  0x16   :  { %p13218_p8 = scmp.ne.s32.totalorder %s13799_s4, %s13217_s25  ;;  %p13221_p9 = scmp.lt.u32.totalorder %s13217_s25, %s13799_s4 }
  0x18   :  { %p13223_p10 = pnand %p13221_p9, %p13218_p8 }
  0x1a   :  { %13226 = shalt.err (!%p13223_p10)
}
  0x1b   :  { %s13227_s30 = scalar_lea.vmem %s62_s12, 128  ;;  %p13232_p12 = scmp.lt.s32.totalorder %s62_s12, %s62_s12 }
  0x1c   :  { %p13228_p11 = scmp.ne.s32.totalorder %s62_s12, %s13227_s30  ;;  %p13233_p13 = scmp.lt.s32.totalorder %s13227_s30, %s13227_s30 }
  0x1e   :  { %p13234_p0 = por %p13233_p13, %p13232_p12 }
  0x20   :  { %p13235_p1 = pnand %p13234_p0, %p13228_p11 }
  0x22   :  { %13238 = shalt.err (!%p13235_p1)
}
  0x23   :  { %64 = dma.hbm_to_vmem [thread:$0]  %s13799_s4, 128, %s62_s12, [#allocation8]  }
  0x24   :  { %s13383_s11 = smov [#allocation10]   ;;  %s13384_s14 = smov [#allocation2]  }
  0x25   :  { %s83_s13 = sshll.u32 %s13383_s11, 4  ;;  %s26_s15 = sshll.u32 %s13384_s14, 4  ;;  %s84_s13 = int_to_ptr.vmem [resolvable:$true] %s83_s13  ;;  %s13471_s15 = int_to_ptr.vmem [resolvable:$true] %s26_s15 }
  0x26   :  { %s13239_s18 = scalar_lea.hbm %s13801_s6, 256 }
  0x27   :  { %p13240_p2 = scmp.ne.s32.totalorder %s13801_s6, %s13239_s18  ;;  %p13243_p3 = scmp.lt.u32.totalorder %s13239_s18, %s13801_s6 }
  0x29   :  { %p13245_p4 = pnand %p13243_p3, %p13240_p2 }
  0x2b   :  { %13248 = shalt.err (!%p13245_p4)
}
  0x2c   :  { %s13249_s4 = scalar_lea.vmem %s84_s13, 256  ;;  %p13254_p6 = scmp.lt.s32.totalorder %s84_s13, %s84_s13 }
  0x2d   :  { %p13250_p5 = scmp.ne.s32.totalorder %s84_s13, %s13249_s4  ;;  %p13255_p7 = scmp.lt.s32.totalorder %s13249_s4, %s13249_s4 }
  0x2f   :  { %p13256_p8 = por %p13255_p7, %p13254_p6 }
  0x31   :  { %p13257_p9 = pnand %p13256_p8, %p13250_p5 }
  0x33   :  { %13260 = shalt.err (!%p13257_p9)
}
  0x34   :  { %86 = dma.hbm_to_vmem [thread:$0]  %s13801_s6, 256, %s84_s13, [#allocation11]  }
  0x35   :  { %s13261_s26 = scalar_lea.hbm %s13796_s1, 1024 }
  0x36   :  { %p13262_p10 = scmp.ne.s32.totalorder %s13796_s1, %s13261_s26  ;;  %p13265_p11 = scmp.lt.u32.totalorder %s13261_s26, %s13796_s1 }
  0x38   :  { %p13267_p12 = pnand %p13265_p11, %p13262_p10 }
  0x3a   :  { %13270 = shalt.err (!%p13267_p12)
}
  0x3b   :  { %s13271_s2 = scalar_lea.vmem %s13471_s15, 1024  ;;  %p13276_p0 = scmp.lt.s32.totalorder %s13471_s15, %s13471_s15 }
  0x3c   :  { %p13272_p13 = scmp.ne.s32.totalorder %s13471_s15, %s13271_s2  ;;  %p13277_p1 = scmp.lt.s32.totalorder %s13271_s2, %s13271_s2 }
  0x3e   :  { %p13278_p2 = por %p13277_p1, %p13276_p0 }
  0x40   :  { %p13279_p3 = pnand %p13278_p2, %p13272_p13 }
  0x42   :  { %13282 = shalt.err (!%p13279_p3)
}
  0x43   :  { %s13385_s6 = smov 256   ;;  %s13386_s10 = smov 16  }
  0x44   :  { %32 = dma.hbm_to_vmem [thread:$0]  %s13796_s1, 1024, %s13471_s15, [#allocation3], %s13385_s6, %s13385_s6, %s13386_s10  }
  0x45   :  { %s13387_s14 = smov [#allocation6]   ;;  %s13283_s19 = scalar_lea.hbm %s13798_s3, 32768 }
  0x46   :  { %s48_s16 = sshll.u32 %s13387_s14, 4  ;;  %p13284_p4 = scmp.ne.s32.totalorder %s13798_s3, %s13283_s19  ;;  %s49_s16 = int_to_ptr.vmem [resolvable:$true] %s48_s16 }
  0x47   :  { %p13287_p5 = scmp.lt.u32.totalorder %s13283_s19, %s13798_s3 }
  0x49   :  { %p13289_p6 = pnand %p13287_p5, %p13284_p4 }
  0x4b   :  { %13292 = shalt.err (!%p13289_p6)
}
  0x4c   :  { %s13293_s12 = scalar_lea.vmem %s49_s16, 32768  ;;  %p13298_p8 = scmp.lt.s32.totalorder %s49_s16, %s49_s16 }
  0x4d   :  { %p13294_p7 = scmp.ne.s32.totalorder %s49_s16, %s13293_s12  ;;  %p13299_p9 = scmp.lt.s32.totalorder %s13293_s12, %s13293_s12 }
  0x4f   :  { %p13300_p10 = por %p13299_p9, %p13298_p8 }
  0x51   :  { %p13301_p11 = pnand %p13300_p10, %p13294_p7 }
  0x53   :  { %13304 = shalt.err (!%p13301_p11)
}
  0x54   :  { %s13388_s1 = smov 512   ;;  %s13389_s15 = smov 32  }
  0x55   :  { %54 = dma.hbm_to_vmem [thread:$0]  %s13798_s3, 32768, %s49_s16, [#allocation5], %s13388_s1, %s13388_s1, %s13389_s15  }
  0x56   :  { %s13390_s25 = smov [#allocation9]   ;;  %s13305_s29 = scalar_lea.hbm %s13800_s5, 131072 }
  0x57   :  { %s70_s26 = sshll.u32 %s13390_s25, 4  ;;  %p13306_p12 = scmp.ne.s32.totalorder %s13800_s5, %s13305_s29  ;;  %s71_s26 = int_to_ptr.vmem [resolvable:$true] %s70_s26 }
  0x58   :  { %p13309_p13 = scmp.lt.u32.totalorder %s13305_s29, %s13800_s5 }
  0x5a   :  { %p13311_p0 = pnand %p13309_p13, %p13306_p12 }
  0x5c   :  { %13314 = shalt.err (!%p13311_p0)
}
  0x5d   :  { %s13315_s11 = scalar_lea.vmem %s71_s26, 131072  ;;  %p13320_p2 = scmp.lt.s32.totalorder %s71_s26, %s71_s26 }
  0x5e   :  { %p13316_p1 = scmp.ne.s32.totalorder %s71_s26, %s13315_s11  ;;  %p13321_p3 = scmp.lt.s32.totalorder %s13315_s11, %s13315_s11 }
  0x60   :  { %p13322_p4 = por %p13321_p3, %p13320_p2 }
  0x62   :  { %p13323_p5 = pnand %p13322_p4, %p13316_p1 }
  0x64   :  { %13326 = shalt.err (!%p13323_p5)
}
  0x65   :  { %s13391_s3 = smov 1024   ;;  %s13392_s13 = smov 64  }
  0x66   :  { %76 = dma.hbm_to_vmem [thread:$0]  %s13800_s5, 131072, %s71_s26, [#allocation8], %s13391_s3, %s13391_s3, %s13392_s13  }
  0x67   :  { %s13393_s17 = smov [#allocation12]   ;;  %s13394_s19 = smov [#allocation13]  }
  0x68   :  { %s92_s18 = sshll.u32 %s13393_s17, 4  ;;  %s105_s20 = sshll.u32 %s13394_s19, 4  ;;  %s93_s18 = int_to_ptr.vmem [resolvable:$true] %s92_s18  ;;  %s106_s20 = int_to_ptr.vmem [resolvable:$true] %s105_s20 }
  0x69   :  { %s13327_s4 = scalar_lea.hbm %s13802_s7, 16384 }
  0x6a   :  { %p13328_p6 = scmp.ne.s32.totalorder %s13802_s7, %s13327_s4  ;;  %p13331_p7 = scmp.lt.u32.totalorder %s13327_s4, %s13802_s7 }
  0x6c   :  { %p13333_p8 = pnand %p13331_p7, %p13328_p6 }
  0x6e   :  { %13336 = shalt.err (!%p13333_p8)
}
  0x6f   :  { %s13337_s5 = scalar_lea.vmem %s93_s18, 16384  ;;  %p13342_p10 = scmp.lt.s32.totalorder %s93_s18, %s93_s18 }
  0x70   :  { %p13338_p9 = scmp.ne.s32.totalorder %s93_s18, %s13337_s5  ;;  %p13343_p11 = scmp.lt.s32.totalorder %s13337_s5, %s13337_s5 }
  0x72   :  { %p13344_p12 = por %p13343_p11, %p13342_p10 }
  0x74   :  { %p13345_p13 = pnand %p13344_p12, %p13338_p9 }
  0x76   :  { %13348 = shalt.err (!%p13345_p13)
}
  0x77   :  { %s13395_s24 = smov 4   ;;  %s13349_s29 = scalar_lea.hbm %s13803_s8, 16 }
  0x78   :  { %98 = dma.hbm_to_vmem [thread:$0]  %s13802_s7, 16384, %s93_s18, [#allocation11], %s13392_s13, %s13392_s13, %s13395_s24  }
  0x79   :  { %p13350_p0 = scmp.ne.s32.totalorder %s13803_s8, %s13349_s29  ;;  %p13353_p1 = scmp.lt.u32.totalorder %s13349_s29, %s13803_s8 }
  0x7b   :  { %p13355_p2 = pnand %p13353_p1, %p13350_p0 }
  0x7d   :  { %13358 = shalt.err (!%p13355_p2)
}
  0x7e   :  { %s13359_s11 = scalar_lea.vmem %s106_s20, 16  ;;  %s13363_s3 = scalar_lea.vmem %s106_s20, 32 }
  0x7f   :  { %p13360_p3 = scmp.ne.s32.totalorder %s106_s20, %s13359_s11  ;;  %p13364_p4 = scmp.lt.s32.totalorder %s106_s20, %s106_s20 }
  0x80   :  { %p13365_p5 = scmp.lt.s32.totalorder %s13363_s3, %s13359_s11 }
  0x82   :  { %p13366_p6 = por %p13365_p5, %p13364_p4 }
  0x84   :  { %p13367_p7 = pnand %p13366_p6, %p13360_p3 }
  0x86   :  { %13370 = shalt.err (!%p13367_p7)
}
  0x87   :  { %108 = dma.hbm_to_vmem [thread:$0]  %s13803_s8, 16, %s106_s20, [#allocation14]  }
  0x88   :  { %13371 = dma.done.wait [#allocation3], 1024  }
  0x89   :  { %13372 = vsyncadd [#allocation3], 4294966272 }
  0x8a   :  { %13373 = dma.done.wait [#allocation5], 32832  }
  0x8b   :  { %13374 = vsyncadd [#allocation5], 4294934464 }
  0x8c   :  { %13375 = dma.done.wait [#allocation8], 131200  }
  0x8d   :  { %13376 = vsyncadd [#allocation8], 4294836096 }
  0x8e   :  { %13377 = dma.done.wait [#allocation11], 16640  }
  0x8f   :  { %13378 = vsyncadd [#allocation11], 4294950656 }
  0x90   :  { %13379 = dma.done.wait [#allocation14], 16  }
  0x91   :  { %13380 = vsyncadd [#allocation14], 4294967280  ;;  %v13396_v0 = vmov 0   ;;  %v13053_v1 = vld [vmem:[#allocation2 + $0x4] ss:$16 sps:$4 sm:$0xff]   ;;  %vm211_vm0 = vcmask 261120  }
  0x92   :  { %247 = vmatprep.mubr.bf16.mxu0 %v13396_v0  ;;  %290 = vmatprep.mubr.bf16.mxu1 %v13396_v0  ;;  %v13055_v2 = vld [vmem:[#allocation2] ss:$16 sps:$4 sm:$0xff]   ;;  %v13056_v3 = vld [vmem:[#allocation2 + $0x24] ss:$16 sps:$4 sm:$0xff]   ;;  %v13060_v6 = vld [vmem:[#allocation2 + $0xc] ss:$16 sps:$4 sm:$0xff]  }
  0x93   :  { %215 = vmatprep.subr.bf16.mxu0 %v13053_v1  ;;  %v13058_v4 = vld [vmem:[#allocation2 + $0x20] ss:$16 sps:$4 sm:$0xff]   ;;  %v13062_v7 = vld [vmem:[#allocation2 + $0x8] ss:$16 sps:$4 sm:$0xff]   ;;  %v13063_v8 = vld [vmem:[#allocation2 + $0x2c] ss:$16 sps:$4 sm:$0xff]   ;;  %258 = vmatprep.subr.bf16.mxu1 %v13060_v6 }
  0x94   :  { %216 = vmatpush1.bf16.msra.mxu0 %v13055_v2  ;;  %v13059_v5 = vld [vmem:[%s13795_s0] sm:$0xff]   ;;  %v13065_v9 = vld [vmem:[#allocation2 + $0x28] ss:$16 sps:$4 sm:$0xff]   ;;  %259 = vmatpush1.bf16.msra.mxu1 %v13062_v7  ;;  %v314_v14 = vld [vmem:[#allocation6 + $0x8] sm:$0xff] }
  0x95   :  { %217 = vmatprep.subr.bf16.mxu0 %v13056_v3  ;;  %v313_v10 = vld [vmem:[#allocation6] sm:$0xff]  ;;  %v318_v15 = vld [vmem:[#allocation6 + $0x28] sm:$0xff]  ;;  %260 = vmatprep.subr.bf16.mxu1 %v13063_v8 }
  0x96   :  { %v317_v11 = vld [vmem:[#allocation6 + $0x20] sm:$0xff]  ;;  %v11295_v17 = vcombine.high %v314_v14, %v318_v15  ;;  %v322_v19 = vld [vmem:[#allocation6 + $0x48] sm:$0xff]  ;;  %v11294_v24 = vcombine.low %v314_v14, %v318_v15 }
  0x97   :  { %v11292_v12 = vcombine.low %v313_v10, %v317_v11  ;;  %v11293_v13 = vcombine.high %v313_v10, %v317_v11  ;;  %v321_v16 = vld [vmem:[#allocation6 + $0x40] sm:$0xff]  ;;  %v326_v21 = vld [vmem:[#allocation6 + $0x68] sm:$0xff] }
  0x98   :  { %218 = vmatpush1.bf16.msra.mxu0 %v13058_v4  ;;  %v325_v18 = vld [vmem:[#allocation6 + $0x60] sm:$0xff]  ;;  %261 = vmatpush1.bf16.msra.mxu1 %v13065_v9  ;;  %v11303_v26 = vcombine.high %v322_v19, %v326_v21  ;;  %v330_v28 = vld [vmem:[#allocation6 + $0x88] sm:$0xff]  ;;  %v11302_v32 = vcombine.low %v322_v19, %v326_v21 }
  0x99   :  { %1891 = vmatprep.subr.bf16.mxu0 %v11293_v13  ;;  %v11301_v20 = vcombine.high %v321_v16, %v325_v18  ;;  %v329_v22 = vld [vmem:[#allocation6 + $0x80] sm:$0xff]  ;;  %v11300_v25 = vcombine.low %v321_v16, %v325_v18  ;;  %1977 = vmatprep.subr.bf16.mxu1 %v11295_v17  ;;  %v334_v29 = vld [vmem:[#allocation6 + $0xa8] sm:$0xff] }
  0x9a   :  { %v333_v23 = vld [vmem:[#allocation6 + $0xa0] sm:$0xff]  ;;  %v11311_v34 = vcombine.high %v330_v28, %v334_v29  ;;  %v338_v36 = vld [vmem:[#allocation6 + $0xc8] sm:$0xff]  ;;  %v11310_v40 = vcombine.low %v330_v28, %v334_v29 }
  0x9b   :  { %11290 = vmatmul.mubr.msk.bf16.vlgmr.msra.gmra.mrb[0].mxu0 %vm211_vm0, %v13059_v5  ;;  %v11309_v27 = vcombine.high %v329_v22, %v333_v23  ;;  %v337_v30 = vld [vmem:[#allocation6 + $0xc0] sm:$0xff]  ;;  %11291 = vmatmul.mubr.msk.bf16.vlgmr.msra.gmra.mrb[0].mxu1 %vm211_vm0, %v13059_v5  ;;  %v11308_v33 = vcombine.low %v329_v22, %v333_v23  ;;  %v342_v37 = vld [vmem:[#allocation6 + $0xe8] sm:$0xff] }
  0x9c   :  { %1892 = vmatpush1.bf16.msra.mxu0 %v11292_v12  ;;  %v341_v31 = vld [vmem:[#allocation6 + $0xe0] sm:$0xff]  ;;  %1978 = vmatpush1.bf16.msra.mxu1 %v11294_v24  ;;  %v11319_v42 = vcombine.high %v338_v36, %v342_v37  ;;  %v346_v44 = vld [vmem:[#allocation6 + $0x108] sm:$0xff]  ;;  %v11318_v48 = vcombine.low %v338_v36, %v342_v37 }
  0x9d   :  { %1893 = vmatprep.subr.bf16.mxu0 %v11301_v20  ;;  %1979 = vmatprep.subr.bf16.mxu1 %v11303_v26  ;;  %v11317_v35 = vcombine.high %v337_v30, %v341_v31  ;;  %v345_v38 = vld [vmem:[#allocation6 + $0x100] sm:$0xff]  ;;  %v11316_v41 = vcombine.low %v337_v30, %v341_v31  ;;  %v350_v45 = vld [vmem:[#allocation6 + $0x128] sm:$0xff] }
  0x9e   :  { %v349_v39 = vld [vmem:[#allocation6 + $0x120] sm:$0xff]  ;;  %v11327_v50 = vcombine.high %v346_v44, %v350_v45  ;;  %v354_v52 = vld [vmem:[#allocation6 + $0x148] sm:$0xff]  ;;  %v11326_v56 = vcombine.low %v346_v44, %v350_v45 }
  0x9f   :  { %v11325_v43 = vcombine.high %v345_v38, %v349_v39  ;;  %v353_v46 = vld [vmem:[#allocation6 + $0x140] sm:$0xff]  ;;  %v11324_v49 = vcombine.low %v345_v38, %v349_v39  ;;  %v358_v53 = vld [vmem:[#allocation6 + $0x168] sm:$0xff] }
  0xa0   :  { %1894 = vmatpush1.bf16.msra.mxu0 %v11300_v25  ;;  %1980 = vmatpush1.bf16.msra.mxu1 %v11302_v32  ;;  %v357_v47 = vld [vmem:[#allocation6 + $0x160] sm:$0xff]  ;;  %v362_v58 = vld [vmem:[#allocation6 + $0x188] sm:$0xff]  ;;  %v11335_v62 = vcombine.high %v354_v52, %v358_v53  ;;  %v11334_v0 = vcombine.low %v354_v52, %v358_v53 }
  0xa1   :  { %1895 = vmatprep.subr.bf16.mxu0 %v11309_v27  ;;  %1981 = vmatprep.subr.bf16.mxu1 %v11311_v34  ;;  %v11333_v51 = vcombine.high %v353_v46, %v357_v47  ;;  %v361_v54 = vld [vmem:[#allocation6 + $0x180] sm:$0xff]  ;;  %v11332_v57 = vcombine.low %v353_v46, %v357_v47  ;;  %v366_v59 = vld [vmem:[#allocation6 + $0x1a8] sm:$0xff] }
  0xa2   :  { %v365_v55 = vld [vmem:[#allocation6 + $0x1a0] sm:$0xff]  ;;  %v370_v2 = vld [vmem:[#allocation6 + $0x1c8] sm:$0xff]  ;;  %v11343_v6 = vcombine.high %v362_v58, %v366_v59  ;;  %v11342_v8 = vcombine.low %v362_v58, %v366_v59 }
  0xa3   :  { %v369_v60 = vld [vmem:[#allocation6 + $0x1c0] sm:$0xff]  ;;  %v11341_v63 = vcombine.high %v361_v54, %v365_v55  ;;  %v11340_v1 = vcombine.low %v361_v54, %v365_v55  ;;  %v374_v3 = vld [vmem:[#allocation6 + $0x1e8] sm:$0xff] }
  0xa4   :  { %1896 = vmatpush1.bf16.msra.mxu0 %v11308_v33  ;;  %1982 = vmatpush1.bf16.msra.mxu1 %v11310_v40  ;;  %v373_v61 = vld [vmem:[#allocation6 + $0x1e0] sm:$0xff]  ;;  %v378_v10 = vld [vmem:[#allocation6 + $0x208] sm:$0xff]  ;;  %v11351_v14 = vcombine.high %v370_v2, %v374_v3  ;;  %v11350_v16 = vcombine.low %v370_v2, %v374_v3 }
  0xa5   :  { %1897 = vmatprep.subr.bf16.mxu0 %v11317_v35  ;;  %1983 = vmatprep.subr.bf16.mxu1 %v11319_v42  ;;  %v377_v4 = vld [vmem:[#allocation6 + $0x200] sm:$0xff]  ;;  %v11349_v7 = vcombine.high %v369_v60, %v373_v61  ;;  %v11348_v9 = vcombine.low %v369_v60, %v373_v61  ;;  %v382_v11 = vld [vmem:[#allocation6 + $0x228] sm:$0xff] }
  0xa6   :  { %v381_v5 = vld [vmem:[#allocation6 + $0x220] sm:$0xff]  ;;  %v386_v18 = vld [vmem:[#allocation6 + $0x248] sm:$0xff]  ;;  %v11359_v22 = vcombine.high %v378_v10, %v382_v11  ;;  %v11358_v24 = vcombine.low %v378_v10, %v382_v11 }
  0xa7   :  { %v385_v12 = vld [vmem:[#allocation6 + $0x240] sm:$0xff]  ;;  %v11357_v15 = vcombine.high %v377_v4, %v381_v5  ;;  %v11356_v17 = vcombine.low %v377_v4, %v381_v5  ;;  %v390_v19 = vld [vmem:[#allocation6 + $0x268] sm:$0xff] }
  0xa8   :  { %1898 = vmatpush1.bf16.msra.mxu0 %v11316_v41  ;;  %1984 = vmatpush1.bf16.msra.mxu1 %v11318_v48  ;;  %v389_v13 = vld [vmem:[#allocation6 + $0x260] sm:$0xff]  ;;  %v394_v26 = vld [vmem:[#allocation6 + $0x288] sm:$0xff]  ;;  %v11367_v30 = vcombine.high %v386_v18, %v390_v19  ;;  %v11366_v32 = vcombine.low %v386_v18, %v390_v19  ;;  %v146_v18 = vlaneseq }
  0xa9   :  { %1899 = vmatprep.subr.bf16.mxu0 %v11325_v43  ;;  %1985 = vmatprep.subr.bf16.mxu1 %v11327_v50  ;;  %v393_v20 = vld [vmem:[#allocation6 + $0x280] sm:$0xff]  ;;  %v11365_v23 = vcombine.high %v385_v12, %v389_v13  ;;  %v11364_v25 = vcombine.low %v385_v12, %v389_v13  ;;  %v398_v27 = vld [vmem:[#allocation6 + $0x2a8] sm:$0xff] }
  0xaa   :  { %v397_v21 = vld [vmem:[#allocation6 + $0x2a0] sm:$0xff]  ;;  %v402_v34 = vld [vmem:[#allocation6 + $0x2c8] sm:$0xff]  ;;  %v11375_v38 = vcombine.high %v394_v26, %v398_v27  ;;  %v11374_v40 = vcombine.low %v394_v26, %v398_v27  ;;  %v13559_v19 = vshrl.u32 %v146_v18, 7 }
  0xab   :  { %v401_v28 = vld [vmem:[#allocation6 + $0x2c0] sm:$0xff]  ;;  %v11373_v31 = vcombine.high %v393_v20, %v397_v21  ;;  %v11372_v33 = vcombine.low %v393_v20, %v397_v21  ;;  %v406_v35 = vld [vmem:[#allocation6 + $0x2e8] sm:$0xff]  ;;  %v144_v21 = vld [vmem:[#allocation4] sm:$0xf] }
  0xac   :  { %1900 = vmatpush1.bf16.msra.mxu0 %v11324_v49  ;;  %1986 = vmatpush1.bf16.msra.mxu1 %v11326_v56  ;;  %v405_v29 = vld [vmem:[#allocation6 + $0x2e0] sm:$0xff]  ;;  %v410_v42 = vld [vmem:[#allocation6 + $0x308] sm:$0xff]  ;;  %v11383_v46 = vcombine.high %v402_v34, %v406_v35  ;;  %v11382_v48 = vcombine.low %v402_v34, %v406_v35  ;;  %v13562_v20 = vsub.s32 0, %v13559_v19  ;;  %v13573_v26 = vsub.s32 3, %v13559_v19 }
  0xad   :  { %1901 = vmatprep.subr.bf16.mxu0 %v11333_v51  ;;  %1987 = vmatprep.subr.bf16.mxu1 %v11335_v62  ;;  %v409_v36 = vld [vmem:[#allocation6 + $0x300] sm:$0xff]  ;;  %v11381_v39 = vcombine.high %v401_v28, %v405_v29  ;;  %v11380_v41 = vcombine.low %v401_v28, %v405_v29  ;;  %v414_v43 = vld [vmem:[#allocation6 + $0x328] sm:$0xff] }
  0xae   :  { %v413_v37 = vld [vmem:[#allocation6 + $0x320] sm:$0xff]  ;;  %v418_v50 = vld [vmem:[#allocation6 + $0x348] sm:$0xff]  ;;  %v11391_v52 = vcombine.high %v410_v42, %v414_v43  ;;  %v11390_v54 = vcombine.low %v410_v42, %v414_v43 }
  0xaf   :  { %v417_v44 = vld [vmem:[#allocation6 + $0x340] sm:$0xff]  ;;  %v11389_v47 = vcombine.high %v409_v36, %v413_v37  ;;  %v11388_v49 = vcombine.low %v409_v36, %v413_v37  ;;  %v422_v51 = vld [vmem:[#allocation6 + $0x368] sm:$0xff] }
  0xb0   :  { %1902 = vmatpush1.bf16.msra.mxu0 %v11332_v57  ;;  %1988 = vmatpush1.bf16.msra.mxu1 %v11334_v0  ;;  %v421_v45 = vld [vmem:[#allocation6 + $0x360] sm:$0xff]  ;;  %v11399_v56 = vcombine.high %v418_v50, %v422_v51  ;;  %v11398_v57 = vcombine.low %v418_v50, %v422_v51  ;;  %v426_v60 = vld [vmem:[#allocation6 + $0x388] sm:$0xff] }
  0xb1   :  { %1903 = vmatprep.subr.bf16.mxu0 %v11341_v63  ;;  %1989 = vmatprep.subr.bf16.mxu1 %v11343_v6  ;;  %v11397_v53 = vcombine.high %v417_v44, %v421_v45  ;;  %v11396_v55 = vcombine.low %v417_v44, %v421_v45  ;;  %v425_v58 = vld [vmem:[#allocation6 + $0x380] sm:$0xff]  ;;  %v430_v62 = vld [vmem:[#allocation6 + $0x3a8] sm:$0xff] }
  0xb2   :  { %v429_v59 = vld [vmem:[#allocation6 + $0x3a0] sm:$0xff]  ;;  %v11406_v0 = vcombine.low %v426_v60, %v430_v62  ;;  %v434_v4 = vld [vmem:[#allocation6 + $0x3c8] sm:$0xff] }
  0xb3   :  { %v11405_v61 = vcombine.high %v425_v58, %v429_v59  ;;  %v11404_v63 = vcombine.low %v425_v58, %v429_v59  ;;  %v433_v2 = vld [vmem:[#allocation6 + $0x3c0] sm:$0xff]  ;;  %v438_v6 = vld [vmem:[#allocation6 + $0x3e8] sm:$0xff] }
  0xb4   :  { %1904 = vmatpush1.bf16.msra.mxu0 %v11340_v1  ;;  %1990 = vmatpush1.bf16.msra.mxu1 %v11342_v8  ;;  %v11407_v1 = vcombine.high %v426_v60, %v430_v62  ;;  %v437_v3 = vld [vmem:[#allocation6 + $0x3e0] sm:$0xff]  ;;  %v11414_v8 = vcombine.low %v434_v4, %v438_v6  ;;  %v442_v12 = vld [vmem:[#allocation6 + $0x408] sm:$0xff] }
  0xb5   :  { %1905 = vmatprep.subr.bf16.mxu0 %v11349_v7  ;;  %1991 = vmatprep.subr.bf16.mxu1 %v11351_v14  ;;  %v11413_v5 = vcombine.high %v433_v2, %v437_v3  ;;  %v11412_v7 = vcombine.low %v433_v2, %v437_v3  ;;  %v13555_v10 = vld [vmem:[#allocation6 + $0x400] sm:$0xff]  ;;  %v446_v14 = vld [vmem:[#allocation6 + $0x428] sm:$0xff] }
  0xb6   :  { %v445_v11 = vld [vmem:[#allocation6 + $0x420] sm:$0xff]  ;;  %v458_v62 = vld [vmem:[#allocation6 + $0x488] sm:$0xff] }
  0xb7   :  { %v11421_v13 = vcombine.high %v13555_v10, %v445_v11  ;;  %v453_v45 = vld [vmem:[#allocation6 + $0x460] sm:$0xff]  ;;  %v478_v18 = vld [vmem:[#allocation6 + $0x528] sm:$0xff] }
  0xb8   :  { %1906 = vmatpush1.bf16.msra.mxu0 %v11348_v9  ;;  %1992 = vmatpush1.bf16.msra.mxu1 %v11350_v16  ;;  %v11415_v9 = vcombine.high %v434_v4, %v438_v6  ;;  %v11422_v16 = vcombine.low %v442_v12, %v446_v14  ;;  %v457_v59 = vld [vmem:[#allocation6 + $0x480] sm:$0xff] }
  0xb9   :  { %1907 = vmatprep.subr.bf16.mxu0 %v11357_v15  ;;  %1993 = vmatprep.subr.bf16.mxu1 %v11359_v22  ;;  %v11420_v15 = vcombine.low %v13555_v10, %v445_v11  ;;  %v13565_v22 = vsub.s32 1, %v13559_v19  ;;  %v470_v10 = vld [vmem:[#allocation6 + $0x4e8] sm:$0xff] }
  0xbc   :  { %1908 = vmatpush1.bf16.msra.mxu0 %v11356_v17  ;;  %1994 = vmatpush1.bf16.msra.mxu1 %v11358_v24  ;;  %v11423_v17 = vcombine.high %v442_v12, %v446_v14  ;;  %v13569_v24 = vsub.s32 2, %v13559_v19 }
  0xbd   :  { %1909 = vmatprep.subr.bf16.mxu0 %v11365_v23  ;;  %1995 = vmatprep.subr.bf16.mxu1 %v11367_v30  ;;  %v149_v23 = vrot.slane %v144_v21, %v13562_v20 }
  0xbe   :  { %v157_v30 = vrot.slane %v144_v21, %v13569_v24 }
  0xc0   :  { %1910 = vmatpush1.bf16.msra.mxu0 %v11364_v25  ;;  %1996 = vmatpush1.bf16.msra.mxu1 %v11366_v32  ;;  %v153_v25 = vrot.slane %v144_v21, %v13565_v22 }
  0xc1   :  { %1911 = vmatprep.subr.bf16.mxu0 %v11373_v31  ;;  %1997 = vmatprep.subr.bf16.mxu1 %v11375_v38 }
  0xc4   :  { %1912 = vmatpush1.bf16.msra.mxu0 %v11372_v33  ;;  %1998 = vmatpush1.bf16.msra.mxu1 %v11374_v40  ;;  %v161_v33 = vrot.slane %v144_v21, %v13573_v26  ;;  %v449_v40 = vld [vmem:[#allocation6 + $0x440] sm:$0xff] }
  0xc5   :  { %1913 = vmatprep.subr.bf16.mxu0 %v11381_v39  ;;  %1999 = vmatprep.subr.bf16.mxu1 %v11383_v46  ;;  %v450_v46 = vld [vmem:[#allocation6 + $0x448] sm:$0xff]  ;;  %v11428_v2 = vcombine.low %v449_v40, %v453_v45 }
  0xc8   :  { %1914 = vmatpush1.bf16.msra.mxu0 %v11380_v41  ;;  %2000 = vmatpush1.bf16.msra.mxu1 %v11382_v48 }
  0xc9   :  { %1915 = vmatprep.subr.bf16.mxu0 %v11389_v47  ;;  %2001 = vmatprep.subr.bf16.mxu1 %v11391_v52  ;;  %v454_v47 = vld [vmem:[#allocation6 + $0x468] sm:$0xff] }
  0xca   :  { %v11431_v58 = vcombine.high %v450_v46, %v454_v47  ;;  %v11430_v3 = vcombine.low %v450_v46, %v454_v47  ;;  %v498_v46 = vld [vmem:[#allocation6 + $0x5c8] sm:$0xff] }
  0xcb   :  { %v502_v47 = vld [vmem:[#allocation6 + $0x5e8] sm:$0xff] }
  0xcc   :  { %1916 = vmatpush1.bf16.msra.mxu0 %v11388_v49  ;;  %2002 = vmatpush1.bf16.msra.mxu1 %v11390_v54 }
  0xcd   :  { %1917 = vmatprep.subr.bf16.mxu0 %v11397_v53  ;;  %2003 = vmatprep.subr.bf16.mxu1 %v11399_v56 }
  0xd0   :  { %1918 = vmatpush1.bf16.msra.mxu0 %v11396_v55  ;;  %2004 = vmatpush1.bf16.msra.mxu1 %v11398_v57  ;;  %v11429_v57 = vcombine.high %v449_v40, %v453_v45  ;;  %v501_v45 = vld [vmem:[#allocation6 + $0x5e0] sm:$0xff] }
  0xd1   :  { %1919 = vmatprep.subr.bf16.mxu0 %v11405_v61  ;;  %2005 = vmatprep.subr.bf16.mxu1 %v11407_v1  ;;  %v461_v61 = vld [vmem:[#allocation6 + $0x4a0] sm:$0xff] }
  0xd2   :  { %v11436_v11 = vcombine.low %v457_v59, %v461_v61 }
  0xd4   :  { %1920 = vmatpush1.bf16.msra.mxu0 %v11404_v63  ;;  %2006 = vmatpush1.bf16.msra.mxu1 %v11406_v0  ;;  %v462_v63 = vld [vmem:[#allocation6 + $0x4a8] sm:$0xff] }
  0xd5   :  { %1921 = vmatprep.subr.bf16.mxu0 %v11413_v5  ;;  %2007 = vmatprep.subr.bf16.mxu1 %v11415_v9  ;;  %v11437_v5 = vcombine.high %v457_v59, %v461_v61  ;;  %v11439_v6 = vcombine.high %v458_v62, %v462_v63  ;;  %v466_v9 = vld [vmem:[#allocation6 + $0x4c8] sm:$0xff]  ;;  %v11438_v12 = vcombine.low %v458_v62, %v462_v63  ;;  %v513_v62 = vld [vmem:[#allocation6 + $0x640] sm:$0xff] }
  0xd6   :  { %v11447_v14 = vcombine.high %v466_v9, %v470_v10  ;;  %v11478_v59 = vcombine.low %v498_v46, %v502_v47  ;;  %v517_v63 = vld [vmem:[#allocation6 + $0x660] sm:$0xff] }
  0xd8   :  { %1922 = vmatpush1.bf16.msra.mxu0 %v11412_v7  ;;  %2008 = vmatpush1.bf16.msra.mxu1 %v11414_v8  ;;  %v465_v7 = vld [vmem:[#allocation6 + $0x4c0] sm:$0xff] }
  0xd9   :  { %1934 = vmatprep.subr.bf16.mxu0 %v11421_v13  ;;  %2020 = vmatprep.subr.bf16.mxu1 %v11423_v17  ;;  %v469_v8 = vld [vmem:[#allocation6 + $0x4e0] sm:$0xff]  ;;  %v474_v17 = vld [vmem:[#allocation6 + $0x508] sm:$0xff] }
  0xda   :  { %v11445_v13 = vcombine.high %v465_v7, %v469_v8  ;;  %v11444_v21 = vcombine.low %v465_v7, %v469_v8  ;;  %v521_v8 = vld [vmem:[#allocation6 + $0x680] sm:$0xff] }
 0x16e   :  { %v249_v27 = vpop.f32.mrb[0].mxu0  ;;  %v292_v37 = vpop.f32.mrb[0].mxu1 }
 0x16f   :  { %v250_v28 = vadd.f32 %v249_v27, %v149_v23  ;;  %v251_v29 = vpop.f32.mrb[1].mxu0  ;;  %v293_v41 = vadd.f32 %v292_v37, %v157_v30  ;;  %v294_v42 = vpop.f32.mrb[1].mxu1  ;;  %v11455_v27 = vcombine.high %v474_v17, %v478_v18  ;;  %v493_v37 = vld [vmem:[#allocation6 + $0x5a0] sm:$0xff] }
 0x170   :  { %v252_v31 = vadd.f32 %v251_v29, %v153_v25  ;;  %v253_v32 = vpop.f32.mrb[2].mxu0  ;;  %v295_v48 = vadd.f32 %v294_v42, %v161_v33  ;;  %v296_v49 = vpop.f32.mrb[2].mxu1  ;;  %v485_v29 = vld [vmem:[#allocation6 + $0x560] sm:$0xff] }
 0x171   :  { %v254_v34 = vadd.f32 %v253_v32, %v149_v23  ;;  %v255_v35 = vpop.f32.mrb[3].mxu0  ;;  %v301_v38 = vmax.f32 %v250_v28, 0.0  ;;  %v303_v51 = vmax.f32 %v293_v41, 0.0  ;;  %v297_v52 = vadd.f32 %v296_v49, %v157_v30  ;;  %v298_v53 = vpop.f32.mrb[3].mxu1  ;;  %v481_v28 = vld [vmem:[#allocation6 + $0x540] sm:$0xff]  ;;  %v482_v30 = vld [vmem:[#allocation6 + $0x548] sm:$0xff] }
 0x172   :  { %v256_v36 = vadd.f32 %v255_v35, %v153_v25  ;;  %v302_v43 = vmax.f32 %v252_v31, 0.0  ;;  %v304_v55 = vmax.f32 %v295_v48, 0.0  ;;  %v299_v56 = vadd.f32 %v298_v53, %v161_v33  ;;  %v486_v31 = vld [vmem:[#allocation6 + $0x568] sm:$0xff]  ;;  %v505_v53 = vld [vmem:[#allocation6 + $0x600] sm:$0xff] }
 0x173   :  { %v305_v39 = vmax.f32 %v254_v34, 0.0  ;;  %v307_v60 = vmax.f32 %v297_v52, 0.0  ;;  %v11446_v23 = vcombine.low %v466_v9, %v470_v10  ;;  %v11454_v33 = vcombine.low %v474_v17, %v478_v18  ;;  %v525_v9 = vld [vmem:[#allocation6 + $0x6a0] sm:$0xff]  ;;  %v522_v10 = vld [vmem:[#allocation6 + $0x688] sm:$0xff] }
 0x174   :  { %v306_v44 = vmax.f32 %v256_v36, 0.0  ;;  %v308_v0 = vmax.f32 %v299_v56, 0.0  ;;  %v11461_v34 = vcombine.high %v481_v28, %v485_v29  ;;  %v11463_v35 = vcombine.high %v482_v30, %v486_v31  ;;  %v489_v36 = vld [vmem:[#allocation6 + $0x580] sm:$0xff]  ;;  %v506_v56 = vld [vmem:[#allocation6 + $0x608] sm:$0xff] }
 0x175   :  { %v13577_v50 = vpack.c.bf16 %v305_v39, %v301_v38  ;;  %v13585_v1 = vpack.c.bf16 %v307_v60, %v303_v51  ;;  %v490_v38 = vld [vmem:[#allocation6 + $0x588] sm:$0xff]  ;;  %v11460_v40 = vcombine.low %v481_v28, %v485_v29  ;;  %v11462_v41 = vcombine.low %v482_v30, %v486_v31  ;;  %v533_v17 = vld [vmem:[#allocation6 + $0x6e0] sm:$0xff] }
 0x176   :  { %v13579_v54 = vpack.c.bf16 %v306_v44, %v302_v43  ;;  %v13587_v4 = vpack.c.bf16 %v308_v0, %v304_v55  ;;  %v494_v39 = vld [vmem:[#allocation6 + $0x5a8] sm:$0xff]  ;;  %v11469_v42 = vcombine.high %v489_v36, %v493_v37  ;;  %v497_v44 = vld [vmem:[#allocation6 + $0x5c0] sm:$0xff]  ;;  %v11468_v48 = vcombine.low %v489_v36, %v493_v37 }
 0x177   :  { %v11471_v43 = vcombine.high %v490_v38, %v494_v39  ;;  %v11470_v49 = vcombine.low %v490_v38, %v494_v39  ;;  %v11477_v51 = vcombine.high %v497_v44, %v501_v45  ;;  %v11479_v52 = vcombine.high %v498_v46, %v502_v47  ;;  %v509_v55 = vld [vmem:[#allocation6 + $0x620] sm:$0xff]  ;;  %v514_v0 = vld [vmem:[#allocation6 + $0x648] sm:$0xff] }
 0x178   :  { %1923 = vmatprep.mubr.bf16.mxu0 %v13579_v54  ;;  %2009 = vmatprep.mubr.bf16.mxu1 %v13579_v54  ;;  %v11485_v60 = vcombine.high %v505_v53, %v509_v55  ;;  %v530_v18 = vld [vmem:[#allocation6 + $0x6c8] sm:$0xff]  ;;  %v537_v29 = vld [vmem:[#allocation6 + $0x700] sm:$0xff] }
 0x179   :  { %1924 = vmatmul.mubr.bf16.vlgmr.msra.gmra.mrb[4].mxu0 %v13577_v50  ;;  %2010 = vmatmul.mubr.bf16.vlgmr.msra.gmra.mrb[4].mxu1 %v13577_v50  ;;  %v541_v30 = vld [vmem:[#allocation6 + $0x720] sm:$0xff]  ;;  %v538_v31 = vld [vmem:[#allocation6 + $0x708] sm:$0xff] }
 0x17a   :  { %1935 = vmatpush1.bf16.msra.mxu0 %v11420_v15  ;;  %2021 = vmatpush1.bf16.msra.mxu1 %v11422_v16  ;;  %v473_v15 = vld [vmem:[#allocation6 + $0x500] sm:$0xff]  ;;  %v546_v39 = vld [vmem:[#allocation6 + $0x748] sm:$0xff] }
 0x17b   :  { %1936 = vmatprep.subr.bf16.mxu0 %v11429_v57  ;;  %2022 = vmatprep.subr.bf16.mxu1 %v11431_v58  ;;  %v477_v16 = vld [vmem:[#allocation6 + $0x520] sm:$0xff]  ;;  %v510_v57 = vld [vmem:[#allocation6 + $0x628] sm:$0xff]  ;;  %v11476_v58 = vcombine.low %v497_v44, %v501_v45 }
 0x17c   :  { %1966 = vmatprep.mubr.bf16.mxu0 %v13587_v4  ;;  %2052 = vmatprep.mubr.bf16.mxu1 %v13587_v4  ;;  %v11453_v25 = vcombine.high %v473_v15, %v477_v16  ;;  %v11452_v32 = vcombine.low %v473_v15, %v477_v16  ;;  %v11487_v61 = vcombine.high %v506_v56, %v510_v57  ;;  %v529_v16 = vld [vmem:[#allocation6 + $0x6c0] sm:$0xff]  ;;  %v554_v47 = vld [vmem:[#allocation6 + $0x788] sm:$0xff] }
 0x17d   :  { %v545_v37 = vld [vmem:[#allocation6 + $0x740] sm:$0xff] }
 0x17e   :  { %1937 = vmatpush1.bf16.msra.mxu0 %v11428_v2  ;;  %2023 = vmatpush1.bf16.msra.mxu1 %v11430_v3  ;;  %v518_v2 = vld [vmem:[#allocation6 + $0x668] sm:$0xff]  ;;  %v11484_v3 = vcombine.low %v505_v53, %v509_v55  ;;  %v549_v38 = vld [vmem:[#allocation6 + $0x760] sm:$0xff] }
 0x17f   :  { %1938 = vmatprep.subr.bf16.mxu0 %v11437_v5  ;;  %2024 = vmatprep.subr.bf16.mxu1 %v11439_v6  ;;  %v11486_v5 = vcombine.low %v506_v56, %v510_v57  ;;  %v11493_v6 = vcombine.high %v513_v62, %v517_v63  ;;  %v11495_v7 = vcombine.high %v514_v0, %v518_v2  ;;  %v553_v45 = vld [vmem:[#allocation6 + $0x780] sm:$0xff]  ;;  %v562_v57 = vld [vmem:[#allocation6 + $0x7c8] sm:$0xff] }
 0x180   :  { %v557_v46 = vld [vmem:[#allocation6 + $0x7a0] sm:$0xff] }
 0x181   :  { %v561_v55 = vld [vmem:[#allocation6 + $0x7c0] sm:$0xff] }
 0x182   :  { %1939 = vmatpush1.bf16.msra.mxu0 %v11436_v11  ;;  %2025 = vmatpush1.bf16.msra.mxu1 %v11438_v12  ;;  %v526_v11 = vld [vmem:[#allocation6 + $0x6a8] sm:$0xff]  ;;  %v11492_v12 = vcombine.low %v513_v62, %v517_v63  ;;  %v565_v56 = vld [vmem:[#allocation6 + $0x7e0] sm:$0xff]  ;;  %v315_v63 = vld [vmem:[#allocation6 + $0x10] sm:$0xff] }
 0x183   :  { %1940 = vmatprep.subr.bf16.mxu0 %v11445_v13  ;;  %2026 = vmatprep.subr.bf16.mxu1 %v11447_v14  ;;  %v11494_v13 = vcombine.low %v514_v0, %v518_v2  ;;  %v11501_v14 = vcombine.high %v521_v8, %v525_v9  ;;  %v11503_v15 = vcombine.high %v522_v10, %v526_v11  ;;  %v319_v0 = vld [vmem:[#allocation6 + $0x30] sm:$0xff]  ;;  %v316_v2 = vld [vmem:[#allocation6 + $0x18] sm:$0xff] }
 0x186   :  { %1941 = vmatpush1.bf16.msra.mxu0 %v11444_v21  ;;  %2027 = vmatpush1.bf16.msra.mxu1 %v11446_v23  ;;  %v534_v21 = vld [vmem:[#allocation6 + $0x6e8] sm:$0xff]  ;;  %v11500_v23 = vcombine.low %v521_v8, %v525_v9  ;;  %v323_v9 = vld [vmem:[#allocation6 + $0x50] sm:$0xff] }
 0x187   :  { %1942 = vmatprep.subr.bf16.mxu0 %v11453_v25  ;;  %2028 = vmatprep.subr.bf16.mxu1 %v11455_v27  ;;  %v11502_v25 = vcombine.low %v522_v10, %v526_v11  ;;  %v11509_v27 = vcombine.high %v529_v16, %v533_v17  ;;  %v11511_v28 = vcombine.high %v530_v18, %v534_v21  ;;  %v327_v10 = vld [vmem:[#allocation6 + $0x70] sm:$0xff]  ;;  %v324_v11 = vld [vmem:[#allocation6 + $0x58] sm:$0xff] }
 0x18a   :  { %1943 = vmatpush1.bf16.msra.mxu0 %v11452_v32  ;;  %2029 = vmatpush1.bf16.msra.mxu1 %v11454_v33  ;;  %v542_v32 = vld [vmem:[#allocation6 + $0x728] sm:$0xff]  ;;  %v11508_v33 = vcombine.low %v529_v16, %v533_v17  ;;  %v331_v17 = vld [vmem:[#allocation6 + $0x90] sm:$0xff] }
 0x18b   :  { %1944 = vmatprep.subr.bf16.mxu0 %v11461_v34  ;;  %2030 = vmatprep.subr.bf16.mxu1 %v11463_v35  ;;  %v11510_v34 = vcombine.low %v530_v18, %v534_v21  ;;  %v11517_v35 = vcombine.high %v537_v29, %v541_v30  ;;  %v11519_v36 = vcombine.high %v538_v31, %v542_v32  ;;  %v335_v18 = vld [vmem:[#allocation6 + $0xb0] sm:$0xff]  ;;  %v332_v21 = vld [vmem:[#allocation6 + $0x98] sm:$0xff] }
 0x18e   :  { %1945 = vmatpush1.bf16.msra.mxu0 %v11460_v40  ;;  %2031 = vmatpush1.bf16.msra.mxu1 %v11462_v41  ;;  %v550_v40 = vld [vmem:[#allocation6 + $0x768] sm:$0xff]  ;;  %v11516_v41 = vcombine.low %v537_v29, %v541_v30  ;;  %v339_v30 = vld [vmem:[#allocation6 + $0xd0] sm:$0xff] }
 0x18f   :  { %1946 = vmatprep.subr.bf16.mxu0 %v11469_v42  ;;  %2032 = vmatprep.subr.bf16.mxu1 %v11471_v43  ;;  %v11518_v42 = vcombine.low %v538_v31, %v542_v32  ;;  %v11525_v43 = vcombine.high %v545_v37, %v549_v38  ;;  %v11527_v44 = vcombine.high %v546_v39, %v550_v40  ;;  %v343_v31 = vld [vmem:[#allocation6 + $0xf0] sm:$0xff]  ;;  %v340_v32 = vld [vmem:[#allocation6 + $0xd8] sm:$0xff] }
 0x192   :  { %1947 = vmatpush1.bf16.msra.mxu0 %v11468_v48  ;;  %2033 = vmatpush1.bf16.msra.mxu1 %v11470_v49  ;;  %v558_v48 = vld [vmem:[#allocation6 + $0x7a8] sm:$0xff]  ;;  %v11524_v49 = vcombine.low %v545_v37, %v549_v38  ;;  %v347_v38 = vld [vmem:[#allocation6 + $0x110] sm:$0xff] }
 0x193   :  { %1948 = vmatprep.subr.bf16.mxu0 %v11477_v51  ;;  %2034 = vmatprep.subr.bf16.mxu1 %v11479_v52  ;;  %v11526_v51 = vcombine.low %v546_v39, %v550_v40  ;;  %v11533_v52 = vcombine.high %v553_v45, %v557_v46  ;;  %v11535_v53 = vcombine.high %v554_v47, %v558_v48  ;;  %v351_v39 = vld [vmem:[#allocation6 + $0x130] sm:$0xff]  ;;  %v352_v40 = vld [vmem:[#allocation6 + $0x138] sm:$0xff] }
 0x196   :  { %1949 = vmatpush1.bf16.msra.mxu0 %v11476_v58  ;;  %2035 = vmatpush1.bf16.msra.mxu1 %v11478_v59  ;;  %v566_v58 = vld [vmem:[#allocation6 + $0x7e8] sm:$0xff]  ;;  %v11532_v59 = vcombine.low %v553_v45, %v557_v46  ;;  %v355_v45 = vld [vmem:[#allocation6 + $0x150] sm:$0xff] }
 0x197   :  { %1950 = vmatprep.subr.bf16.mxu0 %v11485_v60  ;;  %2036 = vmatprep.subr.bf16.mxu1 %v11487_v61  ;;  %v11534_v60 = vcombine.low %v554_v47, %v558_v48  ;;  %v11541_v61 = vcombine.high %v561_v55, %v565_v56  ;;  %v11543_v62 = vcombine.high %v562_v57, %v566_v58  ;;  %v359_v46 = vld [vmem:[#allocation6 + $0x170] sm:$0xff]  ;;  %v356_v47 = vld [vmem:[#allocation6 + $0x158] sm:$0xff] }
 0x198   :  { %v360_v48 = vld [vmem:[#allocation6 + $0x178] sm:$0xff] }
 0x19a   :  { %1951 = vmatpush1.bf16.msra.mxu0 %v11484_v3  ;;  %2037 = vmatpush1.bf16.msra.mxu1 %v11486_v5  ;;  %v320_v3 = vld [vmem:[#allocation6 + $0x38] sm:$0xff]  ;;  %v11540_v5 = vcombine.low %v561_v55, %v565_v56  ;;  %v363_v55 = vld [vmem:[#allocation6 + $0x190] sm:$0xff] }
 0x19b   :  { %1952 = vmatprep.subr.bf16.mxu0 %v11493_v6  ;;  %2038 = vmatprep.subr.bf16.mxu1 %v11495_v7  ;;  %v11542_v6 = vcombine.low %v562_v57, %v566_v58  ;;  %v11297_v7 = vcombine.high %v315_v63, %v319_v0  ;;  %v11299_v8 = vcombine.high %v316_v2, %v320_v3  ;;  %v367_v56 = vld [vmem:[#allocation6 + $0x1b0] sm:$0xff]  ;;  %v364_v57 = vld [vmem:[#allocation6 + $0x198] sm:$0xff] }
 0x19c   :  { %v368_v58 = vld [vmem:[#allocation6 + $0x1b8] sm:$0xff] }
 0x19e   :  { %1953 = vmatpush1.bf16.msra.mxu0 %v11492_v12  ;;  %2039 = vmatpush1.bf16.msra.mxu1 %v11494_v13  ;;  %v328_v12 = vld [vmem:[#allocation6 + $0x78] sm:$0xff]  ;;  %v11296_v13 = vcombine.low %v315_v63, %v319_v0  ;;  %v371_v63 = vld [vmem:[#allocation6 + $0x1d0] sm:$0xff] }
 0x19f   :  { %1954 = vmatprep.subr.bf16.mxu0 %v11501_v14  ;;  %2040 = vmatprep.subr.bf16.mxu1 %v11503_v15  ;;  %v11298_v14 = vcombine.low %v316_v2, %v320_v3  ;;  %v11305_v15 = vcombine.high %v323_v9, %v327_v10  ;;  %v11307_v16 = vcombine.high %v324_v11, %v328_v12  ;;  %v375_v0 = vld [vmem:[#allocation6 + $0x1f0] sm:$0xff]  ;;  %v372_v2 = vld [vmem:[#allocation6 + $0x1d8] sm:$0xff] }
 0x1a0   :  { %v376_v3 = vld [vmem:[#allocation6 + $0x1f8] sm:$0xff] }
 0x1a2   :  { %1955 = vmatpush1.bf16.msra.mxu0 %v11500_v23  ;;  %2041 = vmatpush1.bf16.msra.mxu1 %v11502_v25  ;;  %v336_v23 = vld [vmem:[#allocation6 + $0xb8] sm:$0xff]  ;;  %v11304_v25 = vcombine.low %v323_v9, %v327_v10  ;;  %v379_v9 = vld [vmem:[#allocation6 + $0x210] sm:$0xff] }
 0x1a3   :  { %1956 = vmatprep.subr.bf16.mxu0 %v11509_v27  ;;  %2042 = vmatprep.subr.bf16.mxu1 %v11511_v28  ;;  %v11306_v27 = vcombine.low %v324_v11, %v328_v12  ;;  %v11313_v28 = vcombine.high %v331_v17, %v335_v18  ;;  %v11315_v29 = vcombine.high %v332_v21, %v336_v23  ;;  %v383_v10 = vld [vmem:[#allocation6 + $0x230] sm:$0xff]  ;;  %v380_v11 = vld [vmem:[#allocation6 + $0x218] sm:$0xff] }
 0x1a4   :  { %v384_v12 = vld [vmem:[#allocation6 + $0x238] sm:$0xff] }
 0x1a6   :  { %1957 = vmatpush1.bf16.msra.mxu0 %v11508_v33  ;;  %2043 = vmatpush1.bf16.msra.mxu1 %v11510_v34  ;;  %v344_v33 = vld [vmem:[#allocation6 + $0xf8] sm:$0xff]  ;;  %v11312_v34 = vcombine.low %v331_v17, %v335_v18  ;;  %v387_v17 = vld [vmem:[#allocation6 + $0x250] sm:$0xff] }
 0x1a7   :  { %1958 = vmatprep.subr.bf16.mxu0 %v11517_v35  ;;  %2044 = vmatprep.subr.bf16.mxu1 %v11519_v36  ;;  %v11314_v35 = vcombine.low %v332_v21, %v336_v23  ;;  %v11321_v36 = vcombine.high %v339_v30, %v343_v31  ;;  %v11323_v37 = vcombine.high %v340_v32, %v344_v33  ;;  %v391_v18 = vld [vmem:[#allocation6 + $0x270] sm:$0xff]  ;;  %v388_v21 = vld [vmem:[#allocation6 + $0x258] sm:$0xff] }
 0x1a8   :  { %v392_v23 = vld [vmem:[#allocation6 + $0x278] sm:$0xff] }
 0x1aa   :  { %1959 = vmatpush1.bf16.msra.mxu0 %v11516_v41  ;;  %2045 = vmatpush1.bf16.msra.mxu1 %v11518_v42  ;;  %v11320_v41 = vcombine.low %v339_v30, %v343_v31  ;;  %v11322_v42 = vcombine.low %v340_v32, %v344_v33  ;;  %v395_v30 = vld [vmem:[#allocation6 + $0x290] sm:$0xff]  ;;  %v396_v32 = vld [vmem:[#allocation6 + $0x298] sm:$0xff] }
 0x1ab   :  { %1960 = vmatprep.subr.bf16.mxu0 %v11525_v43  ;;  %2046 = vmatprep.subr.bf16.mxu1 %v11527_v44  ;;  %v11329_v43 = vcombine.high %v347_v38, %v351_v39  ;;  %v399_v31 = vld [vmem:[#allocation6 + $0x2b0] sm:$0xff]  ;;  %v400_v33 = vld [vmem:[#allocation6 + $0x2b8] sm:$0xff] }
 0x1ae   :  { %1961 = vmatpush1.bf16.msra.mxu0 %v11524_v49  ;;  %2047 = vmatpush1.bf16.msra.mxu1 %v11526_v51  ;;  %v11328_v49 = vcombine.low %v347_v38, %v351_v39  ;;  %v403_v38 = vld [vmem:[#allocation6 + $0x2d0] sm:$0xff] }
 0x1af   :  { %1962 = vmatprep.subr.bf16.mxu0 %v11533_v52  ;;  %2048 = vmatprep.subr.bf16.mxu1 %v11535_v53  ;;  %v11337_v52 = vcombine.high %v355_v45, %v359_v46  ;;  %v11339_v53 = vcombine.high %v356_v47, %v360_v48  ;;  %v407_v39 = vld [vmem:[#allocation6 + $0x2f0] sm:$0xff] }
 0x1b2   :  { %1963 = vmatpush1.bf16.msra.mxu0 %v11532_v59  ;;  %2049 = vmatpush1.bf16.msra.mxu1 %v11534_v60  ;;  %v11336_v59 = vcombine.low %v355_v45, %v359_v46  ;;  %v11338_v60 = vcombine.low %v356_v47, %v360_v48  ;;  %v411_v45 = vld [vmem:[#allocation6 + $0x310] sm:$0xff]  ;;  %v412_v47 = vld [vmem:[#allocation6 + $0x318] sm:$0xff] }
 0x1b3   :  { %1964 = vmatprep.subr.bf16.mxu0 %v11541_v61  ;;  %2050 = vmatprep.subr.bf16.mxu1 %v11543_v62  ;;  %v11345_v61 = vcombine.high %v363_v55, %v367_v56  ;;  %v11347_v62 = vcombine.high %v364_v57, %v368_v58  ;;  %v415_v46 = vld [vmem:[#allocation6 + $0x330] sm:$0xff]  ;;  %v416_v48 = vld [vmem:[#allocation6 + $0x338] sm:$0xff] }
 0x1b6   :  { %1965 = vmatpush1.bf16.msra.mxu0 %v11540_v5  ;;  %2051 = vmatpush1.bf16.msra.mxu1 %v11542_v6  ;;  %v11344_v5 = vcombine.low %v363_v55, %v367_v56  ;;  %v11346_v6 = vcombine.low %v364_v57, %v368_v58  ;;  %v419_v55 = vld [vmem:[#allocation6 + $0x350] sm:$0xff]  ;;  %v420_v57 = vld [vmem:[#allocation6 + $0x358] sm:$0xff] }
 0x1b7   :  { %2063 = vmatprep.subr.bf16.mxu0 %v11297_v7  ;;  %2149 = vmatprep.subr.bf16.mxu1 %v11299_v8  ;;  %v11353_v7 = vcombine.high %v371_v63, %v375_v0  ;;  %v11355_v8 = vcombine.high %v372_v2, %v376_v3  ;;  %v423_v56 = vld [vmem:[#allocation6 + $0x370] sm:$0xff]  ;;  %v424_v58 = vld [vmem:[#allocation6 + $0x378] sm:$0xff] }
 0x1b9   :  { %1967 = vmatmul.mubr.bf16.vlgmr.msra.gmra.mrb[4].mxu0 %v13585_v1  ;;  %2053 = vmatmul.mubr.bf16.vlgmr.msra.gmra.mrb[4].mxu1 %v13585_v1 }
 0x1ba   :  { %2064 = vmatpush1.bf16.msra.mxu0 %v11296_v13  ;;  %2095 = vmatprep.mubr.bf16.mxu0 %v13579_v54  ;;  %v11352_v13 = vcombine.low %v371_v63, %v375_v0  ;;  %v427_v63 = vld [vmem:[#allocation6 + $0x390] sm:$0xff] }
 0x1bb   :  { %2150 = vmatpush1.bf16.msra.mxu1 %v11298_v14  ;;  %2181 = vmatprep.mubr.bf16.mxu1 %v13579_v54  ;;  %v348_v54 = vld [vmem:[#allocation6 + $0x118] sm:$0xff]  ;;  %v11354_v14 = vcombine.low %v372_v2, %v376_v3  ;;  %v431_v0 = vld [vmem:[#allocation6 + $0x3b0] sm:$0xff] }
 0x1bc   :  { %2065 = vmatprep.subr.bf16.mxu0 %v11305_v15  ;;  %2151 = vmatprep.subr.bf16.mxu1 %v11307_v16  ;;  %v11331_v44 = vcombine.high %v348_v54, %v352_v40  ;;  %v11330_v51 = vcombine.low %v348_v54, %v352_v40  ;;  %v11361_v15 = vcombine.high %v379_v9, %v383_v10  ;;  %v404_v54 = vld [vmem:[#allocation6 + $0x2d8] sm:$0xff] }
 0x1bd   :  { %v11363_v16 = vcombine.high %v380_v11, %v384_v12  ;;  %v408_v40 = vld [vmem:[#allocation6 + $0x2f8] sm:$0xff] }
 0x1be   :  { %2066 = vmatpush1.bf16.msra.mxu0 %v11304_v25  ;;  %v11360_v25 = vcombine.low %v379_v9, %v383_v10  ;;  %v428_v2 = vld [vmem:[#allocation6 + $0x398] sm:$0xff]  ;;  %v435_v9 = vld [vmem:[#allocation6 + $0x3d0] sm:$0xff] }
 0x1bf   :  { %2152 = vmatpush1.bf16.msra.mxu1 %v11306_v27  ;;  %2067 = vmatprep.subr.bf16.mxu0 %v11313_v28  ;;  %v11362_v27 = vcombine.low %v380_v11, %v384_v12  ;;  %v11369_v28 = vcombine.high %v387_v17, %v391_v18  ;;  %v432_v3 = vld [vmem:[#allocation6 + $0x3b8] sm:$0xff]  ;;  %v439_v10 = vld [vmem:[#allocation6 + $0x3f0] sm:$0xff] }
 0x1c0   :  { %2153 = vmatprep.subr.bf16.mxu1 %v11315_v29  ;;  %v11371_v29 = vcombine.high %v388_v21, %v392_v23  ;;  %v436_v11 = vld [vmem:[#allocation6 + $0x3d8] sm:$0xff] }
 0x1c1   :  { %v440_v12 = vld [vmem:[#allocation6 + $0x3f8] sm:$0xff] }
 0x1c2   :  { %2068 = vmatpush1.bf16.msra.mxu0 %v11312_v34  ;;  %v11368_v34 = vcombine.low %v387_v17, %v391_v18  ;;  %v443_v17 = vld [vmem:[#allocation6 + $0x410] sm:$0xff] }
 0x1c3   :  { %2154 = vmatpush1.bf16.msra.mxu1 %v11314_v35  ;;  %2069 = vmatprep.subr.bf16.mxu0 %v11321_v36  ;;  %v11370_v35 = vcombine.low %v388_v21, %v392_v23  ;;  %v11377_v36 = vcombine.high %v395_v30, %v399_v31  ;;  %v447_v18 = vld [vmem:[#allocation6 + $0x430] sm:$0xff]  ;;  %v444_v21 = vld [vmem:[#allocation6 + $0x418] sm:$0xff] }
 0x1c4   :  { %2155 = vmatprep.subr.bf16.mxu1 %v11323_v37  ;;  %v11379_v37 = vcombine.high %v396_v32, %v400_v33  ;;  %v448_v23 = vld [vmem:[#allocation6 + $0x438] sm:$0xff] }
 0x1c6   :  { %2070 = vmatpush1.bf16.msra.mxu0 %v11320_v41  ;;  %v11376_v41 = vcombine.low %v395_v30, %v399_v31  ;;  %v451_v30 = vld [vmem:[#allocation6 + $0x450] sm:$0xff] }
 0x1c7   :  { %2156 = vmatpush1.bf16.msra.mxu1 %v11322_v42  ;;  %2071 = vmatprep.subr.bf16.mxu0 %v11329_v43  ;;  %v11378_v42 = vcombine.low %v396_v32, %v400_v33  ;;  %v11385_v43 = vcombine.high %v403_v38, %v407_v39  ;;  %v455_v31 = vld [vmem:[#allocation6 + $0x470] sm:$0xff]  ;;  %v11424_v32 = vcombine.low %v443_v17, %v447_v18  ;;  %v452_v33 = vld [vmem:[#allocation6 + $0x458] sm:$0xff] }
 0x1c8   :  { %2157 = vmatprep.subr.bf16.mxu1 %v11331_v44  ;;  %v11387_v44 = vcombine.high %v404_v54, %v408_v40 }
 0x1ca   :  { %2072 = vmatpush1.bf16.msra.mxu0 %v11328_v49  ;;  %v11384_v49 = vcombine.low %v403_v38, %v407_v39  ;;  %v463_v38 = vld [vmem:[#allocation6 + $0x4b0] sm:$0xff] }
 0x1cb   :  { %2158 = vmatpush1.bf16.msra.mxu1 %v11330_v51  ;;  %2073 = vmatprep.subr.bf16.mxu0 %v11337_v52  ;;  %v11386_v51 = vcombine.low %v404_v54, %v408_v40  ;;  %v11393_v52 = vcombine.high %v411_v45, %v415_v46  ;;  %v460_v54 = vld [vmem:[#allocation6 + $0x498] sm:$0xff] }
 0x1cc   :  { %2159 = vmatprep.subr.bf16.mxu1 %v11339_v53  ;;  %v11395_v53 = vcombine.high %v412_v47, %v416_v48  ;;  %v464_v40 = vld [vmem:[#allocation6 + $0x4b8] sm:$0xff] }
 0x1ce   :  { %2074 = vmatpush1.bf16.msra.mxu0 %v11336_v59  ;;  %v11392_v59 = vcombine.low %v411_v45, %v415_v46  ;;  %v467_v45 = vld [vmem:[#allocation6 + $0x4d0] sm:$0xff] }
 0x1cf   :  { %2160 = vmatpush1.bf16.msra.mxu1 %v11338_v60  ;;  %2075 = vmatprep.subr.bf16.mxu0 %v11345_v61  ;;  %v11394_v60 = vcombine.low %v412_v47, %v416_v48  ;;  %v11401_v61 = vcombine.high %v419_v55, %v423_v56  ;;  %v471_v46 = vld [vmem:[#allocation6 + $0x4f0] sm:$0xff]  ;;  %v468_v47 = vld [vmem:[#allocation6 + $0x4d8] sm:$0xff] }
 0x1d0   :  { %2161 = vmatprep.subr.bf16.mxu1 %v11347_v62  ;;  %v11403_v62 = vcombine.high %v420_v57, %v424_v58  ;;  %v472_v48 = vld [vmem:[#allocation6 + $0x4f8] sm:$0xff] }
 0x1d2   :  { %2076 = vmatpush1.bf16.msra.mxu0 %v11344_v5  ;;  %v11400_v5 = vcombine.low %v419_v55, %v423_v56  ;;  %v479_v55 = vld [vmem:[#allocation6 + $0x530] sm:$0xff]  ;;  %v476_v56 = vld [vmem:[#allocation6 + $0x518] sm:$0xff] }
 0x1d3   :  { %2162 = vmatpush1.bf16.msra.mxu1 %v11346_v6  ;;  %2077 = vmatprep.subr.bf16.mxu0 %v11353_v7  ;;  %v11402_v6 = vcombine.low %v420_v57, %v424_v58  ;;  %v11409_v7 = vcombine.high %v427_v63, %v431_v0  ;;  %v480_v57 = vld [vmem:[#allocation6 + $0x538] sm:$0xff]  ;;  %v11450_v58 = vcombine.low %v468_v47, %v472_v48 }
 0x1d4   :  { %2163 = vmatprep.subr.bf16.mxu1 %v11355_v8  ;;  %v11411_v8 = vcombine.high %v428_v2, %v432_v3 }
 0x1d6   :  { %2078 = vmatpush1.bf16.msra.mxu0 %v11352_v13  ;;  %v11408_v13 = vcombine.low %v427_v63, %v431_v0  ;;  %v484_v63 = vld [vmem:[#allocation6 + $0x558] sm:$0xff] }
 0x1d7   :  { %2164 = vmatpush1.bf16.msra.mxu1 %v11354_v14  ;;  %2079 = vmatprep.subr.bf16.mxu0 %v11361_v15  ;;  %v11410_v14 = vcombine.low %v428_v2, %v432_v3  ;;  %v11417_v15 = vcombine.high %v435_v9, %v439_v10  ;;  %v488_v0 = vld [vmem:[#allocation6 + $0x578] sm:$0xff]  ;;  %v11458_v3 = vcombine.low %v476_v56, %v480_v57 }
 0x1d8   :  { %2165 = vmatprep.subr.bf16.mxu1 %v11363_v16  ;;  %v11419_v16 = vcombine.high %v436_v11, %v440_v12 }
 0x1da   :  { %2080 = vmatpush1.bf16.msra.mxu0 %v11360_v25  ;;  %v11416_v25 = vcombine.low %v435_v9, %v439_v10  ;;  %v492_v9 = vld [vmem:[#allocation6 + $0x598] sm:$0xff] }
 0x1db   :  { %2166 = vmatpush1.bf16.msra.mxu1 %v11362_v27  ;;  %2081 = vmatprep.subr.bf16.mxu0 %v11369_v28  ;;  %v11418_v27 = vcombine.low %v436_v11, %v440_v12  ;;  %v11425_v28 = vcombine.high %v443_v17, %v447_v18  ;;  %v496_v10 = vld [vmem:[#allocation6 + $0x5b8] sm:$0xff]  ;;  %v11466_v12 = vcombine.low %v484_v63, %v488_v0 }
 0x1dc   :  { %2167 = vmatprep.subr.bf16.mxu1 %v11371_v29  ;;  %v11427_v29 = vcombine.high %v444_v21, %v448_v23  ;;  %v500_v17 = vld [vmem:[#allocation6 + $0x5d8] sm:$0xff] }
 0x1dd   :  { %v504_v18 = vld [vmem:[#allocation6 + $0x5f8] sm:$0xff] }
 0x1de   :  { %2082 = vmatpush1.bf16.msra.mxu0 %v11368_v34  ;;  %v456_v34 = vld [vmem:[#allocation6 + $0x478] sm:$0xff] }
 0x1df   :  { %2168 = vmatpush1.bf16.msra.mxu1 %v11370_v35  ;;  %2083 = vmatprep.subr.bf16.mxu0 %v11377_v36  ;;  %v11426_v35 = vcombine.low %v444_v21, %v448_v23  ;;  %v11433_v36 = vcombine.high %v451_v30, %v455_v31  ;;  %v11435_v39 = vcombine.high %v452_v33, %v456_v34 }
 0x1e0   :  { %2169 = vmatprep.subr.bf16.mxu1 %v11379_v37  ;;  %v459_v37 = vld [vmem:[#allocation6 + $0x490] sm:$0xff]  ;;  %v11474_v23 = vcombine.low %v492_v9, %v496_v10 }
 0x1e2   :  { %2084 = vmatpush1.bf16.msra.mxu0 %v11376_v41  ;;  %v11432_v41 = vcombine.low %v451_v30, %v455_v31  ;;  %v508_v30 = vld [vmem:[#allocation6 + $0x618] sm:$0xff] }
 0x1e3   :  { %2170 = vmatpush1.bf16.msra.mxu1 %v11378_v42  ;;  %2085 = vmatprep.subr.bf16.mxu0 %v11385_v43  ;;  %v11434_v42 = vcombine.low %v452_v33, %v456_v34  ;;  %v11441_v43 = vcombine.high %v459_v37, %v463_v38  ;;  %v512_v31 = vld [vmem:[#allocation6 + $0x638] sm:$0xff]  ;;  %v11482_v33 = vcombine.low %v500_v17, %v504_v18 }
 0x1e4   :  { %2171 = vmatprep.subr.bf16.mxu1 %v11387_v44  ;;  %v11443_v44 = vcombine.high %v460_v54, %v464_v40 }
 0x1e6   :  { %2086 = vmatpush1.bf16.msra.mxu0 %v11384_v49  ;;  %v11440_v49 = vcombine.low %v459_v37, %v463_v38  ;;  %v519_v37 = vld [vmem:[#allocation6 + $0x670] sm:$0xff]  ;;  %v516_v38 = vld [vmem:[#allocation6 + $0x658] sm:$0xff] }
 0x1e7   :  { %2172 = vmatpush1.bf16.msra.mxu1 %v11386_v51  ;;  %2087 = vmatprep.subr.bf16.mxu0 %v11393_v52  ;;  %v11449_v51 = vcombine.high %v467_v45, %v471_v46  ;;  %v11451_v52 = vcombine.high %v468_v47, %v472_v48 }
 0x1e8   :  { %2173 = vmatprep.subr.bf16.mxu1 %v11395_v53  ;;  %v475_v53 = vld [vmem:[#allocation6 + $0x510] sm:$0xff] }
 0x1e9   :  { %v11456_v2 = vcombine.low %v475_v53, %v479_v55 }
 0x1ea   :  { %2088 = vmatpush1.bf16.msra.mxu0 %v11392_v59  ;;  %v11457_v59 = vcombine.high %v475_v53, %v479_v55  ;;  %v532_v53 = vld [vmem:[#allocation6 + $0x6d8] sm:$0xff] }
 0x1eb   :  { %2174 = vmatpush1.bf16.msra.mxu1 %v11394_v60  ;;  %2089 = vmatprep.subr.bf16.mxu0 %v11401_v61  ;;  %v11459_v60 = vcombine.high %v476_v56, %v480_v57  ;;  %v483_v61 = vld [vmem:[#allocation6 + $0x550] sm:$0xff]  ;;  %v536_v55 = vld [vmem:[#allocation6 + $0x6f8] sm:$0xff] }
 0x1ec   :  { %2175 = vmatprep.subr.bf16.mxu1 %v11403_v62  ;;  %v487_v62 = vld [vmem:[#allocation6 + $0x570] sm:$0xff] }
 0x1ed   :  { %v11464_v11 = vcombine.low %v483_v61, %v487_v62 }
 0x1ee   :  { %2090 = vmatpush1.bf16.msra.mxu0 %v11400_v5  ;;  %v11465_v5 = vcombine.high %v483_v61, %v487_v62  ;;  %v540_v61 = vld [vmem:[#allocation6 + $0x718] sm:$0xff] }
 0x1ef   :  { %2176 = vmatpush1.bf16.msra.mxu1 %v11402_v6  ;;  %2091 = vmatprep.subr.bf16.mxu0 %v11409_v7  ;;  %v11467_v6 = vcombine.high %v484_v63, %v488_v0  ;;  %v491_v7 = vld [vmem:[#allocation6 + $0x590] sm:$0xff]  ;;  %v544_v62 = vld [vmem:[#allocation6 + $0x738] sm:$0xff]  ;;  %v11514_v0 = vcombine.low %v532_v53, %v536_v55 }
 0x1f0   :  { %2177 = vmatprep.subr.bf16.mxu1 %v11411_v8  ;;  %v495_v8 = vld [vmem:[#allocation6 + $0x5b0] sm:$0xff] }
 0x1f1   :  { %v11472_v21 = vcombine.low %v491_v7, %v495_v8 }
 0x1f2   :  { %2092 = vmatpush1.bf16.msra.mxu0 %v11408_v13  ;;  %v11473_v13 = vcombine.high %v491_v7, %v495_v8  ;;  %v548_v7 = vld [vmem:[#allocation6 + $0x758] sm:$0xff] }
 0x1f3   :  { %2178 = vmatpush1.bf16.msra.mxu1 %v11410_v14  ;;  %2093 = vmatprep.subr.bf16.mxu0 %v11417_v15  ;;  %v11475_v14 = vcombine.high %v492_v9, %v496_v10  ;;  %v499_v15 = vld [vmem:[#allocation6 + $0x5d0] sm:$0xff]  ;;  %v552_v8 = vld [vmem:[#allocation6 + $0x778] sm:$0xff]  ;;  %v11522_v10 = vcombine.low %v540_v61, %v544_v62 }
 0x1f4   :  { %2179 = vmatprep.subr.bf16.mxu1 %v11419_v16  ;;  %v503_v16 = vld [vmem:[#allocation6 + $0x5f0] sm:$0xff] }
 0x1f6   :  { %2094 = vmatpush1.bf16.msra.mxu0 %v11416_v25  ;;  %v11481_v25 = vcombine.high %v499_v15, %v503_v16 }
 0x1f7   :  { %2180 = vmatpush1.bf16.msra.mxu1 %v11418_v27  ;;  %2106 = vmatprep.subr.bf16.mxu0 %v11425_v28  ;;  %v11483_v27 = vcombine.high %v500_v17, %v504_v18  ;;  %v507_v28 = vld [vmem:[#allocation6 + $0x610] sm:$0xff]  ;;  %v11530_v18 = vcombine.low %v548_v7, %v552_v8 }
 0x1f8   :  { %2192 = vmatprep.subr.bf16.mxu1 %v11427_v29  ;;  %v511_v29 = vld [vmem:[#allocation6 + $0x630] sm:$0xff] }
 0x1f9   :  { %2096 = vmatmul.mubr.bf16.vlgmr.msra.gmra.mrb[8].mxu0 %v13577_v50  ;;  %v11489_v34 = vcombine.high %v507_v28, %v511_v29 }
 0x1fa   :  { %2182 = vmatmul.mubr.bf16.vlgmr.msra.gmra.mrb[8].mxu1 %v13577_v50  ;;  %2107 = vmatpush1.bf16.msra.mxu0 %v11424_v32  ;;  %v11442_v50 = vcombine.low %v460_v54, %v464_v40  ;;  %v11480_v32 = vcombine.low %v499_v15, %v503_v16  ;;  %v11488_v54 = vcombine.low %v507_v28, %v511_v29  ;;  %v556_v15 = vld [vmem:[#allocation6 + $0x798] sm:$0xff] }
 0x1fb   :  { %2138 = vmatprep.mubr.bf16.mxu0 %v13587_v4  ;;  %2193 = vmatpush1.bf16.msra.mxu1 %v11426_v35  ;;  %v11491_v35 = vcombine.high %v508_v30, %v512_v31  ;;  %v11490_v40 = vcombine.low %v508_v30, %v512_v31  ;;  %v560_v16 = vld [vmem:[#allocation6 + $0x7b8] sm:$0xff] }
 0x1fc   :  { %2224 = vmatprep.mubr.bf16.mxu1 %v13587_v4  ;;  %2108 = vmatprep.subr.bf16.mxu0 %v11433_v36  ;;  %v11448_v4 = vcombine.low %v467_v45, %v471_v46  ;;  %v515_v36 = vld [vmem:[#allocation6 + $0x650] sm:$0xff]  ;;  %v524_v45 = vld [vmem:[#allocation6 + $0x698] sm:$0xff]  ;;  %v11538_v31 = vcombine.low %v556_v15, %v560_v16 }
 0x1fd   :  { %2194 = vmatprep.subr.bf16.mxu1 %v11435_v39  ;;  %v520_v39 = vld [vmem:[#allocation6 + $0x678] sm:$0xff]  ;;  %v11496_v47 = vcombine.low %v515_v36, %v519_v37 }
 0x1fe   :  { %2109 = vmatpush1.bf16.msra.mxu0 %v11432_v41  ;;  %v11497_v41 = vcombine.high %v515_v36, %v519_v37  ;;  %v528_v46 = vld [vmem:[#allocation6 + $0x6b8] sm:$0xff]  ;;  %v11498_v48 = vcombine.low %v516_v38, %v520_v39  ;;  %v2260_v36 = vld [vmem:[#allocation9 + $0x8] sm:$0xff] }
 0x1ff   :  { %2195 = vmatpush1.bf16.msra.mxu1 %v11434_v42  ;;  %2110 = vmatprep.subr.bf16.mxu0 %v11441_v43  ;;  %v11499_v42 = vcombine.high %v516_v38, %v520_v39  ;;  %v523_v43 = vld [vmem:[#allocation6 + $0x690] sm:$0xff]  ;;  %v11506_v57 = vcombine.low %v524_v45, %v528_v46  ;;  %v564_v28 = vld [vmem:[#allocation6 + $0x7d8] sm:$0xff] }
 0x200   :  { %2196 = vmatprep.subr.bf16.mxu1 %v11443_v44  ;;  %v527_v44 = vld [vmem:[#allocation6 + $0x6b0] sm:$0xff]  ;;  %v568_v29 = vld [vmem:[#allocation6 + $0x7f8] sm:$0xff] }
 0x201   :  { %v11504_v56 = vcombine.low %v523_v43, %v527_v44  ;;  %v2268_v37 = vld [vmem:[#allocation9 + $0x48] sm:$0xff]  ;;  %v11546_v39 = vcombine.low %v564_v28, %v568_v29 }
 0x202   :  { %2111 = vmatpush1.bf16.msra.mxu0 %v11440_v49  ;;  %v11505_v49 = vcombine.high %v523_v43, %v527_v44  ;;  %v2276_v43 = vld [vmem:[#allocation9 + $0x88] sm:$0xff] }
 0x203   :  { %2197 = vmatpush1.bf16.msra.mxu1 %v11442_v50  ;;  %2112 = vmatprep.subr.bf16.mxu0 %v11449_v51  ;;  %v11507_v50 = vcombine.high %v524_v45, %v528_v46  ;;  %v531_v51 = vld [vmem:[#allocation6 + $0x6d0] sm:$0xff]  ;;  %v11550_v46 = vcombine.low %v2260_v36, %v2268_v37 }
 0x204   :  { %2198 = vmatprep.subr.bf16.mxu1 %v11451_v52  ;;  %v535_v52 = vld [vmem:[#allocation6 + $0x6f0] sm:$0xff] }
 0x205   :  { %v11512_v63 = vcombine.low %v531_v51, %v535_v52  ;;  %v2284_v44 = vld [vmem:[#allocation9 + $0xc8] sm:$0xff] }
 0x206   :  { %2113 = vmatpush1.bf16.msra.mxu0 %v11448_v4  ;;  %v11513_v4 = vcombine.high %v531_v51, %v535_v52  ;;  %v2292_v51 = vld [vmem:[#allocation9 + $0x108] sm:$0xff] }
 0x207   :  { %2199 = vmatpush1.bf16.msra.mxu1 %v11450_v58  ;;  %2114 = vmatprep.subr.bf16.mxu0 %v11457_v59  ;;  %v11515_v58 = vcombine.high %v532_v53, %v536_v55  ;;  %v539_v59 = vld [vmem:[#allocation6 + $0x710] sm:$0xff]  ;;  %v11566_v55 = vcombine.low %v2276_v43, %v2284_v44 }
 0x208   :  { %2200 = vmatprep.subr.bf16.mxu1 %v11459_v60  ;;  %v543_v60 = vld [vmem:[#allocation6 + $0x730] sm:$0xff] }
 0x209   :  { %v11520_v9 = vcombine.low %v539_v59, %v543_v60  ;;  %v2300_v52 = vld [vmem:[#allocation9 + $0x148] sm:$0xff] }
 0x20a   :  { %2115 = vmatpush1.bf16.msra.mxu0 %v11456_v2  ;;  %v11521_v2 = vcombine.high %v539_v59, %v543_v60  ;;  %v2308_v59 = vld [vmem:[#allocation9 + $0x188] sm:$0xff] }
 0x20b   :  { %2201 = vmatpush1.bf16.msra.mxu1 %v11458_v3  ;;  %2116 = vmatprep.subr.bf16.mxu0 %v11465_v5  ;;  %v11523_v3 = vcombine.high %v540_v61, %v544_v62  ;;  %v547_v5 = vld [vmem:[#allocation6 + $0x750] sm:$0xff]  ;;  %v11582_v62 = vcombine.low %v2292_v51, %v2300_v52 }
 0x20c   :  { %2202 = vmatprep.subr.bf16.mxu1 %v11467_v6  ;;  %v551_v6 = vld [vmem:[#allocation6 + $0x770] sm:$0xff] }
 0x20d   :  { %v11528_v17 = vcombine.low %v547_v5, %v551_v6  ;;  %v2316_v60 = vld [vmem:[#allocation9 + $0x1c8] sm:$0xff] }
 0x20e   :  { %2117 = vmatpush1.bf16.msra.mxu0 %v11464_v11  ;;  %v11529_v11 = vcombine.high %v547_v5, %v551_v6  ;;  %v2332_v5 = vld [vmem:[#allocation9 + $0x248] sm:$0xff] }
 0x20f   :  { %2203 = vmatpush1.bf16.msra.mxu1 %v11466_v12  ;;  %2118 = vmatprep.subr.bf16.mxu0 %v11473_v13  ;;  %v11531_v12 = vcombine.high %v548_v7, %v552_v8  ;;  %v555_v13 = vld [vmem:[#allocation6 + $0x790] sm:$0xff]  ;;  %v11598_v7 = vcombine.low %v2308_v59, %v2316_v60 }
 0x210   :  { %2204 = vmatprep.subr.bf16.mxu1 %v11475_v14  ;;  %v559_v14 = vld [vmem:[#allocation6 + $0x7b0] sm:$0xff] }
 0x211   :  { %v11536_v30 = vcombine.low %v555_v13, %v559_v14 }
 0x212   :  { %2119 = vmatpush1.bf16.msra.mxu0 %v11472_v21  ;;  %v11537_v21 = vcombine.high %v555_v13, %v559_v14  ;;  %v2348_v13 = vld [vmem:[#allocation9 + $0x2c8] sm:$0xff] }
 0x213   :  { %2205 = vmatpush1.bf16.msra.mxu1 %v11474_v23  ;;  %2120 = vmatprep.subr.bf16.mxu0 %v11481_v25  ;;  %v11539_v23 = vcombine.high %v556_v15, %v560_v16  ;;  %v563_v25 = vld [vmem:[#allocation6 + $0x7d0] sm:$0xff] }
 0x214   :  { %2206 = vmatprep.subr.bf16.mxu1 %v11483_v27  ;;  %v567_v27 = vld [vmem:[#allocation6 + $0x7f0] sm:$0xff] }
 0x215   :  { %v11544_v38 = vcombine.low %v563_v25, %v567_v27 }
 0x216   :  { %2121 = vmatpush1.bf16.msra.mxu0 %v11480_v32  ;;  %v11545_v32 = vcombine.high %v563_v25, %v567_v27  ;;  %v2364_v25 = vld [vmem:[#allocation9 + $0x348] sm:$0xff] }
 0x217   :  { %2207 = vmatpush1.bf16.msra.mxu1 %v11482_v33  ;;  %2122 = vmatprep.subr.bf16.mxu0 %v11489_v34  ;;  %v11547_v33 = vcombine.high %v564_v28, %v568_v29  ;;  %v2259_v34 = vld [vmem:[#allocation9] sm:$0xff] }
 0x218   :  { %2208 = vmatprep.subr.bf16.mxu1 %v11491_v35  ;;  %v2267_v35 = vld [vmem:[#allocation9 + $0x40] sm:$0xff] }
 0x219   :  { %v11548_v45 = vcombine.low %v2259_v34, %v2267_v35 }
 0x21a   :  { %2123 = vmatpush1.bf16.msra.mxu0 %v11488_v54  ;;  %v11549_v54 = vcombine.high %v2259_v34, %v2267_v35  ;;  %v2380_v34 = vld [vmem:[#allocation9 + $0x3c8] sm:$0xff] }
 0x21b   :  { %2209 = vmatpush1.bf16.msra.mxu1 %v11490_v40  ;;  %2124 = vmatprep.subr.bf16.mxu0 %v11497_v41  ;;  %v11551_v40 = vcombine.high %v2260_v36, %v2268_v37  ;;  %v2275_v41 = vld [vmem:[#allocation9 + $0x80] sm:$0xff] }
 0x21c   :  { %2210 = vmatprep.subr.bf16.mxu1 %v11499_v42  ;;  %v2283_v42 = vld [vmem:[#allocation9 + $0xc0] sm:$0xff] }
 0x21d   :  { %v11564_v53 = vcombine.low %v2275_v41, %v2283_v42 }
 0x21e   :  { %2125 = vmatpush1.bf16.msra.mxu0 %v11496_v47  ;;  %v11565_v47 = vcombine.high %v2275_v41, %v2283_v42  ;;  %v2396_v41 = vld [vmem:[#allocation9 + $0x448] sm:$0xff] }
 0x21f   :  { %2211 = vmatpush1.bf16.msra.mxu1 %v11498_v48  ;;  %2126 = vmatprep.subr.bf16.mxu0 %v11505_v49  ;;  %v11567_v48 = vcombine.high %v2276_v43, %v2284_v44  ;;  %v2291_v49 = vld [vmem:[#allocation9 + $0x100] sm:$0xff] }
 0x220   :  { %2212 = vmatprep.subr.bf16.mxu1 %v11507_v50  ;;  %v2299_v50 = vld [vmem:[#allocation9 + $0x140] sm:$0xff] }
 0x221   :  { %v11580_v61 = vcombine.low %v2291_v49, %v2299_v50 }
 0x222   :  { %2127 = vmatpush1.bf16.msra.mxu0 %v11504_v56  ;;  %v11581_v56 = vcombine.high %v2291_v49, %v2299_v50  ;;  %v2412_v49 = vld [vmem:[#allocation9 + $0x4c8] sm:$0xff] }
 0x223   :  { %2213 = vmatpush1.bf16.msra.mxu1 %v11506_v57  ;;  %2128 = vmatprep.subr.bf16.mxu0 %v11513_v4  ;;  %v11583_v57 = vcombine.high %v2292_v51, %v2300_v52  ;;  %v2307_v4 = vld [vmem:[#allocation9 + $0x180] sm:$0xff] }
 0x224   :  { %2214 = vmatprep.subr.bf16.mxu1 %v11515_v58  ;;  %v2315_v58 = vld [vmem:[#allocation9 + $0x1c0] sm:$0xff] }
 0x225   :  { %v11596_v6 = vcombine.low %v2307_v4, %v2315_v58 }
 0x226   :  { %2129 = vmatpush1.bf16.msra.mxu0 %v11512_v63  ;;  %v11597_v63 = vcombine.high %v2307_v4, %v2315_v58  ;;  %v2428_v4 = vld [vmem:[#allocation9 + $0x548] sm:$0xff] }
 0x227   :  { %2215 = vmatpush1.bf16.msra.mxu1 %v11514_v0  ;;  %2130 = vmatprep.subr.bf16.mxu0 %v11521_v2  ;;  %v2323_v0 = vld [vmem:[#allocation9 + $0x200] sm:$0xff] }
 0x228   :  { %2216 = vmatprep.subr.bf16.mxu1 %v11523_v3  ;;  %v2331_v2 = vld [vmem:[#allocation9 + $0x240] sm:$0xff]  ;;  %v2324_v3 = vld [vmem:[#allocation9 + $0x208] sm:$0xff] }
 0x229   :  { %v11613_v8 = vcombine.high %v2323_v0, %v2331_v2  ;;  %v11612_v14 = vcombine.low %v2323_v0, %v2331_v2  ;;  %v11614_v15 = vcombine.low %v2324_v3, %v2332_v5  ;;  %v2444_v0 = vld [vmem:[#allocation9 + $0x5c8] sm:$0xff] }
 0x22a   :  { %2131 = vmatpush1.bf16.msra.mxu0 %v11520_v9  ;;  %v11615_v9 = vcombine.high %v2324_v3, %v2332_v5 }
 0x22b   :  { %2217 = vmatpush1.bf16.msra.mxu1 %v11522_v10  ;;  %2132 = vmatprep.subr.bf16.mxu0 %v11529_v11  ;;  %v2339_v10 = vld [vmem:[#allocation9 + $0x280] sm:$0xff] }
 0x22c   :  { %2218 = vmatprep.subr.bf16.mxu1 %v11531_v12  ;;  %v2347_v11 = vld [vmem:[#allocation9 + $0x2c0] sm:$0xff]  ;;  %v2340_v12 = vld [vmem:[#allocation9 + $0x288] sm:$0xff] }
 0x22d   :  { %v11629_v16 = vcombine.high %v2339_v10, %v2347_v11  ;;  %v11628_v27 = vcombine.low %v2339_v10, %v2347_v11  ;;  %v11630_v28 = vcombine.low %v2340_v12, %v2348_v13  ;;  %v2460_v10 = vld [vmem:[#allocation9 + $0x648] sm:$0xff] }
 0x22e   :  { %2133 = vmatpush1.bf16.msra.mxu0 %v11528_v17  ;;  %v11631_v17 = vcombine.high %v2340_v12, %v2348_v13 }
 0x22f   :  { %2219 = vmatpush1.bf16.msra.mxu1 %v11530_v18  ;;  %2134 = vmatprep.subr.bf16.mxu0 %v11537_v21  ;;  %v2355_v18 = vld [vmem:[#allocation9 + $0x300] sm:$0xff] }
 0x230   :  { %2220 = vmatprep.subr.bf16.mxu1 %v11539_v23  ;;  %v2363_v21 = vld [vmem:[#allocation9 + $0x340] sm:$0xff]  ;;  %v2356_v23 = vld [vmem:[#allocation9 + $0x308] sm:$0xff] }
 0x231   :  { %v11645_v29 = vcombine.high %v2355_v18, %v2363_v21  ;;  %v11644_v35 = vcombine.low %v2355_v18, %v2363_v21  ;;  %v11646_v36 = vcombine.low %v2356_v23, %v2364_v25  ;;  %v2476_v18 = vld [vmem:[#allocation9 + $0x6c8] sm:$0xff] }
 0x232   :  { %2135 = vmatpush1.bf16.msra.mxu0 %v11536_v30  ;;  %v11647_v30 = vcombine.high %v2356_v23, %v2364_v25 }
 0x233   :  { %2221 = vmatpush1.bf16.msra.mxu1 %v11538_v31  ;;  %2136 = vmatprep.subr.bf16.mxu0 %v11545_v32  ;;  %v2371_v31 = vld [vmem:[#allocation9 + $0x380] sm:$0xff] }
 0x234   :  { %2222 = vmatprep.subr.bf16.mxu1 %v11547_v33  ;;  %v2379_v32 = vld [vmem:[#allocation9 + $0x3c0] sm:$0xff]  ;;  %v2372_v33 = vld [vmem:[#allocation9 + $0x388] sm:$0xff] }
 0x235   :  { %v11661_v37 = vcombine.high %v2371_v31, %v2379_v32  ;;  %v11660_v42 = vcombine.low %v2371_v31, %v2379_v32  ;;  %v11662_v43 = vcombine.low %v2372_v33, %v2380_v34  ;;  %v2492_v31 = vld [vmem:[#allocation9 + $0x748] sm:$0xff] }
 0x236   :  { %2137 = vmatpush1.bf16.msra.mxu0 %v11544_v38  ;;  %v11663_v38 = vcombine.high %v2372_v33, %v2380_v34 }
 0x237   :  { %2223 = vmatpush1.bf16.msra.mxu1 %v11546_v39  ;;  %8487 = vmatprep.subr.bf16.mxu0 %v11549_v54  ;;  %v2387_v39 = vld [vmem:[#allocation9 + $0x400] sm:$0xff] }
 0x238   :  { %8659 = vmatprep.subr.bf16.mxu1 %v11551_v40  ;;  %v2395_v54 = vld [vmem:[#allocation9 + $0x440] sm:$0xff]  ;;  %v2388_v40 = vld [vmem:[#allocation9 + $0x408] sm:$0xff] }
 0x239   :  { %2139 = vmatmul.mubr.bf16.vlgmr.msra.gmra.mrb[8].mxu0 %v13585_v1  ;;  %v11677_v44 = vcombine.high %v2387_v39, %v2395_v54  ;;  %v11676_v50 = vcombine.low %v2387_v39, %v2395_v54  ;;  %v11678_v51 = vcombine.low %v2388_v40, %v2396_v41  ;;  %v2508_v39 = vld [vmem:[#allocation9 + $0x7c8] sm:$0xff] }
 0x23a   :  { %2225 = vmatmul.mubr.bf16.vlgmr.msra.gmra.mrb[8].mxu1 %v13585_v1  ;;  %8488 = vmatpush1.bf16.msra.mxu0 %v11548_v45  ;;  %v11599_v1 = vcombine.high %v2308_v59, %v2316_v60  ;;  %v11679_v45 = vcombine.high %v2388_v40, %v2396_v41 }
 0x23b   :  { %8660 = vmatpush1.bf16.msra.mxu1 %v11550_v46  ;;  %8489 = vmatprep.subr.bf16.mxu0 %v11565_v47  ;;  %v2403_v46 = vld [vmem:[#allocation9 + $0x480] sm:$0xff] }
 0x23c   :  { %8661 = vmatprep.subr.bf16.mxu1 %v11567_v48  ;;  %v2411_v47 = vld [vmem:[#allocation9 + $0x4c0] sm:$0xff]  ;;  %v2404_v48 = vld [vmem:[#allocation9 + $0x488] sm:$0xff] }
 0x23d   :  { %v11693_v52 = vcombine.high %v2403_v46, %v2411_v47  ;;  %v11692_v58 = vcombine.low %v2403_v46, %v2411_v47  ;;  %v11694_v59 = vcombine.low %v2404_v48, %v2412_v49  ;;  %v13607_v46 = vld [vmem:[#allocation9 + $0x848] sm:$0xff] }
 0x23e   :  { %8490 = vmatpush1.bf16.msra.mxu0 %v11564_v53  ;;  %v11695_v53 = vcombine.high %v2404_v48, %v2412_v49 }
 0x23f   :  { %8662 = vmatpush1.bf16.msra.mxu1 %v11566_v55  ;;  %8491 = vmatprep.subr.bf16.mxu0 %v11581_v56  ;;  %v2419_v55 = vld [vmem:[#allocation9 + $0x500] sm:$0xff] }
 0x240   :  { %8663 = vmatprep.subr.bf16.mxu1 %v11583_v57  ;;  %v2427_v56 = vld [vmem:[#allocation9 + $0x540] sm:$0xff]  ;;  %v2420_v57 = vld [vmem:[#allocation9 + $0x508] sm:$0xff] }
 0x241   :  { %v11709_v60 = vcombine.high %v2419_v55, %v2427_v56  ;;  %v11708_v2 = vcombine.low %v2419_v55, %v2427_v56  ;;  %v11710_v3 = vcombine.low %v2420_v57, %v2428_v4 }
 0x242   :  { %8492 = vmatpush1.bf16.msra.mxu0 %v11580_v61  ;;  %v11711_v61 = vcombine.high %v2420_v57, %v2428_v4 }
 0x243   :  { %8664 = vmatpush1.bf16.msra.mxu1 %v11582_v62  ;;  %8493 = vmatprep.subr.bf16.mxu0 %v11597_v63  ;;  %v2435_v62 = vld [vmem:[#allocation9 + $0x580] sm:$0xff] }
 0x244   :  { %8665 = vmatprep.subr.bf16.mxu1 %v11599_v1  ;;  %v2443_v63 = vld [vmem:[#allocation9 + $0x5c0] sm:$0xff]  ;;  %v2436_v1 = vld [vmem:[#allocation9 + $0x588] sm:$0xff] }
 0x245   :  { %v11725_v5 = vcombine.high %v2435_v62, %v2443_v63  ;;  %v11724_v11 = vcombine.low %v2435_v62, %v2443_v63  ;;  %v11726_v12 = vcombine.low %v2436_v1, %v2444_v0 }
 0x246   :  { %8494 = vmatpush1.bf16.msra.mxu0 %v11596_v6  ;;  %v11727_v6 = vcombine.high %v2436_v1, %v2444_v0 }
 0x247   :  { %8666 = vmatpush1.bf16.msra.mxu1 %v11598_v7  ;;  %8495 = vmatprep.subr.bf16.mxu0 %v11613_v8  ;;  %v2451_v7 = vld [vmem:[#allocation9 + $0x600] sm:$0xff] }
 0x248   :  { %8667 = vmatprep.subr.bf16.mxu1 %v11615_v9  ;;  %v2459_v8 = vld [vmem:[#allocation9 + $0x640] sm:$0xff]  ;;  %v2452_v9 = vld [vmem:[#allocation9 + $0x608] sm:$0xff] }
 0x249   :  { %v11741_v13 = vcombine.high %v2451_v7, %v2459_v8  ;;  %v11740_v21 = vcombine.low %v2451_v7, %v2459_v8  ;;  %v11742_v23 = vcombine.low %v2452_v9, %v2460_v10 }
 0x24a   :  { %8496 = vmatpush1.bf16.msra.mxu0 %v11612_v14  ;;  %v11743_v14 = vcombine.high %v2452_v9, %v2460_v10 }
 0x24b   :  { %8668 = vmatpush1.bf16.msra.mxu1 %v11614_v15  ;;  %8497 = vmatprep.subr.bf16.mxu0 %v11629_v16  ;;  %v2467_v15 = vld [vmem:[#allocation9 + $0x680] sm:$0xff] }
 0x24c   :  { %8669 = vmatprep.subr.bf16.mxu1 %v11631_v17  ;;  %v2475_v16 = vld [vmem:[#allocation9 + $0x6c0] sm:$0xff]  ;;  %v2468_v17 = vld [vmem:[#allocation9 + $0x688] sm:$0xff] }
 0x24d   :  { %v11757_v25 = vcombine.high %v2467_v15, %v2475_v16  ;;  %v11756_v32 = vcombine.low %v2467_v15, %v2475_v16  ;;  %v11758_v33 = vcombine.low %v2468_v17, %v2476_v18 }
 0x24e   :  { %8498 = vmatpush1.bf16.msra.mxu0 %v11628_v27  ;;  %v11759_v27 = vcombine.high %v2468_v17, %v2476_v18  ;;  %v2531_v17 = vld [vmem:[#allocation9 + $0x880] sm:$0xff] }
 0x24f   :  { %8670 = vmatpush1.bf16.msra.mxu1 %v11630_v28  ;;  %8499 = vmatprep.subr.bf16.mxu0 %v11645_v29  ;;  %v2483_v28 = vld [vmem:[#allocation9 + $0x700] sm:$0xff] }
 0x250   :  { %8671 = vmatprep.subr.bf16.mxu1 %v11647_v30  ;;  %v2491_v29 = vld [vmem:[#allocation9 + $0x740] sm:$0xff]  ;;  %v2484_v30 = vld [vmem:[#allocation9 + $0x708] sm:$0xff] }
 0x251   :  { %v11773_v34 = vcombine.high %v2483_v28, %v2491_v29  ;;  %v11772_v54 = vcombine.low %v2483_v28, %v2491_v29  ;;  %v11774_v40 = vcombine.low %v2484_v30, %v2492_v31 }
 0x252   :  { %8500 = vmatpush1.bf16.msra.mxu0 %v11644_v35  ;;  %v11775_v35 = vcombine.high %v2484_v30, %v2492_v31 }
 0x253   :  { %8672 = vmatpush1.bf16.msra.mxu1 %v11646_v36  ;;  %8501 = vmatprep.subr.bf16.mxu0 %v11661_v37  ;;  %v2499_v36 = vld [vmem:[#allocation9 + $0x780] sm:$0xff] }
 0x254   :  { %8673 = vmatprep.subr.bf16.mxu1 %v11663_v38  ;;  %v2507_v37 = vld [vmem:[#allocation9 + $0x7c0] sm:$0xff]  ;;  %v2500_v38 = vld [vmem:[#allocation9 + $0x788] sm:$0xff] }
 0x255   :  { %v11789_v41 = vcombine.high %v2499_v36, %v2507_v37  ;;  %v11788_v47 = vcombine.low %v2499_v36, %v2507_v37  ;;  %v11790_v48 = vcombine.low %v2500_v38, %v2508_v39  ;;  %v2548_v36 = vld [vmem:[#allocation9 + $0x908] sm:$0xff] }
 0x256   :  { %8502 = vmatpush1.bf16.msra.mxu0 %v11660_v42  ;;  %v11791_v42 = vcombine.high %v2500_v38, %v2508_v39  ;;  %v2556_v37 = vld [vmem:[#allocation9 + $0x948] sm:$0xff] }
 0x257   :  { %8674 = vmatpush1.bf16.msra.mxu1 %v11662_v43  ;;  %8503 = vmatprep.subr.bf16.mxu0 %v11677_v44  ;;  %v13601_v43 = vld [vmem:[#allocation9 + $0x800] sm:$0xff] }
 0x258   :  { %8675 = vmatprep.subr.bf16.mxu1 %v11679_v45  ;;  %v13603_v44 = vld [vmem:[#allocation9 + $0x840] sm:$0xff]  ;;  %v13605_v45 = vld [vmem:[#allocation9 + $0x808] sm:$0xff] }
 0x259   :  { %v11805_v49 = vcombine.high %v13601_v43, %v13603_v44  ;;  %v11804_v30 = vcombine.low %v13601_v43, %v13603_v44  ;;  %v11806_v31 = vcombine.low %v13605_v45, %v13607_v46  ;;  %v2564_v43 = vld [vmem:[#allocation9 + $0x988] sm:$0xff] }
 0x25a   :  { %8504 = vmatpush1.bf16.msra.mxu0 %v11676_v50  ;;  %v11807_v50 = vcombine.high %v13605_v45, %v13607_v46  ;;  %v2572_v44 = vld [vmem:[#allocation9 + $0x9c8] sm:$0xff]  ;;  %v11838_v46 = vcombine.low %v2548_v36, %v2556_v37 }
 0x25b   :  { %8676 = vmatpush1.bf16.msra.mxu1 %v11678_v51  ;;  %8505 = vmatprep.subr.bf16.mxu0 %v11693_v52  ;;  %v13613_v51 = vld [vmem:[#allocation7] sm:$0xff] }
 0x25c   :  { %8677 = vmatprep.subr.bf16.mxu1 %v11695_v53  ;;  %v574_v52 = vrot.slane %v13613_v51, %v13562_v20  ;;  %v582_v53 = vrot.slane %v13613_v51, %v13569_v24  ;;  %v578_v55 = vrot.slane %v13613_v51, %v13565_v22  ;;  %v586_v56 = vrot.slane %v13613_v51, %v13573_v26 }
 0x25e   :  { %8506 = vmatpush1.bf16.msra.mxu0 %v11692_v58 }
 0x25f   :  { %8678 = vmatpush1.bf16.msra.mxu1 %v11694_v59  ;;  %8507 = vmatprep.subr.bf16.mxu0 %v11709_v60 }
 0x260   :  { %8679 = vmatprep.subr.bf16.mxu1 %v11711_v61 }
 0x262   :  { %8508 = vmatpush1.bf16.msra.mxu0 %v11708_v2 }
 0x263   :  { %8680 = vmatpush1.bf16.msra.mxu1 %v11710_v3  ;;  %8509 = vmatprep.subr.bf16.mxu0 %v11725_v5 }
 0x264   :  { %8681 = vmatprep.subr.bf16.mxu1 %v11727_v6 }
 0x266   :  { %8510 = vmatpush1.bf16.msra.mxu0 %v11724_v11 }
 0x267   :  { %8682 = vmatpush1.bf16.msra.mxu1 %v11726_v12  ;;  %8511 = vmatprep.subr.bf16.mxu0 %v11741_v13 }
 0x268   :  { %8683 = vmatprep.subr.bf16.mxu1 %v11743_v14 }
 0x26a   :  { %8512 = vmatpush1.bf16.msra.mxu0 %v11740_v21 }
 0x26b   :  { %8684 = vmatpush1.bf16.msra.mxu1 %v11742_v23  ;;  %8513 = vmatprep.subr.bf16.mxu0 %v11757_v25  ;;  %v2539_v23 = vld [vmem:[#allocation9 + $0x8c0] sm:$0xff]  ;;  %v2532_v25 = vld [vmem:[#allocation9 + $0x888] sm:$0xff] }
 0x26c   :  { %8685 = vmatprep.subr.bf16.mxu1 %v11759_v27  ;;  %v2540_v27 = vld [vmem:[#allocation9 + $0x8c8] sm:$0xff]  ;;  %v11820_v38 = vcombine.low %v2531_v17, %v2539_v23 }
 0x26d   :  { %v11822_v39 = vcombine.low %v2532_v25, %v2540_v27 }
 0x26e   :  { %8514 = vmatpush1.bf16.msra.mxu0 %v11756_v32  ;;  %v2547_v32 = vld [vmem:[#allocation9 + $0x900] sm:$0xff] }
 0x26f   :  { %8686 = vmatpush1.bf16.msra.mxu1 %v11758_v33  ;;  %8515 = vmatprep.subr.bf16.mxu0 %v11773_v34  ;;  %v11821_v33 = vcombine.high %v2531_v17, %v2539_v23  ;;  %v11823_v34 = vcombine.high %v2532_v25, %v2540_v27  ;;  %v2643_v25 = vld [vmem:[#allocation9 + $0xc00] sm:$0xff] }
 0x270   :  { %8687 = vmatprep.subr.bf16.mxu1 %v11775_v35  ;;  %v2555_v35 = vld [vmem:[#allocation9 + $0x940] sm:$0xff] }
 0x271   :  { %v11836_v45 = vcombine.low %v2547_v32, %v2555_v35  ;;  %v2651_v27 = vld [vmem:[#allocation9 + $0xc40] sm:$0xff] }
 0x272   :  { %8516 = vmatpush1.bf16.msra.mxu0 %v11772_v54  ;;  %v11837_v54 = vcombine.high %v2547_v32, %v2555_v35 }
 0x273   :  { %8688 = vmatpush1.bf16.msra.mxu1 %v11774_v40  ;;  %8517 = vmatprep.subr.bf16.mxu0 %v11789_v41  ;;  %v11839_v40 = vcombine.high %v2548_v36, %v2556_v37  ;;  %v2563_v41 = vld [vmem:[#allocation9 + $0x980] sm:$0xff] }
 0x274   :  { %8689 = vmatprep.subr.bf16.mxu1 %v11791_v42  ;;  %v2571_v42 = vld [vmem:[#allocation9 + $0x9c0] sm:$0xff] }
 0x275   :  { %v2659_v36 = vld [vmem:[#allocation9 + $0xc80] sm:$0xff] }
 0x276   :  { %8518 = vmatpush1.bf16.msra.mxu0 %v11788_v47  ;;  %v11853_v47 = vcombine.high %v2563_v41, %v2571_v42  ;;  %v2667_v37 = vld [vmem:[#allocation9 + $0xcc0] sm:$0xff] }
 0x277   :  { %8690 = vmatpush1.bf16.msra.mxu1 %v11790_v48  ;;  %8530 = vmatprep.subr.bf16.mxu0 %v11805_v49  ;;  %v11855_v48 = vcombine.high %v2564_v43, %v2572_v44  ;;  %v2579_v49 = vld [vmem:[#allocation9 + $0xa00] sm:$0xff] }
 0x278   :  { %8702 = vmatprep.subr.bf16.mxu1 %v11807_v50  ;;  %v2587_v50 = vld [vmem:[#allocation9 + $0xa40] sm:$0xff] }
 0x28c   :  { %v1968_v57 = vpop.f32.mrb[4].mxu0  ;;  %v2054_v4 = vpop.f32.mrb[4].mxu1 }
 0x28d   :  { %v12877_v58 = vadd.f32 %v1968_v57, %v574_v52  ;;  %v12881_v59 = vadd.f32 %v2054_v4, %v582_v53  ;;  %v1970_v60 = vpop.f32.mrb[5].mxu0  ;;  %v2056_v61 = vpop.f32.mrb[5].mxu1  ;;  %v11869_v57 = vcombine.high %v2579_v49, %v2587_v50 }
 0x28e   :  { %v12878_v62 = vadd.f32 %v1970_v60, %v578_v55  ;;  %v12882_v63 = vadd.f32 %v2056_v61, %v586_v56  ;;  %v1972_v1 = vpop.f32.mrb[6].mxu0  ;;  %v2058_v0 = vpop.f32.mrb[6].mxu1  ;;  %v2596_v60 = vld [vmem:[#allocation9 + $0xa88] sm:$0xff] }
 0x28f   :  { %v12879_v2 = vadd.f32 %v1972_v1, %v574_v52  ;;  %v12883_v3 = vadd.f32 %v2058_v0, %v582_v53  ;;  %v1974_v5 = vpop.f32.mrb[7].mxu0  ;;  %v2060_v6 = vpop.f32.mrb[7].mxu1  ;;  %v2235_v9 = vmax.f32 %v12877_v58, 0.0  ;;  %v2237_v10 = vmax.f32 %v12881_v59, 0.0  ;;  %v2580_v52 = vld [vmem:[#allocation9 + $0xa08] sm:$0xff]  ;;  %v2595_v58 = vld [vmem:[#allocation9 + $0xa80] sm:$0xff] }
 0x290   :  { %v12880_v7 = vadd.f32 %v1974_v5, %v578_v55  ;;  %v12884_v8 = vadd.f32 %v2060_v6, %v586_v56  ;;  %v2236_v13 = vmax.f32 %v12878_v62, 0.0  ;;  %v2238_v14 = vmax.f32 %v12882_v63, 0.0  ;;  %v2588_v53 = vld [vmem:[#allocation9 + $0xa48] sm:$0xff]  ;;  %v2603_v59 = vld [vmem:[#allocation9 + $0xac0] sm:$0xff] }
 0x291   :  { %v2243_v11 = vmax.f32 %v12879_v2, 0.0  ;;  %v2245_v12 = vmax.f32 %v12883_v3, 0.0  ;;  %v11852_v55 = vcombine.low %v2563_v41, %v2571_v42  ;;  %v11854_v56 = vcombine.low %v2564_v43, %v2572_v44  ;;  %v2604_v61 = vld [vmem:[#allocation9 + $0xac8] sm:$0xff]  ;;  %v2611_v2 = vld [vmem:[#allocation9 + $0xb00] sm:$0xff] }
 0x292   :  { %v2244_v15 = vmax.f32 %v12880_v7, 0.0  ;;  %v2246_v16 = vmax.f32 %v12884_v8, 0.0  ;;  %v11871_v4 = vcombine.high %v2580_v52, %v2588_v53  ;;  %v11868_v62 = vcombine.low %v2579_v49, %v2587_v50  ;;  %v2619_v3 = vld [vmem:[#allocation9 + $0xb40] sm:$0xff]  ;;  %v2612_v5 = vld [vmem:[#allocation9 + $0xb08] sm:$0xff] }
 0x293   :  { %v13623_v18 = vpack.c.bf16 %v2243_v11, %v2235_v9  ;;  %v13625_v21 = vpack.c.bf16 %v2245_v12, %v2237_v10  ;;  %v11870_v63 = vcombine.low %v2580_v52, %v2588_v53  ;;  %v11885_v1 = vcombine.high %v2595_v58, %v2603_v59  ;;  %v2620_v6 = vld [vmem:[#allocation9 + $0xb48] sm:$0xff]  ;;  %v2627_v11 = vld [vmem:[#allocation9 + $0xb80] sm:$0xff] }
 0x294   :  { %v13627_v28 = vpack.c.bf16 %v2244_v15, %v2236_v13  ;;  %v13629_v29 = vpack.c.bf16 %v2246_v16, %v2238_v14  ;;  %v11887_v0 = vcombine.high %v2596_v60, %v2604_v61  ;;  %v11884_v7 = vcombine.low %v2595_v58, %v2603_v59  ;;  %v2635_v12 = vld [vmem:[#allocation9 + $0xbc0] sm:$0xff]  ;;  %v2628_v13 = vld [vmem:[#allocation9 + $0xb88] sm:$0xff] }
 0x295   :  { %v11886_v8 = vcombine.low %v2596_v60, %v2604_v61  ;;  %v11901_v9 = vcombine.high %v2611_v2, %v2619_v3  ;;  %v11903_v10 = vcombine.high %v2612_v5, %v2620_v6  ;;  %v2636_v14 = vld [vmem:[#allocation9 + $0xbc8] sm:$0xff]  ;;  %v11900_v15 = vcombine.low %v2611_v2, %v2619_v3  ;;  %v2675_v43 = vld [vmem:[#allocation9 + $0xd00] sm:$0xff] }
 0x296   :  { %8519 = vmatprep.mubr.bf16.mxu0 %v13627_v28  ;;  %8691 = vmatprep.mubr.bf16.mxu1 %v13627_v28  ;;  %v11902_v16 = vcombine.low %v2612_v5, %v2620_v6  ;;  %v11917_v17 = vcombine.high %v2627_v11, %v2635_v12  ;;  %v11919_v23 = vcombine.high %v2628_v13, %v2636_v14  ;;  %v2683_v44 = vld [vmem:[#allocation9 + $0xd40] sm:$0xff] }
 0x297   :  { %8520 = vmatmul.mubr.bf16.vlgmr.msra.gmra.mrb[12].mxu0 %v13623_v18  ;;  %8692 = vmatmul.mubr.bf16.vlgmr.msra.gmra.mrb[12].mxu1 %v13623_v18  ;;  %v11916_v32 = vcombine.low %v2627_v11, %v2635_v12  ;;  %v11949_v41 = vcombine.high %v2659_v36, %v2667_v37  ;;  %v11965_v49 = vcombine.high %v2675_v43, %v2683_v44  ;;  %v2691_v52 = vld [vmem:[#allocation9 + $0xd80] sm:$0xff] }
 0x298   :  { %8531 = vmatpush1.bf16.msra.mxu0 %v11804_v30  ;;  %8703 = vmatpush1.bf16.msra.mxu1 %v11806_v31  ;;  %v2644_v30 = vld [vmem:[#allocation9 + $0xc08] sm:$0xff]  ;;  %v2699_v53 = vld [vmem:[#allocation9 + $0xdc0] sm:$0xff] }
 0x299   :  { %8562 = vmatprep.mubr.bf16.mxu0 %v13629_v29  ;;  %8734 = vmatprep.mubr.bf16.mxu1 %v13629_v29  ;;  %v2652_v31 = vld [vmem:[#allocation9 + $0xc48] sm:$0xff]  ;;  %v11981_v58 = vcombine.high %v2691_v52, %v2699_v53  ;;  %v2707_v60 = vld [vmem:[#allocation9 + $0xe00] sm:$0xff] }
 0x29a   :  { %8532 = vmatprep.subr.bf16.mxu0 %v11821_v33  ;;  %8704 = vmatprep.subr.bf16.mxu1 %v11823_v34  ;;  %v11918_v33 = vcombine.low %v2628_v13, %v2636_v14  ;;  %v11933_v34 = vcombine.high %v2643_v25, %v2651_v27  ;;  %v11935_v35 = vcombine.high %v2644_v30, %v2652_v31  ;;  %v2715_v61 = vld [vmem:[#allocation9 + $0xe40] sm:$0xff] }
 0x29b   :  { %v11997_v2 = vcombine.high %v2707_v60, %v2715_v61  ;;  %v2723_v5 = vld [vmem:[#allocation9 + $0xe80] sm:$0xff] }
 0x29c   :  { %8533 = vmatpush1.bf16.msra.mxu0 %v11820_v38  ;;  %8705 = vmatpush1.bf16.msra.mxu1 %v11822_v39  ;;  %v2660_v38 = vld [vmem:[#allocation9 + $0xc88] sm:$0xff]  ;;  %v2731_v6 = vld [vmem:[#allocation9 + $0xec0] sm:$0xff] }
 0x29d   :  { %8534 = vmatprep.subr.bf16.mxu0 %v11837_v54  ;;  %8706 = vmatprep.subr.bf16.mxu1 %v11839_v40  ;;  %v2668_v39 = vld [vmem:[#allocation9 + $0xcc8] sm:$0xff]  ;;  %v11932_v54 = vcombine.low %v2643_v25, %v2651_v27  ;;  %v11934_v40 = vcombine.low %v2644_v30, %v2652_v31  ;;  %v12013_v11 = vcombine.high %v2723_v5, %v2731_v6  ;;  %v2739_v13 = vld [vmem:[#allocation9 + $0xf00] sm:$0xff] }
 0x29e   :  { %v11951_v42 = vcombine.high %v2660_v38, %v2668_v39  ;;  %v2747_v14 = vld [vmem:[#allocation9 + $0xf40] sm:$0xff] }
 0x29f   :  { %v12029_v25 = vcombine.high %v2739_v13, %v2747_v14  ;;  %v2755_v30 = vld [vmem:[#allocation9 + $0xf80] sm:$0xff] }
 0x2a0   :  { %8535 = vmatpush1.bf16.msra.mxu0 %v11836_v45  ;;  %8707 = vmatpush1.bf16.msra.mxu1 %v11838_v46  ;;  %v2676_v45 = vld [vmem:[#allocation9 + $0xd08] sm:$0xff]  ;;  %v2763_v31 = vld [vmem:[#allocation9 + $0xfc0] sm:$0xff] }
 0x2a1   :  { %8536 = vmatprep.subr.bf16.mxu0 %v11853_v47  ;;  %8708 = vmatprep.subr.bf16.mxu1 %v11855_v48  ;;  %v2684_v46 = vld [vmem:[#allocation9 + $0xd48] sm:$0xff]  ;;  %v11948_v47 = vcombine.low %v2659_v36, %v2667_v37  ;;  %v11950_v48 = vcombine.low %v2660_v38, %v2668_v39  ;;  %v12045_v36 = vcombine.high %v2755_v30, %v2763_v31  ;;  %v2771_v38 = vld [vmem:[#allocation9 + $0x1000] sm:$0xff] }
 0x2a2   :  { %v11967_v50 = vcombine.high %v2676_v45, %v2684_v46  ;;  %v2779_v39 = vld [vmem:[#allocation9 + $0x1040] sm:$0xff] }
 0x2a4   :  { %8537 = vmatpush1.bf16.msra.mxu0 %v11852_v55  ;;  %8709 = vmatpush1.bf16.msra.mxu1 %v11854_v56  ;;  %v2692_v55 = vld [vmem:[#allocation9 + $0xd88] sm:$0xff] }
 0x2a5   :  { %8538 = vmatprep.subr.bf16.mxu0 %v11869_v57  ;;  %8710 = vmatprep.subr.bf16.mxu1 %v11871_v4  ;;  %v2700_v56 = vld [vmem:[#allocation9 + $0xdc8] sm:$0xff]  ;;  %v11964_v57 = vcombine.low %v2675_v43, %v2683_v44  ;;  %v11966_v4 = vcombine.low %v2676_v45, %v2684_v46  ;;  %v12061_v43 = vcombine.high %v2771_v38, %v2779_v39  ;;  %v2787_v45 = vld [vmem:[#allocation9 + $0x1080] sm:$0xff] }
 0x2a6   :  { %v11983_v59 = vcombine.high %v2692_v55, %v2700_v56  ;;  %v2795_v46 = vld [vmem:[#allocation9 + $0x10c0] sm:$0xff] }
 0x2a8   :  { %8539 = vmatpush1.bf16.msra.mxu0 %v11868_v62  ;;  %8711 = vmatpush1.bf16.msra.mxu1 %v11870_v63  ;;  %v2708_v62 = vld [vmem:[#allocation9 + $0xe08] sm:$0xff] }
 0x2a9   :  { %8540 = vmatprep.subr.bf16.mxu0 %v11885_v1  ;;  %8712 = vmatprep.subr.bf16.mxu1 %v11887_v0  ;;  %v2716_v63 = vld [vmem:[#allocation9 + $0xe48] sm:$0xff]  ;;  %v11980_v1 = vcombine.low %v2691_v52, %v2699_v53  ;;  %v11982_v0 = vcombine.low %v2692_v55, %v2700_v56  ;;  %v12077_v52 = vcombine.high %v2787_v45, %v2795_v46  ;;  %v2803_v55 = vld [vmem:[#allocation9 + $0x1100] sm:$0xff] }
 0x2aa   :  { %v11999_v3 = vcombine.high %v2708_v62, %v2716_v63  ;;  %v2811_v56 = vld [vmem:[#allocation9 + $0x1140] sm:$0xff] }
 0x2ac   :  { %8541 = vmatpush1.bf16.msra.mxu0 %v11884_v7  ;;  %8713 = vmatpush1.bf16.msra.mxu1 %v11886_v8  ;;  %v2724_v7 = vld [vmem:[#allocation9 + $0xe88] sm:$0xff] }
 0x2ad   :  { %8542 = vmatprep.subr.bf16.mxu0 %v11901_v9  ;;  %8714 = vmatprep.subr.bf16.mxu1 %v11903_v10  ;;  %v2732_v8 = vld [vmem:[#allocation9 + $0xec8] sm:$0xff]  ;;  %v11996_v9 = vcombine.low %v2707_v60, %v2715_v61  ;;  %v11998_v10 = vcombine.low %v2708_v62, %v2716_v63  ;;  %v12093_v60 = vcombine.high %v2803_v55, %v2811_v56  ;;  %v2819_v62 = vld [vmem:[#allocation9 + $0x1180] sm:$0xff] }
 0x2ae   :  { %v12015_v12 = vcombine.high %v2724_v7, %v2732_v8  ;;  %v2827_v63 = vld [vmem:[#allocation9 + $0x11c0] sm:$0xff] }
 0x2b0   :  { %8543 = vmatpush1.bf16.msra.mxu0 %v11900_v15  ;;  %8715 = vmatpush1.bf16.msra.mxu1 %v11902_v16  ;;  %v2740_v15 = vld [vmem:[#allocation9 + $0xf08] sm:$0xff] }
 0x2b1   :  { %8544 = vmatprep.subr.bf16.mxu0 %v11917_v17  ;;  %8716 = vmatprep.subr.bf16.mxu1 %v11919_v23  ;;  %v2748_v16 = vld [vmem:[#allocation9 + $0xf48] sm:$0xff]  ;;  %v12012_v17 = vcombine.low %v2723_v5, %v2731_v6  ;;  %v12014_v23 = vcombine.low %v2724_v7, %v2732_v8  ;;  %v12109_v5 = vcombine.high %v2819_v62, %v2827_v63  ;;  %v2835_v7 = vld [vmem:[#allocation9 + $0x1200] sm:$0xff] }
 0x2b2   :  { %v12031_v27 = vcombine.high %v2740_v15, %v2748_v16  ;;  %v2843_v8 = vld [vmem:[#allocation9 + $0x1240] sm:$0xff] }
 0x2b4   :  { %8545 = vmatpush1.bf16.msra.mxu0 %v11916_v32  ;;  %8717 = vmatpush1.bf16.msra.mxu1 %v11918_v33  ;;  %v2756_v32 = vld [vmem:[#allocation9 + $0xf88] sm:$0xff] }
 0x2b5   :  { %8546 = vmatprep.subr.bf16.mxu0 %v11933_v34  ;;  %8718 = vmatprep.subr.bf16.mxu1 %v11935_v35  ;;  %v2764_v33 = vld [vmem:[#allocation9 + $0xfc8] sm:$0xff]  ;;  %v12028_v34 = vcombine.low %v2739_v13, %v2747_v14  ;;  %v12030_v35 = vcombine.low %v2740_v15, %v2748_v16  ;;  %v12125_v13 = vcombine.high %v2835_v7, %v2843_v8  ;;  %v2851_v15 = vld [vmem:[#allocation9 + $0x1280] sm:$0xff] }
 0x2b6   :  { %v12047_v37 = vcombine.high %v2756_v32, %v2764_v33  ;;  %v2859_v16 = vld [vmem:[#allocation9 + $0x12c0] sm:$0xff] }
 0x2b8   :  { %8547 = vmatpush1.bf16.msra.mxu0 %v11932_v54  ;;  %8719 = vmatpush1.bf16.msra.mxu1 %v11934_v40  ;;  %v2772_v54 = vld [vmem:[#allocation9 + $0x1008] sm:$0xff] }
 0x2b9   :  { %8548 = vmatprep.subr.bf16.mxu0 %v11949_v41  ;;  %8720 = vmatprep.subr.bf16.mxu1 %v11951_v42  ;;  %v2780_v40 = vld [vmem:[#allocation9 + $0x1048] sm:$0xff]  ;;  %v12044_v41 = vcombine.low %v2755_v30, %v2763_v31  ;;  %v12046_v42 = vcombine.low %v2756_v32, %v2764_v33  ;;  %v12141_v30 = vcombine.high %v2851_v15, %v2859_v16  ;;  %v2867_v32 = vld [vmem:[#allocation9 + $0x1300] sm:$0xff] }
 0x2ba   :  { %v12063_v44 = vcombine.high %v2772_v54, %v2780_v40  ;;  %v2875_v33 = vld [vmem:[#allocation9 + $0x1340] sm:$0xff] }
 0x2bc   :  { %8549 = vmatpush1.bf16.msra.mxu0 %v11948_v47  ;;  %8721 = vmatpush1.bf16.msra.mxu1 %v11950_v48  ;;  %v2788_v47 = vld [vmem:[#allocation9 + $0x1088] sm:$0xff] }
 0x2bd   :  { %8550 = vmatprep.subr.bf16.mxu0 %v11965_v49  ;;  %8722 = vmatprep.subr.bf16.mxu1 %v11967_v50  ;;  %v2796_v48 = vld [vmem:[#allocation9 + $0x10c8] sm:$0xff]  ;;  %v12060_v49 = vcombine.low %v2771_v38, %v2779_v39  ;;  %v12062_v50 = vcombine.low %v2772_v54, %v2780_v40  ;;  %v12157_v38 = vcombine.high %v2867_v32, %v2875_v33  ;;  %v2883_v54 = vld [vmem:[#allocation9 + $0x1380] sm:$0xff] }
 0x2be   :  { %v12079_v53 = vcombine.high %v2788_v47, %v2796_v48  ;;  %v2891_v40 = vld [vmem:[#allocation9 + $0x13c0] sm:$0xff] }
 0x2c0   :  { %8551 = vmatpush1.bf16.msra.mxu0 %v11964_v57  ;;  %8723 = vmatpush1.bf16.msra.mxu1 %v11966_v4  ;;  %v2804_v57 = vld [vmem:[#allocation9 + $0x1108] sm:$0xff] }
 0x2c1   :  { %8552 = vmatprep.subr.bf16.mxu0 %v11981_v58  ;;  %8724 = vmatprep.subr.bf16.mxu1 %v11983_v59  ;;  %v2812_v4 = vld [vmem:[#allocation9 + $0x1148] sm:$0xff]  ;;  %v12076_v58 = vcombine.low %v2787_v45, %v2795_v46  ;;  %v12078_v59 = vcombine.low %v2788_v47, %v2796_v48  ;;  %v12173_v45 = vcombine.high %v2883_v54, %v2891_v40  ;;  %v2899_v47 = vld [vmem:[#allocation9 + $0x1400] sm:$0xff] }
 0x2c2   :  { %v12095_v61 = vcombine.high %v2804_v57, %v2812_v4  ;;  %v2907_v48 = vld [vmem:[#allocation9 + $0x1440] sm:$0xff] }
 0x2c4   :  { %8553 = vmatpush1.bf16.msra.mxu0 %v11980_v1  ;;  %8725 = vmatpush1.bf16.msra.mxu1 %v11982_v0  ;;  %v2820_v1 = vld [vmem:[#allocation9 + $0x1188] sm:$0xff] }
 0x2c5   :  { %8554 = vmatprep.subr.bf16.mxu0 %v11997_v2  ;;  %8726 = vmatprep.subr.bf16.mxu1 %v11999_v3  ;;  %v2828_v0 = vld [vmem:[#allocation9 + $0x11c8] sm:$0xff]  ;;  %v12092_v2 = vcombine.low %v2803_v55, %v2811_v56  ;;  %v12094_v3 = vcombine.low %v2804_v57, %v2812_v4  ;;  %v12189_v55 = vcombine.high %v2899_v47, %v2907_v48  ;;  %v2915_v57 = vld [vmem:[#allocation9 + $0x1480] sm:$0xff] }
 0x2c6   :  { %v12111_v6 = vcombine.high %v2820_v1, %v2828_v0  ;;  %v2923_v4 = vld [vmem:[#allocation9 + $0x14c0] sm:$0xff] }
 0x2c8   :  { %8555 = vmatpush1.bf16.msra.mxu0 %v11996_v9  ;;  %8727 = vmatpush1.bf16.msra.mxu1 %v11998_v10  ;;  %v2836_v9 = vld [vmem:[#allocation9 + $0x1208] sm:$0xff] }
 0x2c9   :  { %8556 = vmatprep.subr.bf16.mxu0 %v12013_v11  ;;  %8728 = vmatprep.subr.bf16.mxu1 %v12015_v12  ;;  %v2844_v10 = vld [vmem:[#allocation9 + $0x1248] sm:$0xff]  ;;  %v12108_v11 = vcombine.low %v2819_v62, %v2827_v63  ;;  %v12110_v12 = vcombine.low %v2820_v1, %v2828_v0  ;;  %v12205_v62 = vcombine.high %v2915_v57, %v2923_v4  ;;  %v2931_v1 = vld [vmem:[#allocation9 + $0x1500] sm:$0xff] }
 0x2ca   :  { %v12127_v14 = vcombine.high %v2836_v9, %v2844_v10  ;;  %v2939_v0 = vld [vmem:[#allocation9 + $0x1540] sm:$0xff] }
 0x2cc   :  { %8557 = vmatpush1.bf16.msra.mxu0 %v12012_v17  ;;  %8729 = vmatpush1.bf16.msra.mxu1 %v12014_v23  ;;  %v2852_v17 = vld [vmem:[#allocation9 + $0x1288] sm:$0xff] }
 0x2cd   :  { %8558 = vmatprep.subr.bf16.mxu0 %v12029_v25  ;;  %8730 = vmatprep.subr.bf16.mxu1 %v12031_v27  ;;  %v2860_v23 = vld [vmem:[#allocation9 + $0x12c8] sm:$0xff]  ;;  %v12124_v25 = vcombine.low %v2835_v7, %v2843_v8  ;;  %v12126_v27 = vcombine.low %v2836_v9, %v2844_v10  ;;  %v12221_v7 = vcombine.high %v2931_v1, %v2939_v0  ;;  %v2947_v9 = vld [vmem:[#allocation9 + $0x1580] sm:$0xff] }
 0x2ce   :  { %v12143_v31 = vcombine.high %v2852_v17, %v2860_v23  ;;  %v2955_v10 = vld [vmem:[#allocation9 + $0x15c0] sm:$0xff] }
 0x2d0   :  { %8559 = vmatpush1.bf16.msra.mxu0 %v12028_v34  ;;  %8731 = vmatpush1.bf16.msra.mxu1 %v12030_v35  ;;  %v2868_v34 = vld [vmem:[#allocation9 + $0x1308] sm:$0xff] }
 0x2d1   :  { %8560 = vmatprep.subr.bf16.mxu0 %v12045_v36  ;;  %8732 = vmatprep.subr.bf16.mxu1 %v12047_v37  ;;  %v2876_v35 = vld [vmem:[#allocation9 + $0x1348] sm:$0xff]  ;;  %v12140_v36 = vcombine.low %v2851_v15, %v2859_v16  ;;  %v12142_v37 = vcombine.low %v2852_v17, %v2860_v23  ;;  %v12237_v15 = vcombine.high %v2947_v9, %v2955_v10  ;;  %v2963_v17 = vld [vmem:[#allocation9 + $0x1600] sm:$0xff] }
 0x2d2   :  { %v12159_v39 = vcombine.high %v2868_v34, %v2876_v35  ;;  %v2971_v23 = vld [vmem:[#allocation9 + $0x1640] sm:$0xff] }
 0x2d4   :  { %8561 = vmatpush1.bf16.msra.mxu0 %v12044_v41  ;;  %8733 = vmatpush1.bf16.msra.mxu1 %v12046_v42  ;;  %v2884_v41 = vld [vmem:[#allocation9 + $0x1388] sm:$0xff] }
 0x2d5   :  { %8573 = vmatprep.subr.bf16.mxu0 %v12061_v43  ;;  %8745 = vmatprep.subr.bf16.mxu1 %v12063_v44  ;;  %v2892_v42 = vld [vmem:[#allocation9 + $0x13c8] sm:$0xff]  ;;  %v12156_v43 = vcombine.low %v2867_v32, %v2875_v33  ;;  %v12158_v44 = vcombine.low %v2868_v34, %v2876_v35  ;;  %v12253_v32 = vcombine.high %v2963_v17, %v2971_v23  ;;  %v2979_v34 = vld [vmem:[#allocation9 + $0x1680] sm:$0xff] }
 0x2d6   :  { %v12175_v46 = vcombine.high %v2884_v41, %v2892_v42  ;;  %v2987_v35 = vld [vmem:[#allocation9 + $0x16c0] sm:$0xff] }
 0x2d7   :  { %8563 = vmatmul.mubr.bf16.vlgmr.msra.gmra.mrb[12].mxu0 %v13625_v21  ;;  %8735 = vmatmul.mubr.bf16.vlgmr.msra.gmra.mrb[12].mxu1 %v13625_v21 }
 0x2d8   :  { %8574 = vmatpush1.bf16.msra.mxu0 %v12060_v49  ;;  %8746 = vmatpush1.bf16.msra.mxu1 %v12062_v50  ;;  %v2900_v49 = vld [vmem:[#allocation9 + $0x1408] sm:$0xff] }
 0x2d9   :  { %8575 = vmatprep.subr.bf16.mxu0 %v12077_v52  ;;  %8747 = vmatprep.subr.bf16.mxu1 %v12079_v53  ;;  %v2908_v50 = vld [vmem:[#allocation9 + $0x1448] sm:$0xff]  ;;  %v12172_v52 = vcombine.low %v2883_v54, %v2891_v40  ;;  %v12174_v53 = vcombine.low %v2884_v41, %v2892_v42  ;;  %v12269_v54 = vcombine.high %v2979_v34, %v2987_v35  ;;  %v13644_v41 = vsub.s32 4, %v13559_v19  ;;  %v2995_v42 = vld [vmem:[#allocation9 + $0x1700] sm:$0xff] }
 0x2da   :  { %v12191_v56 = vcombine.high %v2900_v49, %v2908_v50 }
 0x2dc   :  { %8576 = vmatpush1.bf16.msra.mxu0 %v12076_v58  ;;  %8748 = vmatpush1.bf16.msra.mxu1 %v12078_v59  ;;  %v2916_v58 = vld [vmem:[#allocation9 + $0x1488] sm:$0xff] }
 0x2dd   :  { %8577 = vmatprep.subr.bf16.mxu0 %v12093_v60  ;;  %8749 = vmatprep.subr.bf16.mxu1 %v12095_v61  ;;  %v2924_v59 = vld [vmem:[#allocation9 + $0x14c8] sm:$0xff]  ;;  %v12188_v60 = vcombine.low %v2899_v47, %v2907_v48  ;;  %v12190_v61 = vcombine.low %v2900_v49, %v2908_v50  ;;  %v13653_v48 = vsub.s32 7, %v13559_v19  ;;  %v12268_v49 = vcombine.low %v2979_v34, %v2987_v35 }
 0x2de   :  { %v12207_v63 = vcombine.high %v2916_v58, %v2924_v59  ;;  %v3004_v47 = vld [vmem:[#allocation9 + $0x1748] sm:$0xff] }
 0x2e0   :  { %8578 = vmatpush1.bf16.msra.mxu0 %v12092_v2  ;;  %8750 = vmatpush1.bf16.msra.mxu1 %v12094_v3  ;;  %v2932_v2 = vld [vmem:[#allocation9 + $0x1508] sm:$0xff] }
 0x2e1   :  { %8579 = vmatprep.subr.bf16.mxu0 %v12109_v5  ;;  %8751 = vmatprep.subr.bf16.mxu1 %v12111_v6  ;;  %v2940_v3 = vld [vmem:[#allocation9 + $0x1548] sm:$0xff]  ;;  %v12204_v5 = vcombine.low %v2915_v57, %v2923_v4  ;;  %v12206_v6 = vcombine.low %v2916_v58, %v2924_v59 }
 0x2e2   :  { %v12223_v8 = vcombine.high %v2932_v2, %v2940_v3  ;;  %v3012_v58 = vld [vmem:[#allocation9 + $0x1788] sm:$0xff] }
 0x2e3   :  { %v3020_v59 = vld [vmem:[#allocation9 + $0x17c8] sm:$0xff] }
 0x2e4   :  { %8580 = vmatpush1.bf16.msra.mxu0 %v12108_v11  ;;  %8752 = vmatpush1.bf16.msra.mxu1 %v12110_v12  ;;  %v2948_v11 = vld [vmem:[#allocation9 + $0x1588] sm:$0xff] }
 0x2e5   :  { %8581 = vmatprep.subr.bf16.mxu0 %v12125_v13  ;;  %8753 = vmatprep.subr.bf16.mxu1 %v12127_v14  ;;  %v2956_v12 = vld [vmem:[#allocation9 + $0x15c8] sm:$0xff]  ;;  %v12220_v13 = vcombine.low %v2931_v1, %v2939_v0  ;;  %v12222_v14 = vcombine.low %v2932_v2, %v2940_v3 }
 0x2e6   :  { %v12239_v16 = vcombine.high %v2948_v11, %v2956_v12 }
 0x2e8   :  { %8582 = vmatpush1.bf16.msra.mxu0 %v12124_v25  ;;  %8754 = vmatpush1.bf16.msra.mxu1 %v12126_v27  ;;  %v2964_v25 = vld [vmem:[#allocation9 + $0x1608] sm:$0xff] }
 0x2e9   :  { %8583 = vmatprep.subr.bf16.mxu0 %v12141_v30  ;;  %8755 = vmatprep.subr.bf16.mxu1 %v12143_v31  ;;  %v2972_v27 = vld [vmem:[#allocation9 + $0x1648] sm:$0xff]  ;;  %v12236_v30 = vcombine.low %v2947_v9, %v2955_v10  ;;  %v12238_v31 = vcombine.low %v2948_v11, %v2956_v12 }
 0x2ea   :  { %v12255_v33 = vcombine.high %v2964_v25, %v2972_v27  ;;  %v3028_v12 = vld [vmem:[#allocation9 + $0x1808] sm:$0xff] }
 0x2ec   :  { %8584 = vmatpush1.bf16.msra.mxu0 %v12140_v36  ;;  %8756 = vmatpush1.bf16.msra.mxu1 %v12142_v37  ;;  %v2980_v36 = vld [vmem:[#allocation9 + $0x1688] sm:$0xff] }
 0x2ed   :  { %8585 = vmatprep.subr.bf16.mxu0 %v12157_v38  ;;  %8757 = vmatprep.subr.bf16.mxu1 %v12159_v39  ;;  %v2988_v37 = vld [vmem:[#allocation9 + $0x16c8] sm:$0xff]  ;;  %v12252_v38 = vcombine.low %v2963_v17, %v2971_v23  ;;  %v12254_v39 = vcombine.low %v2964_v25, %v2972_v27  ;;  %v12302_v23 = vcombine.low %v3012_v58, %v3020_v59 }
 0x2ee   :  { %v12271_v40 = vcombine.high %v2980_v36, %v2988_v37  ;;  %v12270_v50 = vcombine.low %v2980_v36, %v2988_v37 }
 0x2f0   :  { %8586 = vmatpush1.bf16.msra.mxu0 %v12156_v43  ;;  %8758 = vmatpush1.bf16.msra.mxu1 %v12158_v44  ;;  %v13647_v43 = vsub.s32 6, %v13559_v19  ;;  %v13650_v44 = vsub.s32 5, %v13559_v19  ;;  %v3019_v19 = vld [vmem:[#allocation9 + $0x17c0] sm:$0xff] }
 0x2f1   :  { %8587 = vmatprep.subr.bf16.mxu0 %v12173_v45  ;;  %8759 = vmatprep.subr.bf16.mxu1 %v12175_v46  ;;  %v3003_v45 = vld [vmem:[#allocation9 + $0x1740] sm:$0xff]  ;;  %v2996_v46 = vld [vmem:[#allocation9 + $0x1708] sm:$0xff] }
 0x2f2   :  { %v598_v57 = vrot.slane %v13613_v51, %v13647_v43  ;;  %v594_v4 = vrot.slane %v13613_v51, %v13650_v44 }
 0x2f4   :  { %8588 = vmatpush1.bf16.msra.mxu0 %v12172_v52  ;;  %8760 = vmatpush1.bf16.msra.mxu1 %v12174_v53  ;;  %v590_v52 = vrot.slane %v13613_v51, %v13644_v41  ;;  %v12285_v53 = vcombine.high %v2995_v42, %v3003_v45 }
 0x2f5   :  { %8589 = vmatprep.subr.bf16.mxu0 %v12189_v55  ;;  %8761 = vmatprep.subr.bf16.mxu1 %v12191_v56  ;;  %v12287_v55 = vcombine.high %v2996_v46, %v3004_v47  ;;  %v3011_v56 = vld [vmem:[#allocation9 + $0x1780] sm:$0xff] }
 0x2f6   :  { %v12301_v3 = vcombine.high %v3011_v56, %v3019_v19  ;;  %v12300_v17 = vcombine.low %v3011_v56, %v3019_v19 }
 0x2f8   :  { %8590 = vmatpush1.bf16.msra.mxu0 %v12188_v60  ;;  %8762 = vmatpush1.bf16.msra.mxu1 %v12190_v61  ;;  %v602_v60 = vrot.slane %v13613_v51, %v13653_v48  ;;  %v3036_v51 = vld [vmem:[#allocation9 + $0x1848] sm:$0xff] }
 0x2f9   :  { %8591 = vmatprep.subr.bf16.mxu0 %v12205_v62  ;;  %8763 = vmatprep.subr.bf16.mxu1 %v12207_v63  ;;  %v12284_v62 = vcombine.low %v2995_v42, %v3003_v45  ;;  %v12286_v63 = vcombine.low %v2996_v46, %v3004_v47  ;;  %v12319_v35 = vcombine.high %v3028_v12, %v3036_v51  ;;  %v3051_v47 = vld [vmem:[#allocation9 + $0x18c0] sm:$0xff] }
 0x2fc   :  { %8592 = vmatpush1.bf16.msra.mxu0 %v12204_v5  ;;  %8764 = vmatpush1.bf16.msra.mxu1 %v12206_v6  ;;  %v12303_v5 = vcombine.high %v3012_v58, %v3020_v59  ;;  %v3027_v6 = vld [vmem:[#allocation9 + $0x1800] sm:$0xff]  ;;  %v3060_v59 = vld [vmem:[#allocation9 + $0x1908] sm:$0xff] }
 0x2fd   :  { %8593 = vmatprep.subr.bf16.mxu0 %v12221_v7  ;;  %8765 = vmatprep.subr.bf16.mxu1 %v12223_v8  ;;  %v3035_v7 = vld [vmem:[#allocation9 + $0x1840] sm:$0xff] }
 0x2fe   :  { %v12316_v46 = vcombine.low %v3027_v6, %v3035_v7  ;;  %v3067_v58 = vld [vmem:[#allocation9 + $0x1940] sm:$0xff] }
 0x300   :  { %8594 = vmatpush1.bf16.msra.mxu0 %v12220_v13  ;;  %8766 = vmatpush1.bf16.msra.mxu1 %v12222_v14 }
 0x301   :  { %8595 = vmatprep.subr.bf16.mxu0 %v12237_v15  ;;  %8767 = vmatprep.subr.bf16.mxu1 %v12239_v16 }
 0x304   :  { %8596 = vmatpush1.bf16.msra.mxu0 %v12236_v30  ;;  %8768 = vmatpush1.bf16.msra.mxu1 %v12238_v31  ;;  %v12317_v31 = vcombine.high %v3027_v6, %v3035_v7 }
 0x305   :  { %8597 = vmatprep.subr.bf16.mxu0 %v12253_v32  ;;  %8769 = vmatprep.subr.bf16.mxu1 %v12255_v33 }
 0x308   :  { %8598 = vmatpush1.bf16.msra.mxu0 %v12252_v38  ;;  %8770 = vmatpush1.bf16.msra.mxu1 %v12254_v39 }
 0x309   :  { %8599 = vmatprep.subr.bf16.mxu0 %v12269_v54  ;;  %8771 = vmatprep.subr.bf16.mxu1 %v12271_v40  ;;  %v3043_v54 = vld [vmem:[#allocation9 + $0x1880] sm:$0xff] }
 0x30c   :  { %8600 = vmatpush1.bf16.msra.mxu0 %v12268_v49  ;;  %8772 = vmatpush1.bf16.msra.mxu1 %v12270_v50  ;;  %v2140_v61 = vpop.f32.mrb[8].mxu0  ;;  %v3044_v49 = vld [vmem:[#allocation9 + $0x1888] sm:$0xff] }
 0x30d   :  { %v12885_v1 = vadd.f32 %v2140_v61, %v590_v52  ;;  %v2226_v0 = vpop.f32.mrb[8].mxu1  ;;  %v2142_v2 = vpop.f32.mrb[9].mxu0  ;;  %8601 = vmatprep.subr.bf16.mxu0 %v12285_v53  ;;  %8773 = vmatprep.subr.bf16.mxu1 %v12287_v55  ;;  %v3052_v50 = vld [vmem:[#allocation9 + $0x18c8] sm:$0xff]  ;;  %v12318_v55 = vcombine.low %v3028_v12, %v3036_v51  ;;  %v12332_v61 = vcombine.low %v3043_v54, %v3051_v47 }
 0x30e   :  { %v12889_v8 = vadd.f32 %v2226_v0, %v598_v57  ;;  %v12886_v9 = vadd.f32 %v2142_v2, %v594_v4  ;;  %v2228_v10 = vpop.f32.mrb[9].mxu1  ;;  %v2144_v11 = vpop.f32.mrb[10].mxu0  ;;  %v12335_v19 = vcombine.high %v3044_v49, %v3052_v50  ;;  %v3075_v0 = vld [vmem:[#allocation9 + $0x1980] sm:$0xff]  ;;  %v3092_v12 = vld [vmem:[#allocation9 + $0x1a08] sm:$0xff] }
 0x30f   :  { %v12890_v13 = vadd.f32 %v2228_v10, %v602_v60  ;;  %v12887_v14 = vadd.f32 %v2144_v11, %v590_v52  ;;  %v2230_v15 = vpop.f32.mrb[10].mxu1  ;;  %v2146_v16 = vpop.f32.mrb[11].mxu0  ;;  %v2239_v32 = vmax.f32 %v12885_v1, 0.0  ;;  %v3083_v2 = vld [vmem:[#allocation9 + $0x19c0] sm:$0xff]  ;;  %v3100_v51 = vld [vmem:[#allocation9 + $0x1a48] sm:$0xff] }
 0x310   :  { %v12891_v25 = vadd.f32 %v2230_v15, %v598_v57  ;;  %v12888_v27 = vadd.f32 %v2146_v16, %v594_v4  ;;  %v2232_v30 = vpop.f32.mrb[11].mxu1  ;;  %8602 = vmatpush1.bf16.msra.mxu0 %v12284_v62  ;;  %8774 = vmatpush1.bf16.msra.mxu1 %v12286_v63  ;;  %v2241_v36 = vmax.f32 %v12889_v8, 0.0  ;;  %v2240_v37 = vmax.f32 %v12886_v9, 0.0  ;;  %v3059_v57 = vld [vmem:[#allocation9 + $0x1900] sm:$0xff] }
 0x311   :  { %v2247_v33 = vmax.f32 %v12887_v14, 0.0  ;;  %v12892_v34 = vadd.f32 %v2232_v30, %v602_v60  ;;  %8603 = vmatprep.subr.bf16.mxu0 %v12301_v3  ;;  %8775 = vmatprep.subr.bf16.mxu1 %v12303_v5  ;;  %v2242_v40 = vmax.f32 %v12890_v13, 0.0  ;;  %v12333_v4 = vcombine.high %v3043_v54, %v3051_v47  ;;  %v3068_v60 = vld [vmem:[#allocation9 + $0x1948] sm:$0xff]  ;;  %v3091_v10 = vld [vmem:[#allocation9 + $0x1a00] sm:$0xff] }
 0x312   :  { %v2249_v38 = vmax.f32 %v12891_v25, 0.0  ;;  %v2248_v39 = vmax.f32 %v12888_v27, 0.0  ;;  %v12334_v62 = vcombine.low %v3044_v49, %v3052_v50  ;;  %v12349_v63 = vcombine.high %v3059_v57, %v3067_v58  ;;  %v3076_v3 = vld [vmem:[#allocation9 + $0x1988] sm:$0xff]  ;;  %v3099_v11 = vld [vmem:[#allocation9 + $0x1a40] sm:$0xff] }
 0x313   :  { %v13663_v42 = vpack.c.bf16 %v2247_v33, %v2239_v32  ;;  %v2250_v45 = vmax.f32 %v12892_v34, 0.0  ;;  %v12351_v1 = vcombine.high %v3060_v59, %v3068_v60  ;;  %v3084_v5 = vld [vmem:[#allocation9 + $0x19c8] sm:$0xff]  ;;  %v12348_v6 = vcombine.low %v3059_v57, %v3067_v58  ;;  %v3123_v34 = vld [vmem:[#allocation9 + $0x1b00] sm:$0xff] }
 0x314   :  { %v13665_v52 = vpack.c.bf16 %v2249_v38, %v2241_v36  ;;  %v13667_v53 = vpack.c.bf16 %v2248_v39, %v2240_v37  ;;  %8604 = vmatpush1.bf16.msra.mxu0 %v12300_v17  ;;  %8776 = vmatpush1.bf16.msra.mxu1 %v12302_v23  ;;  %v12350_v7 = vcombine.low %v3060_v59, %v3068_v60  ;;  %v3107_v17 = vld [vmem:[#allocation9 + $0x1a80] sm:$0xff]  ;;  %v3108_v25 = vld [vmem:[#allocation9 + $0x1a88] sm:$0xff] }
 0x315   :  { %v13669_v56 = vpack.c.bf16 %v2250_v45, %v2242_v40  ;;  %8616 = vmatprep.subr.bf16.mxu0 %v12317_v31  ;;  %8788 = vmatprep.subr.bf16.mxu1 %v12319_v35  ;;  %v12365_v8 = vcombine.high %v3075_v0, %v3083_v2  ;;  %v12367_v9 = vcombine.high %v3076_v3, %v3084_v5  ;;  %v3115_v23 = vld [vmem:[#allocation9 + $0x1ac0] sm:$0xff]  ;;  %v3116_v27 = vld [vmem:[#allocation9 + $0x1ac8] sm:$0xff] }
 0x316   :  { %8605 = vmatprep.mubr.bf16.mxu0 %v13667_v53  ;;  %8777 = vmatprep.mubr.bf16.mxu1 %v13667_v53  ;;  %v12364_v13 = vcombine.low %v3075_v0, %v3083_v2  ;;  %v12366_v14 = vcombine.low %v3076_v3, %v3084_v5  ;;  %v12381_v15 = vcombine.high %v3091_v10, %v3099_v11  ;;  %v3131_v35 = vld [vmem:[#allocation9 + $0x1b40] sm:$0xff]  ;;  %v3124_v36 = vld [vmem:[#allocation9 + $0x1b08] sm:$0xff] }
 0x317   :  { %8606 = vmatmul.mubr.bf16.vlgmr.msra.gmra.mrb[12].mxu0 %v13663_v42  ;;  %8778 = vmatmul.mubr.bf16.vlgmr.msra.gmra.mrb[12].mxu1 %v13663_v42  ;;  %v12383_v16 = vcombine.high %v3092_v12, %v3100_v51  ;;  %v12380_v30 = vcombine.low %v3091_v10, %v3099_v11  ;;  %v12382_v31 = vcombine.low %v3092_v12, %v3100_v51  ;;  %v3132_v37 = vld [vmem:[#allocation9 + $0x1b48] sm:$0xff]  ;;  %v3139_v45 = vld [vmem:[#allocation9 + $0x1b80] sm:$0xff] }
 0x318   :  { %8617 = vmatpush1.bf16.msra.mxu0 %v12316_v46  ;;  %8789 = vmatpush1.bf16.msra.mxu1 %v12318_v55  ;;  %v12397_v32 = vcombine.high %v3107_v17, %v3115_v23  ;;  %v12399_v33 = vcombine.high %v3108_v25, %v3116_v27  ;;  %v12396_v38 = vcombine.low %v3107_v17, %v3115_v23  ;;  %v3147_v46 = vld [vmem:[#allocation9 + $0x1bc0] sm:$0xff]  ;;  %v3140_v47 = vld [vmem:[#allocation9 + $0x1b88] sm:$0xff] }
 0x319   :  { %8648 = vmatprep.mubr.bf16.mxu0 %v13669_v56  ;;  %8820 = vmatprep.mubr.bf16.mxu1 %v13669_v56  ;;  %v12398_v39 = vcombine.low %v3108_v25, %v3116_v27  ;;  %v12413_v54 = vcombine.high %v3123_v34, %v3131_v35  ;;  %v12415_v40 = vcombine.high %v3124_v36, %v3132_v37  ;;  %v3148_v49 = vld [vmem:[#allocation9 + $0x1bc8] sm:$0xff]  ;;  %v3163_v58 = vld [vmem:[#allocation9 + $0x1c40] sm:$0xff] }
 0x31a   :  { %8618 = vmatprep.subr.bf16.mxu0 %v12333_v4  ;;  %8790 = vmatprep.subr.bf16.mxu1 %v12335_v19  ;;  %v12412_v50 = vcombine.low %v3123_v34, %v3131_v35  ;;  %v12414_v55 = vcombine.low %v3124_v36, %v3132_v37  ;;  %v12429_v57 = vcombine.high %v3139_v45, %v3147_v46  ;;  %v3155_v19 = vld [vmem:[#allocation9 + $0x1c00] sm:$0xff]  ;;  %v3156_v59 = vld [vmem:[#allocation9 + $0x1c08] sm:$0xff] }
 0x31b   :  { %v12431_v4 = vcombine.high %v3140_v47, %v3148_v49  ;;  %v3164_v60 = vld [vmem:[#allocation9 + $0x1c48] sm:$0xff]  ;;  %v3171_v0 = vld [vmem:[#allocation9 + $0x1c80] sm:$0xff] }
 0x31c   :  { %8619 = vmatpush1.bf16.msra.mxu0 %v12332_v61  ;;  %8791 = vmatpush1.bf16.msra.mxu1 %v12334_v62  ;;  %v12428_v61 = vcombine.low %v3139_v45, %v3147_v46  ;;  %v12430_v62 = vcombine.low %v3140_v47, %v3148_v49  ;;  %v3179_v2 = vld [vmem:[#allocation9 + $0x1cc0] sm:$0xff]  ;;  %v3172_v3 = vld [vmem:[#allocation9 + $0x1c88] sm:$0xff] }
 0x31d   :  { %8620 = vmatprep.subr.bf16.mxu0 %v12349_v63  ;;  %8792 = vmatprep.subr.bf16.mxu1 %v12351_v1  ;;  %v12445_v63 = vcombine.high %v3155_v19, %v3163_v58  ;;  %v12447_v1 = vcombine.high %v3156_v59, %v3164_v60  ;;  %v3180_v5 = vld [vmem:[#allocation9 + $0x1cc8] sm:$0xff]  ;;  %v3187_v10 = vld [vmem:[#allocation9 + $0x1d00] sm:$0xff] }
 0x31e   :  { %v3195_v11 = vld [vmem:[#allocation9 + $0x1d40] sm:$0xff]  ;;  %v3188_v12 = vld [vmem:[#allocation9 + $0x1d08] sm:$0xff] }
 0x31f   :  { %v3196_v51 = vld [vmem:[#allocation9 + $0x1d48] sm:$0xff]  ;;  %v3203_v17 = vld [vmem:[#allocation9 + $0x1d80] sm:$0xff] }
 0x320   :  { %8621 = vmatpush1.bf16.msra.mxu0 %v12348_v6  ;;  %8793 = vmatpush1.bf16.msra.mxu1 %v12350_v7  ;;  %v12444_v6 = vcombine.low %v3155_v19, %v3163_v58  ;;  %v12446_v7 = vcombine.low %v3156_v59, %v3164_v60  ;;  %v3211_v23 = vld [vmem:[#allocation9 + $0x1dc0] sm:$0xff]  ;;  %v3204_v25 = vld [vmem:[#allocation9 + $0x1d88] sm:$0xff] }
 0x321   :  { %8622 = vmatprep.subr.bf16.mxu0 %v12365_v8  ;;  %8794 = vmatprep.subr.bf16.mxu1 %v12367_v9  ;;  %v12461_v8 = vcombine.high %v3171_v0, %v3179_v2  ;;  %v12463_v9 = vcombine.high %v3172_v3, %v3180_v5  ;;  %v3212_v27 = vld [vmem:[#allocation9 + $0x1dc8] sm:$0xff]  ;;  %v3219_v34 = vld [vmem:[#allocation9 + $0x1e00] sm:$0xff] }
 0x322   :  { %v3227_v35 = vld [vmem:[#allocation9 + $0x1e40] sm:$0xff]  ;;  %v3220_v36 = vld [vmem:[#allocation9 + $0x1e08] sm:$0xff] }
 0x323   :  { %v3228_v37 = vld [vmem:[#allocation9 + $0x1e48] sm:$0xff]  ;;  %v3235_v45 = vld [vmem:[#allocation9 + $0x1e80] sm:$0xff] }
 0x324   :  { %8623 = vmatpush1.bf16.msra.mxu0 %v12364_v13  ;;  %8795 = vmatpush1.bf16.msra.mxu1 %v12366_v14  ;;  %v12460_v13 = vcombine.low %v3171_v0, %v3179_v2  ;;  %v12462_v14 = vcombine.low %v3172_v3, %v3180_v5  ;;  %v3243_v46 = vld [vmem:[#allocation9 + $0x1ec0] sm:$0xff]  ;;  %v3236_v47 = vld [vmem:[#allocation9 + $0x1e88] sm:$0xff] }
 0x325   :  { %8624 = vmatprep.subr.bf16.mxu0 %v12381_v15  ;;  %8796 = vmatprep.subr.bf16.mxu1 %v12383_v16  ;;  %v12477_v15 = vcombine.high %v3187_v10, %v3195_v11  ;;  %v12479_v16 = vcombine.high %v3188_v12, %v3196_v51  ;;  %v3244_v49 = vld [vmem:[#allocation9 + $0x1ec8] sm:$0xff]  ;;  %v3251_v19 = vld [vmem:[#allocation9 + $0x1f00] sm:$0xff] }
 0x326   :  { %v3259_v58 = vld [vmem:[#allocation9 + $0x1f40] sm:$0xff]  ;;  %v3252_v59 = vld [vmem:[#allocation9 + $0x1f08] sm:$0xff] }
 0x327   :  { %v3260_v60 = vld [vmem:[#allocation9 + $0x1f48] sm:$0xff]  ;;  %v3267_v0 = vld [vmem:[#allocation9 + $0x1f80] sm:$0xff] }
 0x328   :  { %8625 = vmatpush1.bf16.msra.mxu0 %v12380_v30  ;;  %8797 = vmatpush1.bf16.msra.mxu1 %v12382_v31  ;;  %v12476_v30 = vcombine.low %v3187_v10, %v3195_v11  ;;  %v12478_v31 = vcombine.low %v3188_v12, %v3196_v51  ;;  %v3275_v2 = vld [vmem:[#allocation9 + $0x1fc0] sm:$0xff]  ;;  %v3268_v3 = vld [vmem:[#allocation9 + $0x1f88] sm:$0xff]  ;;  %v2261_v10 = vld [vmem:[#allocation9 + $0x10] sm:$0xff] }
 0x329   :  { %8626 = vmatprep.subr.bf16.mxu0 %v12397_v32  ;;  %8798 = vmatprep.subr.bf16.mxu1 %v12399_v33  ;;  %v12493_v32 = vcombine.high %v3203_v17, %v3211_v23  ;;  %v12495_v33 = vcombine.high %v3204_v25, %v3212_v27  ;;  %v3276_v5 = vld [vmem:[#allocation9 + $0x1fc8] sm:$0xff]  ;;  %v2269_v11 = vld [vmem:[#allocation9 + $0x50] sm:$0xff]  ;;  %v2262_v12 = vld [vmem:[#allocation9 + $0x18] sm:$0xff] }
 0x32a   :  { %v2270_v51 = vld [vmem:[#allocation9 + $0x58] sm:$0xff] }
 0x32c   :  { %8627 = vmatpush1.bf16.msra.mxu0 %v12396_v38  ;;  %8799 = vmatpush1.bf16.msra.mxu1 %v12398_v39  ;;  %v12492_v38 = vcombine.low %v3203_v17, %v3211_v23  ;;  %v12494_v39 = vcombine.low %v3204_v25, %v3212_v27  ;;  %v2277_v17 = vld [vmem:[#allocation9 + $0x90] sm:$0xff]  ;;  %v2278_v25 = vld [vmem:[#allocation9 + $0x98] sm:$0xff] }
 0x32d   :  { %8628 = vmatprep.subr.bf16.mxu0 %v12413_v54  ;;  %8800 = vmatprep.subr.bf16.mxu1 %v12415_v40  ;;  %v12509_v54 = vcombine.high %v3219_v34, %v3227_v35  ;;  %v12511_v40 = vcombine.high %v3220_v36, %v3228_v37  ;;  %v2285_v23 = vld [vmem:[#allocation9 + $0xd0] sm:$0xff]  ;;  %v2286_v27 = vld [vmem:[#allocation9 + $0xd8] sm:$0xff] }
 0x330   :  { %8629 = vmatpush1.bf16.msra.mxu0 %v12412_v50  ;;  %8801 = vmatpush1.bf16.msra.mxu1 %v12414_v55  ;;  %v12508_v50 = vcombine.low %v3219_v34, %v3227_v35  ;;  %v12510_v55 = vcombine.low %v3220_v36, %v3228_v37  ;;  %v2293_v34 = vld [vmem:[#allocation9 + $0x110] sm:$0xff]  ;;  %v2294_v36 = vld [vmem:[#allocation9 + $0x118] sm:$0xff] }
 0x331   :  { %8630 = vmatprep.subr.bf16.mxu0 %v12429_v57  ;;  %8802 = vmatprep.subr.bf16.mxu1 %v12431_v4  ;;  %v12525_v57 = vcombine.high %v3235_v45, %v3243_v46  ;;  %v12527_v4 = vcombine.high %v3236_v47, %v3244_v49  ;;  %v2301_v35 = vld [vmem:[#allocation9 + $0x150] sm:$0xff]  ;;  %v2302_v37 = vld [vmem:[#allocation9 + $0x158] sm:$0xff] }
 0x334   :  { %8631 = vmatpush1.bf16.msra.mxu0 %v12428_v61  ;;  %8803 = vmatpush1.bf16.msra.mxu1 %v12430_v62  ;;  %v12524_v61 = vcombine.low %v3235_v45, %v3243_v46  ;;  %v12526_v62 = vcombine.low %v3236_v47, %v3244_v49  ;;  %v2309_v45 = vld [vmem:[#allocation9 + $0x190] sm:$0xff]  ;;  %v2310_v47 = vld [vmem:[#allocation9 + $0x198] sm:$0xff] }
 0x335   :  { %8632 = vmatprep.subr.bf16.mxu0 %v12445_v63  ;;  %8804 = vmatprep.subr.bf16.mxu1 %v12447_v1  ;;  %v12541_v63 = vcombine.high %v3251_v19, %v3259_v58  ;;  %v12543_v1 = vcombine.high %v3252_v59, %v3260_v60  ;;  %v2317_v46 = vld [vmem:[#allocation9 + $0x1d0] sm:$0xff]  ;;  %v2318_v49 = vld [vmem:[#allocation9 + $0x1d8] sm:$0xff] }
 0x338   :  { %8633 = vmatpush1.bf16.msra.mxu0 %v12444_v6  ;;  %8805 = vmatpush1.bf16.msra.mxu1 %v12446_v7  ;;  %v12540_v6 = vcombine.low %v3251_v19, %v3259_v58  ;;  %v12542_v7 = vcombine.low %v3252_v59, %v3260_v60  ;;  %v2325_v19 = vld [vmem:[#allocation9 + $0x210] sm:$0xff]  ;;  %v2326_v59 = vld [vmem:[#allocation9 + $0x218] sm:$0xff] }
 0x339   :  { %8634 = vmatprep.subr.bf16.mxu0 %v12461_v8  ;;  %8806 = vmatprep.subr.bf16.mxu1 %v12463_v9  ;;  %v12557_v8 = vcombine.high %v3267_v0, %v3275_v2  ;;  %v12559_v9 = vcombine.high %v3268_v3, %v3276_v5  ;;  %v2333_v58 = vld [vmem:[#allocation9 + $0x250] sm:$0xff]  ;;  %v2334_v60 = vld [vmem:[#allocation9 + $0x258] sm:$0xff] }
 0x33c   :  { %8635 = vmatpush1.bf16.msra.mxu0 %v12460_v13  ;;  %8807 = vmatpush1.bf16.msra.mxu1 %v12462_v14  ;;  %v12556_v13 = vcombine.low %v3267_v0, %v3275_v2  ;;  %v12558_v14 = vcombine.low %v3268_v3, %v3276_v5  ;;  %v2341_v0 = vld [vmem:[#allocation9 + $0x290] sm:$0xff]  ;;  %v2342_v3 = vld [vmem:[#allocation9 + $0x298] sm:$0xff] }
 0x33d   :  { %8636 = vmatprep.subr.bf16.mxu0 %v12477_v15  ;;  %8808 = vmatprep.subr.bf16.mxu1 %v12479_v16  ;;  %v11553_v15 = vcombine.high %v2261_v10, %v2269_v11  ;;  %v11555_v16 = vcombine.high %v2262_v12, %v2270_v51  ;;  %v2349_v2 = vld [vmem:[#allocation9 + $0x2d0] sm:$0xff]  ;;  %v2350_v5 = vld [vmem:[#allocation9 + $0x2d8] sm:$0xff] }
 0x340   :  { %8637 = vmatpush1.bf16.msra.mxu0 %v12476_v30  ;;  %8809 = vmatpush1.bf16.msra.mxu1 %v12478_v31  ;;  %v11552_v30 = vcombine.low %v2261_v10, %v2269_v11  ;;  %v11554_v31 = vcombine.low %v2262_v12, %v2270_v51  ;;  %v2357_v10 = vld [vmem:[#allocation9 + $0x310] sm:$0xff]  ;;  %v2358_v12 = vld [vmem:[#allocation9 + $0x318] sm:$0xff] }
 0x341   :  { %8638 = vmatprep.subr.bf16.mxu0 %v12493_v32  ;;  %8810 = vmatprep.subr.bf16.mxu1 %v12495_v33  ;;  %v11569_v32 = vcombine.high %v2277_v17, %v2285_v23  ;;  %v11571_v33 = vcombine.high %v2278_v25, %v2286_v27  ;;  %v2365_v11 = vld [vmem:[#allocation9 + $0x350] sm:$0xff]  ;;  %v2366_v51 = vld [vmem:[#allocation9 + $0x358] sm:$0xff] }
 0x344   :  { %8639 = vmatpush1.bf16.msra.mxu0 %v12492_v38  ;;  %8811 = vmatpush1.bf16.msra.mxu1 %v12494_v39  ;;  %v11568_v38 = vcombine.low %v2277_v17, %v2285_v23  ;;  %v11570_v39 = vcombine.low %v2278_v25, %v2286_v27  ;;  %v2373_v17 = vld [vmem:[#allocation9 + $0x390] sm:$0xff]  ;;  %v2374_v25 = vld [vmem:[#allocation9 + $0x398] sm:$0xff] }
 0x345   :  { %8640 = vmatprep.subr.bf16.mxu0 %v12509_v54  ;;  %8812 = vmatprep.subr.bf16.mxu1 %v12511_v40  ;;  %v11585_v54 = vcombine.high %v2293_v34, %v2301_v35  ;;  %v11587_v40 = vcombine.high %v2294_v36, %v2302_v37  ;;  %v2381_v23 = vld [vmem:[#allocation9 + $0x3d0] sm:$0xff]  ;;  %v2382_v27 = vld [vmem:[#allocation9 + $0x3d8] sm:$0xff] }
 0x348   :  { %8641 = vmatpush1.bf16.msra.mxu0 %v12508_v50  ;;  %8813 = vmatpush1.bf16.msra.mxu1 %v12510_v55  ;;  %v11584_v50 = vcombine.low %v2293_v34, %v2301_v35  ;;  %v11586_v55 = vcombine.low %v2294_v36, %v2302_v37  ;;  %v2389_v34 = vld [vmem:[#allocation9 + $0x410] sm:$0xff]  ;;  %v2390_v36 = vld [vmem:[#allocation9 + $0x418] sm:$0xff] }
 0x349   :  { %8642 = vmatprep.subr.bf16.mxu0 %v12525_v57  ;;  %8814 = vmatprep.subr.bf16.mxu1 %v12527_v4  ;;  %v11601_v57 = vcombine.high %v2309_v45, %v2317_v46  ;;  %v11603_v4 = vcombine.high %v2310_v47, %v2318_v49  ;;  %v2397_v35 = vld [vmem:[#allocation9 + $0x450] sm:$0xff]  ;;  %v2398_v37 = vld [vmem:[#allocation9 + $0x458] sm:$0xff] }
 0x34c   :  { %8643 = vmatpush1.bf16.msra.mxu0 %v12524_v61  ;;  %8815 = vmatpush1.bf16.msra.mxu1 %v12526_v62  ;;  %v11600_v61 = vcombine.low %v2309_v45, %v2317_v46  ;;  %v11602_v62 = vcombine.low %v2310_v47, %v2318_v49  ;;  %v2405_v45 = vld [vmem:[#allocation9 + $0x490] sm:$0xff]  ;;  %v2406_v47 = vld [vmem:[#allocation9 + $0x498] sm:$0xff] }
 0x34d   :  { %8644 = vmatprep.subr.bf16.mxu0 %v12541_v63  ;;  %8816 = vmatprep.subr.bf16.mxu1 %v12543_v1  ;;  %v11617_v63 = vcombine.high %v2325_v19, %v2333_v58  ;;  %v11619_v1 = vcombine.high %v2326_v59, %v2334_v60  ;;  %v2413_v46 = vld [vmem:[#allocation9 + $0x4d0] sm:$0xff]  ;;  %v2414_v49 = vld [vmem:[#allocation9 + $0x4d8] sm:$0xff] }
 0x350   :  { %8645 = vmatpush1.bf16.msra.mxu0 %v12540_v6  ;;  %8817 = vmatpush1.bf16.msra.mxu1 %v12542_v7  ;;  %v11616_v6 = vcombine.low %v2325_v19, %v2333_v58  ;;  %v11618_v7 = vcombine.low %v2326_v59, %v2334_v60  ;;  %v2421_v19 = vld [vmem:[#allocation9 + $0x510] sm:$0xff]  ;;  %v2422_v59 = vld [vmem:[#allocation9 + $0x518] sm:$0xff] }
 0x351   :  { %8646 = vmatprep.subr.bf16.mxu0 %v12557_v8  ;;  %8818 = vmatprep.subr.bf16.mxu1 %v12559_v9  ;;  %v11633_v8 = vcombine.high %v2341_v0, %v2349_v2  ;;  %v11635_v9 = vcombine.high %v2342_v3, %v2350_v5  ;;  %v2429_v58 = vld [vmem:[#allocation9 + $0x550] sm:$0xff]  ;;  %v2430_v60 = vld [vmem:[#allocation9 + $0x558] sm:$0xff] }
 0x354   :  { %8647 = vmatpush1.bf16.msra.mxu0 %v12556_v13  ;;  %8819 = vmatpush1.bf16.msra.mxu1 %v12558_v14  ;;  %v11632_v13 = vcombine.low %v2341_v0, %v2349_v2  ;;  %v11634_v14 = vcombine.low %v2342_v3, %v2350_v5  ;;  %v2437_v0 = vld [vmem:[#allocation9 + $0x590] sm:$0xff]  ;;  %v2438_v3 = vld [vmem:[#allocation9 + $0x598] sm:$0xff] }
 0x355   :  { %8831 = vmatprep.subr.bf16.mxu0 %v11553_v15  ;;  %9003 = vmatprep.subr.bf16.mxu1 %v11555_v16  ;;  %v11649_v15 = vcombine.high %v2357_v10, %v2365_v11  ;;  %v11651_v16 = vcombine.high %v2358_v12, %v2366_v51  ;;  %v2445_v2 = vld [vmem:[#allocation9 + $0x5d0] sm:$0xff]  ;;  %v2446_v5 = vld [vmem:[#allocation9 + $0x5d8] sm:$0xff] }
 0x357   :  { %8649 = vmatmul.mubr.bf16.vlgmr.msra.gmra.mrb[12].mxu0 %v13665_v52  ;;  %8821 = vmatmul.mubr.bf16.vlgmr.msra.gmra.mrb[12].mxu1 %v13665_v52 }
 0x358   :  { %8832 = vmatpush1.bf16.msra.mxu0 %v11552_v30  ;;  %8863 = vmatprep.mubr.bf16.mxu0 %v13627_v28  ;;  %v11648_v30 = vcombine.low %v2357_v10, %v2365_v11  ;;  %v2453_v10 = vld [vmem:[#allocation9 + $0x610] sm:$0xff] }
 0x359   :  { %9004 = vmatpush1.bf16.msra.mxu1 %v11554_v31  ;;  %9035 = vmatprep.mubr.bf16.mxu1 %v13627_v28  ;;  %v11650_v31 = vcombine.low %v2358_v12, %v2366_v51  ;;  %v2461_v11 = vld [vmem:[#allocation9 + $0x650] sm:$0xff]  ;;  %v2454_v12 = vld [vmem:[#allocation9 + $0x618] sm:$0xff] }
 0x35a   :  { %8833 = vmatprep.subr.bf16.mxu0 %v11569_v32  ;;  %9005 = vmatprep.subr.bf16.mxu1 %v11571_v33  ;;  %v11665_v32 = vcombine.high %v2373_v17, %v2381_v23  ;;  %v11667_v33 = vcombine.high %v2374_v25, %v2382_v27  ;;  %v2462_v51 = vld [vmem:[#allocation9 + $0x658] sm:$0xff] }
 0x35c   :  { %8834 = vmatpush1.bf16.msra.mxu0 %v11568_v38  ;;  %v11664_v38 = vcombine.low %v2373_v17, %v2381_v23  ;;  %v2469_v17 = vld [vmem:[#allocation9 + $0x690] sm:$0xff] }
 0x35d   :  { %9006 = vmatpush1.bf16.msra.mxu1 %v11570_v39  ;;  %8835 = vmatprep.subr.bf16.mxu0 %v11585_v54  ;;  %v11666_v39 = vcombine.low %v2374_v25, %v2382_v27  ;;  %v11681_v54 = vcombine.high %v2389_v34, %v2397_v35  ;;  %v2477_v23 = vld [vmem:[#allocation9 + $0x6d0] sm:$0xff]  ;;  %v2470_v25 = vld [vmem:[#allocation9 + $0x698] sm:$0xff] }
 0x35e   :  { %9007 = vmatprep.subr.bf16.mxu1 %v11587_v40  ;;  %v11683_v40 = vcombine.high %v2390_v36, %v2398_v37  ;;  %v2478_v27 = vld [vmem:[#allocation9 + $0x6d8] sm:$0xff] }
 0x360   :  { %8836 = vmatpush1.bf16.msra.mxu0 %v11584_v50  ;;  %v11680_v50 = vcombine.low %v2389_v34, %v2397_v35  ;;  %v2485_v34 = vld [vmem:[#allocation9 + $0x710] sm:$0xff] }
 0x361   :  { %9008 = vmatpush1.bf16.msra.mxu1 %v11586_v55  ;;  %8837 = vmatprep.subr.bf16.mxu0 %v11601_v57  ;;  %v11682_v55 = vcombine.low %v2390_v36, %v2398_v37  ;;  %v11697_v57 = vcombine.high %v2405_v45, %v2413_v46  ;;  %v2493_v35 = vld [vmem:[#allocation9 + $0x750] sm:$0xff]  ;;  %v2486_v36 = vld [vmem:[#allocation9 + $0x718] sm:$0xff] }
 0x362   :  { %9009 = vmatprep.subr.bf16.mxu1 %v11603_v4  ;;  %v11699_v4 = vcombine.high %v2406_v47, %v2414_v49  ;;  %v2494_v37 = vld [vmem:[#allocation9 + $0x758] sm:$0xff] }
 0x364   :  { %8838 = vmatpush1.bf16.msra.mxu0 %v11600_v61  ;;  %v11696_v61 = vcombine.low %v2405_v45, %v2413_v46  ;;  %v2501_v45 = vld [vmem:[#allocation9 + $0x790] sm:$0xff] }
 0x365   :  { %9010 = vmatpush1.bf16.msra.mxu1 %v11602_v62  ;;  %8839 = vmatprep.subr.bf16.mxu0 %v11617_v63  ;;  %v11698_v62 = vcombine.low %v2406_v47, %v2414_v49  ;;  %v11713_v63 = vcombine.high %v2421_v19, %v2429_v58  ;;  %v2509_v46 = vld [vmem:[#allocation9 + $0x7d0] sm:$0xff]  ;;  %v2502_v47 = vld [vmem:[#allocation9 + $0x798] sm:$0xff] }
 0x366   :  { %9011 = vmatprep.subr.bf16.mxu1 %v11619_v1  ;;  %v11715_v1 = vcombine.high %v2422_v59, %v2430_v60  ;;  %v2510_v49 = vld [vmem:[#allocation9 + $0x7d8] sm:$0xff] }
 0x368   :  { %8840 = vmatpush1.bf16.msra.mxu0 %v11616_v6  ;;  %v11712_v6 = vcombine.low %v2421_v19, %v2429_v58  ;;  %v2517_v19 = vld [vmem:[#allocation9 + $0x810] sm:$0xff] }
 0x369   :  { %9012 = vmatpush1.bf16.msra.mxu1 %v11618_v7  ;;  %8841 = vmatprep.subr.bf16.mxu0 %v11633_v8  ;;  %v11714_v7 = vcombine.low %v2422_v59, %v2430_v60  ;;  %v11729_v8 = vcombine.high %v2437_v0, %v2445_v2  ;;  %v2525_v58 = vld [vmem:[#allocation9 + $0x850] sm:$0xff]  ;;  %v2518_v59 = vld [vmem:[#allocation9 + $0x818] sm:$0xff] }
 0x36a   :  { %9013 = vmatprep.subr.bf16.mxu1 %v11635_v9  ;;  %v11731_v9 = vcombine.high %v2438_v3, %v2446_v5  ;;  %v2526_v60 = vld [vmem:[#allocation9 + $0x858] sm:$0xff] }
 0x36c   :  { %8842 = vmatpush1.bf16.msra.mxu0 %v11632_v13  ;;  %v11728_v13 = vcombine.low %v2437_v0, %v2445_v2  ;;  %v2533_v0 = vld [vmem:[#allocation9 + $0x890] sm:$0xff] }
 0x36d   :  { %9014 = vmatpush1.bf16.msra.mxu1 %v11634_v14  ;;  %8843 = vmatprep.subr.bf16.mxu0 %v11649_v15  ;;  %v11730_v14 = vcombine.low %v2438_v3, %v2446_v5  ;;  %v11745_v15 = vcombine.high %v2453_v10, %v2461_v11  ;;  %v2541_v2 = vld [vmem:[#allocation9 + $0x8d0] sm:$0xff]  ;;  %v11808_v3 = vcombine.low %v2517_v19, %v2525_v58  ;;  %v2534_v5 = vld [vmem:[#allocation9 + $0x898] sm:$0xff] }
 0x36e   :  { %9015 = vmatprep.subr.bf16.mxu1 %v11651_v16  ;;  %v11747_v16 = vcombine.high %v2454_v12, %v2462_v51 }
 0x370   :  { %8844 = vmatpush1.bf16.msra.mxu0 %v11648_v30  ;;  %v11744_v30 = vcombine.low %v2453_v10, %v2461_v11  ;;  %v2557_v10 = vld [vmem:[#allocation9 + $0x950] sm:$0xff] }
 0x371   :  { %9016 = vmatpush1.bf16.msra.mxu1 %v11650_v31  ;;  %8845 = vmatprep.subr.bf16.mxu0 %v11665_v32  ;;  %v11746_v31 = vcombine.low %v2454_v12, %v2462_v51  ;;  %v11761_v32 = vcombine.high %v2469_v17, %v2477_v23  ;;  %v2550_v12 = vld [vmem:[#allocation9 + $0x918] sm:$0xff] }
 0x372   :  { %9017 = vmatprep.subr.bf16.mxu1 %v11667_v33  ;;  %v11763_v33 = vcombine.high %v2470_v25, %v2478_v27  ;;  %v2558_v51 = vld [vmem:[#allocation9 + $0x958] sm:$0xff] }
 0x374   :  { %8846 = vmatpush1.bf16.msra.mxu0 %v11664_v38  ;;  %v11760_v38 = vcombine.low %v2469_v17, %v2477_v23  ;;  %v2565_v17 = vld [vmem:[#allocation9 + $0x990] sm:$0xff] }
 0x375   :  { %9018 = vmatpush1.bf16.msra.mxu1 %v11666_v39  ;;  %8847 = vmatprep.subr.bf16.mxu0 %v11681_v54  ;;  %v11762_v39 = vcombine.low %v2470_v25, %v2478_v27  ;;  %v11777_v54 = vcombine.high %v2485_v34, %v2493_v35  ;;  %v2573_v23 = vld [vmem:[#allocation9 + $0x9d0] sm:$0xff]  ;;  %v2566_v25 = vld [vmem:[#allocation9 + $0x998] sm:$0xff] }
 0x376   :  { %9019 = vmatprep.subr.bf16.mxu1 %v11683_v40  ;;  %v11779_v40 = vcombine.high %v2486_v36, %v2494_v37  ;;  %v2574_v27 = vld [vmem:[#allocation9 + $0x9d8] sm:$0xff] }
 0x378   :  { %8848 = vmatpush1.bf16.msra.mxu0 %v11680_v50  ;;  %v11776_v50 = vcombine.low %v2485_v34, %v2493_v35  ;;  %v2581_v34 = vld [vmem:[#allocation9 + $0xa10] sm:$0xff] }
 0x379   :  { %9020 = vmatpush1.bf16.msra.mxu1 %v11682_v55  ;;  %8849 = vmatprep.subr.bf16.mxu0 %v11697_v57  ;;  %v11778_v55 = vcombine.low %v2486_v36, %v2494_v37  ;;  %v11793_v57 = vcombine.high %v2501_v45, %v2509_v46  ;;  %v2589_v35 = vld [vmem:[#allocation9 + $0xa50] sm:$0xff]  ;;  %v2582_v36 = vld [vmem:[#allocation9 + $0xa18] sm:$0xff] }
 0x37a   :  { %9021 = vmatprep.subr.bf16.mxu1 %v11699_v4  ;;  %v11795_v4 = vcombine.high %v2502_v47, %v2510_v49  ;;  %v2590_v37 = vld [vmem:[#allocation9 + $0xa58] sm:$0xff] }
 0x37c   :  { %8850 = vmatpush1.bf16.msra.mxu0 %v11696_v61  ;;  %v11792_v61 = vcombine.low %v2501_v45, %v2509_v46  ;;  %v2597_v45 = vld [vmem:[#allocation9 + $0xa90] sm:$0xff] }
 0x37d   :  { %9022 = vmatpush1.bf16.msra.mxu1 %v11698_v62  ;;  %8851 = vmatprep.subr.bf16.mxu0 %v11713_v63  ;;  %v11794_v62 = vcombine.low %v2502_v47, %v2510_v49  ;;  %v11809_v63 = vcombine.high %v2517_v19, %v2525_v58  ;;  %v2605_v46 = vld [vmem:[#allocation9 + $0xad0] sm:$0xff]  ;;  %v2598_v47 = vld [vmem:[#allocation9 + $0xa98] sm:$0xff] }
 0x37e   :  { %9023 = vmatprep.subr.bf16.mxu1 %v11715_v1  ;;  %v11811_v1 = vcombine.high %v2518_v59, %v2526_v60  ;;  %v2606_v49 = vld [vmem:[#allocation9 + $0xad8] sm:$0xff]  ;;  %v2613_v19 = vld [vmem:[#allocation9 + $0xb10] sm:$0xff] }
 0x37f   :  { %v2621_v58 = vld [vmem:[#allocation9 + $0xb50] sm:$0xff] }
 0x380   :  { %8852 = vmatpush1.bf16.msra.mxu0 %v11712_v6  ;;  %v2542_v6 = vld [vmem:[#allocation9 + $0x8d8] sm:$0xff] }
 0x381   :  { %9024 = vmatpush1.bf16.msra.mxu1 %v11714_v7  ;;  %8853 = vmatprep.subr.bf16.mxu0 %v11729_v8  ;;  %v11810_v7 = vcombine.low %v2518_v59, %v2526_v60  ;;  %v11825_v8 = vcombine.high %v2533_v0, %v2541_v2  ;;  %v11827_v11 = vcombine.high %v2534_v5, %v2542_v6  ;;  %v2614_v59 = vld [vmem:[#allocation9 + $0xb18] sm:$0xff] }
 0x382   :  { %9025 = vmatprep.subr.bf16.mxu1 %v11731_v9  ;;  %v2549_v9 = vld [vmem:[#allocation9 + $0x910] sm:$0xff]  ;;  %v2622_v60 = vld [vmem:[#allocation9 + $0xb58] sm:$0xff] }
 0x384   :  { %8854 = vmatpush1.bf16.msra.mxu0 %v11728_v13  ;;  %v11824_v13 = vcombine.low %v2533_v0, %v2541_v2  ;;  %v2629_v0 = vld [vmem:[#allocation9 + $0xb90] sm:$0xff] }
 0x385   :  { %9026 = vmatpush1.bf16.msra.mxu1 %v11730_v14  ;;  %8855 = vmatprep.subr.bf16.mxu0 %v11745_v15  ;;  %v11826_v14 = vcombine.low %v2534_v5, %v2542_v6  ;;  %v11841_v15 = vcombine.high %v2549_v9, %v2557_v10  ;;  %v2637_v2 = vld [vmem:[#allocation9 + $0xbd0] sm:$0xff]  ;;  %v2638_v5 = vld [vmem:[#allocation9 + $0xbd8] sm:$0xff]  ;;  %v11904_v6 = vcombine.low %v2613_v19, %v2621_v58 }
 0x386   :  { %9027 = vmatprep.subr.bf16.mxu1 %v11747_v16  ;;  %v11843_v16 = vcombine.high %v2550_v12, %v2558_v51 }
 0x388   :  { %8856 = vmatpush1.bf16.msra.mxu0 %v11744_v30  ;;  %v11840_v30 = vcombine.low %v2549_v9, %v2557_v10  ;;  %v2645_v10 = vld [vmem:[#allocation9 + $0xc10] sm:$0xff] }
 0x389   :  { %9028 = vmatpush1.bf16.msra.mxu1 %v11746_v31  ;;  %8857 = vmatprep.subr.bf16.mxu0 %v11761_v32  ;;  %v11842_v31 = vcombine.low %v2550_v12, %v2558_v51  ;;  %v11857_v32 = vcombine.high %v2565_v17, %v2573_v23  ;;  %v2646_v12 = vld [vmem:[#allocation9 + $0xc18] sm:$0xff] }
 0x38a   :  { %9029 = vmatprep.subr.bf16.mxu1 %v11763_v33  ;;  %v11859_v33 = vcombine.high %v2566_v25, %v2574_v27  ;;  %v2654_v51 = vld [vmem:[#allocation9 + $0xc58] sm:$0xff] }
 0x38c   :  { %8858 = vmatpush1.bf16.msra.mxu0 %v11760_v38  ;;  %v11856_v38 = vcombine.low %v2565_v17, %v2573_v23  ;;  %v2661_v17 = vld [vmem:[#allocation9 + $0xc90] sm:$0xff] }
 0x38d   :  { %9030 = vmatpush1.bf16.msra.mxu1 %v11762_v39  ;;  %8859 = vmatprep.subr.bf16.mxu0 %v11777_v54  ;;  %v11858_v39 = vcombine.low %v2566_v25, %v2574_v27  ;;  %v11873_v54 = vcombine.high %v2581_v34, %v2589_v35  ;;  %v2669_v23 = vld [vmem:[#allocation9 + $0xcd0] sm:$0xff]  ;;  %v2662_v25 = vld [vmem:[#allocation9 + $0xc98] sm:$0xff] }
 0x38e   :  { %9031 = vmatprep.subr.bf16.mxu1 %v11779_v40  ;;  %v11875_v40 = vcombine.high %v2582_v36, %v2590_v37  ;;  %v2670_v27 = vld [vmem:[#allocation9 + $0xcd8] sm:$0xff] }
 0x390   :  { %8860 = vmatpush1.bf16.msra.mxu0 %v11776_v50  ;;  %v11872_v50 = vcombine.low %v2581_v34, %v2589_v35  ;;  %v2677_v34 = vld [vmem:[#allocation9 + $0xd10] sm:$0xff] }
 0x391   :  { %9032 = vmatpush1.bf16.msra.mxu1 %v11778_v55  ;;  %8861 = vmatprep.subr.bf16.mxu0 %v11793_v57  ;;  %v11874_v55 = vcombine.low %v2582_v36, %v2590_v37  ;;  %v11889_v57 = vcombine.high %v2597_v45, %v2605_v46  ;;  %v2685_v35 = vld [vmem:[#allocation9 + $0xd50] sm:$0xff]  ;;  %v2678_v36 = vld [vmem:[#allocation9 + $0xd18] sm:$0xff] }
 0x392   :  { %9033 = vmatprep.subr.bf16.mxu1 %v11795_v4  ;;  %v11891_v4 = vcombine.high %v2598_v47, %v2606_v49  ;;  %v2686_v37 = vld [vmem:[#allocation9 + $0xd58] sm:$0xff] }
 0x394   :  { %8862 = vmatpush1.bf16.msra.mxu0 %v11792_v61  ;;  %v11888_v61 = vcombine.low %v2597_v45, %v2605_v46  ;;  %v2693_v45 = vld [vmem:[#allocation9 + $0xd90] sm:$0xff] }
 0x395   :  { %9034 = vmatpush1.bf16.msra.mxu1 %v11794_v62  ;;  %8874 = vmatprep.subr.bf16.mxu0 %v11809_v63  ;;  %v11890_v62 = vcombine.low %v2598_v47, %v2606_v49  ;;  %v11905_v63 = vcombine.high %v2613_v19, %v2621_v58  ;;  %v2701_v46 = vld [vmem:[#allocation9 + $0xdd0] sm:$0xff]  ;;  %v2694_v47 = vld [vmem:[#allocation9 + $0xd98] sm:$0xff] }
 0x396   :  { %9046 = vmatprep.subr.bf16.mxu1 %v11811_v1  ;;  %v11907_v1 = vcombine.high %v2614_v59, %v2622_v60  ;;  %v2702_v49 = vld [vmem:[#allocation9 + $0xdd8] sm:$0xff]  ;;  %v2709_v19 = vld [vmem:[#allocation9 + $0xe10] sm:$0xff] }
 0x397   :  { %8864 = vmatmul.mubr.bf16.vlgmr.msra.gmra.mrb[16].mxu0 %v13623_v18  ;;  %v2717_v58 = vld [vmem:[#allocation9 + $0xe50] sm:$0xff] }
 0x398   :  { %9036 = vmatmul.mubr.bf16.vlgmr.msra.gmra.mrb[16].mxu1 %v13623_v18  ;;  %8875 = vmatpush1.bf16.msra.mxu0 %v11808_v3  ;;  %v2630_v3 = vld [vmem:[#allocation9 + $0xb98] sm:$0xff] }
 0x399   :  { %8906 = vmatprep.mubr.bf16.mxu0 %v13629_v29  ;;  %9047 = vmatpush1.bf16.msra.mxu1 %v11810_v7  ;;  %v11906_v7 = vcombine.low %v2614_v59, %v2622_v60  ;;  %v11923_v9 = vcombine.high %v2630_v3, %v2638_v5  ;;  %v2710_v59 = vld [vmem:[#allocation9 + $0xe18] sm:$0xff] }
 0x39a   :  { %9078 = vmatprep.mubr.bf16.mxu1 %v13629_v29  ;;  %8876 = vmatprep.subr.bf16.mxu0 %v11825_v8  ;;  %v11921_v8 = vcombine.high %v2629_v0, %v2637_v2  ;;  %v2718_v60 = vld [vmem:[#allocation9 + $0xe58] sm:$0xff] }
 0x39b   :  { %9048 = vmatprep.subr.bf16.mxu1 %v11827_v11  ;;  %v2653_v11 = vld [vmem:[#allocation9 + $0xc50] sm:$0xff] }
 0x39c   :  { %8877 = vmatpush1.bf16.msra.mxu0 %v11824_v13  ;;  %v11920_v13 = vcombine.low %v2629_v0, %v2637_v2  ;;  %v2725_v0 = vld [vmem:[#allocation9 + $0xe90] sm:$0xff] }
 0x39d   :  { %9049 = vmatpush1.bf16.msra.mxu1 %v11826_v14  ;;  %8878 = vmatprep.subr.bf16.mxu0 %v11841_v15  ;;  %v11922_v14 = vcombine.low %v2630_v3, %v2638_v5  ;;  %v11937_v15 = vcombine.high %v2645_v10, %v2653_v11  ;;  %v2733_v2 = vld [vmem:[#allocation9 + $0xed0] sm:$0xff]  ;;  %v2726_v3 = vld [vmem:[#allocation9 + $0xe98] sm:$0xff] }
 0x39e   :  { %9050 = vmatprep.subr.bf16.mxu1 %v11843_v16  ;;  %v11939_v16 = vcombine.high %v2646_v12, %v2654_v51  ;;  %v2734_v5 = vld [vmem:[#allocation9 + $0xed8] sm:$0xff] }
 0x3a0   :  { %8879 = vmatpush1.bf16.msra.mxu0 %v11840_v30  ;;  %v11936_v30 = vcombine.low %v2645_v10, %v2653_v11  ;;  %v2741_v10 = vld [vmem:[#allocation9 + $0xf10] sm:$0xff] }
 0x3a1   :  { %9051 = vmatpush1.bf16.msra.mxu1 %v11842_v31  ;;  %8880 = vmatprep.subr.bf16.mxu0 %v11857_v32  ;;  %v11938_v31 = vcombine.low %v2646_v12, %v2654_v51  ;;  %v11953_v32 = vcombine.high %v2661_v17, %v2669_v23  ;;  %v2749_v11 = vld [vmem:[#allocation9 + $0xf50] sm:$0xff]  ;;  %v2742_v12 = vld [vmem:[#allocation9 + $0xf18] sm:$0xff] }
 0x3a2   :  { %9052 = vmatprep.subr.bf16.mxu1 %v11859_v33  ;;  %v11955_v33 = vcombine.high %v2662_v25, %v2670_v27  ;;  %v2750_v51 = vld [vmem:[#allocation9 + $0xf58] sm:$0xff] }
 0x3a4   :  { %8881 = vmatpush1.bf16.msra.mxu0 %v11856_v38  ;;  %v11952_v38 = vcombine.low %v2661_v17, %v2669_v23  ;;  %v2757_v17 = vld [vmem:[#allocation9 + $0xf90] sm:$0xff] }
 0x3a5   :  { %9053 = vmatpush1.bf16.msra.mxu1 %v11858_v39  ;;  %8882 = vmatprep.subr.bf16.mxu0 %v11873_v54  ;;  %v11954_v39 = vcombine.low %v2662_v25, %v2670_v27  ;;  %v11969_v54 = vcombine.high %v2677_v34, %v2685_v35  ;;  %v2765_v23 = vld [vmem:[#allocation9 + $0xfd0] sm:$0xff]  ;;  %v2758_v25 = vld [vmem:[#allocation9 + $0xf98] sm:$0xff] }
 0x3a6   :  { %9054 = vmatprep.subr.bf16.mxu1 %v11875_v40  ;;  %v11971_v40 = vcombine.high %v2678_v36, %v2686_v37  ;;  %v2766_v27 = vld [vmem:[#allocation9 + $0xfd8] sm:$0xff] }
 0x3a8   :  { %8883 = vmatpush1.bf16.msra.mxu0 %v11872_v50  ;;  %v11968_v50 = vcombine.low %v2677_v34, %v2685_v35  ;;  %v2773_v34 = vld [vmem:[#allocation9 + $0x1010] sm:$0xff] }
 0x3a9   :  { %9055 = vmatpush1.bf16.msra.mxu1 %v11874_v55  ;;  %8884 = vmatprep.subr.bf16.mxu0 %v11889_v57  ;;  %v11970_v55 = vcombine.low %v2678_v36, %v2686_v37  ;;  %v11985_v57 = vcombine.high %v2693_v45, %v2701_v46  ;;  %v2781_v35 = vld [vmem:[#allocation9 + $0x1050] sm:$0xff]  ;;  %v2774_v36 = vld [vmem:[#allocation9 + $0x1018] sm:$0xff] }
 0x3aa   :  { %9056 = vmatprep.subr.bf16.mxu1 %v11891_v4  ;;  %v11987_v4 = vcombine.high %v2694_v47, %v2702_v49  ;;  %v2782_v37 = vld [vmem:[#allocation9 + $0x1058] sm:$0xff] }
 0x3ac   :  { %8885 = vmatpush1.bf16.msra.mxu0 %v11888_v61  ;;  %v11984_v61 = vcombine.low %v2693_v45, %v2701_v46  ;;  %v2789_v45 = vld [vmem:[#allocation9 + $0x1090] sm:$0xff] }
 0x3ad   :  { %9057 = vmatpush1.bf16.msra.mxu1 %v11890_v62  ;;  %8886 = vmatprep.subr.bf16.mxu0 %v11905_v63  ;;  %v11986_v62 = vcombine.low %v2694_v47, %v2702_v49  ;;  %v12001_v63 = vcombine.high %v2709_v19, %v2717_v58  ;;  %v2797_v46 = vld [vmem:[#allocation9 + $0x10d0] sm:$0xff]  ;;  %v12064_v47 = vcombine.low %v2773_v34, %v2781_v35  ;;  %v2790_v49 = vld [vmem:[#allocation9 + $0x1098] sm:$0xff] }
 0x3ae   :  { %9058 = vmatprep.subr.bf16.mxu1 %v11907_v1  ;;  %v12003_v1 = vcombine.high %v2710_v59, %v2718_v60 }
 0x3b0   :  { %8887 = vmatpush1.bf16.msra.mxu0 %v11904_v6  ;;  %v12000_v6 = vcombine.low %v2709_v19, %v2717_v58  ;;  %v2813_v19 = vld [vmem:[#allocation9 + $0x1150] sm:$0xff] }
 0x3b1   :  { %9059 = vmatpush1.bf16.msra.mxu1 %v11906_v7  ;;  %8888 = vmatprep.subr.bf16.mxu0 %v11921_v8  ;;  %v12002_v7 = vcombine.low %v2710_v59, %v2718_v60  ;;  %v12017_v8 = vcombine.high %v2725_v0, %v2733_v2  ;;  %v2806_v59 = vld [vmem:[#allocation9 + $0x1118] sm:$0xff] }
 0x3b2   :  { %9060 = vmatprep.subr.bf16.mxu1 %v11923_v9  ;;  %v12019_v9 = vcombine.high %v2726_v3, %v2734_v5  ;;  %v2814_v60 = vld [vmem:[#allocation9 + $0x1158] sm:$0xff] }
 0x3b4   :  { %8889 = vmatpush1.bf16.msra.mxu0 %v11920_v13  ;;  %v12016_v13 = vcombine.low %v2725_v0, %v2733_v2  ;;  %v2821_v0 = vld [vmem:[#allocation9 + $0x1190] sm:$0xff] }
 0x3b5   :  { %9061 = vmatpush1.bf16.msra.mxu1 %v11922_v14  ;;  %8890 = vmatprep.subr.bf16.mxu0 %v11937_v15  ;;  %v12018_v14 = vcombine.low %v2726_v3, %v2734_v5  ;;  %v12033_v15 = vcombine.high %v2741_v10, %v2749_v11  ;;  %v2829_v2 = vld [vmem:[#allocation9 + $0x11d0] sm:$0xff]  ;;  %v2822_v3 = vld [vmem:[#allocation9 + $0x1198] sm:$0xff] }
 0x3b6   :  { %9062 = vmatprep.subr.bf16.mxu1 %v11939_v16  ;;  %v12035_v16 = vcombine.high %v2742_v12, %v2750_v51  ;;  %v2830_v5 = vld [vmem:[#allocation9 + $0x11d8] sm:$0xff] }
 0x3b8   :  { %8891 = vmatpush1.bf16.msra.mxu0 %v11936_v30  ;;  %v12032_v30 = vcombine.low %v2741_v10, %v2749_v11  ;;  %v2837_v10 = vld [vmem:[#allocation9 + $0x1210] sm:$0xff] }
 0x3b9   :  { %9063 = vmatpush1.bf16.msra.mxu1 %v11938_v31  ;;  %8892 = vmatprep.subr.bf16.mxu0 %v11953_v32  ;;  %v12034_v31 = vcombine.low %v2742_v12, %v2750_v51  ;;  %v12049_v32 = vcombine.high %v2757_v17, %v2765_v23  ;;  %v2845_v11 = vld [vmem:[#allocation9 + $0x1250] sm:$0xff]  ;;  %v2838_v12 = vld [vmem:[#allocation9 + $0x1218] sm:$0xff] }
 0x3ba   :  { %9064 = vmatprep.subr.bf16.mxu1 %v11955_v33  ;;  %v12051_v33 = vcombine.high %v2758_v25, %v2766_v27  ;;  %v2846_v51 = vld [vmem:[#allocation9 + $0x1258] sm:$0xff] }
 0x3bc   :  { %8893 = vmatpush1.bf16.msra.mxu0 %v11952_v38  ;;  %v12048_v38 = vcombine.low %v2757_v17, %v2765_v23  ;;  %v2853_v17 = vld [vmem:[#allocation9 + $0x1290] sm:$0xff] }
 0x3bd   :  { %9065 = vmatpush1.bf16.msra.mxu1 %v11954_v39  ;;  %8894 = vmatprep.subr.bf16.mxu0 %v11969_v54  ;;  %v12050_v39 = vcombine.low %v2758_v25, %v2766_v27  ;;  %v12065_v54 = vcombine.high %v2773_v34, %v2781_v35  ;;  %v2861_v23 = vld [vmem:[#allocation9 + $0x12d0] sm:$0xff]  ;;  %v2854_v25 = vld [vmem:[#allocation9 + $0x1298] sm:$0xff] }
 0x3be   :  { %9066 = vmatprep.subr.bf16.mxu1 %v11971_v40  ;;  %v12067_v40 = vcombine.high %v2774_v36, %v2782_v37  ;;  %v2862_v27 = vld [vmem:[#allocation9 + $0x12d8] sm:$0xff]  ;;  %v2869_v34 = vld [vmem:[#allocation9 + $0x1310] sm:$0xff] }
 0x3bf   :  { %v2877_v35 = vld [vmem:[#allocation9 + $0x1350] sm:$0xff] }
 0x3c0   :  { %8895 = vmatpush1.bf16.msra.mxu0 %v11968_v50  ;;  %v2798_v50 = vld [vmem:[#allocation9 + $0x10d8] sm:$0xff] }
 0x3c1   :  { %9067 = vmatpush1.bf16.msra.mxu1 %v11970_v55  ;;  %8896 = vmatprep.subr.bf16.mxu0 %v11985_v57  ;;  %v12066_v55 = vcombine.low %v2774_v36, %v2782_v37  ;;  %v12081_v57 = vcombine.high %v2789_v45, %v2797_v46  ;;  %v12083_v58 = vcombine.high %v2790_v49, %v2798_v50  ;;  %v2870_v36 = vld [vmem:[#allocation9 + $0x1318] sm:$0xff] }
 0x3c2   :  { %9068 = vmatprep.subr.bf16.mxu1 %v11987_v4  ;;  %v2805_v4 = vld [vmem:[#allocation9 + $0x1110] sm:$0xff]  ;;  %v2878_v37 = vld [vmem:[#allocation9 + $0x1358] sm:$0xff] }
 0x3c4   :  { %8897 = vmatpush1.bf16.msra.mxu0 %v11984_v61  ;;  %v12080_v61 = vcombine.low %v2789_v45, %v2797_v46  ;;  %v2885_v45 = vld [vmem:[#allocation9 + $0x1390] sm:$0xff] }
 0x3c5   :  { %9069 = vmatpush1.bf16.msra.mxu1 %v11986_v62  ;;  %8898 = vmatprep.subr.bf16.mxu0 %v12001_v63  ;;  %v12082_v62 = vcombine.low %v2790_v49, %v2798_v50  ;;  %v12097_v63 = vcombine.high %v2805_v4, %v2813_v19  ;;  %v2893_v46 = vld [vmem:[#allocation9 + $0x13d0] sm:$0xff]  ;;  %v2894_v49 = vld [vmem:[#allocation9 + $0x13d8] sm:$0xff]  ;;  %v12160_v50 = vcombine.low %v2869_v34, %v2877_v35 }
 0x3c6   :  { %9070 = vmatprep.subr.bf16.mxu1 %v12003_v1  ;;  %v12099_v1 = vcombine.high %v2806_v59, %v2814_v60 }
 0x3c8   :  { %8899 = vmatpush1.bf16.msra.mxu0 %v12000_v6  ;;  %v12096_v6 = vcombine.low %v2805_v4, %v2813_v19  ;;  %v2901_v19 = vld [vmem:[#allocation9 + $0x1410] sm:$0xff] }
 0x3c9   :  { %9071 = vmatpush1.bf16.msra.mxu1 %v12002_v7  ;;  %8900 = vmatprep.subr.bf16.mxu0 %v12017_v8  ;;  %v12098_v7 = vcombine.low %v2806_v59, %v2814_v60  ;;  %v12113_v8 = vcombine.high %v2821_v0, %v2829_v2  ;;  %v2902_v59 = vld [vmem:[#allocation9 + $0x1418] sm:$0xff] }
 0x3ca   :  { %9072 = vmatprep.subr.bf16.mxu1 %v12019_v9  ;;  %v12115_v9 = vcombine.high %v2822_v3, %v2830_v5  ;;  %v2910_v60 = vld [vmem:[#allocation9 + $0x1458] sm:$0xff] }
 0x3cc   :  { %8901 = vmatpush1.bf16.msra.mxu0 %v12016_v13  ;;  %v12112_v13 = vcombine.low %v2821_v0, %v2829_v2  ;;  %v2917_v0 = vld [vmem:[#allocation9 + $0x1490] sm:$0xff] }
 0x3cd   :  { %9073 = vmatpush1.bf16.msra.mxu1 %v12018_v14  ;;  %8902 = vmatprep.subr.bf16.mxu0 %v12033_v15  ;;  %v12114_v14 = vcombine.low %v2822_v3, %v2830_v5  ;;  %v12129_v15 = vcombine.high %v2837_v10, %v2845_v11  ;;  %v2925_v2 = vld [vmem:[#allocation9 + $0x14d0] sm:$0xff]  ;;  %v2918_v3 = vld [vmem:[#allocation9 + $0x1498] sm:$0xff] }
 0x3ce   :  { %9074 = vmatprep.subr.bf16.mxu1 %v12035_v16  ;;  %v12131_v16 = vcombine.high %v2838_v12, %v2846_v51  ;;  %v2926_v5 = vld [vmem:[#allocation9 + $0x14d8] sm:$0xff] }
 0x3d0   :  { %8903 = vmatpush1.bf16.msra.mxu0 %v12032_v30  ;;  %v12128_v30 = vcombine.low %v2837_v10, %v2845_v11  ;;  %v2933_v10 = vld [vmem:[#allocation9 + $0x1510] sm:$0xff] }
 0x3d1   :  { %9075 = vmatpush1.bf16.msra.mxu1 %v12034_v31  ;;  %8904 = vmatprep.subr.bf16.mxu0 %v12049_v32  ;;  %v12130_v31 = vcombine.low %v2838_v12, %v2846_v51  ;;  %v12145_v32 = vcombine.high %v2853_v17, %v2861_v23  ;;  %v2941_v11 = vld [vmem:[#allocation9 + $0x1550] sm:$0xff]  ;;  %v2934_v12 = vld [vmem:[#allocation9 + $0x1518] sm:$0xff] }
 0x3d2   :  { %9076 = vmatprep.subr.bf16.mxu1 %v12051_v33  ;;  %v12147_v33 = vcombine.high %v2854_v25, %v2862_v27  ;;  %v2942_v51 = vld [vmem:[#allocation9 + $0x1558] sm:$0xff] }
 0x3d4   :  { %8905 = vmatpush1.bf16.msra.mxu0 %v12048_v38  ;;  %v12144_v38 = vcombine.low %v2853_v17, %v2861_v23  ;;  %v2949_v17 = vld [vmem:[#allocation9 + $0x1590] sm:$0xff] }
 0x3d5   :  { %9077 = vmatpush1.bf16.msra.mxu1 %v12050_v39  ;;  %8917 = vmatprep.subr.bf16.mxu0 %v12065_v54  ;;  %v12146_v39 = vcombine.low %v2854_v25, %v2862_v27  ;;  %v12161_v54 = vcombine.high %v2869_v34, %v2877_v35  ;;  %v2957_v23 = vld [vmem:[#allocation9 + $0x15d0] sm:$0xff]  ;;  %v2950_v25 = vld [vmem:[#allocation9 + $0x1598] sm:$0xff] }
 0x3d6   :  { %9089 = vmatprep.subr.bf16.mxu1 %v12067_v40  ;;  %v12163_v40 = vcombine.high %v2870_v36, %v2878_v37  ;;  %v2958_v27 = vld [vmem:[#allocation9 + $0x15d8] sm:$0xff]  ;;  %v2965_v34 = vld [vmem:[#allocation9 + $0x1610] sm:$0xff] }
 0x3d7   :  { %8907 = vmatmul.mubr.bf16.vlgmr.msra.gmra.mrb[16].mxu0 %v13625_v21  ;;  %v2973_v35 = vld [vmem:[#allocation9 + $0x1650] sm:$0xff] }
 0x3d8   :  { %9079 = vmatmul.mubr.bf16.vlgmr.msra.gmra.mrb[16].mxu1 %v13625_v21  ;;  %8918 = vmatpush1.bf16.msra.mxu0 %v12064_v47  ;;  %v2886_v47 = vld [vmem:[#allocation9 + $0x1398] sm:$0xff] }
 0x3d9   :  { %8949 = vmatprep.mubr.bf16.mxu0 %v13667_v53  ;;  %9090 = vmatpush1.bf16.msra.mxu1 %v12066_v55  ;;  %v12162_v55 = vcombine.low %v2870_v36, %v2878_v37  ;;  %v12179_v4 = vcombine.high %v2886_v47, %v2894_v49  ;;  %v2966_v36 = vld [vmem:[#allocation9 + $0x1618] sm:$0xff] }
 0x3da   :  { %9121 = vmatprep.mubr.bf16.mxu1 %v13667_v53  ;;  %8919 = vmatprep.subr.bf16.mxu0 %v12081_v57  ;;  %v12177_v57 = vcombine.high %v2885_v45, %v2893_v46  ;;  %v2974_v37 = vld [vmem:[#allocation9 + $0x1658] sm:$0xff] }
 0x3db   :  { %9091 = vmatprep.subr.bf16.mxu1 %v12083_v58  ;;  %v2909_v58 = vld [vmem:[#allocation9 + $0x1450] sm:$0xff] }
 0x3dc   :  { %8920 = vmatpush1.bf16.msra.mxu0 %v12080_v61  ;;  %v12176_v61 = vcombine.low %v2885_v45, %v2893_v46  ;;  %v2981_v45 = vld [vmem:[#allocation9 + $0x1690] sm:$0xff] }
 0x3dd   :  { %9092 = vmatpush1.bf16.msra.mxu1 %v12082_v62  ;;  %8921 = vmatprep.subr.bf16.mxu0 %v12097_v63  ;;  %v12178_v62 = vcombine.low %v2886_v47, %v2894_v49  ;;  %v12193_v63 = vcombine.high %v2901_v19, %v2909_v58  ;;  %v2989_v46 = vld [vmem:[#allocation9 + $0x16d0] sm:$0xff]  ;;  %v2982_v47 = vld [vmem:[#allocation9 + $0x1698] sm:$0xff] }
 0x3de   :  { %9093 = vmatprep.subr.bf16.mxu1 %v12099_v1  ;;  %v12195_v1 = vcombine.high %v2902_v59, %v2910_v60  ;;  %v2990_v49 = vld [vmem:[#allocation9 + $0x16d8] sm:$0xff] }
 0x3e0   :  { %8922 = vmatpush1.bf16.msra.mxu0 %v12096_v6  ;;  %v12192_v6 = vcombine.low %v2901_v19, %v2909_v58  ;;  %v2997_v19 = vld [vmem:[#allocation9 + $0x1710] sm:$0xff] }
 0x3e1   :  { %9094 = vmatpush1.bf16.msra.mxu1 %v12098_v7  ;;  %8923 = vmatprep.subr.bf16.mxu0 %v12113_v8  ;;  %v12194_v7 = vcombine.low %v2902_v59, %v2910_v60  ;;  %v12209_v8 = vcombine.high %v2917_v0, %v2925_v2  ;;  %v3005_v58 = vld [vmem:[#allocation9 + $0x1750] sm:$0xff]  ;;  %v2998_v59 = vld [vmem:[#allocation9 + $0x1718] sm:$0xff] }
 0x3e2   :  { %9095 = vmatprep.subr.bf16.mxu1 %v12115_v9  ;;  %v12211_v9 = vcombine.high %v2918_v3, %v2926_v5  ;;  %v3006_v60 = vld [vmem:[#allocation9 + $0x1758] sm:$0xff] }
 0x3e4   :  { %8924 = vmatpush1.bf16.msra.mxu0 %v12112_v13  ;;  %v12208_v13 = vcombine.low %v2917_v0, %v2925_v2  ;;  %v3013_v0 = vld [vmem:[#allocation9 + $0x1790] sm:$0xff] }
 0x3e5   :  { %9096 = vmatpush1.bf16.msra.mxu1 %v12114_v14  ;;  %8925 = vmatprep.subr.bf16.mxu0 %v12129_v15  ;;  %v12210_v14 = vcombine.low %v2918_v3, %v2926_v5  ;;  %v12225_v15 = vcombine.high %v2933_v10, %v2941_v11  ;;  %v3021_v2 = vld [vmem:[#allocation9 + $0x17d0] sm:$0xff]  ;;  %v3014_v3 = vld [vmem:[#allocation9 + $0x1798] sm:$0xff] }
 0x3e6   :  { %9097 = vmatprep.subr.bf16.mxu1 %v12131_v16  ;;  %v12227_v16 = vcombine.high %v2934_v12, %v2942_v51  ;;  %v3022_v5 = vld [vmem:[#allocation9 + $0x17d8] sm:$0xff] }
 0x3e8   :  { %8926 = vmatpush1.bf16.msra.mxu0 %v12128_v30  ;;  %v12224_v30 = vcombine.low %v2933_v10, %v2941_v11  ;;  %v3029_v10 = vld [vmem:[#allocation9 + $0x1810] sm:$0xff] }
 0x3e9   :  { %9098 = vmatpush1.bf16.msra.mxu1 %v12130_v31  ;;  %8927 = vmatprep.subr.bf16.mxu0 %v12145_v32  ;;  %v12226_v31 = vcombine.low %v2934_v12, %v2942_v51  ;;  %v12241_v32 = vcombine.high %v2949_v17, %v2957_v23  ;;  %v3037_v11 = vld [vmem:[#allocation9 + $0x1850] sm:$0xff]  ;;  %v3030_v12 = vld [vmem:[#allocation9 + $0x1818] sm:$0xff] }
 0x3ea   :  { %9099 = vmatprep.subr.bf16.mxu1 %v12147_v33  ;;  %v12243_v33 = vcombine.high %v2950_v25, %v2958_v27  ;;  %v3038_v51 = vld [vmem:[#allocation9 + $0x1858] sm:$0xff] }
 0x3ec   :  { %8928 = vmatpush1.bf16.msra.mxu0 %v12144_v38  ;;  %v12240_v38 = vcombine.low %v2949_v17, %v2957_v23  ;;  %v3045_v17 = vld [vmem:[#allocation9 + $0x1890] sm:$0xff] }
 0x3ed   :  { %9100 = vmatpush1.bf16.msra.mxu1 %v12146_v39  ;;  %8929 = vmatprep.subr.bf16.mxu0 %v12161_v54  ;;  %v12242_v39 = vcombine.low %v2950_v25, %v2958_v27  ;;  %v12257_v54 = vcombine.high %v2965_v34, %v2973_v35  ;;  %v3053_v23 = vld [vmem:[#allocation9 + $0x18d0] sm:$0xff]  ;;  %v12320_v25 = vcombine.low %v3029_v10, %v3037_v11  ;;  %v3046_v27 = vld [vmem:[#allocation9 + $0x1898] sm:$0xff] }
 0x3ee   :  { %9101 = vmatprep.subr.bf16.mxu1 %v12163_v40  ;;  %v12259_v40 = vcombine.high %v2966_v36, %v2974_v37 }
 0x3f0   :  { %8930 = vmatpush1.bf16.msra.mxu0 %v12160_v50  ;;  %v12256_v50 = vcombine.low %v2965_v34, %v2973_v35  ;;  %v3069_v34 = vld [vmem:[#allocation9 + $0x1950] sm:$0xff] }
 0x3f1   :  { %9102 = vmatpush1.bf16.msra.mxu1 %v12162_v55  ;;  %8931 = vmatprep.subr.bf16.mxu0 %v12177_v57  ;;  %v12258_v55 = vcombine.low %v2966_v36, %v2974_v37  ;;  %v12273_v57 = vcombine.high %v2981_v45, %v2989_v46  ;;  %v3062_v36 = vld [vmem:[#allocation9 + $0x1918] sm:$0xff] }
 0x3f2   :  { %9103 = vmatprep.subr.bf16.mxu1 %v12179_v4  ;;  %v12275_v4 = vcombine.high %v2982_v47, %v2990_v49  ;;  %v3070_v37 = vld [vmem:[#allocation9 + $0x1958] sm:$0xff] }
 0x3f4   :  { %8932 = vmatpush1.bf16.msra.mxu0 %v12176_v61  ;;  %v12272_v61 = vcombine.low %v2981_v45, %v2989_v46  ;;  %v3077_v45 = vld [vmem:[#allocation9 + $0x1990] sm:$0xff] }
 0x3f5   :  { %9104 = vmatpush1.bf16.msra.mxu1 %v12178_v62  ;;  %8933 = vmatprep.subr.bf16.mxu0 %v12193_v63  ;;  %v12274_v62 = vcombine.low %v2982_v47, %v2990_v49  ;;  %v12289_v63 = vcombine.high %v2997_v19, %v3005_v58  ;;  %v3085_v46 = vld [vmem:[#allocation9 + $0x19d0] sm:$0xff]  ;;  %v3078_v47 = vld [vmem:[#allocation9 + $0x1998] sm:$0xff] }
 0x3f6   :  { %9105 = vmatprep.subr.bf16.mxu1 %v12195_v1  ;;  %v12291_v1 = vcombine.high %v2998_v59, %v3006_v60  ;;  %v3086_v49 = vld [vmem:[#allocation9 + $0x19d8] sm:$0xff] }
 0x3f8   :  { %8934 = vmatpush1.bf16.msra.mxu0 %v12192_v6  ;;  %v12288_v6 = vcombine.low %v2997_v19, %v3005_v58  ;;  %v3093_v19 = vld [vmem:[#allocation9 + $0x1a10] sm:$0xff] }
 0x3f9   :  { %9106 = vmatpush1.bf16.msra.mxu1 %v12194_v7  ;;  %8935 = vmatprep.subr.bf16.mxu0 %v12209_v8  ;;  %v12290_v7 = vcombine.low %v2998_v59, %v3006_v60  ;;  %v12305_v8 = vcombine.high %v3013_v0, %v3021_v2  ;;  %v3101_v58 = vld [vmem:[#allocation9 + $0x1a50] sm:$0xff]  ;;  %v3094_v59 = vld [vmem:[#allocation9 + $0x1a18] sm:$0xff] }
 0x3fa   :  { %9107 = vmatprep.subr.bf16.mxu1 %v12211_v9  ;;  %v12307_v9 = vcombine.high %v3014_v3, %v3022_v5  ;;  %v3102_v60 = vld [vmem:[#allocation9 + $0x1a58] sm:$0xff] }
 0x3fc   :  { %8936 = vmatpush1.bf16.msra.mxu0 %v12208_v13  ;;  %v12304_v13 = vcombine.low %v3013_v0, %v3021_v2  ;;  %v3109_v0 = vld [vmem:[#allocation9 + $0x1a90] sm:$0xff] }
 0x3fd   :  { %9108 = vmatpush1.bf16.msra.mxu1 %v12210_v14  ;;  %8937 = vmatprep.subr.bf16.mxu0 %v12225_v15  ;;  %v12306_v14 = vcombine.low %v3014_v3, %v3022_v5  ;;  %v12321_v15 = vcombine.high %v3029_v10, %v3037_v11  ;;  %v3117_v2 = vld [vmem:[#allocation9 + $0x1ad0] sm:$0xff]  ;;  %v3110_v3 = vld [vmem:[#allocation9 + $0x1a98] sm:$0xff] }
 0x3fe   :  { %9109 = vmatprep.subr.bf16.mxu1 %v12227_v16  ;;  %v12323_v16 = vcombine.high %v3030_v12, %v3038_v51  ;;  %v3118_v5 = vld [vmem:[#allocation9 + $0x1ad8] sm:$0xff]  ;;  %v3125_v11 = vld [vmem:[#allocation9 + $0x1b10] sm:$0xff] }
 0x3ff   :  { %v12403_v10 = vcombine.high %v3110_v3, %v3118_v5 }
 0x400   :  { %8938 = vmatpush1.bf16.msra.mxu0 %v12224_v30  ;;  %v3054_v30 = vld [vmem:[#allocation9 + $0x18d8] sm:$0xff] }
 0x401   :  { %9110 = vmatpush1.bf16.msra.mxu1 %v12226_v31  ;;  %8939 = vmatprep.subr.bf16.mxu0 %v12241_v32  ;;  %v12322_v31 = vcombine.low %v3030_v12, %v3038_v51  ;;  %v12337_v32 = vcombine.high %v3045_v17, %v3053_v23  ;;  %v12339_v35 = vcombine.high %v3046_v27, %v3054_v30  ;;  %v3133_v12 = vld [vmem:[#allocation9 + $0x1b50] sm:$0xff] }
 0x402   :  { %9111 = vmatprep.subr.bf16.mxu1 %v12243_v33  ;;  %v3061_v33 = vld [vmem:[#allocation9 + $0x1910] sm:$0xff] }
 0x404   :  { %8940 = vmatpush1.bf16.msra.mxu0 %v12240_v38  ;;  %v12336_v38 = vcombine.low %v3045_v17, %v3053_v23  ;;  %v12400_v23 = vcombine.low %v3109_v0, %v3117_v2 }
 0x405   :  { %9112 = vmatpush1.bf16.msra.mxu1 %v12242_v39  ;;  %8941 = vmatprep.subr.bf16.mxu0 %v12257_v54  ;;  %v12338_v39 = vcombine.low %v3046_v27, %v3054_v30  ;;  %v12353_v54 = vcombine.high %v3061_v33, %v3069_v34  ;;  %v12417_v27 = vcombine.high %v3125_v11, %v3133_v12  ;;  %v3141_v30 = vld [vmem:[#allocation9 + $0x1b90] sm:$0xff] }
 0x406   :  { %9113 = vmatprep.subr.bf16.mxu1 %v12259_v40  ;;  %v12355_v40 = vcombine.high %v3062_v36, %v3070_v37 }
 0x408   :  { %8942 = vmatpush1.bf16.msra.mxu0 %v12256_v50  ;;  %v12352_v50 = vcombine.low %v3061_v33, %v3069_v34 }
 0x409   :  { %9114 = vmatpush1.bf16.msra.mxu1 %v12258_v55  ;;  %8943 = vmatprep.subr.bf16.mxu0 %v12273_v57  ;;  %v12354_v55 = vcombine.low %v3062_v36, %v3070_v37  ;;  %v12369_v57 = vcombine.high %v3077_v45, %v3085_v46 }
 0x40a   :  { %9115 = vmatprep.subr.bf16.mxu1 %v12275_v4  ;;  %v12371_v4 = vcombine.high %v3078_v47, %v3086_v49 }
 0x40c   :  { %8944 = vmatpush1.bf16.msra.mxu0 %v12272_v61  ;;  %v12368_v61 = vcombine.low %v3077_v45, %v3085_v46 }
 0x40d   :  { %9116 = vmatpush1.bf16.msra.mxu1 %v12274_v62  ;;  %8945 = vmatprep.subr.bf16.mxu0 %v12289_v63  ;;  %v12370_v62 = vcombine.low %v3078_v47, %v3086_v49  ;;  %v12385_v63 = vcombine.high %v3093_v19, %v3101_v58 }
 0x40e   :  { %9117 = vmatprep.subr.bf16.mxu1 %v12291_v1  ;;  %v12387_v1 = vcombine.high %v3094_v59, %v3102_v60 }
 0x410   :  { %8946 = vmatpush1.bf16.msra.mxu0 %v12288_v6  ;;  %v12384_v6 = vcombine.low %v3093_v19, %v3101_v58 }
 0x411   :  { %9118 = vmatpush1.bf16.msra.mxu1 %v12290_v7  ;;  %8947 = vmatprep.subr.bf16.mxu0 %v12305_v8  ;;  %v3283_v7 = vld [vmem:[#allocation10] sm:$0xff]  ;;  %v12386_v8 = vcombine.low %v3094_v59, %v3102_v60 }
 0x412   :  { %9119 = vmatprep.subr.bf16.mxu1 %v12307_v9  ;;  %v12401_v9 = vcombine.high %v3109_v0, %v3117_v2  ;;  %v3290_v51 = vrot.slane %v3283_v7, %v13562_v20  ;;  %v3302_v17 = vrot.slane %v3283_v7, %v13573_v26  ;;  %v3165_v0 = vld [vmem:[#allocation9 + $0x1c50] sm:$0xff] }
 0x414   :  { %8948 = vmatpush1.bf16.msra.mxu0 %v12304_v13  ;;  %v3298_v13 = vrot.slane %v3283_v7, %v13569_v24 }
 0x415   :  { %9120 = vmatpush1.bf16.msra.mxu1 %v12306_v14  ;;  %8960 = vmatprep.subr.bf16.mxu0 %v12321_v15  ;;  %v3126_v14 = vld [vmem:[#allocation9 + $0x1b18] sm:$0xff] }
 0x416   :  { %9132 = vmatprep.subr.bf16.mxu1 %v12323_v16  ;;  %v3134_v15 = vld [vmem:[#allocation9 + $0x1b58] sm:$0xff]  ;;  %v3294_v16 = vrot.slane %v3283_v7, %v13565_v22 }
 0x417   :  { %8950 = vmatmul.mubr.bf16.vlgmr.msra.gmra.mrb[16].mxu0 %v13663_v42  ;;  %v12419_v34 = vcombine.high %v3126_v14, %v3134_v15  ;;  %v3158_v7 = vld [vmem:[#allocation9 + $0x1c18] sm:$0xff] }
 0x418   :  { %9122 = vmatmul.mubr.bf16.vlgmr.msra.gmra.mrb[16].mxu1 %v13663_v42  ;;  %8961 = vmatpush1.bf16.msra.mxu0 %v12320_v25  ;;  %v12402_v25 = vcombine.low %v3110_v3, %v3118_v5 }
 0x419   :  { %8992 = vmatprep.mubr.bf16.mxu0 %v13669_v56  ;;  %9133 = vmatpush1.bf16.msra.mxu1 %v12322_v31  ;;  %v3149_v31 = vld [vmem:[#allocation9 + $0x1bd0] sm:$0xff] }
 0x41a   :  { %9164 = vmatprep.mubr.bf16.mxu1 %v13669_v56  ;;  %8962 = vmatprep.subr.bf16.mxu0 %v12337_v32  ;;  %v12433_v59 = vcombine.high %v3141_v30, %v3149_v31 }
 0x41b   :  { %9134 = vmatprep.subr.bf16.mxu1 %v12339_v35 }
 0x41c   :  { %8963 = vmatpush1.bf16.msra.mxu0 %v12336_v38 }
 0x41d   :  { %9135 = vmatpush1.bf16.msra.mxu1 %v12338_v39  ;;  %8964 = vmatprep.subr.bf16.mxu0 %v12353_v54  ;;  %v12416_v39 = vcombine.low %v3125_v11, %v3133_v12  ;;  %v3142_v54 = vld [vmem:[#allocation9 + $0x1b98] sm:$0xff] }
 0x41e   :  { %9136 = vmatprep.subr.bf16.mxu1 %v12355_v40  ;;  %v3150_v40 = vld [vmem:[#allocation9 + $0x1bd8] sm:$0xff] }
 0x420   :  { %8965 = vmatpush1.bf16.msra.mxu0 %v12352_v50  ;;  %v12418_v50 = vcombine.low %v3126_v14, %v3134_v15 }
 0x421   :  { %9137 = vmatpush1.bf16.msra.mxu1 %v12354_v55  ;;  %8966 = vmatprep.subr.bf16.mxu0 %v12369_v57  ;;  %v12432_v55 = vcombine.low %v3141_v30, %v3149_v31  ;;  %v3182_v30 = vld [vmem:[#allocation9 + $0x1cd8] sm:$0xff] }
 0x422   :  { %9138 = vmatprep.subr.bf16.mxu1 %v12371_v4 }
 0x424   :  { %8967 = vmatpush1.bf16.msra.mxu0 %v12368_v61 }
 0x425   :  { %9139 = vmatpush1.bf16.msra.mxu1 %v12370_v62  ;;  %8968 = vmatprep.subr.bf16.mxu0 %v12385_v63  ;;  %v12434_v62 = vcombine.low %v3142_v54, %v3150_v40  ;;  %v12435_v63 = vcombine.high %v3142_v54, %v3150_v40 }
 0x426   :  { %9140 = vmatprep.subr.bf16.mxu1 %v12387_v1  ;;  %v3157_v1 = vld [vmem:[#allocation9 + $0x1c10] sm:$0xff] }
 0x427   :  { %v12449_v14 = vcombine.high %v3157_v1, %v3165_v0  ;;  %v12448_v31 = vcombine.low %v3157_v1, %v3165_v0 }
 0x428   :  { %8969 = vmatpush1.bf16.msra.mxu0 %v12384_v6 }
 0x429   :  { %9141 = vmatpush1.bf16.msra.mxu1 %v12386_v8  ;;  %8970 = vmatprep.subr.bf16.mxu0 %v12401_v9  ;;  %v3166_v8 = vld [vmem:[#allocation9 + $0x1c58] sm:$0xff] }
 0x42a   :  { %v8650_v32 = vpop.f32.mrb[12].mxu0  ;;  %v8822_v33 = vpop.f32.mrb[12].mxu1  ;;  %9142 = vmatprep.subr.bf16.mxu1 %v12403_v10 }
 0x42b   :  { %v12893_v35 = vadd.f32 %v8650_v32, %v3290_v51  ;;  %v12897_v36 = vadd.f32 %v8822_v33, %v3298_v13  ;;  %v8652_v37 = vpop.f32.mrb[13].mxu0  ;;  %v8824_v38 = vpop.f32.mrb[13].mxu1  ;;  %v12450_v32 = vcombine.low %v3158_v7, %v3166_v8 }
 0x42c   :  { %v12894_v45 = vadd.f32 %v8652_v37, %v3294_v16  ;;  %v12898_v46 = vadd.f32 %v8824_v38, %v3302_v17  ;;  %v8654_v47 = vpop.f32.mrb[14].mxu0  ;;  %v8826_v49 = vpop.f32.mrb[14].mxu1  ;;  %8971 = vmatpush1.bf16.msra.mxu0 %v12400_v23  ;;  %v3173_v23 = vld [vmem:[#allocation9 + $0x1c90] sm:$0xff]  ;;  %v3190_v37 = vld [vmem:[#allocation9 + $0x1d18] sm:$0xff] }
 0x42d   :  { %v12895_v57 = vadd.f32 %v8654_v47, %v3290_v51  ;;  %v12899_v4 = vadd.f32 %v8826_v49, %v3298_v13  ;;  %9143 = vmatpush1.bf16.msra.mxu1 %v12402_v25  ;;  %v8656_v19 = vpop.f32.mrb[15].mxu0  ;;  %v8828_v58 = vpop.f32.mrb[15].mxu1  ;;  %8972 = vmatprep.subr.bf16.mxu0 %v12417_v27  ;;  %v9863_v2 = vmax.f32 %v12893_v35, 0.0  ;;  %v9865_v3 = vmax.f32 %v12897_v36, 0.0  ;;  %v3181_v25 = vld [vmem:[#allocation9 + $0x1cd0] sm:$0xff]  ;;  %v3174_v27 = vld [vmem:[#allocation9 + $0x1c98] sm:$0xff] }
 0x42e   :  { %v12896_v60 = vadd.f32 %v8656_v19, %v3294_v16  ;;  %v12900_v61 = vadd.f32 %v8828_v58, %v3302_v17  ;;  %9144 = vmatprep.subr.bf16.mxu1 %v12419_v34  ;;  %v9864_v9 = vmax.f32 %v12894_v45, 0.0  ;;  %v9866_v10 = vmax.f32 %v12898_v46, 0.0  ;;  %v3189_v35 = vld [vmem:[#allocation9 + $0x1d10] sm:$0xff]  ;;  %v3198_v38 = vld [vmem:[#allocation9 + $0x1d58] sm:$0xff] }
 0x42f   :  { %v9879_v5 = vmax.f32 %v12895_v57, 0.0  ;;  %v9881_v6 = vmax.f32 %v12899_v4, 0.0  ;;  %v12451_v17 = vcombine.high %v3158_v7, %v3166_v8  ;;  %v12465_v33 = vcombine.high %v3173_v23, %v3181_v25  ;;  %v3197_v36 = vld [vmem:[#allocation9 + $0x1d50] sm:$0xff]  ;;  %v3206_v49 = vld [vmem:[#allocation9 + $0x1d98] sm:$0xff] }
 0x430   :  { %v9880_v11 = vmax.f32 %v12896_v60, 0.0  ;;  %v9882_v12 = vmax.f32 %v12900_v61, 0.0  ;;  %8973 = vmatpush1.bf16.msra.mxu0 %v12416_v39  ;;  %v12467_v34 = vcombine.high %v3174_v27, %v3182_v30  ;;  %v12464_v39 = vcombine.low %v3173_v23, %v3181_v25  ;;  %v3205_v46 = vld [vmem:[#allocation9 + $0x1d90] sm:$0xff]  ;;  %v3222_v60 = vld [vmem:[#allocation9 + $0x1e18] sm:$0xff] }
 0x431   :  { %v13697_v51 = vpack.c.bf16 %v9879_v5, %v9863_v2  ;;  %v13699_v13 = vpack.c.bf16 %v9881_v6, %v9865_v3  ;;  %9145 = vmatpush1.bf16.msra.mxu1 %v12418_v50  ;;  %8974 = vmatprep.subr.bf16.mxu0 %v12433_v59  ;;  %v12466_v54 = vcombine.low %v3174_v27, %v3182_v30  ;;  %v3213_v47 = vld [vmem:[#allocation9 + $0x1dd0] sm:$0xff]  ;;  %v3214_v50 = vld [vmem:[#allocation9 + $0x1dd8] sm:$0xff] }
 0x432   :  { %v13701_v15 = vpack.c.bf16 %v9880_v11, %v9864_v9  ;;  %v13703_v16 = vpack.c.bf16 %v9882_v12, %v9866_v10  ;;  %9146 = vmatprep.subr.bf16.mxu1 %v12435_v63  ;;  %v12481_v40 = vcombine.high %v3189_v35, %v3197_v36  ;;  %v12483_v45 = vcombine.high %v3190_v37, %v3198_v38  ;;  %v3221_v58 = vld [vmem:[#allocation9 + $0x1e10] sm:$0xff]  ;;  %v3230_v61 = vld [vmem:[#allocation9 + $0x1e58] sm:$0xff] }
 0x433   :  { %v12482_v57 = vcombine.low %v3190_v37, %v3198_v38  ;;  %v12497_v4 = vcombine.high %v3205_v46, %v3213_v47  ;;  %v12499_v19 = vcombine.high %v3206_v49, %v3214_v50  ;;  %v3229_v59 = vld [vmem:[#allocation9 + $0x1e50] sm:$0xff]  ;;  %v12498_v63 = vcombine.low %v3206_v49, %v3214_v50  ;;  %v3238_v5 = vld [vmem:[#allocation9 + $0x1e98] sm:$0xff] }
 0x434   :  { %8975 = vmatpush1.bf16.msra.mxu0 %v12432_v55  ;;  %v12480_v55 = vcombine.low %v3189_v35, %v3197_v36  ;;  %v12513_v1 = vcombine.high %v3221_v58, %v3229_v59  ;;  %v12515_v0 = vcombine.high %v3222_v60, %v3230_v61  ;;  %v3237_v2 = vld [vmem:[#allocation9 + $0x1e90] sm:$0xff]  ;;  %v3246_v6 = vld [vmem:[#allocation9 + $0x1ed8] sm:$0xff]  ;;  %v12512_v7 = vcombine.low %v3221_v58, %v3229_v59  ;;  %v2288_v58 = vld [vmem:[#allocation9 + $0xe8] sm:$0xff] }
 0x435   :  { %9147 = vmatpush1.bf16.msra.mxu1 %v12434_v62  ;;  %8976 = vmatprep.subr.bf16.mxu0 %v12449_v14  ;;  %v12496_v62 = vcombine.low %v3205_v46, %v3213_v47  ;;  %v3245_v3 = vld [vmem:[#allocation9 + $0x1ed0] sm:$0xff]  ;;  %v12514_v8 = vcombine.low %v3222_v60, %v3230_v61  ;;  %v12531_v10 = vcombine.high %v3238_v5, %v3246_v6  ;;  %v3254_v14 = vld [vmem:[#allocation9 + $0x1f18] sm:$0xff]  ;;  %v2295_v61 = vld [vmem:[#allocation9 + $0x120] sm:$0xff] }
 0x436   :  { %9148 = vmatprep.subr.bf16.mxu1 %v12451_v17  ;;  %v12529_v9 = vcombine.high %v3237_v2, %v3245_v3  ;;  %v3253_v11 = vld [vmem:[#allocation9 + $0x1f10] sm:$0xff]  ;;  %v3262_v17 = vld [vmem:[#allocation9 + $0x1f58] sm:$0xff]  ;;  %v12528_v23 = vcombine.low %v3237_v2, %v3245_v3  ;;  %v12530_v25 = vcombine.low %v3238_v5, %v3246_v6 }
 0x437   :  { %v3261_v12 = vld [vmem:[#allocation9 + $0x1f50] sm:$0xff]  ;;  %v12547_v30 = vcombine.high %v3254_v14, %v3262_v17  ;;  %v12546_v36 = vcombine.low %v3254_v14, %v3262_v17 }
 0x438   :  { %8977 = vmatpush1.bf16.msra.mxu0 %v12448_v31  ;;  %v12545_v27 = vcombine.high %v3253_v11, %v3261_v12  ;;  %v3269_v31 = vld [vmem:[#allocation9 + $0x1f90] sm:$0xff]  ;;  %v12544_v35 = vcombine.low %v3253_v11, %v3261_v12 }
 0x439   :  { %9149 = vmatpush1.bf16.msra.mxu1 %v12450_v32  ;;  %8978 = vmatprep.subr.bf16.mxu0 %v12465_v33  ;;  %v3277_v32 = vld [vmem:[#allocation9 + $0x1fd0] sm:$0xff]  ;;  %v3270_v33 = vld [vmem:[#allocation9 + $0x1f98] sm:$0xff] }
 0x43a   :  { %9150 = vmatprep.subr.bf16.mxu1 %v12467_v34  ;;  %v3278_v34 = vld [vmem:[#allocation9 + $0x1fd8] sm:$0xff]  ;;  %v12561_v37 = vcombine.high %v3269_v31, %v3277_v32  ;;  %v12560_v46 = vcombine.low %v3269_v31, %v3277_v32 }
 0x43b   :  { %v12563_v38 = vcombine.high %v3270_v33, %v3278_v34  ;;  %v12562_v47 = vcombine.low %v3270_v33, %v3278_v34 }
 0x43c   :  { %8979 = vmatpush1.bf16.msra.mxu0 %v12464_v39  ;;  %v2263_v39 = vld [vmem:[#allocation9 + $0x20] sm:$0xff] }
 0x43d   :  { %9151 = vmatpush1.bf16.msra.mxu1 %v12466_v54  ;;  %8980 = vmatprep.subr.bf16.mxu0 %v12481_v40  ;;  %v2271_v54 = vld [vmem:[#allocation9 + $0x60] sm:$0xff]  ;;  %v2264_v40 = vld [vmem:[#allocation9 + $0x28] sm:$0xff] }
 0x43e   :  { %9152 = vmatprep.subr.bf16.mxu1 %v12483_v45  ;;  %v2272_v45 = vld [vmem:[#allocation9 + $0x68] sm:$0xff]  ;;  %v11557_v49 = vcombine.high %v2263_v39, %v2271_v54 }
 0x43f   :  { %v11559_v50 = vcombine.high %v2264_v40, %v2272_v45  ;;  %v11558_v59 = vcombine.low %v2264_v40, %v2272_v45 }
 0x440   :  { %8981 = vmatpush1.bf16.msra.mxu0 %v12480_v55  ;;  %v2279_v55 = vld [vmem:[#allocation9 + $0xa0] sm:$0xff] }
 0x441   :  { %9153 = vmatpush1.bf16.msra.mxu1 %v12482_v57  ;;  %8982 = vmatprep.subr.bf16.mxu0 %v12497_v4  ;;  %v2287_v57 = vld [vmem:[#allocation9 + $0xe0] sm:$0xff]  ;;  %v11556_v4 = vcombine.low %v2263_v39, %v2271_v54 }
 0x442   :  { %9154 = vmatprep.subr.bf16.mxu1 %v12499_v19  ;;  %v2280_v19 = vld [vmem:[#allocation9 + $0xa8] sm:$0xff]  ;;  %v11573_v60 = vcombine.high %v2279_v55, %v2287_v57  ;;  %v11572_v2 = vcombine.low %v2279_v55, %v2287_v57 }
 0x443   :  { %v11574_v3 = vcombine.low %v2280_v19, %v2288_v58 }
 0x444   :  { %8983 = vmatpush1.bf16.msra.mxu0 %v12496_v62  ;;  %v2303_v62 = vld [vmem:[#allocation9 + $0x160] sm:$0xff] }
 0x445   :  { %9155 = vmatpush1.bf16.msra.mxu1 %v12498_v63  ;;  %8984 = vmatprep.subr.bf16.mxu0 %v12513_v1  ;;  %v11575_v63 = vcombine.high %v2280_v19, %v2288_v58  ;;  %v2296_v1 = vld [vmem:[#allocation9 + $0x128] sm:$0xff]  ;;  %v11589_v5 = vcombine.high %v2295_v61, %v2303_v62  ;;  %v11588_v11 = vcombine.low %v2295_v61, %v2303_v62  ;;  %v2375_v58 = vld [vmem:[#allocation9 + $0x3a0] sm:$0xff] }
 0x446   :  { %9156 = vmatprep.subr.bf16.mxu1 %v12515_v0  ;;  %v2304_v0 = vld [vmem:[#allocation9 + $0x168] sm:$0xff] }
 0x447   :  { %v11591_v6 = vcombine.high %v2296_v1, %v2304_v0  ;;  %v11590_v12 = vcombine.low %v2296_v1, %v2304_v0  ;;  %v2384_v61 = vld [vmem:[#allocation9 + $0x3e8] sm:$0xff] }
 0x448   :  { %8985 = vmatpush1.bf16.msra.mxu0 %v12512_v7  ;;  %v2311_v7 = vld [vmem:[#allocation9 + $0x1a0] sm:$0xff] }
 0x449   :  { %9157 = vmatpush1.bf16.msra.mxu1 %v12514_v8  ;;  %8986 = vmatprep.subr.bf16.mxu0 %v12529_v9  ;;  %v2319_v8 = vld [vmem:[#allocation9 + $0x1e0] sm:$0xff]  ;;  %v2312_v9 = vld [vmem:[#allocation9 + $0x1a8] sm:$0xff] }
 0x44a   :  { %9158 = vmatprep.subr.bf16.mxu1 %v12531_v10  ;;  %v2320_v10 = vld [vmem:[#allocation9 + $0x1e8] sm:$0xff]  ;;  %v11605_v14 = vcombine.high %v2311_v7, %v2319_v8  ;;  %v11604_v31 = vcombine.low %v2311_v7, %v2319_v8 }
 0x44b   :  { %v11607_v17 = vcombine.high %v2312_v9, %v2320_v10  ;;  %v11606_v32 = vcombine.low %v2312_v9, %v2320_v10 }
 0x44c   :  { %8987 = vmatpush1.bf16.msra.mxu0 %v12528_v23  ;;  %v2327_v23 = vld [vmem:[#allocation9 + $0x220] sm:$0xff] }
 0x44d   :  { %9159 = vmatpush1.bf16.msra.mxu1 %v12530_v25  ;;  %8988 = vmatprep.subr.bf16.mxu0 %v12545_v27  ;;  %v2335_v25 = vld [vmem:[#allocation9 + $0x260] sm:$0xff]  ;;  %v2328_v27 = vld [vmem:[#allocation9 + $0x228] sm:$0xff] }
 0x44e   :  { %9160 = vmatprep.subr.bf16.mxu1 %v12547_v30  ;;  %v2336_v30 = vld [vmem:[#allocation9 + $0x268] sm:$0xff]  ;;  %v11621_v33 = vcombine.high %v2327_v23, %v2335_v25  ;;  %v11620_v39 = vcombine.low %v2327_v23, %v2335_v25 }
 0x44f   :  { %v11623_v34 = vcombine.high %v2328_v27, %v2336_v30  ;;  %v11622_v54 = vcombine.low %v2328_v27, %v2336_v30 }
 0x450   :  { %8989 = vmatpush1.bf16.msra.mxu0 %v12544_v35  ;;  %v2343_v35 = vld [vmem:[#allocation9 + $0x2a0] sm:$0xff] }
 0x451   :  { %9161 = vmatpush1.bf16.msra.mxu1 %v12546_v36  ;;  %8990 = vmatprep.subr.bf16.mxu0 %v12561_v37  ;;  %v2351_v36 = vld [vmem:[#allocation9 + $0x2e0] sm:$0xff]  ;;  %v2344_v37 = vld [vmem:[#allocation9 + $0x2a8] sm:$0xff] }
 0x452   :  { %9162 = vmatprep.subr.bf16.mxu1 %v12563_v38  ;;  %v2352_v38 = vld [vmem:[#allocation9 + $0x2e8] sm:$0xff]  ;;  %v11637_v40 = vcombine.high %v2343_v35, %v2351_v36  ;;  %v11636_v55 = vcombine.low %v2343_v35, %v2351_v36 }
 0x453   :  { %v11639_v45 = vcombine.high %v2344_v37, %v2352_v38  ;;  %v11638_v57 = vcombine.low %v2344_v37, %v2352_v38 }
 0x454   :  { %8991 = vmatpush1.bf16.msra.mxu0 %v12560_v46  ;;  %v2359_v46 = vld [vmem:[#allocation9 + $0x320] sm:$0xff] }
 0x455   :  { %9163 = vmatpush1.bf16.msra.mxu1 %v12562_v47  ;;  %9175 = vmatprep.subr.bf16.mxu0 %v11557_v49  ;;  %v2367_v47 = vld [vmem:[#allocation9 + $0x360] sm:$0xff]  ;;  %v2360_v49 = vld [vmem:[#allocation9 + $0x328] sm:$0xff] }
 0x456   :  { %9347 = vmatprep.subr.bf16.mxu1 %v11559_v50  ;;  %v2368_v50 = vld [vmem:[#allocation9 + $0x368] sm:$0xff]  ;;  %v11652_v62 = vcombine.low %v2359_v46, %v2367_v47 }
 0x457   :  { %8993 = vmatmul.mubr.bf16.vlgmr.msra.gmra.mrb[16].mxu0 %v13665_v52  ;;  %v11655_v19 = vcombine.high %v2360_v49, %v2368_v50 }
 0x458   :  { %9165 = vmatmul.mubr.bf16.vlgmr.msra.gmra.mrb[16].mxu1 %v13665_v52  ;;  %9176 = vmatpush1.bf16.msra.mxu0 %v11556_v4  ;;  %v11653_v4 = vcombine.high %v2359_v46, %v2367_v47 }
 0x459   :  { %9207 = vmatprep.mubr.bf16.mxu0 %v13627_v28  ;;  %9348 = vmatpush1.bf16.msra.mxu1 %v11558_v59  ;;  %v2383_v59 = vld [vmem:[#allocation9 + $0x3e0] sm:$0xff] }
 0x45a   :  { %9379 = vmatprep.mubr.bf16.mxu1 %v13627_v28  ;;  %9177 = vmatprep.subr.bf16.mxu0 %v11573_v60  ;;  %v2376_v60 = vld [vmem:[#allocation9 + $0x3a8] sm:$0xff]  ;;  %v11669_v1 = vcombine.high %v2375_v58, %v2383_v59  ;;  %v11668_v7 = vcombine.low %v2375_v58, %v2383_v59 }
 0x45b   :  { %9349 = vmatprep.subr.bf16.mxu1 %v11575_v63  ;;  %v11654_v63 = vcombine.low %v2360_v49, %v2368_v50  ;;  %v11671_v0 = vcombine.high %v2376_v60, %v2384_v61  ;;  %v11670_v8 = vcombine.low %v2376_v60, %v2384_v61 }
 0x45c   :  { %9178 = vmatpush1.bf16.msra.mxu0 %v11572_v2  ;;  %v2391_v2 = vld [vmem:[#allocation9 + $0x420] sm:$0xff] }
 0x45d   :  { %9350 = vmatpush1.bf16.msra.mxu1 %v11574_v3  ;;  %9179 = vmatprep.subr.bf16.mxu0 %v11589_v5  ;;  %v2399_v3 = vld [vmem:[#allocation9 + $0x460] sm:$0xff]  ;;  %v2392_v5 = vld [vmem:[#allocation9 + $0x428] sm:$0xff] }
 0x45e   :  { %9351 = vmatprep.subr.bf16.mxu1 %v11591_v6  ;;  %v2400_v6 = vld [vmem:[#allocation9 + $0x468] sm:$0xff]  ;;  %v11685_v9 = vcombine.high %v2391_v2, %v2399_v3  ;;  %v11684_v23 = vcombine.low %v2391_v2, %v2399_v3 }
 0x45f   :  { %v11687_v10 = vcombine.high %v2392_v5, %v2400_v6  ;;  %v11686_v25 = vcombine.low %v2392_v5, %v2400_v6 }
 0x460   :  { %9180 = vmatpush1.bf16.msra.mxu0 %v11588_v11  ;;  %v2407_v11 = vld [vmem:[#allocation9 + $0x4a0] sm:$0xff] }
 0x461   :  { %9352 = vmatpush1.bf16.msra.mxu1 %v11590_v12  ;;  %9181 = vmatprep.subr.bf16.mxu0 %v11605_v14  ;;  %v2415_v12 = vld [vmem:[#allocation9 + $0x4e0] sm:$0xff]  ;;  %v2408_v14 = vld [vmem:[#allocation9 + $0x4a8] sm:$0xff] }
 0x462   :  { %9353 = vmatprep.subr.bf16.mxu1 %v11607_v17  ;;  %v2416_v17 = vld [vmem:[#allocation9 + $0x4e8] sm:$0xff]  ;;  %v11701_v27 = vcombine.high %v2407_v11, %v2415_v12  ;;  %v11700_v35 = vcombine.low %v2407_v11, %v2415_v12 }
 0x463   :  { %v11703_v30 = vcombine.high %v2408_v14, %v2416_v17  ;;  %v11702_v36 = vcombine.low %v2408_v14, %v2416_v17 }
 0x464   :  { %9182 = vmatpush1.bf16.msra.mxu0 %v11604_v31  ;;  %v2423_v31 = vld [vmem:[#allocation9 + $0x520] sm:$0xff] }
 0x465   :  { %9354 = vmatpush1.bf16.msra.mxu1 %v11606_v32  ;;  %9183 = vmatprep.subr.bf16.mxu0 %v11621_v33  ;;  %v2431_v32 = vld [vmem:[#allocation9 + $0x560] sm:$0xff]  ;;  %v2424_v33 = vld [vmem:[#allocation9 + $0x528] sm:$0xff] }
 0x466   :  { %9355 = vmatprep.subr.bf16.mxu1 %v11623_v34  ;;  %v2432_v34 = vld [vmem:[#allocation9 + $0x568] sm:$0xff]  ;;  %v11717_v37 = vcombine.high %v2423_v31, %v2431_v32  ;;  %v11716_v46 = vcombine.low %v2423_v31, %v2431_v32 }
 0x467   :  { %v11719_v38 = vcombine.high %v2424_v33, %v2432_v34  ;;  %v11718_v47 = vcombine.low %v2424_v33, %v2432_v34 }
 0x468   :  { %9184 = vmatpush1.bf16.msra.mxu0 %v11620_v39  ;;  %v2439_v39 = vld [vmem:[#allocation9 + $0x5a0] sm:$0xff] }
 0x469   :  { %9356 = vmatpush1.bf16.msra.mxu1 %v11622_v54  ;;  %9185 = vmatprep.subr.bf16.mxu0 %v11637_v40  ;;  %v2447_v54 = vld [vmem:[#allocation9 + $0x5e0] sm:$0xff]  ;;  %v2440_v40 = vld [vmem:[#allocation9 + $0x5a8] sm:$0xff] }
 0x46a   :  { %9357 = vmatprep.subr.bf16.mxu1 %v11639_v45  ;;  %v2448_v45 = vld [vmem:[#allocation9 + $0x5e8] sm:$0xff]  ;;  %v11733_v49 = vcombine.high %v2439_v39, %v2447_v54  ;;  %v11732_v58 = vcombine.low %v2439_v39, %v2447_v54 }
 0x46b   :  { %v11735_v50 = vcombine.high %v2440_v40, %v2448_v45  ;;  %v11734_v59 = vcombine.low %v2440_v40, %v2448_v45 }
 0x46c   :  { %9186 = vmatpush1.bf16.msra.mxu0 %v11636_v55  ;;  %v2455_v55 = vld [vmem:[#allocation9 + $0x620] sm:$0xff] }
 0x46d   :  { %9358 = vmatpush1.bf16.msra.mxu1 %v11638_v57  ;;  %9187 = vmatprep.subr.bf16.mxu0 %v11653_v4  ;;  %v2463_v57 = vld [vmem:[#allocation9 + $0x660] sm:$0xff]  ;;  %v2456_v4 = vld [vmem:[#allocation9 + $0x628] sm:$0xff] }
 0x46e   :  { %9359 = vmatprep.subr.bf16.mxu1 %v11655_v19  ;;  %v2464_v19 = vld [vmem:[#allocation9 + $0x668] sm:$0xff]  ;;  %v11749_v60 = vcombine.high %v2455_v55, %v2463_v57  ;;  %v11748_v2 = vcombine.low %v2455_v55, %v2463_v57 }
 0x46f   :  { %v11751_v61 = vcombine.high %v2456_v4, %v2464_v19  ;;  %v11750_v3 = vcombine.low %v2456_v4, %v2464_v19  ;;  %v2544_v55 = vld [vmem:[#allocation9 + $0x8e8] sm:$0xff]  ;;  %v2551_v19 = vld [vmem:[#allocation9 + $0x920] sm:$0xff] }
 0x470   :  { %9188 = vmatpush1.bf16.msra.mxu0 %v11652_v62  ;;  %v2471_v62 = vld [vmem:[#allocation9 + $0x6a0] sm:$0xff] }
 0x471   :  { %9360 = vmatpush1.bf16.msra.mxu1 %v11654_v63  ;;  %9189 = vmatprep.subr.bf16.mxu0 %v11669_v1  ;;  %v2479_v63 = vld [vmem:[#allocation9 + $0x6e0] sm:$0xff]  ;;  %v2472_v1 = vld [vmem:[#allocation9 + $0x6a8] sm:$0xff] }
 0x472   :  { %9361 = vmatprep.subr.bf16.mxu1 %v11671_v0  ;;  %v2480_v0 = vld [vmem:[#allocation9 + $0x6e8] sm:$0xff]  ;;  %v11765_v5 = vcombine.high %v2471_v62, %v2479_v63  ;;  %v11764_v11 = vcombine.low %v2471_v62, %v2479_v63 }
 0x473   :  { %v11767_v6 = vcombine.high %v2472_v1, %v2480_v0  ;;  %v11766_v12 = vcombine.low %v2472_v1, %v2480_v0 }
 0x474   :  { %9190 = vmatpush1.bf16.msra.mxu0 %v11668_v7  ;;  %v2487_v7 = vld [vmem:[#allocation9 + $0x720] sm:$0xff] }
 0x475   :  { %9362 = vmatpush1.bf16.msra.mxu1 %v11670_v8  ;;  %9191 = vmatprep.subr.bf16.mxu0 %v11685_v9  ;;  %v2495_v8 = vld [vmem:[#allocation9 + $0x760] sm:$0xff]  ;;  %v2488_v9 = vld [vmem:[#allocation9 + $0x728] sm:$0xff] }
 0x476   :  { %9363 = vmatprep.subr.bf16.mxu1 %v11687_v10  ;;  %v2496_v10 = vld [vmem:[#allocation9 + $0x768] sm:$0xff]  ;;  %v11781_v14 = vcombine.high %v2487_v7, %v2495_v8  ;;  %v11780_v31 = vcombine.low %v2487_v7, %v2495_v8 }
 0x477   :  { %v11783_v17 = vcombine.high %v2488_v9, %v2496_v10  ;;  %v11782_v32 = vcombine.low %v2488_v9, %v2496_v10 }
 0x478   :  { %9192 = vmatpush1.bf16.msra.mxu0 %v11684_v23  ;;  %v2503_v23 = vld [vmem:[#allocation9 + $0x7a0] sm:$0xff] }
 0x479   :  { %9364 = vmatpush1.bf16.msra.mxu1 %v11686_v25  ;;  %9193 = vmatprep.subr.bf16.mxu0 %v11701_v27  ;;  %v2511_v25 = vld [vmem:[#allocation9 + $0x7e0] sm:$0xff]  ;;  %v2504_v27 = vld [vmem:[#allocation9 + $0x7a8] sm:$0xff] }
 0x47a   :  { %9365 = vmatprep.subr.bf16.mxu1 %v11703_v30  ;;  %v2512_v30 = vld [vmem:[#allocation9 + $0x7e8] sm:$0xff]  ;;  %v11797_v33 = vcombine.high %v2503_v23, %v2511_v25  ;;  %v11796_v39 = vcombine.low %v2503_v23, %v2511_v25 }
 0x47b   :  { %v11799_v34 = vcombine.high %v2504_v27, %v2512_v30  ;;  %v11798_v54 = vcombine.low %v2504_v27, %v2512_v30 }
 0x47c   :  { %9194 = vmatpush1.bf16.msra.mxu0 %v11700_v35  ;;  %v2519_v35 = vld [vmem:[#allocation9 + $0x820] sm:$0xff] }
 0x47d   :  { %9366 = vmatpush1.bf16.msra.mxu1 %v11702_v36  ;;  %9195 = vmatprep.subr.bf16.mxu0 %v11717_v37  ;;  %v2527_v36 = vld [vmem:[#allocation9 + $0x860] sm:$0xff]  ;;  %v2520_v37 = vld [vmem:[#allocation9 + $0x828] sm:$0xff] }
 0x47e   :  { %9367 = vmatprep.subr.bf16.mxu1 %v11719_v38  ;;  %v2528_v38 = vld [vmem:[#allocation9 + $0x868] sm:$0xff]  ;;  %v11813_v40 = vcombine.high %v2519_v35, %v2527_v36 }
 0x47f   :  { %v11815_v45 = vcombine.high %v2520_v37, %v2528_v38  ;;  %v11814_v57 = vcombine.low %v2520_v37, %v2528_v38 }
 0x480   :  { %9196 = vmatpush1.bf16.msra.mxu0 %v11716_v46  ;;  %v2535_v46 = vld [vmem:[#allocation9 + $0x8a0] sm:$0xff] }
 0x481   :  { %9368 = vmatpush1.bf16.msra.mxu1 %v11718_v47  ;;  %9197 = vmatprep.subr.bf16.mxu0 %v11733_v49  ;;  %v2543_v47 = vld [vmem:[#allocation9 + $0x8e0] sm:$0xff]  ;;  %v11812_v49 = vcombine.low %v2519_v35, %v2527_v36 }
 0x482   :  { %9369 = vmatprep.subr.bf16.mxu1 %v11735_v50  ;;  %v2536_v50 = vld [vmem:[#allocation9 + $0x8a8] sm:$0xff]  ;;  %v11829_v4 = vcombine.high %v2535_v46, %v2543_v47  ;;  %v11828_v62 = vcombine.low %v2535_v46, %v2543_v47 }
 0x483   :  { %v11830_v63 = vcombine.low %v2536_v50, %v2544_v55 }
 0x484   :  { %9198 = vmatpush1.bf16.msra.mxu0 %v11732_v58  ;;  %v2559_v58 = vld [vmem:[#allocation9 + $0x960] sm:$0xff] }
 0x485   :  { %9370 = vmatpush1.bf16.msra.mxu1 %v11734_v59  ;;  %9199 = vmatprep.subr.bf16.mxu0 %v11749_v60  ;;  %v11831_v59 = vcombine.high %v2536_v50, %v2544_v55  ;;  %v2552_v60 = vld [vmem:[#allocation9 + $0x928] sm:$0xff]  ;;  %v11845_v1 = vcombine.high %v2551_v19, %v2559_v58  ;;  %v11844_v7 = vcombine.low %v2551_v19, %v2559_v58  ;;  %v2631_v55 = vld [vmem:[#allocation9 + $0xba0] sm:$0xff] }
 0x486   :  { %9371 = vmatprep.subr.bf16.mxu1 %v11751_v61  ;;  %v2560_v61 = vld [vmem:[#allocation9 + $0x968] sm:$0xff] }
 0x487   :  { %v11847_v0 = vcombine.high %v2552_v60, %v2560_v61  ;;  %v11846_v8 = vcombine.low %v2552_v60, %v2560_v61  ;;  %v2640_v19 = vld [vmem:[#allocation9 + $0xbe8] sm:$0xff] }
 0x488   :  { %9200 = vmatpush1.bf16.msra.mxu0 %v11748_v2  ;;  %v2567_v2 = vld [vmem:[#allocation9 + $0x9a0] sm:$0xff] }
 0x489   :  { %9372 = vmatpush1.bf16.msra.mxu1 %v11750_v3  ;;  %9201 = vmatprep.subr.bf16.mxu0 %v11765_v5  ;;  %v2575_v3 = vld [vmem:[#allocation9 + $0x9e0] sm:$0xff]  ;;  %v2568_v5 = vld [vmem:[#allocation9 + $0x9a8] sm:$0xff] }
 0x48a   :  { %9373 = vmatprep.subr.bf16.mxu1 %v11767_v6  ;;  %v2576_v6 = vld [vmem:[#allocation9 + $0x9e8] sm:$0xff]  ;;  %v11861_v9 = vcombine.high %v2567_v2, %v2575_v3  ;;  %v11860_v23 = vcombine.low %v2567_v2, %v2575_v3 }
 0x48b   :  { %v11863_v10 = vcombine.high %v2568_v5, %v2576_v6  ;;  %v11862_v25 = vcombine.low %v2568_v5, %v2576_v6 }
 0x48c   :  { %9202 = vmatpush1.bf16.msra.mxu0 %v11764_v11  ;;  %v2583_v11 = vld [vmem:[#allocation9 + $0xa20] sm:$0xff] }
 0x48d   :  { %9374 = vmatpush1.bf16.msra.mxu1 %v11766_v12  ;;  %9203 = vmatprep.subr.bf16.mxu0 %v11781_v14  ;;  %v2591_v12 = vld [vmem:[#allocation9 + $0xa60] sm:$0xff]  ;;  %v2584_v14 = vld [vmem:[#allocation9 + $0xa28] sm:$0xff] }
 0x48e   :  { %9375 = vmatprep.subr.bf16.mxu1 %v11783_v17  ;;  %v2592_v17 = vld [vmem:[#allocation9 + $0xa68] sm:$0xff]  ;;  %v11877_v27 = vcombine.high %v2583_v11, %v2591_v12  ;;  %v11876_v35 = vcombine.low %v2583_v11, %v2591_v12 }
 0x48f   :  { %v11879_v30 = vcombine.high %v2584_v14, %v2592_v17  ;;  %v11878_v36 = vcombine.low %v2584_v14, %v2592_v17 }
 0x490   :  { %9204 = vmatpush1.bf16.msra.mxu0 %v11780_v31  ;;  %v2599_v31 = vld [vmem:[#allocation9 + $0xaa0] sm:$0xff] }
 0x491   :  { %9376 = vmatpush1.bf16.msra.mxu1 %v11782_v32  ;;  %9205 = vmatprep.subr.bf16.mxu0 %v11797_v33  ;;  %v2607_v32 = vld [vmem:[#allocation9 + $0xae0] sm:$0xff]  ;;  %v2600_v33 = vld [vmem:[#allocation9 + $0xaa8] sm:$0xff] }
 0x492   :  { %9377 = vmatprep.subr.bf16.mxu1 %v11799_v34  ;;  %v2608_v34 = vld [vmem:[#allocation9 + $0xae8] sm:$0xff]  ;;  %v11893_v37 = vcombine.high %v2599_v31, %v2607_v32  ;;  %v11892_v46 = vcombine.low %v2599_v31, %v2607_v32 }
 0x493   :  { %v11895_v38 = vcombine.high %v2600_v33, %v2608_v34  ;;  %v11894_v47 = vcombine.low %v2600_v33, %v2608_v34 }
 0x494   :  { %9206 = vmatpush1.bf16.msra.mxu0 %v11796_v39  ;;  %v2615_v39 = vld [vmem:[#allocation9 + $0xb20] sm:$0xff] }
 0x495   :  { %9378 = vmatpush1.bf16.msra.mxu1 %v11798_v54  ;;  %9218 = vmatprep.subr.bf16.mxu0 %v11813_v40  ;;  %v2623_v54 = vld [vmem:[#allocation9 + $0xb60] sm:$0xff]  ;;  %v2616_v40 = vld [vmem:[#allocation9 + $0xb28] sm:$0xff] }
 0x496   :  { %9390 = vmatprep.subr.bf16.mxu1 %v11815_v45  ;;  %v2624_v45 = vld [vmem:[#allocation9 + $0xb68] sm:$0xff]  ;;  %v11908_v58 = vcombine.low %v2615_v39, %v2623_v54 }
 0x497   :  { %9208 = vmatmul.mubr.bf16.vlgmr.msra.gmra.mrb[20].mxu0 %v13623_v18  ;;  %v11911_v50 = vcombine.high %v2616_v40, %v2624_v45 }
 0x498   :  { %9380 = vmatmul.mubr.bf16.vlgmr.msra.gmra.mrb[20].mxu1 %v13623_v18  ;;  %9219 = vmatpush1.bf16.msra.mxu0 %v11812_v49  ;;  %v11909_v49 = vcombine.high %v2615_v39, %v2623_v54 }
 0x499   :  { %9250 = vmatprep.mubr.bf16.mxu0 %v13629_v29  ;;  %9391 = vmatpush1.bf16.msra.mxu1 %v11814_v57  ;;  %v2639_v57 = vld [vmem:[#allocation9 + $0xbe0] sm:$0xff] }
 0x49a   :  { %9422 = vmatprep.mubr.bf16.mxu1 %v13629_v29  ;;  %9220 = vmatprep.subr.bf16.mxu0 %v11829_v4  ;;  %v2632_v4 = vld [vmem:[#allocation9 + $0xba8] sm:$0xff]  ;;  %v11925_v60 = vcombine.high %v2631_v55, %v2639_v57  ;;  %v11924_v2 = vcombine.low %v2631_v55, %v2639_v57 }
 0x49b   :  { %9392 = vmatprep.subr.bf16.mxu1 %v11831_v59  ;;  %v11910_v59 = vcombine.low %v2616_v40, %v2624_v45  ;;  %v11927_v61 = vcombine.high %v2632_v4, %v2640_v19  ;;  %v11926_v3 = vcombine.low %v2632_v4, %v2640_v19 }
 0x49c   :  { %9221 = vmatpush1.bf16.msra.mxu0 %v11828_v62  ;;  %v2647_v62 = vld [vmem:[#allocation9 + $0xc20] sm:$0xff] }
 0x49d   :  { %9393 = vmatpush1.bf16.msra.mxu1 %v11830_v63  ;;  %9222 = vmatprep.subr.bf16.mxu0 %v11845_v1  ;;  %v2655_v63 = vld [vmem:[#allocation9 + $0xc60] sm:$0xff]  ;;  %v2648_v1 = vld [vmem:[#allocation9 + $0xc28] sm:$0xff] }
 0x49e   :  { %9394 = vmatprep.subr.bf16.mxu1 %v11847_v0  ;;  %v2656_v0 = vld [vmem:[#allocation9 + $0xc68] sm:$0xff]  ;;  %v11941_v5 = vcombine.high %v2647_v62, %v2655_v63  ;;  %v11940_v11 = vcombine.low %v2647_v62, %v2655_v63 }
 0x49f   :  { %v11943_v6 = vcombine.high %v2648_v1, %v2656_v0  ;;  %v11942_v12 = vcombine.low %v2648_v1, %v2656_v0 }
 0x4a0   :  { %9223 = vmatpush1.bf16.msra.mxu0 %v11844_v7  ;;  %v2663_v7 = vld [vmem:[#allocation9 + $0xca0] sm:$0xff] }
 0x4a1   :  { %9395 = vmatpush1.bf16.msra.mxu1 %v11846_v8  ;;  %9224 = vmatprep.subr.bf16.mxu0 %v11861_v9  ;;  %v2671_v8 = vld [vmem:[#allocation9 + $0xce0] sm:$0xff]  ;;  %v2664_v9 = vld [vmem:[#allocation9 + $0xca8] sm:$0xff] }
 0x4a2   :  { %9396 = vmatprep.subr.bf16.mxu1 %v11863_v10  ;;  %v2672_v10 = vld [vmem:[#allocation9 + $0xce8] sm:$0xff]  ;;  %v11957_v14 = vcombine.high %v2663_v7, %v2671_v8  ;;  %v11956_v31 = vcombine.low %v2663_v7, %v2671_v8 }
 0x4a3   :  { %v11959_v17 = vcombine.high %v2664_v9, %v2672_v10  ;;  %v11958_v32 = vcombine.low %v2664_v9, %v2672_v10 }
 0x4a4   :  { %9225 = vmatpush1.bf16.msra.mxu0 %v11860_v23  ;;  %v2679_v23 = vld [vmem:[#allocation9 + $0xd20] sm:$0xff] }
 0x4a5   :  { %9397 = vmatpush1.bf16.msra.mxu1 %v11862_v25  ;;  %9226 = vmatprep.subr.bf16.mxu0 %v11877_v27  ;;  %v2687_v25 = vld [vmem:[#allocation9 + $0xd60] sm:$0xff]  ;;  %v2680_v27 = vld [vmem:[#allocation9 + $0xd28] sm:$0xff] }
 0x4a6   :  { %9398 = vmatprep.subr.bf16.mxu1 %v11879_v30  ;;  %v2688_v30 = vld [vmem:[#allocation9 + $0xd68] sm:$0xff]  ;;  %v11973_v33 = vcombine.high %v2679_v23, %v2687_v25  ;;  %v11972_v39 = vcombine.low %v2679_v23, %v2687_v25 }
 0x4a7   :  { %v11975_v34 = vcombine.high %v2680_v27, %v2688_v30  ;;  %v11974_v54 = vcombine.low %v2680_v27, %v2688_v30 }
 0x4a8   :  { %9227 = vmatpush1.bf16.msra.mxu0 %v11876_v35  ;;  %v2695_v35 = vld [vmem:[#allocation9 + $0xda0] sm:$0xff] }
 0x4a9   :  { %9399 = vmatpush1.bf16.msra.mxu1 %v11878_v36  ;;  %9228 = vmatprep.subr.bf16.mxu0 %v11893_v37  ;;  %v2703_v36 = vld [vmem:[#allocation9 + $0xde0] sm:$0xff]  ;;  %v2696_v37 = vld [vmem:[#allocation9 + $0xda8] sm:$0xff] }
 0x4aa   :  { %9400 = vmatprep.subr.bf16.mxu1 %v11895_v38  ;;  %v2704_v38 = vld [vmem:[#allocation9 + $0xde8] sm:$0xff]  ;;  %v11989_v40 = vcombine.high %v2695_v35, %v2703_v36  ;;  %v11988_v55 = vcombine.low %v2695_v35, %v2703_v36 }
 0x4ab   :  { %v11991_v45 = vcombine.high %v2696_v37, %v2704_v38  ;;  %v11990_v57 = vcombine.low %v2696_v37, %v2704_v38 }
 0x4ac   :  { %9229 = vmatpush1.bf16.msra.mxu0 %v11892_v46  ;;  %v2711_v46 = vld [vmem:[#allocation9 + $0xe20] sm:$0xff] }
 0x4ad   :  { %9401 = vmatpush1.bf16.msra.mxu1 %v11894_v47  ;;  %9230 = vmatprep.subr.bf16.mxu0 %v11909_v49  ;;  %v2719_v47 = vld [vmem:[#allocation9 + $0xe60] sm:$0xff]  ;;  %v2712_v49 = vld [vmem:[#allocation9 + $0xe28] sm:$0xff] }
 0x4ae   :  { %9402 = vmatprep.subr.bf16.mxu1 %v11911_v50  ;;  %v2720_v50 = vld [vmem:[#allocation9 + $0xe68] sm:$0xff]  ;;  %v12005_v4 = vcombine.high %v2711_v46, %v2719_v47  ;;  %v12004_v62 = vcombine.low %v2711_v46, %v2719_v47 }
 0x4af   :  { %v12007_v19 = vcombine.high %v2712_v49, %v2720_v50  ;;  %v12006_v63 = vcombine.low %v2712_v49, %v2720_v50  ;;  %v2800_v46 = vld [vmem:[#allocation9 + $0x10e8] sm:$0xff]  ;;  %v2807_v50 = vld [vmem:[#allocation9 + $0x1120] sm:$0xff] }
 0x4b0   :  { %9231 = vmatpush1.bf16.msra.mxu0 %v11908_v58  ;;  %v2727_v58 = vld [vmem:[#allocation9 + $0xea0] sm:$0xff] }
 0x4b1   :  { %9403 = vmatpush1.bf16.msra.mxu1 %v11910_v59  ;;  %9232 = vmatprep.subr.bf16.mxu0 %v11925_v60  ;;  %v2735_v59 = vld [vmem:[#allocation9 + $0xee0] sm:$0xff]  ;;  %v2728_v60 = vld [vmem:[#allocation9 + $0xea8] sm:$0xff] }
 0x4b2   :  { %9404 = vmatprep.subr.bf16.mxu1 %v11927_v61  ;;  %v2736_v61 = vld [vmem:[#allocation9 + $0xee8] sm:$0xff]  ;;  %v12021_v1 = vcombine.high %v2727_v58, %v2735_v59  ;;  %v12020_v7 = vcombine.low %v2727_v58, %v2735_v59 }
 0x4b3   :  { %v12023_v0 = vcombine.high %v2728_v60, %v2736_v61  ;;  %v12022_v8 = vcombine.low %v2728_v60, %v2736_v61 }
 0x4b4   :  { %9233 = vmatpush1.bf16.msra.mxu0 %v11924_v2  ;;  %v2743_v2 = vld [vmem:[#allocation9 + $0xf20] sm:$0xff] }
 0x4b5   :  { %9405 = vmatpush1.bf16.msra.mxu1 %v11926_v3  ;;  %9234 = vmatprep.subr.bf16.mxu0 %v11941_v5  ;;  %v2751_v3 = vld [vmem:[#allocation9 + $0xf60] sm:$0xff]  ;;  %v2744_v5 = vld [vmem:[#allocation9 + $0xf28] sm:$0xff] }
 0x4b6   :  { %9406 = vmatprep.subr.bf16.mxu1 %v11943_v6  ;;  %v2752_v6 = vld [vmem:[#allocation9 + $0xf68] sm:$0xff]  ;;  %v12037_v9 = vcombine.high %v2743_v2, %v2751_v3  ;;  %v12036_v23 = vcombine.low %v2743_v2, %v2751_v3 }
 0x4b7   :  { %v12039_v10 = vcombine.high %v2744_v5, %v2752_v6  ;;  %v12038_v25 = vcombine.low %v2744_v5, %v2752_v6 }
 0x4b8   :  { %9235 = vmatpush1.bf16.msra.mxu0 %v11940_v11  ;;  %v2759_v11 = vld [vmem:[#allocation9 + $0xfa0] sm:$0xff] }
 0x4b9   :  { %9407 = vmatpush1.bf16.msra.mxu1 %v11942_v12  ;;  %9236 = vmatprep.subr.bf16.mxu0 %v11957_v14  ;;  %v2767_v12 = vld [vmem:[#allocation9 + $0xfe0] sm:$0xff]  ;;  %v2760_v14 = vld [vmem:[#allocation9 + $0xfa8] sm:$0xff] }
 0x4ba   :  { %9408 = vmatprep.subr.bf16.mxu1 %v11959_v17  ;;  %v2768_v17 = vld [vmem:[#allocation9 + $0xfe8] sm:$0xff]  ;;  %v12053_v27 = vcombine.high %v2759_v11, %v2767_v12  ;;  %v12052_v35 = vcombine.low %v2759_v11, %v2767_v12 }
 0x4bb   :  { %v12055_v30 = vcombine.high %v2760_v14, %v2768_v17  ;;  %v12054_v36 = vcombine.low %v2760_v14, %v2768_v17 }
 0x4bc   :  { %9237 = vmatpush1.bf16.msra.mxu0 %v11956_v31  ;;  %v2775_v31 = vld [vmem:[#allocation9 + $0x1020] sm:$0xff] }
 0x4bd   :  { %9409 = vmatpush1.bf16.msra.mxu1 %v11958_v32  ;;  %9238 = vmatprep.subr.bf16.mxu0 %v11973_v33  ;;  %v2783_v32 = vld [vmem:[#allocation9 + $0x1060] sm:$0xff]  ;;  %v2776_v33 = vld [vmem:[#allocation9 + $0x1028] sm:$0xff] }
 0x4be   :  { %9410 = vmatprep.subr.bf16.mxu1 %v11975_v34  ;;  %v2784_v34 = vld [vmem:[#allocation9 + $0x1068] sm:$0xff]  ;;  %v12069_v37 = vcombine.high %v2775_v31, %v2783_v32 }
 0x4bf   :  { %v12071_v38 = vcombine.high %v2776_v33, %v2784_v34  ;;  %v12070_v47 = vcombine.low %v2776_v33, %v2784_v34 }
 0x4c0   :  { %9239 = vmatpush1.bf16.msra.mxu0 %v11972_v39  ;;  %v2791_v39 = vld [vmem:[#allocation9 + $0x10a0] sm:$0xff] }
 0x4c1   :  { %9411 = vmatpush1.bf16.msra.mxu1 %v11974_v54  ;;  %9240 = vmatprep.subr.bf16.mxu0 %v11989_v40  ;;  %v2799_v54 = vld [vmem:[#allocation9 + $0x10e0] sm:$0xff]  ;;  %v12068_v40 = vcombine.low %v2775_v31, %v2783_v32 }
 0x4c2   :  { %9412 = vmatprep.subr.bf16.mxu1 %v11991_v45  ;;  %v2792_v45 = vld [vmem:[#allocation9 + $0x10a8] sm:$0xff]  ;;  %v12085_v49 = vcombine.high %v2791_v39, %v2799_v54  ;;  %v12084_v58 = vcombine.low %v2791_v39, %v2799_v54 }
 0x4c3   :  { %v12086_v59 = vcombine.low %v2792_v45, %v2800_v46 }
 0x4c4   :  { %9241 = vmatpush1.bf16.msra.mxu0 %v11988_v55  ;;  %v2815_v55 = vld [vmem:[#allocation9 + $0x1160] sm:$0xff] }
 0x4c5   :  { %9413 = vmatpush1.bf16.msra.mxu1 %v11990_v57  ;;  %9242 = vmatprep.subr.bf16.mxu0 %v12005_v4  ;;  %v12087_v57 = vcombine.high %v2792_v45, %v2800_v46  ;;  %v2808_v4 = vld [vmem:[#allocation9 + $0x1128] sm:$0xff]  ;;  %v12101_v60 = vcombine.high %v2807_v50, %v2815_v55  ;;  %v12100_v2 = vcombine.low %v2807_v50, %v2815_v55  ;;  %v2887_v46 = vld [vmem:[#allocation9 + $0x13a0] sm:$0xff] }
 0x4c6   :  { %9414 = vmatprep.subr.bf16.mxu1 %v12007_v19  ;;  %v2816_v19 = vld [vmem:[#allocation9 + $0x1168] sm:$0xff] }
 0x4c7   :  { %v12103_v61 = vcombine.high %v2808_v4, %v2816_v19  ;;  %v12102_v3 = vcombine.low %v2808_v4, %v2816_v19  ;;  %v2896_v50 = vld [vmem:[#allocation9 + $0x13e8] sm:$0xff] }
 0x4c8   :  { %9243 = vmatpush1.bf16.msra.mxu0 %v12004_v62  ;;  %v2823_v62 = vld [vmem:[#allocation9 + $0x11a0] sm:$0xff] }
 0x4c9   :  { %9415 = vmatpush1.bf16.msra.mxu1 %v12006_v63  ;;  %9244 = vmatprep.subr.bf16.mxu0 %v12021_v1  ;;  %v2831_v63 = vld [vmem:[#allocation9 + $0x11e0] sm:$0xff]  ;;  %v2824_v1 = vld [vmem:[#allocation9 + $0x11a8] sm:$0xff] }
 0x4ca   :  { %9416 = vmatprep.subr.bf16.mxu1 %v12023_v0  ;;  %v2832_v0 = vld [vmem:[#allocation9 + $0x11e8] sm:$0xff]  ;;  %v12117_v5 = vcombine.high %v2823_v62, %v2831_v63  ;;  %v12116_v11 = vcombine.low %v2823_v62, %v2831_v63 }
 0x4cb   :  { %v12119_v6 = vcombine.high %v2824_v1, %v2832_v0  ;;  %v12118_v12 = vcombine.low %v2824_v1, %v2832_v0 }
 0x4cc   :  { %9245 = vmatpush1.bf16.msra.mxu0 %v12020_v7  ;;  %v2839_v7 = vld [vmem:[#allocation9 + $0x1220] sm:$0xff] }
 0x4cd   :  { %9417 = vmatpush1.bf16.msra.mxu1 %v12022_v8  ;;  %9246 = vmatprep.subr.bf16.mxu0 %v12037_v9  ;;  %v2847_v8 = vld [vmem:[#allocation9 + $0x1260] sm:$0xff]  ;;  %v2840_v9 = vld [vmem:[#allocation9 + $0x1228] sm:$0xff] }
 0x4ce   :  { %9418 = vmatprep.subr.bf16.mxu1 %v12039_v10  ;;  %v2848_v10 = vld [vmem:[#allocation9 + $0x1268] sm:$0xff]  ;;  %v12133_v14 = vcombine.high %v2839_v7, %v2847_v8  ;;  %v12132_v31 = vcombine.low %v2839_v7, %v2847_v8 }
 0x4cf   :  { %v12135_v17 = vcombine.high %v2840_v9, %v2848_v10  ;;  %v12134_v32 = vcombine.low %v2840_v9, %v2848_v10 }
 0x4d0   :  { %9247 = vmatpush1.bf16.msra.mxu0 %v12036_v23  ;;  %v2855_v23 = vld [vmem:[#allocation9 + $0x12a0] sm:$0xff] }
 0x4d1   :  { %9419 = vmatpush1.bf16.msra.mxu1 %v12038_v25  ;;  %9248 = vmatprep.subr.bf16.mxu0 %v12053_v27  ;;  %v2863_v25 = vld [vmem:[#allocation9 + $0x12e0] sm:$0xff]  ;;  %v2856_v27 = vld [vmem:[#allocation9 + $0x12a8] sm:$0xff] }
 0x4d2   :  { %9420 = vmatprep.subr.bf16.mxu1 %v12055_v30  ;;  %v2864_v30 = vld [vmem:[#allocation9 + $0x12e8] sm:$0xff]  ;;  %v12149_v33 = vcombine.high %v2855_v23, %v2863_v25  ;;  %v12148_v39 = vcombine.low %v2855_v23, %v2863_v25 }
 0x4d3   :  { %v12151_v34 = vcombine.high %v2856_v27, %v2864_v30  ;;  %v12150_v54 = vcombine.low %v2856_v27, %v2864_v30 }
 0x4d4   :  { %9249 = vmatpush1.bf16.msra.mxu0 %v12052_v35  ;;  %v2871_v35 = vld [vmem:[#allocation9 + $0x1320] sm:$0xff] }
 0x4d5   :  { %9421 = vmatpush1.bf16.msra.mxu1 %v12054_v36  ;;  %9261 = vmatprep.subr.bf16.mxu0 %v12069_v37  ;;  %v2879_v36 = vld [vmem:[#allocation9 + $0x1360] sm:$0xff]  ;;  %v2872_v37 = vld [vmem:[#allocation9 + $0x1328] sm:$0xff] }
 0x4d6   :  { %9433 = vmatprep.subr.bf16.mxu1 %v12071_v38  ;;  %v2880_v38 = vld [vmem:[#allocation9 + $0x1368] sm:$0xff]  ;;  %v12164_v55 = vcombine.low %v2871_v35, %v2879_v36 }
 0x4d7   :  { %9251 = vmatmul.mubr.bf16.vlgmr.msra.gmra.mrb[20].mxu0 %v13625_v21  ;;  %v12167_v45 = vcombine.high %v2872_v37, %v2880_v38 }
 0x4d8   :  { %9423 = vmatmul.mubr.bf16.vlgmr.msra.gmra.mrb[20].mxu1 %v13625_v21  ;;  %9262 = vmatpush1.bf16.msra.mxu0 %v12068_v40  ;;  %v12165_v40 = vcombine.high %v2871_v35, %v2879_v36 }
 0x4d9   :  { %9293 = vmatprep.mubr.bf16.mxu0 %v13667_v53  ;;  %9434 = vmatpush1.bf16.msra.mxu1 %v12070_v47  ;;  %v2895_v47 = vld [vmem:[#allocation9 + $0x13e0] sm:$0xff] }
 0x4da   :  { %9465 = vmatprep.mubr.bf16.mxu1 %v13667_v53  ;;  %9263 = vmatprep.subr.bf16.mxu0 %v12085_v49  ;;  %v2888_v49 = vld [vmem:[#allocation9 + $0x13a8] sm:$0xff]  ;;  %v12181_v4 = vcombine.high %v2887_v46, %v2895_v47  ;;  %v12180_v62 = vcombine.low %v2887_v46, %v2895_v47 }
 0x4db   :  { %9435 = vmatprep.subr.bf16.mxu1 %v12087_v57  ;;  %v12166_v57 = vcombine.low %v2872_v37, %v2880_v38  ;;  %v12183_v19 = vcombine.high %v2888_v49, %v2896_v50  ;;  %v12182_v63 = vcombine.low %v2888_v49, %v2896_v50 }
 0x4dc   :  { %9264 = vmatpush1.bf16.msra.mxu0 %v12084_v58  ;;  %v2903_v58 = vld [vmem:[#allocation9 + $0x1420] sm:$0xff] }
 0x4dd   :  { %9436 = vmatpush1.bf16.msra.mxu1 %v12086_v59  ;;  %9265 = vmatprep.subr.bf16.mxu0 %v12101_v60  ;;  %v2911_v59 = vld [vmem:[#allocation9 + $0x1460] sm:$0xff]  ;;  %v2904_v60 = vld [vmem:[#allocation9 + $0x1428] sm:$0xff] }
 0x4de   :  { %9437 = vmatprep.subr.bf16.mxu1 %v12103_v61  ;;  %v2912_v61 = vld [vmem:[#allocation9 + $0x1468] sm:$0xff]  ;;  %v12197_v1 = vcombine.high %v2903_v58, %v2911_v59  ;;  %v12196_v7 = vcombine.low %v2903_v58, %v2911_v59 }
 0x4df   :  { %v12199_v0 = vcombine.high %v2904_v60, %v2912_v61  ;;  %v12198_v8 = vcombine.low %v2904_v60, %v2912_v61 }
 0x4e0   :  { %9266 = vmatpush1.bf16.msra.mxu0 %v12100_v2  ;;  %v2919_v2 = vld [vmem:[#allocation9 + $0x14a0] sm:$0xff] }
 0x4e1   :  { %9438 = vmatpush1.bf16.msra.mxu1 %v12102_v3  ;;  %9267 = vmatprep.subr.bf16.mxu0 %v12117_v5  ;;  %v2927_v3 = vld [vmem:[#allocation9 + $0x14e0] sm:$0xff]  ;;  %v2920_v5 = vld [vmem:[#allocation9 + $0x14a8] sm:$0xff] }
 0x4e2   :  { %9439 = vmatprep.subr.bf16.mxu1 %v12119_v6  ;;  %v2928_v6 = vld [vmem:[#allocation9 + $0x14e8] sm:$0xff]  ;;  %v12213_v9 = vcombine.high %v2919_v2, %v2927_v3  ;;  %v12212_v23 = vcombine.low %v2919_v2, %v2927_v3 }
 0x4e3   :  { %v12215_v10 = vcombine.high %v2920_v5, %v2928_v6  ;;  %v12214_v25 = vcombine.low %v2920_v5, %v2928_v6 }
 0x4e4   :  { %9268 = vmatpush1.bf16.msra.mxu0 %v12116_v11  ;;  %v2935_v11 = vld [vmem:[#allocation9 + $0x1520] sm:$0xff] }
 0x4e5   :  { %9440 = vmatpush1.bf16.msra.mxu1 %v12118_v12  ;;  %9269 = vmatprep.subr.bf16.mxu0 %v12133_v14  ;;  %v2943_v12 = vld [vmem:[#allocation9 + $0x1560] sm:$0xff]  ;;  %v2936_v14 = vld [vmem:[#allocation9 + $0x1528] sm:$0xff] }
 0x4e6   :  { %9441 = vmatprep.subr.bf16.mxu1 %v12135_v17  ;;  %v2944_v17 = vld [vmem:[#allocation9 + $0x1568] sm:$0xff]  ;;  %v12229_v27 = vcombine.high %v2935_v11, %v2943_v12  ;;  %v12228_v35 = vcombine.low %v2935_v11, %v2943_v12 }
 0x4e7   :  { %v12231_v30 = vcombine.high %v2936_v14, %v2944_v17  ;;  %v12230_v36 = vcombine.low %v2936_v14, %v2944_v17 }
 0x4e8   :  { %9270 = vmatpush1.bf16.msra.mxu0 %v12132_v31  ;;  %v2951_v31 = vld [vmem:[#allocation9 + $0x15a0] sm:$0xff] }
 0x4e9   :  { %9442 = vmatpush1.bf16.msra.mxu1 %v12134_v32  ;;  %9271 = vmatprep.subr.bf16.mxu0 %v12149_v33  ;;  %v2959_v32 = vld [vmem:[#allocation9 + $0x15e0] sm:$0xff]  ;;  %v2952_v33 = vld [vmem:[#allocation9 + $0x15a8] sm:$0xff] }
 0x4ea   :  { %9443 = vmatprep.subr.bf16.mxu1 %v12151_v34  ;;  %v2960_v34 = vld [vmem:[#allocation9 + $0x15e8] sm:$0xff]  ;;  %v12245_v37 = vcombine.high %v2951_v31, %v2959_v32  ;;  %v12244_v46 = vcombine.low %v2951_v31, %v2959_v32 }
 0x4eb   :  { %v12247_v38 = vcombine.high %v2952_v33, %v2960_v34  ;;  %v12246_v47 = vcombine.low %v2952_v33, %v2960_v34 }
 0x4ec   :  { %9272 = vmatpush1.bf16.msra.mxu0 %v12148_v39  ;;  %v2967_v39 = vld [vmem:[#allocation9 + $0x1620] sm:$0xff] }
 0x4ed   :  { %9444 = vmatpush1.bf16.msra.mxu1 %v12150_v54  ;;  %9273 = vmatprep.subr.bf16.mxu0 %v12165_v40  ;;  %v2975_v54 = vld [vmem:[#allocation9 + $0x1660] sm:$0xff]  ;;  %v2968_v40 = vld [vmem:[#allocation9 + $0x1628] sm:$0xff] }
 0x4ee   :  { %9445 = vmatprep.subr.bf16.mxu1 %v12167_v45  ;;  %v2976_v45 = vld [vmem:[#allocation9 + $0x1668] sm:$0xff]  ;;  %v12261_v49 = vcombine.high %v2967_v39, %v2975_v54  ;;  %v12260_v58 = vcombine.low %v2967_v39, %v2975_v54 }
 0x4ef   :  { %v12263_v50 = vcombine.high %v2968_v40, %v2976_v45  ;;  %v12262_v59 = vcombine.low %v2968_v40, %v2976_v45  ;;  %v3056_v39 = vld [vmem:[#allocation9 + $0x18e8] sm:$0xff]  ;;  %v3063_v45 = vld [vmem:[#allocation9 + $0x1920] sm:$0xff] }
 0x4f0   :  { %9274 = vmatpush1.bf16.msra.mxu0 %v12164_v55  ;;  %v2983_v55 = vld [vmem:[#allocation9 + $0x16a0] sm:$0xff] }
 0x4f1   :  { %9446 = vmatpush1.bf16.msra.mxu1 %v12166_v57  ;;  %9275 = vmatprep.subr.bf16.mxu0 %v12181_v4  ;;  %v2991_v57 = vld [vmem:[#allocation9 + $0x16e0] sm:$0xff]  ;;  %v2984_v4 = vld [vmem:[#allocation9 + $0x16a8] sm:$0xff] }
 0x4f2   :  { %9447 = vmatprep.subr.bf16.mxu1 %v12183_v19  ;;  %v2992_v19 = vld [vmem:[#allocation9 + $0x16e8] sm:$0xff]  ;;  %v12277_v60 = vcombine.high %v2983_v55, %v2991_v57  ;;  %v12276_v2 = vcombine.low %v2983_v55, %v2991_v57 }
 0x4f3   :  { %v12279_v61 = vcombine.high %v2984_v4, %v2992_v19  ;;  %v12278_v3 = vcombine.low %v2984_v4, %v2992_v19 }
 0x4f4   :  { %9276 = vmatpush1.bf16.msra.mxu0 %v12180_v62  ;;  %v2999_v62 = vld [vmem:[#allocation9 + $0x1720] sm:$0xff] }
 0x4f5   :  { %9448 = vmatpush1.bf16.msra.mxu1 %v12182_v63  ;;  %9277 = vmatprep.subr.bf16.mxu0 %v12197_v1  ;;  %v3007_v63 = vld [vmem:[#allocation9 + $0x1760] sm:$0xff]  ;;  %v3000_v1 = vld [vmem:[#allocation9 + $0x1728] sm:$0xff] }
 0x4f6   :  { %9449 = vmatprep.subr.bf16.mxu1 %v12199_v0  ;;  %v3008_v0 = vld [vmem:[#allocation9 + $0x1768] sm:$0xff]  ;;  %v12293_v5 = vcombine.high %v2999_v62, %v3007_v63  ;;  %v12292_v11 = vcombine.low %v2999_v62, %v3007_v63 }
 0x4f7   :  { %v12295_v6 = vcombine.high %v3000_v1, %v3008_v0  ;;  %v12294_v12 = vcombine.low %v3000_v1, %v3008_v0 }
 0x4f8   :  { %9278 = vmatpush1.bf16.msra.mxu0 %v12196_v7  ;;  %v3015_v7 = vld [vmem:[#allocation9 + $0x17a0] sm:$0xff] }
 0x4f9   :  { %9450 = vmatpush1.bf16.msra.mxu1 %v12198_v8  ;;  %9279 = vmatprep.subr.bf16.mxu0 %v12213_v9  ;;  %v3023_v8 = vld [vmem:[#allocation9 + $0x17e0] sm:$0xff]  ;;  %v3016_v9 = vld [vmem:[#allocation9 + $0x17a8] sm:$0xff] }
 0x4fa   :  { %9451 = vmatprep.subr.bf16.mxu1 %v12215_v10  ;;  %v3024_v10 = vld [vmem:[#allocation9 + $0x17e8] sm:$0xff]  ;;  %v12309_v14 = vcombine.high %v3015_v7, %v3023_v8  ;;  %v12308_v31 = vcombine.low %v3015_v7, %v3023_v8 }
 0x4fb   :  { %v12311_v17 = vcombine.high %v3016_v9, %v3024_v10  ;;  %v12310_v32 = vcombine.low %v3016_v9, %v3024_v10 }
 0x4fc   :  { %9280 = vmatpush1.bf16.msra.mxu0 %v12212_v23  ;;  %v3031_v23 = vld [vmem:[#allocation9 + $0x1820] sm:$0xff] }
 0x4fd   :  { %9452 = vmatpush1.bf16.msra.mxu1 %v12214_v25  ;;  %9281 = vmatprep.subr.bf16.mxu0 %v12229_v27  ;;  %v3039_v25 = vld [vmem:[#allocation9 + $0x1860] sm:$0xff]  ;;  %v3032_v27 = vld [vmem:[#allocation9 + $0x1828] sm:$0xff] }
 0x4fe   :  { %9453 = vmatprep.subr.bf16.mxu1 %v12231_v30  ;;  %v3040_v30 = vld [vmem:[#allocation9 + $0x1868] sm:$0xff]  ;;  %v12325_v33 = vcombine.high %v3031_v23, %v3039_v25 }
 0x4ff   :  { %v12327_v34 = vcombine.high %v3032_v27, %v3040_v30  ;;  %v12326_v54 = vcombine.low %v3032_v27, %v3040_v30 }
 0x500   :  { %9282 = vmatpush1.bf16.msra.mxu0 %v12228_v35  ;;  %v3047_v35 = vld [vmem:[#allocation9 + $0x18a0] sm:$0xff] }
 0x501   :  { %9454 = vmatpush1.bf16.msra.mxu1 %v12230_v36  ;;  %9283 = vmatprep.subr.bf16.mxu0 %v12245_v37  ;;  %v3055_v36 = vld [vmem:[#allocation9 + $0x18e0] sm:$0xff]  ;;  %v12324_v37 = vcombine.low %v3031_v23, %v3039_v25 }
 0x502   :  { %9455 = vmatprep.subr.bf16.mxu1 %v12247_v38  ;;  %v3048_v38 = vld [vmem:[#allocation9 + $0x18a8] sm:$0xff]  ;;  %v12341_v40 = vcombine.high %v3047_v35, %v3055_v36  ;;  %v12340_v55 = vcombine.low %v3047_v35, %v3055_v36 }
 0x503   :  { %v12342_v57 = vcombine.low %v3048_v38, %v3056_v39  ;;  %v3128_v35 = vld [vmem:[#allocation9 + $0x1b28] sm:$0xff] }
 0x504   :  { %9284 = vmatpush1.bf16.msra.mxu0 %v12244_v46  ;;  %v3071_v46 = vld [vmem:[#allocation9 + $0x1960] sm:$0xff]  ;;  %v3136_v36 = vld [vmem:[#allocation9 + $0x1b68] sm:$0xff] }
 0x505   :  { %9456 = vmatpush1.bf16.msra.mxu1 %v12246_v47  ;;  %9285 = vmatprep.subr.bf16.mxu0 %v12261_v49  ;;  %v12343_v47 = vcombine.high %v3048_v38, %v3056_v39  ;;  %v3064_v49 = vld [vmem:[#allocation9 + $0x1928] sm:$0xff]  ;;  %v12357_v4 = vcombine.high %v3063_v45, %v3071_v46  ;;  %v12356_v62 = vcombine.low %v3063_v45, %v3071_v46 }
 0x506   :  { %9457 = vmatprep.subr.bf16.mxu1 %v12263_v50  ;;  %v3072_v50 = vld [vmem:[#allocation9 + $0x1968] sm:$0xff] }
 0x507   :  { %v12359_v19 = vcombine.high %v3064_v49, %v3072_v50  ;;  %v12358_v63 = vcombine.low %v3064_v49, %v3072_v50  ;;  %v3143_v49 = vld [vmem:[#allocation9 + $0x1ba0] sm:$0xff] }
 0x508   :  { %9286 = vmatpush1.bf16.msra.mxu0 %v12260_v58  ;;  %v3079_v58 = vld [vmem:[#allocation9 + $0x19a0] sm:$0xff] }
 0x509   :  { %9458 = vmatpush1.bf16.msra.mxu1 %v12262_v59  ;;  %9287 = vmatprep.subr.bf16.mxu0 %v12277_v60  ;;  %v3087_v59 = vld [vmem:[#allocation9 + $0x19e0] sm:$0xff]  ;;  %v3080_v60 = vld [vmem:[#allocation9 + $0x19a8] sm:$0xff] }
 0x50a   :  { %9459 = vmatprep.subr.bf16.mxu1 %v12279_v61  ;;  %v3088_v61 = vld [vmem:[#allocation9 + $0x19e8] sm:$0xff]  ;;  %v12373_v1 = vcombine.high %v3079_v58, %v3087_v59  ;;  %v12372_v7 = vcombine.low %v3079_v58, %v3087_v59  ;;  %v3151_v50 = vld [vmem:[#allocation9 + $0x1be0] sm:$0xff] }
 0x50b   :  { %v12375_v0 = vcombine.high %v3080_v60, %v3088_v61  ;;  %v12374_v8 = vcombine.low %v3080_v60, %v3088_v61  ;;  %v3152_v58 = vld [vmem:[#allocation9 + $0x1be8] sm:$0xff] }
 0x50c   :  { %9288 = vmatpush1.bf16.msra.mxu0 %v12276_v2  ;;  %v3095_v2 = vld [vmem:[#allocation9 + $0x1a20] sm:$0xff] }
 0x50d   :  { %9460 = vmatpush1.bf16.msra.mxu1 %v12278_v3  ;;  %9289 = vmatprep.subr.bf16.mxu0 %v12293_v5  ;;  %v3103_v3 = vld [vmem:[#allocation9 + $0x1a60] sm:$0xff]  ;;  %v3096_v5 = vld [vmem:[#allocation9 + $0x1a28] sm:$0xff] }
 0x50e   :  { %9461 = vmatprep.subr.bf16.mxu1 %v12295_v6  ;;  %v3104_v6 = vld [vmem:[#allocation9 + $0x1a68] sm:$0xff]  ;;  %v12389_v9 = vcombine.high %v3095_v2, %v3103_v3  ;;  %v12388_v23 = vcombine.low %v3095_v2, %v3103_v3 }
 0x50f   :  { %v12391_v10 = vcombine.high %v3096_v5, %v3104_v6  ;;  %v12390_v25 = vcombine.low %v3096_v5, %v3104_v6  ;;  %v12437_v6 = vcombine.high %v3143_v49, %v3151_v50 }
 0x510   :  { %9290 = vmatpush1.bf16.msra.mxu0 %v12292_v11  ;;  %v3111_v11 = vld [vmem:[#allocation9 + $0x1aa0] sm:$0xff] }
 0x511   :  { %9462 = vmatpush1.bf16.msra.mxu1 %v12294_v12  ;;  %9291 = vmatprep.subr.bf16.mxu0 %v12309_v14  ;;  %v3119_v12 = vld [vmem:[#allocation9 + $0x1ae0] sm:$0xff]  ;;  %v3112_v14 = vld [vmem:[#allocation9 + $0x1aa8] sm:$0xff] }
 0x512   :  { %9463 = vmatprep.subr.bf16.mxu1 %v12311_v17  ;;  %v3120_v17 = vld [vmem:[#allocation9 + $0x1ae8] sm:$0xff]  ;;  %v12405_v27 = vcombine.high %v3111_v11, %v3119_v12  ;;  %v12404_v39 = vcombine.low %v3111_v11, %v3119_v12  ;;  %v3159_v12 = vld [vmem:[#allocation9 + $0x1c20] sm:$0xff] }
 0x513   :  { %v12407_v30 = vcombine.high %v3112_v14, %v3120_v17 }
 0x514   :  { %9292 = vmatpush1.bf16.msra.mxu0 %v12308_v31  ;;  %v3127_v31 = vld [vmem:[#allocation9 + $0x1b20] sm:$0xff] }
 0x515   :  { %9464 = vmatpush1.bf16.msra.mxu1 %v12310_v32  ;;  %9304 = vmatprep.subr.bf16.mxu0 %v12325_v33  ;;  %v3135_v32 = vld [vmem:[#allocation9 + $0x1b60] sm:$0xff] }
 0x516   :  { %9476 = vmatprep.subr.bf16.mxu1 %v12327_v34  ;;  %v13194_v33 = vld [vmem:[#allocation10] sm:$0xff]  ;;  %v12421_v45 = vcombine.high %v3127_v31, %v3135_v32 }
 0x517   :  { %9294 = vmatmul.mubr.bf16.vlgmr.msra.gmra.mrb[20].mxu0 %v13663_v42  ;;  %v3306_v34 = vrot.slane %v13194_v33, %v13644_v41  ;;  %v3310_v38 = vrot.slane %v13194_v33, %v13650_v44 }
 0x518   :  { %9466 = vmatmul.mubr.bf16.vlgmr.msra.gmra.mrb[20].mxu1 %v13663_v42  ;;  %9305 = vmatpush1.bf16.msra.mxu0 %v12324_v37  ;;  %v3314_v37 = vrot.slane %v13194_v33, %v13647_v43 }
 0x519   :  { %9336 = vmatprep.mubr.bf16.mxu0 %v13669_v56  ;;  %9477 = vmatpush1.bf16.msra.mxu1 %v12326_v54  ;;  %v3318_v54 = vrot.slane %v13194_v33, %v13653_v48 }
 0x51a   :  { %9508 = vmatprep.mubr.bf16.mxu1 %v13669_v56  ;;  %9306 = vmatprep.subr.bf16.mxu0 %v12341_v40  ;;  %v12406_v40 = vcombine.low %v3112_v14, %v3120_v17  ;;  %v3167_v14 = vld [vmem:[#allocation9 + $0x1c60] sm:$0xff] }
 0x51b   :  { %9478 = vmatprep.subr.bf16.mxu1 %v12343_v47  ;;  %v12423_v47 = vcombine.high %v3128_v35, %v3136_v36 }
 0x51c   :  { %9307 = vmatpush1.bf16.msra.mxu0 %v12340_v55 }
 0x51d   :  { %9479 = vmatpush1.bf16.msra.mxu1 %v12342_v57  ;;  %9308 = vmatprep.subr.bf16.mxu0 %v12357_v4 }
 0x51e   :  { %9480 = vmatprep.subr.bf16.mxu1 %v12359_v19  ;;  %v3144_v19 = vld [vmem:[#allocation9 + $0x1ba8] sm:$0xff] }
 0x51f   :  { %v12439_v11 = vcombine.high %v3144_v19, %v3152_v58 }
 0x520   :  { %9309 = vmatpush1.bf16.msra.mxu0 %v12356_v62 }
 0x521   :  { %9481 = vmatpush1.bf16.msra.mxu1 %v12358_v63  ;;  %9310 = vmatprep.subr.bf16.mxu0 %v12373_v1  ;;  %v12420_v63 = vcombine.low %v3127_v31, %v3135_v32  ;;  %v12422_v1 = vcombine.low %v3128_v35, %v3136_v36  ;;  %v3168_v31 = vld [vmem:[#allocation9 + $0x1c68] sm:$0xff] }
 0x522   :  { %9482 = vmatprep.subr.bf16.mxu1 %v12375_v0 }
 0x524   :  { %9311 = vmatpush1.bf16.msra.mxu0 %v12372_v7 }
 0x525   :  { %9483 = vmatpush1.bf16.msra.mxu1 %v12374_v8  ;;  %9312 = vmatprep.subr.bf16.mxu0 %v12389_v9 }
 0x526   :  { %9484 = vmatprep.subr.bf16.mxu1 %v12391_v10  ;;  %v12436_v10 = vcombine.low %v3143_v49, %v3151_v50  ;;  %v3176_v50 = vld [vmem:[#allocation9 + $0x1ca8] sm:$0xff] }
 0x528   :  { %9313 = vmatpush1.bf16.msra.mxu0 %v12388_v23 }
 0x529   :  { %9485 = vmatpush1.bf16.msra.mxu1 %v12390_v25  ;;  %9314 = vmatprep.subr.bf16.mxu0 %v12405_v27  ;;  %v12438_v27 = vcombine.low %v3144_v19, %v3152_v58 }
 0x52a   :  { %v8994_v46 = vpop.f32.mrb[16].mxu0  ;;  %9486 = vmatprep.subr.bf16.mxu1 %v12407_v30  ;;  %v3160_v30 = vld [vmem:[#allocation9 + $0x1c28] sm:$0xff] }
 0x52b   :  { %v12901_v55 = vadd.f32 %v8994_v46, %v3306_v34  ;;  %v9166_v57 = vpop.f32.mrb[16].mxu1  ;;  %v8996_v4 = vpop.f32.mrb[17].mxu0  ;;  %v3175_v46 = vld [vmem:[#allocation9 + $0x1ca0] sm:$0xff] }
 0x52c   :  { %v12905_v59 = vadd.f32 %v9166_v57, %v3314_v37  ;;  %v12902_v60 = vadd.f32 %v8996_v4, %v3310_v38  ;;  %v9168_v61 = vpop.f32.mrb[17].mxu1  ;;  %v8998_v62 = vpop.f32.mrb[18].mxu0  ;;  %9315 = vmatpush1.bf16.msra.mxu0 %v12404_v39  ;;  %v12453_v39 = vcombine.high %v3159_v12, %v3167_v14  ;;  %v12452_v57 = vcombine.low %v3159_v12, %v3167_v14  ;;  %v3223_v12 = vld [vmem:[#allocation9 + $0x1e20] sm:$0xff] }
 0x52d   :  { %v12906_v0 = vadd.f32 %v9168_v61, %v3318_v54  ;;  %v12903_v2 = vadd.f32 %v8998_v62, %v3306_v34  ;;  %v9170_v3 = vpop.f32.mrb[18].mxu1  ;;  %9487 = vmatpush1.bf16.msra.mxu1 %v12406_v40  ;;  %v9000_v5 = vpop.f32.mrb[19].mxu0  ;;  %9316 = vmatprep.subr.bf16.mxu0 %v12421_v45  ;;  %v9867_v17 = vmax.f32 %v12901_v55, 0.0  ;;  %v3184_v55 = vld [vmem:[#allocation9 + $0x1ce8] sm:$0xff]  ;;  %v12454_v4 = vcombine.low %v3160_v30, %v3168_v31  ;;  %v3231_v14 = vld [vmem:[#allocation9 + $0x1e60] sm:$0xff] }
 0x52e   :  { %v12907_v7 = vadd.f32 %v9170_v3, %v3314_v37  ;;  %v12904_v8 = vadd.f32 %v9000_v5, %v3310_v38  ;;  %v9172_v9 = vpop.f32.mrb[19].mxu1  ;;  %9488 = vmatprep.subr.bf16.mxu1 %v12423_v47  ;;  %v9869_v32 = vmax.f32 %v12905_v59, 0.0  ;;  %v9868_v33 = vmax.f32 %v12902_v60, 0.0  ;;  %v3183_v47 = vld [vmem:[#allocation9 + $0x1ce0] sm:$0xff]  ;;  %v3192_v61 = vld [vmem:[#allocation9 + $0x1d28] sm:$0xff] }
 0x52f   :  { %v9883_v23 = vmax.f32 %v12903_v2, 0.0  ;;  %v12908_v25 = vadd.f32 %v9172_v9, %v3318_v54  ;;  %v9870_v36 = vmax.f32 %v12906_v0, 0.0  ;;  %v12455_v54 = vcombine.high %v3160_v30, %v3168_v31  ;;  %v3191_v59 = vld [vmem:[#allocation9 + $0x1d20] sm:$0xff]  ;;  %v3200_v62 = vld [vmem:[#allocation9 + $0x1d68] sm:$0xff] }
 0x530   :  { %v9885_v34 = vmax.f32 %v12907_v7, 0.0  ;;  %v9884_v35 = vmax.f32 %v12904_v8, 0.0  ;;  %9317 = vmatpush1.bf16.msra.mxu0 %v12420_v63  ;;  %v12469_v19 = vcombine.high %v3175_v46, %v3183_v47  ;;  %v12471_v58 = vcombine.high %v3176_v50, %v3184_v55  ;;  %v3199_v60 = vld [vmem:[#allocation9 + $0x1d60] sm:$0xff]  ;;  %v3216_v7 = vld [vmem:[#allocation9 + $0x1de8] sm:$0xff] }
 0x531   :  { %v13725_v37 = vpack.c.bf16 %v9883_v23, %v9867_v17  ;;  %v9886_v38 = vmax.f32 %v12908_v25, 0.0  ;;  %9489 = vmatpush1.bf16.msra.mxu1 %v12422_v1  ;;  %9318 = vmatprep.subr.bf16.mxu0 %v12437_v6  ;;  %v12468_v63 = vcombine.low %v3175_v46, %v3183_v47  ;;  %v12470_v1 = vcombine.low %v3176_v50, %v3184_v55  ;;  %v3207_v3 = vld [vmem:[#allocation9 + $0x1da0] sm:$0xff]  ;;  %v3208_v6 = vld [vmem:[#allocation9 + $0x1da8] sm:$0xff] }
 0x532   :  { %v13727_v40 = vpack.c.bf16 %v9885_v34, %v9869_v32  ;;  %v13729_v45 = vpack.c.bf16 %v9884_v35, %v9868_v33  ;;  %9490 = vmatprep.subr.bf16.mxu1 %v12439_v11  ;;  %v12485_v0 = vcombine.high %v3191_v59, %v3199_v60  ;;  %v12487_v2 = vcombine.high %v3192_v61, %v3200_v62  ;;  %v3215_v5 = vld [vmem:[#allocation9 + $0x1de0] sm:$0xff]  ;;  %v3224_v17 = vld [vmem:[#allocation9 + $0x1e28] sm:$0xff] }
 0x533   :  { %v13731_v49 = vpack.c.bf16 %v9886_v38, %v9870_v36  ;;  %v12484_v8 = vcombine.low %v3191_v59, %v3199_v60  ;;  %v12486_v9 = vcombine.low %v3192_v61, %v3200_v62  ;;  %v12503_v11 = vcombine.high %v3208_v6, %v3216_v7  ;;  %v3232_v23 = vld [vmem:[#allocation9 + $0x1e68] sm:$0xff]  ;;  %v3239_v32 = vld [vmem:[#allocation9 + $0x1ea0] sm:$0xff] }
 0x534   :  { %9319 = vmatpush1.bf16.msra.mxu0 %v12436_v10  ;;  %v12501_v10 = vcombine.high %v3207_v3, %v3215_v5  ;;  %v12500_v25 = vcombine.low %v3207_v3, %v3215_v5  ;;  %v12517_v30 = vcombine.high %v3223_v12, %v3231_v14  ;;  %v12519_v31 = vcombine.high %v3224_v17, %v3232_v23  ;;  %v3247_v33 = vld [vmem:[#allocation9 + $0x1ee0] sm:$0xff]  ;;  %v3240_v34 = vld [vmem:[#allocation9 + $0x1ea8] sm:$0xff]  ;;  %v2265_v3 = vld [vmem:[#allocation9 + $0x30] sm:$0xff] }
 0x535   :  { %9491 = vmatpush1.bf16.msra.mxu1 %v12438_v27  ;;  %9320 = vmatprep.subr.bf16.mxu0 %v12453_v39  ;;  %v12502_v27 = vcombine.low %v3208_v6, %v3216_v7  ;;  %v3248_v35 = vld [vmem:[#allocation9 + $0x1ee8] sm:$0xff]  ;;  %v12516_v36 = vcombine.low %v3223_v12, %v3231_v14  ;;  %v12518_v38 = vcombine.low %v3224_v17, %v3232_v23  ;;  %v3255_v46 = vld [vmem:[#allocation9 + $0x1f20] sm:$0xff]  ;;  %v2273_v5 = vld [vmem:[#allocation9 + $0x70] sm:$0xff] }
 0x536   :  { %9492 = vmatprep.subr.bf16.mxu1 %v12455_v54  ;;  %v12533_v39 = vcombine.high %v3239_v32, %v3247_v33  ;;  %v12535_v54 = vcombine.high %v3240_v34, %v3248_v35  ;;  %v3263_v47 = vld [vmem:[#allocation9 + $0x1f60] sm:$0xff]  ;;  %v3256_v50 = vld [vmem:[#allocation9 + $0x1f28] sm:$0xff]  ;;  %v2266_v6 = vld [vmem:[#allocation9 + $0x38] sm:$0xff]  ;;  %v11560_v17 = vcombine.low %v2265_v3, %v2273_v5 }
 0x537   :  { %v3264_v55 = vld [vmem:[#allocation9 + $0x1f68] sm:$0xff]  ;;  %v3271_v59 = vld [vmem:[#allocation9 + $0x1fa0] sm:$0xff]  ;;  %v2274_v7 = vld [vmem:[#allocation9 + $0x78] sm:$0xff] }
 0x538   :  { %9321 = vmatpush1.bf16.msra.mxu0 %v12452_v57  ;;  %v12532_v57 = vcombine.low %v3239_v32, %v3247_v33  ;;  %v3279_v60 = vld [vmem:[#allocation9 + $0x1fe0] sm:$0xff]  ;;  %v3272_v61 = vld [vmem:[#allocation9 + $0x1fa8] sm:$0xff]  ;;  %v2281_v12 = vld [vmem:[#allocation9 + $0xb0] sm:$0xff] }
 0x539   :  { %9493 = vmatpush1.bf16.msra.mxu1 %v12454_v4  ;;  %9322 = vmatprep.subr.bf16.mxu0 %v12469_v19  ;;  %v12534_v4 = vcombine.low %v3240_v34, %v3248_v35  ;;  %v12549_v19 = vcombine.high %v3255_v46, %v3263_v47  ;;  %v3280_v62 = vld [vmem:[#allocation9 + $0x1fe8] sm:$0xff]  ;;  %v2289_v14 = vld [vmem:[#allocation9 + $0xf0] sm:$0xff]  ;;  %v2282_v23 = vld [vmem:[#allocation9 + $0xb8] sm:$0xff] }
 0x53a   :  { %9494 = vmatprep.subr.bf16.mxu1 %v12471_v58  ;;  %v12551_v58 = vcombine.high %v3256_v50, %v3264_v55  ;;  %v2305_v32 = vld [vmem:[#allocation9 + $0x170] sm:$0xff]  ;;  %v2298_v34 = vld [vmem:[#allocation9 + $0x138] sm:$0xff] }
 0x53b   :  { %v2306_v35 = vld [vmem:[#allocation9 + $0x178] sm:$0xff] }
 0x53c   :  { %9323 = vmatpush1.bf16.msra.mxu0 %v12468_v63  ;;  %v12548_v63 = vcombine.low %v3255_v46, %v3263_v47  ;;  %v2313_v46 = vld [vmem:[#allocation9 + $0x1b0] sm:$0xff] }
 0x53d   :  { %9495 = vmatpush1.bf16.msra.mxu1 %v12470_v1  ;;  %9324 = vmatprep.subr.bf16.mxu0 %v12485_v0  ;;  %v12550_v1 = vcombine.low %v3256_v50, %v3264_v55  ;;  %v12565_v0 = vcombine.high %v3271_v59, %v3279_v60  ;;  %v2321_v47 = vld [vmem:[#allocation9 + $0x1f0] sm:$0xff]  ;;  %v2314_v50 = vld [vmem:[#allocation9 + $0x1b8] sm:$0xff] }
 0x53e   :  { %9496 = vmatprep.subr.bf16.mxu1 %v12487_v2  ;;  %v12567_v2 = vcombine.high %v3272_v61, %v3280_v62  ;;  %v2322_v55 = vld [vmem:[#allocation9 + $0x1f8] sm:$0xff] }
 0x540   :  { %9325 = vmatpush1.bf16.msra.mxu0 %v12484_v8  ;;  %v12564_v8 = vcombine.low %v3271_v59, %v3279_v60  ;;  %v2329_v59 = vld [vmem:[#allocation9 + $0x230] sm:$0xff] }
 0x541   :  { %9497 = vmatpush1.bf16.msra.mxu1 %v12486_v9  ;;  %9326 = vmatprep.subr.bf16.mxu0 %v12501_v10  ;;  %v12566_v9 = vcombine.low %v3272_v61, %v3280_v62  ;;  %v11561_v10 = vcombine.high %v2265_v3, %v2273_v5  ;;  %v2337_v60 = vld [vmem:[#allocation9 + $0x270] sm:$0xff]  ;;  %v2330_v61 = vld [vmem:[#allocation9 + $0x238] sm:$0xff] }
 0x542   :  { %9498 = vmatprep.subr.bf16.mxu1 %v12503_v11  ;;  %v11563_v11 = vcombine.high %v2266_v6, %v2274_v7  ;;  %v2338_v62 = vld [vmem:[#allocation9 + $0x278] sm:$0xff]  ;;  %v2353_v3 = vld [vmem:[#allocation9 + $0x2f0] sm:$0xff] }
 0x543   :  { %v2346_v5 = vld [vmem:[#allocation9 + $0x2b8] sm:$0xff] }
 0x544   :  { %9327 = vmatpush1.bf16.msra.mxu0 %v12500_v25  ;;  %v2290_v25 = vld [vmem:[#allocation9 + $0xf8] sm:$0xff] }
 0x545   :  { %9499 = vmatpush1.bf16.msra.mxu1 %v12502_v27  ;;  %9328 = vmatprep.subr.bf16.mxu0 %v12517_v30  ;;  %v11562_v27 = vcombine.low %v2266_v6, %v2274_v7  ;;  %v11577_v30 = vcombine.high %v2281_v12, %v2289_v14  ;;  %v11579_v33 = vcombine.high %v2282_v23, %v2290_v25  ;;  %v2354_v6 = vld [vmem:[#allocation9 + $0x2f8] sm:$0xff] }
 0x546   :  { %9500 = vmatprep.subr.bf16.mxu1 %v12519_v31  ;;  %v2297_v31 = vld [vmem:[#allocation9 + $0x130] sm:$0xff]  ;;  %v11624_v7 = vcombine.low %v2329_v59, %v2337_v60 }
 0x548   :  { %9329 = vmatpush1.bf16.msra.mxu0 %v12516_v36  ;;  %v11576_v36 = vcombine.low %v2281_v12, %v2289_v14  ;;  %v2369_v12 = vld [vmem:[#allocation9 + $0x370] sm:$0xff]  ;;  %v2362_v14 = vld [vmem:[#allocation9 + $0x338] sm:$0xff] }
 0x549   :  { %9501 = vmatpush1.bf16.msra.mxu1 %v12518_v38  ;;  %9330 = vmatprep.subr.bf16.mxu0 %v12533_v39  ;;  %v11578_v38 = vcombine.low %v2282_v23, %v2290_v25  ;;  %v11593_v39 = vcombine.high %v2297_v31, %v2305_v32  ;;  %v11642_v25 = vcombine.low %v2346_v5, %v2354_v6 }
 0x54a   :  { %9502 = vmatprep.subr.bf16.mxu1 %v12535_v54  ;;  %v11595_v54 = vcombine.high %v2298_v34, %v2306_v35 }
 0x54c   :  { %9331 = vmatpush1.bf16.msra.mxu0 %v12532_v57  ;;  %v11592_v57 = vcombine.low %v2297_v31, %v2305_v32  ;;  %v2377_v31 = vld [vmem:[#allocation9 + $0x3b0] sm:$0xff] }
 0x54d   :  { %9503 = vmatpush1.bf16.msra.mxu1 %v12534_v4  ;;  %9332 = vmatprep.subr.bf16.mxu0 %v12549_v19  ;;  %v11594_v4 = vcombine.low %v2298_v34, %v2306_v35  ;;  %v11609_v19 = vcombine.high %v2313_v46, %v2321_v47  ;;  %v2385_v32 = vld [vmem:[#allocation9 + $0x3f0] sm:$0xff]  ;;  %v2386_v34 = vld [vmem:[#allocation9 + $0x3f8] sm:$0xff] }
 0x54e   :  { %9504 = vmatprep.subr.bf16.mxu1 %v12551_v58  ;;  %v11611_v58 = vcombine.high %v2314_v50, %v2322_v55 }
 0x550   :  { %9333 = vmatpush1.bf16.msra.mxu0 %v12548_v63  ;;  %v11610_v63 = vcombine.low %v2314_v50, %v2322_v55  ;;  %v2402_v50 = vld [vmem:[#allocation9 + $0x478] sm:$0xff]  ;;  %v11672_v55 = vcombine.low %v2377_v31, %v2385_v32 }
 0x551   :  { %9505 = vmatpush1.bf16.msra.mxu1 %v12550_v1  ;;  %9334 = vmatprep.subr.bf16.mxu0 %v12565_v0  ;;  %v11625_v1 = vcombine.high %v2329_v59, %v2337_v60  ;;  %v11627_v0 = vcombine.high %v2330_v61, %v2338_v62  ;;  %v2417_v59 = vld [vmem:[#allocation9 + $0x4f0] sm:$0xff]  ;;  %v2410_v60 = vld [vmem:[#allocation9 + $0x4b8] sm:$0xff] }
 0x552   :  { %9506 = vmatprep.subr.bf16.mxu1 %v12567_v2  ;;  %v2345_v2 = vld [vmem:[#allocation9 + $0x2b0] sm:$0xff] }
 0x553   :  { %v11640_v23 = vcombine.low %v2345_v2, %v2353_v3 }
 0x554   :  { %9335 = vmatpush1.bf16.msra.mxu0 %v12564_v8  ;;  %v11626_v8 = vcombine.low %v2330_v61, %v2338_v62  ;;  %v2418_v61 = vld [vmem:[#allocation9 + $0x4f8] sm:$0xff] }
 0x555   :  { %9507 = vmatpush1.bf16.msra.mxu1 %v12566_v9  ;;  %9519 = vmatprep.subr.bf16.mxu0 %v11561_v10  ;;  %v11641_v9 = vcombine.high %v2345_v2, %v2353_v3  ;;  %v11643_v10 = vcombine.high %v2346_v5, %v2354_v6  ;;  %v2433_v2 = vld [vmem:[#allocation9 + $0x570] sm:$0xff]  ;;  %v2426_v3 = vld [vmem:[#allocation9 + $0x538] sm:$0xff] }
 0x556   :  { %9691 = vmatprep.subr.bf16.mxu1 %v11563_v11  ;;  %v2361_v11 = vld [vmem:[#allocation9 + $0x330] sm:$0xff]  ;;  %v2434_v5 = vld [vmem:[#allocation9 + $0x578] sm:$0xff] }
 0x557   :  { %9337 = vmatmul.mubr.bf16.vlgmr.msra.gmra.mrb[20].mxu0 %v13665_v52  ;;  %v11656_v35 = vcombine.low %v2361_v11, %v2369_v12 }
 0x558   :  { %9509 = vmatmul.mubr.bf16.vlgmr.msra.gmra.mrb[20].mxu1 %v13665_v52  ;;  %9520 = vmatpush1.bf16.msra.mxu0 %v11560_v17  ;;  %v2370_v17 = vld [vmem:[#allocation9 + $0x378] sm:$0xff] }
 0x559   :  { %9551 = vmatprep.mubr.bf16.mxu0 %v13627_v28  ;;  %9692 = vmatpush1.bf16.msra.mxu1 %v11562_v27  ;;  %v11657_v27 = vcombine.high %v2361_v11, %v2369_v12  ;;  %v2449_v11 = vld [vmem:[#allocation9 + $0x5f0] sm:$0xff]  ;;  %v2442_v12 = vld [vmem:[#allocation9 + $0x5b8] sm:$0xff] }
 0x55a   :  { %9723 = vmatprep.mubr.bf16.mxu1 %v13627_v28  ;;  %9521 = vmatprep.subr.bf16.mxu0 %v11577_v30  ;;  %v11608_v28 = vcombine.low %v2313_v46, %v2321_v47  ;;  %v11659_v30 = vcombine.high %v2362_v14, %v2370_v17  ;;  %v2401_v46 = vld [vmem:[#allocation9 + $0x470] sm:$0xff]  ;;  %v2394_v47 = vld [vmem:[#allocation9 + $0x438] sm:$0xff] }
 0x55b   :  { %9693 = vmatprep.subr.bf16.mxu1 %v11579_v33  ;;  %v2378_v33 = vld [vmem:[#allocation9 + $0x3b8] sm:$0xff] }
 0x55c   :  { %9522 = vmatpush1.bf16.msra.mxu0 %v11576_v36  ;;  %v11658_v36 = vcombine.low %v2362_v14, %v2370_v17  ;;  %v2450_v14 = vld [vmem:[#allocation9 + $0x5f8] sm:$0xff] }
 0x55d   :  { %9694 = vmatpush1.bf16.msra.mxu1 %v11578_v38  ;;  %9523 = vmatprep.subr.bf16.mxu0 %v11593_v39  ;;  %v11673_v38 = vcombine.high %v2377_v31, %v2385_v32  ;;  %v11675_v39 = vcombine.high %v2378_v33, %v2386_v34  ;;  %v2465_v31 = vld [vmem:[#allocation9 + $0x670] sm:$0xff]  ;;  %v2458_v32 = vld [vmem:[#allocation9 + $0x638] sm:$0xff] }
 0x55e   :  { %9695 = vmatprep.subr.bf16.mxu1 %v11595_v54  ;;  %v2393_v54 = vld [vmem:[#allocation9 + $0x430] sm:$0xff] }
 0x55f   :  { %v11688_v62 = vcombine.low %v2393_v54, %v2401_v46 }
 0x560   :  { %9524 = vmatpush1.bf16.msra.mxu0 %v11592_v57  ;;  %v11674_v57 = vcombine.low %v2378_v33, %v2386_v34  ;;  %v2466_v33 = vld [vmem:[#allocation9 + $0x678] sm:$0xff] }
 0x561   :  { %9696 = vmatpush1.bf16.msra.mxu1 %v11594_v4  ;;  %9525 = vmatprep.subr.bf16.mxu0 %v11609_v19  ;;  %v11689_v4 = vcombine.high %v2393_v54, %v2401_v46  ;;  %v11691_v19 = vcombine.high %v2394_v47, %v2402_v50  ;;  %v2481_v54 = vld [vmem:[#allocation9 + $0x6f0] sm:$0xff]  ;;  %v2474_v46 = vld [vmem:[#allocation9 + $0x6b8] sm:$0xff] }
 0x562   :  { %9697 = vmatprep.subr.bf16.mxu1 %v11611_v58  ;;  %v2409_v58 = vld [vmem:[#allocation9 + $0x4b0] sm:$0xff] }
 0x563   :  { %v11704_v6 = vcombine.low %v2409_v58, %v2417_v59 }
 0x564   :  { %9526 = vmatpush1.bf16.msra.mxu0 %v11608_v28  ;;  %v11690_v28 = vcombine.low %v2394_v47, %v2402_v50  ;;  %v2482_v47 = vld [vmem:[#allocation9 + $0x6f8] sm:$0xff] }
 0x565   :  { %9698 = vmatpush1.bf16.msra.mxu1 %v11610_v63  ;;  %9527 = vmatprep.subr.bf16.mxu0 %v11625_v1  ;;  %v11705_v63 = vcombine.high %v2409_v58, %v2417_v59  ;;  %v11707_v1 = vcombine.high %v2410_v60, %v2418_v61  ;;  %v2497_v58 = vld [vmem:[#allocation9 + $0x770] sm:$0xff]  ;;  %v2490_v59 = vld [vmem:[#allocation9 + $0x738] sm:$0xff] }
 0x566   :  { %9699 = vmatprep.subr.bf16.mxu1 %v11627_v0  ;;  %v2425_v0 = vld [vmem:[#allocation9 + $0x530] sm:$0xff] }
 0x567   :  { %v11720_v17 = vcombine.low %v2425_v0, %v2433_v2 }
 0x568   :  { %9528 = vmatpush1.bf16.msra.mxu0 %v11624_v7  ;;  %v11706_v7 = vcombine.low %v2410_v60, %v2418_v61  ;;  %v2498_v60 = vld [vmem:[#allocation9 + $0x778] sm:$0xff] }
 0x569   :  { %9700 = vmatpush1.bf16.msra.mxu1 %v11626_v8  ;;  %9529 = vmatprep.subr.bf16.mxu0 %v11641_v9  ;;  %v11721_v8 = vcombine.high %v2425_v0, %v2433_v2  ;;  %v11723_v9 = vcombine.high %v2426_v3, %v2434_v5  ;;  %v2513_v0 = vld [vmem:[#allocation9 + $0x7f0] sm:$0xff]  ;;  %v2506_v2 = vld [vmem:[#allocation9 + $0x7b8] sm:$0xff] }
 0x56a   :  { %9701 = vmatprep.subr.bf16.mxu1 %v11643_v10  ;;  %v2441_v10 = vld [vmem:[#allocation9 + $0x5b0] sm:$0xff] }
 0x56b   :  { %v11736_v34 = vcombine.low %v2441_v10, %v2449_v11 }
 0x56c   :  { %9530 = vmatpush1.bf16.msra.mxu0 %v11640_v23  ;;  %v11722_v23 = vcombine.low %v2426_v3, %v2434_v5  ;;  %v2514_v3 = vld [vmem:[#allocation9 + $0x7f8] sm:$0xff] }
 0x56d   :  { %9702 = vmatpush1.bf16.msra.mxu1 %v11642_v25  ;;  %9531 = vmatprep.subr.bf16.mxu0 %v11657_v27  ;;  %v11737_v25 = vcombine.high %v2441_v10, %v2449_v11  ;;  %v11739_v27 = vcombine.high %v2442_v12, %v2450_v14  ;;  %v2529_v10 = vld [vmem:[#allocation9 + $0x870] sm:$0xff]  ;;  %v2522_v11 = vld [vmem:[#allocation9 + $0x838] sm:$0xff] }
 0x56e   :  { %9703 = vmatprep.subr.bf16.mxu1 %v11659_v30  ;;  %v2457_v30 = vld [vmem:[#allocation9 + $0x630] sm:$0xff] }
 0x56f   :  { %v11752_v50 = vcombine.low %v2457_v30, %v2465_v31 }
 0x570   :  { %9532 = vmatpush1.bf16.msra.mxu0 %v11656_v35  ;;  %v11738_v35 = vcombine.low %v2442_v12, %v2450_v14  ;;  %v2530_v12 = vld [vmem:[#allocation9 + $0x878] sm:$0xff] }
 0x571   :  { %9704 = vmatpush1.bf16.msra.mxu1 %v11658_v36  ;;  %9533 = vmatprep.subr.bf16.mxu0 %v11673_v38  ;;  %v11753_v36 = vcombine.high %v2457_v30, %v2465_v31  ;;  %v11755_v38 = vcombine.high %v2458_v32, %v2466_v33  ;;  %v2545_v30 = vld [vmem:[#allocation9 + $0x8f0] sm:$0xff] }
 0x572   :  { %9705 = vmatprep.subr.bf16.mxu1 %v11675_v39  ;;  %v2473_v39 = vld [vmem:[#allocation9 + $0x6b0] sm:$0xff] }
 0x573   :  { %v11768_v61 = vcombine.low %v2473_v39, %v2481_v54 }
 0x574   :  { %9534 = vmatpush1.bf16.msra.mxu0 %v11672_v55  ;;  %v11754_v55 = vcombine.low %v2458_v32, %v2466_v33  ;;  %v2538_v32 = vld [vmem:[#allocation9 + $0x8b8] sm:$0xff] }
 0x575   :  { %9706 = vmatpush1.bf16.msra.mxu1 %v11674_v57  ;;  %9535 = vmatprep.subr.bf16.mxu0 %v11689_v4  ;;  %v11769_v57 = vcombine.high %v2473_v39, %v2481_v54  ;;  %v11771_v4 = vcombine.high %v2474_v46, %v2482_v47  ;;  %v2546_v33 = vld [vmem:[#allocation9 + $0x8f8] sm:$0xff] }
 0x576   :  { %9707 = vmatprep.subr.bf16.mxu1 %v11691_v19  ;;  %v2489_v19 = vld [vmem:[#allocation9 + $0x730] sm:$0xff]  ;;  %v11835_v39 = vcombine.high %v2538_v32, %v2546_v33  ;;  %v2554_v54 = vld [vmem:[#allocation9 + $0x938] sm:$0xff] }
 0x577   :  { %v11784_v5 = vcombine.low %v2489_v19, %v2497_v58 }
 0x578   :  { %9536 = vmatpush1.bf16.msra.mxu0 %v11688_v62  ;;  %v11770_v62 = vcombine.low %v2474_v46, %v2482_v47  ;;  %v2562_v46 = vld [vmem:[#allocation9 + $0x978] sm:$0xff] }
 0x579   :  { %9708 = vmatpush1.bf16.msra.mxu1 %v11690_v28  ;;  %9537 = vmatprep.subr.bf16.mxu0 %v11705_v63  ;;  %v11785_v28 = vcombine.high %v2489_v19, %v2497_v58  ;;  %v11787_v63 = vcombine.high %v2490_v59, %v2498_v60  ;;  %v2577_v19 = vld [vmem:[#allocation9 + $0x9f0] sm:$0xff]  ;;  %v2570_v58 = vld [vmem:[#allocation9 + $0x9b8] sm:$0xff] }
 0x57a   :  { %9709 = vmatprep.subr.bf16.mxu1 %v11707_v1  ;;  %v2505_v1 = vld [vmem:[#allocation9 + $0x7b0] sm:$0xff] }
 0x57b   :  { %v11800_v14 = vcombine.low %v2505_v1, %v2513_v0 }
 0x57c   :  { %9538 = vmatpush1.bf16.msra.mxu0 %v11704_v6  ;;  %v11786_v6 = vcombine.low %v2490_v59, %v2498_v60  ;;  %v2578_v59 = vld [vmem:[#allocation9 + $0x9f8] sm:$0xff] }
 0x57d   :  { %9710 = vmatpush1.bf16.msra.mxu1 %v11706_v7  ;;  %9539 = vmatprep.subr.bf16.mxu0 %v11721_v8  ;;  %v11801_v7 = vcombine.high %v2505_v1, %v2513_v0  ;;  %v11803_v8 = vcombine.high %v2506_v2, %v2514_v3  ;;  %v2586_v1 = vld [vmem:[#allocation9 + $0xa38] sm:$0xff] }
 0x57e   :  { %9711 = vmatprep.subr.bf16.mxu1 %v11723_v9  ;;  %v2521_v9 = vld [vmem:[#allocation9 + $0x830] sm:$0xff]  ;;  %v2594_v0 = vld [vmem:[#allocation9 + $0xa78] sm:$0xff] }
 0x57f   :  { %v11816_v31 = vcombine.low %v2521_v9, %v2529_v10 }
 0x580   :  { %9540 = vmatpush1.bf16.msra.mxu0 %v11720_v17  ;;  %v11802_v17 = vcombine.low %v2506_v2, %v2514_v3  ;;  %v11866_v2 = vcombine.low %v2570_v58, %v2578_v59 }
 0x581   :  { %9712 = vmatpush1.bf16.msra.mxu1 %v11722_v23  ;;  %9541 = vmatprep.subr.bf16.mxu0 %v11737_v25  ;;  %v11817_v23 = vcombine.high %v2521_v9, %v2529_v10  ;;  %v11819_v25 = vcombine.high %v2522_v11, %v2530_v12  ;;  %v2610_v9 = vld [vmem:[#allocation9 + $0xaf8] sm:$0xff] }
 0x582   :  { %9713 = vmatprep.subr.bf16.mxu1 %v11739_v27  ;;  %v2537_v27 = vld [vmem:[#allocation9 + $0x8b0] sm:$0xff] }
 0x583   :  { %v11832_v47 = vcombine.low %v2537_v27, %v2545_v30 }
 0x584   :  { %9542 = vmatpush1.bf16.msra.mxu0 %v11736_v34  ;;  %v11818_v34 = vcombine.low %v2522_v11, %v2530_v12  ;;  %v11882_v11 = vcombine.low %v2586_v1, %v2594_v0 }
 0x585   :  { %9714 = vmatpush1.bf16.msra.mxu1 %v11738_v35  ;;  %9543 = vmatprep.subr.bf16.mxu0 %v11753_v36  ;;  %v11833_v35 = vcombine.high %v2537_v27, %v2545_v30  ;;  %v2553_v36 = vld [vmem:[#allocation9 + $0x930] sm:$0xff]  ;;  %v2626_v27 = vld [vmem:[#allocation9 + $0xb78] sm:$0xff] }
 0x586   :  { %9715 = vmatprep.subr.bf16.mxu1 %v11755_v38  ;;  %v2561_v38 = vld [vmem:[#allocation9 + $0x970] sm:$0xff] }
 0x587   :  { %v11848_v60 = vcombine.low %v2553_v36, %v2561_v38 }
 0x588   :  { %9544 = vmatpush1.bf16.msra.mxu0 %v11752_v50  ;;  %v11834_v50 = vcombine.low %v2538_v32, %v2546_v33 }
 0x589   :  { %9716 = vmatpush1.bf16.msra.mxu1 %v11754_v55  ;;  %9545 = vmatprep.subr.bf16.mxu0 %v11769_v57  ;;  %v11849_v55 = vcombine.high %v2553_v36, %v2561_v38  ;;  %v11851_v57 = vcombine.high %v2554_v54, %v2562_v46  ;;  %v2634_v36 = vld [vmem:[#allocation9 + $0xbb8] sm:$0xff] }
 0x58a   :  { %9717 = vmatprep.subr.bf16.mxu1 %v11771_v4  ;;  %v2569_v4 = vld [vmem:[#allocation9 + $0x9b0] sm:$0xff]  ;;  %v2642_v38 = vld [vmem:[#allocation9 + $0xbf8] sm:$0xff] }
 0x58c   :  { %9546 = vmatpush1.bf16.msra.mxu0 %v11768_v61  ;;  %v11865_v61 = vcombine.high %v2569_v4, %v2577_v19 }
 0x58d   :  { %9718 = vmatpush1.bf16.msra.mxu1 %v11770_v62  ;;  %9547 = vmatprep.subr.bf16.mxu0 %v11785_v28  ;;  %v11867_v62 = vcombine.high %v2570_v58, %v2578_v59  ;;  %v2585_v28 = vld [vmem:[#allocation9 + $0xa30] sm:$0xff]  ;;  %v11930_v58 = vcombine.low %v2634_v36, %v2642_v38 }
 0x58e   :  { %9719 = vmatprep.subr.bf16.mxu1 %v11787_v63  ;;  %v2593_v63 = vld [vmem:[#allocation9 + $0xa70] sm:$0xff] }
 0x58f   :  { %v11881_v3 = vcombine.high %v2585_v28, %v2593_v63  ;;  %v11880_v10 = vcombine.low %v2585_v28, %v2593_v63  ;;  %v2674_v28 = vld [vmem:[#allocation9 + $0xcf8] sm:$0xff] }
 0x590   :  { %9548 = vmatpush1.bf16.msra.mxu0 %v11784_v5  ;;  %v11883_v5 = vcombine.high %v2586_v1, %v2594_v0 }
 0x591   :  { %9720 = vmatpush1.bf16.msra.mxu1 %v11786_v6  ;;  %9549 = vmatprep.subr.bf16.mxu0 %v11801_v7  ;;  %v2601_v6 = vld [vmem:[#allocation9 + $0xab0] sm:$0xff] }
 0x592   :  { %9721 = vmatprep.subr.bf16.mxu1 %v11803_v8  ;;  %v2609_v7 = vld [vmem:[#allocation9 + $0xaf0] sm:$0xff]  ;;  %v2602_v8 = vld [vmem:[#allocation9 + $0xab8] sm:$0xff] }
 0x593   :  { %v11897_v12 = vcombine.high %v2601_v6, %v2609_v7  ;;  %v11896_v30 = vcombine.low %v2601_v6, %v2609_v7  ;;  %v2690_v6 = vld [vmem:[#allocation9 + $0xd78] sm:$0xff] }
 0x594   :  { %9550 = vmatpush1.bf16.msra.mxu0 %v11800_v14  ;;  %v11899_v14 = vcombine.high %v2602_v8, %v2610_v9 }
 0x595   :  { %9722 = vmatpush1.bf16.msra.mxu1 %v11802_v17  ;;  %9562 = vmatprep.subr.bf16.mxu0 %v11817_v23  ;;  %v2617_v17 = vld [vmem:[#allocation9 + $0xb30] sm:$0xff] }
 0x596   :  { %9734 = vmatprep.subr.bf16.mxu1 %v11819_v25  ;;  %v2625_v23 = vld [vmem:[#allocation9 + $0xb70] sm:$0xff]  ;;  %v2618_v25 = vld [vmem:[#allocation9 + $0xb38] sm:$0xff] }
 0x597   :  { %9552 = vmatmul.mubr.bf16.vlgmr.msra.gmra.mrb[24].mxu0 %v13623_v18  ;;  %v11913_v32 = vcombine.high %v2617_v17, %v2625_v23  ;;  %v11915_v33 = vcombine.high %v2618_v25, %v2626_v27 }
 0x598   :  { %9724 = vmatmul.mubr.bf16.vlgmr.msra.gmra.mrb[24].mxu1 %v13623_v18  ;;  %9563 = vmatpush1.bf16.msra.mxu0 %v11816_v31  ;;  %v11850_v18 = vcombine.low %v2554_v54, %v2562_v46  ;;  %v11898_v31 = vcombine.low %v2602_v8, %v2610_v9  ;;  %v11914_v54 = vcombine.low %v2618_v25, %v2626_v27 }
 0x599   :  { %9594 = vmatprep.mubr.bf16.mxu0 %v13629_v29  ;;  %9735 = vmatpush1.bf16.msra.mxu1 %v11818_v34  ;;  %v2633_v34 = vld [vmem:[#allocation9 + $0xbb0] sm:$0xff] }
 0x59a   :  { %9766 = vmatprep.mubr.bf16.mxu1 %v13629_v29  ;;  %9564 = vmatprep.subr.bf16.mxu0 %v11833_v35  ;;  %v11864_v29 = vcombine.low %v2569_v4, %v2577_v19  ;;  %v2641_v35 = vld [vmem:[#allocation9 + $0xbf0] sm:$0xff]  ;;  %v2658_v4 = vld [vmem:[#allocation9 + $0xc78] sm:$0xff] }
 0x59b   :  { %9736 = vmatprep.subr.bf16.mxu1 %v11835_v39  ;;  %v11912_v39 = vcombine.low %v2617_v17, %v2625_v23  ;;  %v11929_v46 = vcombine.high %v2633_v34, %v2641_v35  ;;  %v11928_v19 = vcombine.low %v2633_v34, %v2641_v35  ;;  %v2706_v17 = vld [vmem:[#allocation9 + $0xdf8] sm:$0xff] }
 0x59c   :  { %9565 = vmatpush1.bf16.msra.mxu0 %v11832_v47  ;;  %v11931_v47 = vcombine.high %v2634_v36, %v2642_v38  ;;  %v2722_v34 = vld [vmem:[#allocation9 + $0xe78] sm:$0xff] }
 0x59d   :  { %9737 = vmatpush1.bf16.msra.mxu1 %v11834_v50  ;;  %9566 = vmatprep.subr.bf16.mxu0 %v11849_v55  ;;  %v2649_v50 = vld [vmem:[#allocation9 + $0xc30] sm:$0xff] }
 0x59e   :  { %9738 = vmatprep.subr.bf16.mxu1 %v11851_v57  ;;  %v2657_v55 = vld [vmem:[#allocation9 + $0xc70] sm:$0xff]  ;;  %v2650_v57 = vld [vmem:[#allocation9 + $0xc38] sm:$0xff] }
 0x59f   :  { %v11945_v59 = vcombine.high %v2649_v50, %v2657_v55  ;;  %v11944_v63 = vcombine.low %v2649_v50, %v2657_v55  ;;  %v11946_v1 = vcombine.low %v2650_v57, %v2658_v4  ;;  %v2738_v50 = vld [vmem:[#allocation9 + $0xef8] sm:$0xff] }
 0x5a0   :  { %9567 = vmatpush1.bf16.msra.mxu0 %v11848_v60  ;;  %v11947_v60 = vcombine.high %v2650_v57, %v2658_v4 }
 0x5a1   :  { %9739 = vmatpush1.bf16.msra.mxu1 %v11850_v18  ;;  %9568 = vmatprep.subr.bf16.mxu0 %v11865_v61  ;;  %v2665_v18 = vld [vmem:[#allocation9 + $0xcb0] sm:$0xff] }
 0x5a2   :  { %9740 = vmatprep.subr.bf16.mxu1 %v11867_v62  ;;  %v2673_v61 = vld [vmem:[#allocation9 + $0xcf0] sm:$0xff]  ;;  %v2666_v62 = vld [vmem:[#allocation9 + $0xcb8] sm:$0xff] }
 0x5a3   :  { %v11961_v0 = vcombine.high %v2665_v18, %v2673_v61  ;;  %v11960_v7 = vcombine.low %v2665_v18, %v2673_v61  ;;  %v11962_v8 = vcombine.low %v2666_v62, %v2674_v28  ;;  %v2754_v18 = vld [vmem:[#allocation9 + $0xf78] sm:$0xff] }
 0x5a4   :  { %9569 = vmatpush1.bf16.msra.mxu0 %v11864_v29  ;;  %v11963_v29 = vcombine.high %v2666_v62, %v2674_v28 }
 0x5a5   :  { %9741 = vmatpush1.bf16.msra.mxu1 %v11866_v2  ;;  %9570 = vmatprep.subr.bf16.mxu0 %v11881_v3  ;;  %v2681_v2 = vld [vmem:[#allocation9 + $0xd30] sm:$0xff] }
 0x5a6   :  { %9742 = vmatprep.subr.bf16.mxu1 %v11883_v5  ;;  %v2689_v3 = vld [vmem:[#allocation9 + $0xd70] sm:$0xff]  ;;  %v2682_v5 = vld [vmem:[#allocation9 + $0xd38] sm:$0xff] }
 0x5a7   :  { %v11977_v9 = vcombine.high %v2681_v2, %v2689_v3  ;;  %v11976_v23 = vcombine.low %v2681_v2, %v2689_v3  ;;  %v11978_v25 = vcombine.low %v2682_v5, %v2690_v6  ;;  %v2770_v2 = vld [vmem:[#allocation9 + $0xff8] sm:$0xff] }
 0x5a8   :  { %9571 = vmatpush1.bf16.msra.mxu0 %v11880_v10  ;;  %v11979_v10 = vcombine.high %v2682_v5, %v2690_v6 }
 0x5a9   :  { %9743 = vmatpush1.bf16.msra.mxu1 %v11882_v11  ;;  %9572 = vmatprep.subr.bf16.mxu0 %v11897_v12  ;;  %v2697_v11 = vld [vmem:[#allocation9 + $0xdb0] sm:$0xff] }
 0x5aa   :  { %9744 = vmatprep.subr.bf16.mxu1 %v11899_v14  ;;  %v2705_v12 = vld [vmem:[#allocation9 + $0xdf0] sm:$0xff]  ;;  %v2698_v14 = vld [vmem:[#allocation9 + $0xdb8] sm:$0xff] }
 0x5ab   :  { %v11993_v27 = vcombine.high %v2697_v11, %v2705_v12  ;;  %v11992_v35 = vcombine.low %v2697_v11, %v2705_v12  ;;  %v11994_v36 = vcombine.low %v2698_v14, %v2706_v17  ;;  %v2786_v11 = vld [vmem:[#allocation9 + $0x1078] sm:$0xff] }
 0x5ac   :  { %9573 = vmatpush1.bf16.msra.mxu0 %v11896_v30  ;;  %v11995_v30 = vcombine.high %v2698_v14, %v2706_v17 }
 0x5ad   :  { %9745 = vmatpush1.bf16.msra.mxu1 %v11898_v31  ;;  %9574 = vmatprep.subr.bf16.mxu0 %v11913_v32  ;;  %v2713_v31 = vld [vmem:[#allocation9 + $0xe30] sm:$0xff] }
 0x5ae   :  { %9746 = vmatprep.subr.bf16.mxu1 %v11915_v33  ;;  %v2721_v32 = vld [vmem:[#allocation9 + $0xe70] sm:$0xff]  ;;  %v2714_v33 = vld [vmem:[#allocation9 + $0xe38] sm:$0xff] }
 0x5af   :  { %v12009_v38 = vcombine.high %v2713_v31, %v2721_v32  ;;  %v12008_v55 = vcombine.low %v2713_v31, %v2721_v32  ;;  %v12010_v57 = vcombine.low %v2714_v33, %v2722_v34  ;;  %v2794_v31 = vld [vmem:[#allocation9 + $0x10b8] sm:$0xff] }
 0x5b0   :  { %9575 = vmatpush1.bf16.msra.mxu0 %v11912_v39  ;;  %v12011_v39 = vcombine.high %v2714_v33, %v2722_v34  ;;  %v2802_v32 = vld [vmem:[#allocation9 + $0x10f8] sm:$0xff] }
 0x5b1   :  { %9747 = vmatpush1.bf16.msra.mxu1 %v11914_v54  ;;  %9576 = vmatprep.subr.bf16.mxu0 %v11929_v46  ;;  %v2729_v54 = vld [vmem:[#allocation9 + $0xeb0] sm:$0xff] }
 0x5b2   :  { %9748 = vmatprep.subr.bf16.mxu1 %v11931_v47  ;;  %v2737_v46 = vld [vmem:[#allocation9 + $0xef0] sm:$0xff]  ;;  %v2730_v47 = vld [vmem:[#allocation9 + $0xeb8] sm:$0xff] }
 0x5b3   :  { %v12025_v4 = vcombine.high %v2729_v54, %v2737_v46  ;;  %v12024_v61 = vcombine.low %v2729_v54, %v2737_v46  ;;  %v12026_v62 = vcombine.low %v2730_v47, %v2738_v50  ;;  %v2818_v54 = vld [vmem:[#allocation9 + $0x1178] sm:$0xff] }
 0x5b4   :  { %9577 = vmatpush1.bf16.msra.mxu0 %v11928_v19  ;;  %v12027_v19 = vcombine.high %v2730_v47, %v2738_v50  ;;  %v12090_v47 = vcombine.low %v2794_v31, %v2802_v32 }
 0x5b5   :  { %9749 = vmatpush1.bf16.msra.mxu1 %v11930_v58  ;;  %9578 = vmatprep.subr.bf16.mxu0 %v11945_v59  ;;  %v2745_v58 = vld [vmem:[#allocation9 + $0xf30] sm:$0xff] }
 0x5b6   :  { %9750 = vmatprep.subr.bf16.mxu1 %v11947_v60  ;;  %v2753_v59 = vld [vmem:[#allocation9 + $0xf70] sm:$0xff]  ;;  %v2746_v60 = vld [vmem:[#allocation9 + $0xf38] sm:$0xff] }
 0x5b7   :  { %v12041_v28 = vcombine.high %v2745_v58, %v2753_v59  ;;  %v12040_v3 = vcombine.low %v2745_v58, %v2753_v59  ;;  %v12042_v5 = vcombine.low %v2746_v60, %v2754_v18  ;;  %v2834_v58 = vld [vmem:[#allocation9 + $0x11f8] sm:$0xff] }
 0x5b8   :  { %9579 = vmatpush1.bf16.msra.mxu0 %v11944_v63  ;;  %v12043_v63 = vcombine.high %v2746_v60, %v2754_v18 }
 0x5b9   :  { %9751 = vmatpush1.bf16.msra.mxu1 %v11946_v1  ;;  %9580 = vmatprep.subr.bf16.mxu0 %v11961_v0  ;;  %v2761_v1 = vld [vmem:[#allocation9 + $0xfb0] sm:$0xff] }
 0x5ba   :  { %9752 = vmatprep.subr.bf16.mxu1 %v11963_v29  ;;  %v2769_v0 = vld [vmem:[#allocation9 + $0xff0] sm:$0xff]  ;;  %v2762_v29 = vld [vmem:[#allocation9 + $0xfb8] sm:$0xff] }
 0x5bb   :  { %v12057_v6 = vcombine.high %v2761_v1, %v2769_v0  ;;  %v12056_v12 = vcombine.low %v2761_v1, %v2769_v0  ;;  %v12058_v14 = vcombine.low %v2762_v29, %v2770_v2 }
 0x5bc   :  { %9581 = vmatpush1.bf16.msra.mxu0 %v11960_v7  ;;  %v12059_v7 = vcombine.high %v2762_v29, %v2770_v2  ;;  %v2857_v2 = vld [vmem:[#allocation9 + $0x12b0] sm:$0xff] }
 0x5bd   :  { %9753 = vmatpush1.bf16.msra.mxu1 %v11962_v8  ;;  %9582 = vmatprep.subr.bf16.mxu0 %v11977_v9  ;;  %v2777_v8 = vld [vmem:[#allocation9 + $0x1030] sm:$0xff] }
 0x5be   :  { %9754 = vmatprep.subr.bf16.mxu1 %v11979_v10  ;;  %v2785_v9 = vld [vmem:[#allocation9 + $0x1070] sm:$0xff]  ;;  %v2778_v10 = vld [vmem:[#allocation9 + $0x1038] sm:$0xff] }
 0x5bf   :  { %v12073_v17 = vcombine.high %v2777_v8, %v2785_v9  ;;  %v12074_v33 = vcombine.low %v2778_v10, %v2786_v11 }
 0x5c0   :  { %9583 = vmatpush1.bf16.msra.mxu0 %v11976_v23  ;;  %v12075_v23 = vcombine.high %v2778_v10, %v2786_v11  ;;  %v2873_v11 = vld [vmem:[#allocation9 + $0x1330] sm:$0xff] }
 0x5c1   :  { %9755 = vmatpush1.bf16.msra.mxu1 %v11978_v25  ;;  %9584 = vmatprep.subr.bf16.mxu0 %v11993_v27  ;;  %v2793_v25 = vld [vmem:[#allocation9 + $0x10b0] sm:$0xff] }
 0x5c2   :  { %9756 = vmatprep.subr.bf16.mxu1 %v11995_v30  ;;  %v2801_v27 = vld [vmem:[#allocation9 + $0x10f0] sm:$0xff]  ;;  %v12072_v30 = vcombine.low %v2777_v8, %v2785_v9 }
 0x5c3   :  { %v12089_v34 = vcombine.high %v2793_v25, %v2801_v27  ;;  %v12088_v46 = vcombine.low %v2793_v25, %v2801_v27 }
 0x5c4   :  { %9585 = vmatpush1.bf16.msra.mxu0 %v11992_v35  ;;  %v2809_v35 = vld [vmem:[#allocation9 + $0x1130] sm:$0xff] }
 0x5c5   :  { %9757 = vmatpush1.bf16.msra.mxu1 %v11994_v36  ;;  %9586 = vmatprep.subr.bf16.mxu0 %v12009_v38  ;;  %v2817_v36 = vld [vmem:[#allocation9 + $0x1170] sm:$0xff]  ;;  %v12091_v38 = vcombine.high %v2794_v31, %v2802_v32 }
 0x5c6   :  { %9758 = vmatprep.subr.bf16.mxu1 %v12011_v39  ;;  %v2810_v39 = vld [vmem:[#allocation9 + $0x1138] sm:$0xff]  ;;  %v12105_v50 = vcombine.high %v2809_v35, %v2817_v36  ;;  %v12104_v59 = vcombine.low %v2809_v35, %v2817_v36  ;;  %v2889_v31 = vld [vmem:[#allocation9 + $0x13b0] sm:$0xff] }
 0x5c7   :  { %v2897_v32 = vld [vmem:[#allocation9 + $0x13f0] sm:$0xff] }
 0x5c8   :  { %9587 = vmatpush1.bf16.msra.mxu0 %v12008_v55  ;;  %v12107_v55 = vcombine.high %v2810_v39, %v2818_v54 }
 0x5c9   :  { %9759 = vmatpush1.bf16.msra.mxu1 %v12010_v57  ;;  %9588 = vmatprep.subr.bf16.mxu0 %v12025_v4  ;;  %v2825_v57 = vld [vmem:[#allocation9 + $0x11b0] sm:$0xff] }
 0x5ca   :  { %9760 = vmatprep.subr.bf16.mxu1 %v12027_v19  ;;  %v2833_v4 = vld [vmem:[#allocation9 + $0x11f0] sm:$0xff]  ;;  %v2826_v19 = vld [vmem:[#allocation9 + $0x11b8] sm:$0xff] }
 0x5cb   :  { %v12121_v60 = vcombine.high %v2825_v57, %v2833_v4  ;;  %v12123_v18 = vcombine.high %v2826_v19, %v2834_v58  ;;  %v12122_v1 = vcombine.low %v2826_v19, %v2834_v58  ;;  %v2921_v58 = vld [vmem:[#allocation9 + $0x14b0] sm:$0xff] }
 0x5cc   :  { %9589 = vmatpush1.bf16.msra.mxu0 %v12024_v61  ;;  %v2841_v61 = vld [vmem:[#allocation9 + $0x1230] sm:$0xff] }
 0x5cd   :  { %9761 = vmatpush1.bf16.msra.mxu1 %v12026_v62  ;;  %9590 = vmatprep.subr.bf16.mxu0 %v12041_v28  ;;  %v2849_v62 = vld [vmem:[#allocation9 + $0x1270] sm:$0xff]  ;;  %v2842_v28 = vld [vmem:[#allocation9 + $0x1238] sm:$0xff] }
 0x5ce   :  { %9762 = vmatprep.subr.bf16.mxu1 %v12043_v63  ;;  %v2850_v63 = vld [vmem:[#allocation9 + $0x1278] sm:$0xff]  ;;  %v12137_v0 = vcombine.high %v2841_v61, %v2849_v62 }
 0x5cf   :  { %v12139_v29 = vcombine.high %v2842_v28, %v2850_v63  ;;  %v12138_v8 = vcombine.low %v2842_v28, %v2850_v63  ;;  %v2937_v63 = vld [vmem:[#allocation9 + $0x1530] sm:$0xff] }
 0x5d0   :  { %9591 = vmatpush1.bf16.msra.mxu0 %v12040_v3  ;;  %v2865_v3 = vld [vmem:[#allocation9 + $0x12f0] sm:$0xff] }
 0x5d1   :  { %9763 = vmatpush1.bf16.msra.mxu1 %v12042_v5  ;;  %9592 = vmatprep.subr.bf16.mxu0 %v12057_v6  ;;  %v2858_v5 = vld [vmem:[#allocation9 + $0x12b8] sm:$0xff]  ;;  %v12153_v9 = vcombine.high %v2857_v2, %v2865_v3 }
 0x5d2   :  { %9764 = vmatprep.subr.bf16.mxu1 %v12059_v7  ;;  %v2866_v6 = vld [vmem:[#allocation9 + $0x12f8] sm:$0xff]  ;;  %v12136_v7 = vcombine.low %v2841_v61, %v2849_v62 }
 0x5d3   :  { %v12155_v10 = vcombine.high %v2858_v5, %v2866_v6  ;;  %v12154_v25 = vcombine.low %v2858_v5, %v2866_v6  ;;  %v2953_v6 = vld [vmem:[#allocation9 + $0x15b0] sm:$0xff] }
 0x5d4   :  { %9593 = vmatpush1.bf16.msra.mxu0 %v12056_v12  ;;  %v2881_v12 = vld [vmem:[#allocation9 + $0x1370] sm:$0xff] }
 0x5d5   :  { %9765 = vmatpush1.bf16.msra.mxu1 %v12058_v14  ;;  %9605 = vmatprep.subr.bf16.mxu0 %v12073_v17  ;;  %v2874_v14 = vld [vmem:[#allocation9 + $0x1338] sm:$0xff]  ;;  %v12169_v27 = vcombine.high %v2873_v11, %v2881_v12  ;;  %v12168_v35 = vcombine.low %v2873_v11, %v2881_v12 }
 0x5d6   :  { %9777 = vmatprep.subr.bf16.mxu1 %v12075_v23  ;;  %v2882_v17 = vld [vmem:[#allocation9 + $0x1378] sm:$0xff]  ;;  %v12152_v23 = vcombine.low %v2857_v2, %v2865_v3 }
 0x5d7   :  { %9595 = vmatmul.mubr.bf16.vlgmr.msra.gmra.mrb[24].mxu0 %v13625_v21  ;;  %v12170_v36 = vcombine.low %v2874_v14, %v2882_v17 }
 0x5d8   :  { %9767 = vmatmul.mubr.bf16.vlgmr.msra.gmra.mrb[24].mxu1 %v13625_v21  ;;  %9606 = vmatpush1.bf16.msra.mxu0 %v12072_v30  ;;  %v12106_v21 = vcombine.low %v2810_v39, %v2818_v54  ;;  %v12171_v30 = vcombine.high %v2874_v14, %v2882_v17  ;;  %v2905_v54 = vld [vmem:[#allocation9 + $0x1430] sm:$0xff] }
 0x5d9   :  { %9637 = vmatprep.mubr.bf16.mxu0 %v13667_v53  ;;  %9778 = vmatpush1.bf16.msra.mxu1 %v12074_v33  ;;  %v2890_v33 = vld [vmem:[#allocation9 + $0x13b8] sm:$0xff]  ;;  %v2969_v17 = vld [vmem:[#allocation9 + $0x1630] sm:$0xff] }
 0x5da   :  { %9809 = vmatprep.mubr.bf16.mxu1 %v13667_v53  ;;  %9607 = vmatprep.subr.bf16.mxu0 %v12089_v34  ;;  %v12120_v53 = vcombine.low %v2825_v57, %v2833_v4  ;;  %v2898_v34 = vld [vmem:[#allocation9 + $0x13f8] sm:$0xff] }
 0x5db   :  { %9779 = vmatprep.subr.bf16.mxu1 %v12091_v38  ;;  %v12185_v38 = vcombine.high %v2889_v31, %v2897_v32  ;;  %v12187_v39 = vcombine.high %v2890_v33, %v2898_v34  ;;  %v12186_v57 = vcombine.low %v2890_v33, %v2898_v34  ;;  %v2985_v34 = vld [vmem:[#allocation9 + $0x16b0] sm:$0xff] }
 0x5dc   :  { %9608 = vmatpush1.bf16.msra.mxu0 %v12088_v46  ;;  %v2913_v46 = vld [vmem:[#allocation9 + $0x1470] sm:$0xff] }
 0x5dd   :  { %9780 = vmatpush1.bf16.msra.mxu1 %v12090_v47  ;;  %9609 = vmatprep.subr.bf16.mxu0 %v12105_v50  ;;  %v2906_v47 = vld [vmem:[#allocation9 + $0x1438] sm:$0xff]  ;;  %v12201_v4 = vcombine.high %v2905_v54, %v2913_v46 }
 0x5de   :  { %9781 = vmatprep.subr.bf16.mxu1 %v12107_v55  ;;  %v2914_v50 = vld [vmem:[#allocation9 + $0x1478] sm:$0xff]  ;;  %v12184_v55 = vcombine.low %v2889_v31, %v2897_v32 }
 0x5df   :  { %v12203_v19 = vcombine.high %v2906_v47, %v2914_v50  ;;  %v12202_v61 = vcombine.low %v2906_v47, %v2914_v50  ;;  %v3001_v50 = vld [vmem:[#allocation9 + $0x1730] sm:$0xff] }
 0x5e0   :  { %9610 = vmatpush1.bf16.msra.mxu0 %v12104_v59  ;;  %v2929_v59 = vld [vmem:[#allocation9 + $0x14f0] sm:$0xff] }
 0x5e1   :  { %9782 = vmatpush1.bf16.msra.mxu1 %v12106_v21  ;;  %9611 = vmatprep.subr.bf16.mxu0 %v12121_v60  ;;  %v2922_v21 = vld [vmem:[#allocation9 + $0x14b8] sm:$0xff]  ;;  %v12217_v62 = vcombine.high %v2921_v58, %v2929_v59 }
 0x5e2   :  { %9783 = vmatprep.subr.bf16.mxu1 %v12123_v18  ;;  %v2930_v60 = vld [vmem:[#allocation9 + $0x14f8] sm:$0xff]  ;;  %v12200_v18 = vcombine.low %v2905_v54, %v2913_v46 }
 0x5e3   :  { %v12219_v28 = vcombine.high %v2922_v21, %v2930_v60  ;;  %v12218_v2 = vcombine.low %v2922_v21, %v2930_v60  ;;  %v3017_v60 = vld [vmem:[#allocation9 + $0x17b0] sm:$0xff] }
 0x5e4   :  { %9612 = vmatpush1.bf16.msra.mxu0 %v12120_v53  ;;  %v2945_v53 = vld [vmem:[#allocation9 + $0x1570] sm:$0xff] }
 0x5e5   :  { %9784 = vmatpush1.bf16.msra.mxu1 %v12122_v1  ;;  %9613 = vmatprep.subr.bf16.mxu0 %v12137_v0  ;;  %v2938_v1 = vld [vmem:[#allocation9 + $0x1538] sm:$0xff]  ;;  %v12233_v3 = vcombine.high %v2937_v63, %v2945_v53 }
 0x5e6   :  { %9785 = vmatprep.subr.bf16.mxu1 %v12139_v29  ;;  %v2946_v0 = vld [vmem:[#allocation9 + $0x1578] sm:$0xff]  ;;  %v12216_v29 = vcombine.low %v2921_v58, %v2929_v59 }
 0x5e7   :  { %v12235_v5 = vcombine.high %v2938_v1, %v2946_v0  ;;  %v12234_v11 = vcombine.low %v2938_v1, %v2946_v0  ;;  %v3033_v0 = vld [vmem:[#allocation9 + $0x1830] sm:$0xff] }
 0x5e8   :  { %9614 = vmatpush1.bf16.msra.mxu0 %v12136_v7  ;;  %v2961_v7 = vld [vmem:[#allocation9 + $0x15f0] sm:$0xff] }
 0x5e9   :  { %9786 = vmatpush1.bf16.msra.mxu1 %v12138_v8  ;;  %9615 = vmatprep.subr.bf16.mxu0 %v12153_v9  ;;  %v2954_v8 = vld [vmem:[#allocation9 + $0x15b8] sm:$0xff]  ;;  %v12249_v12 = vcombine.high %v2953_v6, %v2961_v7 }
 0x5ea   :  { %9787 = vmatprep.subr.bf16.mxu1 %v12155_v10  ;;  %v2962_v9 = vld [vmem:[#allocation9 + $0x15f8] sm:$0xff]  ;;  %v12232_v10 = vcombine.low %v2937_v63, %v2945_v53 }
 0x5eb   :  { %v12251_v14 = vcombine.high %v2954_v8, %v2962_v9  ;;  %v12250_v31 = vcombine.low %v2954_v8, %v2962_v9  ;;  %v3049_v9 = vld [vmem:[#allocation9 + $0x18b0] sm:$0xff] }
 0x5ec   :  { %9616 = vmatpush1.bf16.msra.mxu0 %v12152_v23  ;;  %v2977_v23 = vld [vmem:[#allocation9 + $0x1670] sm:$0xff] }
 0x5ed   :  { %9788 = vmatpush1.bf16.msra.mxu1 %v12154_v25  ;;  %9617 = vmatprep.subr.bf16.mxu0 %v12169_v27  ;;  %v2970_v25 = vld [vmem:[#allocation9 + $0x1638] sm:$0xff]  ;;  %v12265_v32 = vcombine.high %v2969_v17, %v2977_v23 }
 0x5ee   :  { %9789 = vmatprep.subr.bf16.mxu1 %v12171_v30  ;;  %v2978_v27 = vld [vmem:[#allocation9 + $0x1678] sm:$0xff]  ;;  %v12248_v30 = vcombine.low %v2953_v6, %v2961_v7 }
 0x5ef   :  { %v12267_v33 = vcombine.high %v2970_v25, %v2978_v27  ;;  %v12266_v54 = vcombine.low %v2970_v25, %v2978_v27  ;;  %v3065_v25 = vld [vmem:[#allocation9 + $0x1930] sm:$0xff] }
 0x5f0   :  { %9618 = vmatpush1.bf16.msra.mxu0 %v12168_v35  ;;  %v2993_v35 = vld [vmem:[#allocation9 + $0x16f0] sm:$0xff] }
 0x5f1   :  { %9790 = vmatpush1.bf16.msra.mxu1 %v12170_v36  ;;  %9619 = vmatprep.subr.bf16.mxu0 %v12185_v38  ;;  %v2986_v36 = vld [vmem:[#allocation9 + $0x16b8] sm:$0xff]  ;;  %v12281_v46 = vcombine.high %v2985_v34, %v2993_v35  ;;  %v3073_v27 = vld [vmem:[#allocation9 + $0x1970] sm:$0xff] }
 0x5f2   :  { %9791 = vmatprep.subr.bf16.mxu1 %v12187_v39  ;;  %v2994_v38 = vld [vmem:[#allocation9 + $0x16f8] sm:$0xff]  ;;  %v12264_v39 = vcombine.low %v2969_v17, %v2977_v23 }
 0x5f3   :  { %v12283_v47 = vcombine.high %v2986_v36, %v2994_v38  ;;  %v12282_v58 = vcombine.low %v2986_v36, %v2994_v38  ;;  %v3081_v38 = vld [vmem:[#allocation9 + $0x19b0] sm:$0xff] }
 0x5f4   :  { %9620 = vmatpush1.bf16.msra.mxu0 %v12184_v55  ;;  %v3009_v55 = vld [vmem:[#allocation9 + $0x1770] sm:$0xff] }
 0x5f5   :  { %9792 = vmatpush1.bf16.msra.mxu1 %v12186_v57  ;;  %9621 = vmatprep.subr.bf16.mxu0 %v12201_v4  ;;  %v3002_v57 = vld [vmem:[#allocation9 + $0x1738] sm:$0xff]  ;;  %v12297_v59 = vcombine.high %v3001_v50, %v3009_v55 }
 0x5f6   :  { %9793 = vmatprep.subr.bf16.mxu1 %v12203_v19  ;;  %v3010_v4 = vld [vmem:[#allocation9 + $0x1778] sm:$0xff]  ;;  %v12280_v19 = vcombine.low %v2985_v34, %v2993_v35  ;;  %v12361_v35 = vcombine.high %v3065_v25, %v3073_v27 }
 0x5f7   :  { %v12299_v21 = vcombine.high %v3002_v57, %v3010_v4  ;;  %v12298_v63 = vcombine.low %v3002_v57, %v3010_v4  ;;  %v3097_v57 = vld [vmem:[#allocation9 + $0x1a30] sm:$0xff] }
 0x5f8   :  { %9622 = vmatpush1.bf16.msra.mxu0 %v12200_v18  ;;  %v3025_v18 = vld [vmem:[#allocation9 + $0x17f0] sm:$0xff] }
 0x5f9   :  { %9794 = vmatpush1.bf16.msra.mxu1 %v12202_v61  ;;  %9623 = vmatprep.subr.bf16.mxu0 %v12217_v62  ;;  %v3018_v61 = vld [vmem:[#allocation9 + $0x17b8] sm:$0xff]  ;;  %v12313_v53 = vcombine.high %v3017_v60, %v3025_v18  ;;  %v3105_v4 = vld [vmem:[#allocation9 + $0x1a70] sm:$0xff] }
 0x5fa   :  { %9795 = vmatprep.subr.bf16.mxu1 %v12219_v28  ;;  %v3026_v62 = vld [vmem:[#allocation9 + $0x17f8] sm:$0xff]  ;;  %v12296_v28 = vcombine.low %v3001_v50, %v3009_v55 }
 0x5fb   :  { %v12315_v1 = vcombine.high %v3018_v61, %v3026_v62  ;;  %v12314_v6 = vcombine.low %v3018_v61, %v3026_v62  ;;  %v3121_v61 = vld [vmem:[#allocation9 + $0x1af0] sm:$0xff]  ;;  %v3114_v62 = vld [vmem:[#allocation9 + $0x1ab8] sm:$0xff] }
 0x5fc   :  { %9624 = vmatpush1.bf16.msra.mxu0 %v12216_v29  ;;  %v3041_v29 = vld [vmem:[#allocation9 + $0x1870] sm:$0xff] }
 0x5fd   :  { %9796 = vmatpush1.bf16.msra.mxu1 %v12218_v2  ;;  %9625 = vmatprep.subr.bf16.mxu0 %v12233_v3  ;;  %v3034_v2 = vld [vmem:[#allocation9 + $0x1838] sm:$0xff]  ;;  %v12329_v7 = vcombine.high %v3033_v0, %v3041_v29 }
 0x5fe   :  { %9797 = vmatprep.subr.bf16.mxu1 %v12235_v5  ;;  %v3042_v3 = vld [vmem:[#allocation9 + $0x1878] sm:$0xff]  ;;  %v12312_v5 = vcombine.low %v3017_v60, %v3025_v18  ;;  %v3113_v18 = vld [vmem:[#allocation9 + $0x1ab0] sm:$0xff] }
 0x5ff   :  { %v12331_v8 = vcombine.high %v3034_v2, %v3042_v3  ;;  %v12330_v17 = vcombine.low %v3034_v2, %v3042_v3  ;;  %v3129_v2 = vld [vmem:[#allocation9 + $0x1b30] sm:$0xff] }
 0x600   :  { %9626 = vmatpush1.bf16.msra.mxu0 %v12232_v10  ;;  %v3057_v10 = vld [vmem:[#allocation9 + $0x18f0] sm:$0xff] }
 0x601   :  { %9798 = vmatpush1.bf16.msra.mxu1 %v12234_v11  ;;  %9627 = vmatprep.subr.bf16.mxu0 %v12249_v12  ;;  %v12328_v11 = vcombine.low %v3033_v0, %v3041_v29  ;;  %v3050_v12 = vld [vmem:[#allocation9 + $0x18b8] sm:$0xff]  ;;  %v12345_v23 = vcombine.high %v3049_v9, %v3057_v10  ;;  %v12409_v0 = vcombine.high %v3113_v18, %v3121_v61  ;;  %v3137_v3 = vld [vmem:[#allocation9 + $0x1b70] sm:$0xff] }
 0x602   :  { %9799 = vmatprep.subr.bf16.mxu1 %v12251_v14  ;;  %v3058_v14 = vld [vmem:[#allocation9 + $0x18f8] sm:$0xff] }
 0x603   :  { %v12346_v34 = vcombine.low %v3050_v12, %v3058_v14 }
 0x604   :  { %9628 = vmatpush1.bf16.msra.mxu0 %v12248_v30  ;;  %v12347_v30 = vcombine.high %v3050_v12, %v3058_v14  ;;  %v12425_v14 = vcombine.high %v3129_v2, %v3137_v3 }
 0x605   :  { %9800 = vmatpush1.bf16.msra.mxu1 %v12250_v31  ;;  %9629 = vmatprep.subr.bf16.mxu0 %v12265_v32  ;;  %v3066_v31 = vld [vmem:[#allocation9 + $0x1938] sm:$0xff] }
 0x606   :  { %9801 = vmatprep.subr.bf16.mxu1 %v12267_v33  ;;  %v3074_v32 = vld [vmem:[#allocation9 + $0x1978] sm:$0xff]  ;;  %v12344_v33 = vcombine.low %v3049_v9, %v3057_v10  ;;  %v12408_v10 = vcombine.low %v3113_v18, %v3121_v61 }
 0x607   :  { %v12363_v36 = vcombine.high %v3066_v31, %v3074_v32  ;;  %v3162_v18 = vld [vmem:[#allocation9 + $0x1c38] sm:$0xff] }
 0x608   :  { %9630 = vmatpush1.bf16.msra.mxu0 %v12264_v39  ;;  %v3089_v39 = vld [vmem:[#allocation9 + $0x19f0] sm:$0xff]  ;;  %v3170_v61 = vld [vmem:[#allocation9 + $0x1c78] sm:$0xff] }
 0x609   :  { %9802 = vmatpush1.bf16.msra.mxu1 %v12266_v54  ;;  %9631 = vmatprep.subr.bf16.mxu0 %v12281_v46  ;;  %v3082_v54 = vld [vmem:[#allocation9 + $0x19b8] sm:$0xff]  ;;  %v12377_v50 = vcombine.high %v3081_v38, %v3089_v39 }
 0x60a   :  { %9803 = vmatprep.subr.bf16.mxu1 %v12283_v47  ;;  %v3090_v46 = vld [vmem:[#allocation9 + $0x19f8] sm:$0xff]  ;;  %v12360_v47 = vcombine.low %v3065_v25, %v3073_v27  ;;  %v3153_v25 = vld [vmem:[#allocation9 + $0x1bf0] sm:$0xff] }
 0x60b   :  { %v12379_v55 = vcombine.high %v3082_v54, %v3090_v46 }
 0x60c   :  { %9632 = vmatpush1.bf16.msra.mxu0 %v12280_v19  ;;  %v3098_v19 = vld [vmem:[#allocation9 + $0x1a38] sm:$0xff] }
 0x60d   :  { %9804 = vmatpush1.bf16.msra.mxu1 %v12282_v58  ;;  %9633 = vmatprep.subr.bf16.mxu0 %v12297_v59  ;;  %v3106_v58 = vld [vmem:[#allocation9 + $0x1a78] sm:$0xff]  ;;  %v12378_v59 = vcombine.low %v3082_v54, %v3090_v46 }
 0x60e   :  { %9805 = vmatprep.subr.bf16.mxu1 %v12299_v21  ;;  %v12393_v21 = vcombine.high %v3097_v57, %v3105_v4  ;;  %v12395_v60 = vcombine.high %v3098_v19, %v3106_v58 }
 0x610   :  { %9634 = vmatpush1.bf16.msra.mxu0 %v12296_v28  ;;  %v3122_v28 = vld [vmem:[#allocation9 + $0x1af8] sm:$0xff] }
 0x611   :  { %9806 = vmatpush1.bf16.msra.mxu1 %v12298_v63  ;;  %9635 = vmatprep.subr.bf16.mxu0 %v12313_v53  ;;  %v12392_v63 = vcombine.low %v3097_v57, %v3105_v4  ;;  %v13749_v53 = vld [vmem:[#allocation10 + $0x8] sm:$0xff]  ;;  %v12411_v29 = vcombine.high %v3114_v62, %v3122_v28  ;;  %v12410_v12 = vcombine.low %v3114_v62, %v3122_v28 }
 0x612   :  { %9807 = vmatprep.subr.bf16.mxu1 %v12315_v1  ;;  %v12394_v1 = vcombine.low %v3098_v19, %v3106_v58  ;;  %v3326_v9 = vrot.slane %v13749_v53, %v13565_v22  ;;  %v3161_v19 = vld [vmem:[#allocation9 + $0x1c30] sm:$0xff] }
 0x613   :  { %v3169_v58 = vld [vmem:[#allocation9 + $0x1c70] sm:$0xff] }
 0x614   :  { %9636 = vmatpush1.bf16.msra.mxu0 %v12312_v5  ;;  %v3322_v5 = vrot.slane %v13749_v53, %v13562_v20 }
 0x615   :  { %9808 = vmatpush1.bf16.msra.mxu1 %v12314_v6  ;;  %9648 = vmatprep.subr.bf16.mxu0 %v12329_v7  ;;  %v3130_v6 = vld [vmem:[#allocation9 + $0x1b38] sm:$0xff] }
 0x616   :  { %9820 = vmatprep.subr.bf16.mxu1 %v12331_v8  ;;  %v3138_v7 = vld [vmem:[#allocation9 + $0x1b78] sm:$0xff]  ;;  %v3330_v8 = vrot.slane %v13749_v53, %v13569_v24 }
 0x617   :  { %9638 = vmatmul.mubr.bf16.vlgmr.msra.gmra.mrb[24].mxu0 %v13663_v42  ;;  %v12427_v20 = vcombine.high %v3130_v6, %v3138_v7  ;;  %v3146_v24 = vld [vmem:[#allocation9 + $0x1bb8] sm:$0xff] }
 0x618   :  { %9810 = vmatmul.mubr.bf16.vlgmr.msra.gmra.mrb[24].mxu1 %v13663_v42  ;;  %9649 = vmatpush1.bf16.msra.mxu0 %v12328_v11  ;;  %v12362_v42 = vcombine.low %v3066_v31, %v3074_v32  ;;  %v3334_v11 = vrot.slane %v13749_v53, %v13573_v26  ;;  %v3154_v32 = vld [vmem:[#allocation9 + $0x1bf8] sm:$0xff]  ;;  %v12426_v26 = vcombine.low %v3130_v6, %v3138_v7 }
 0x619   :  { %9680 = vmatprep.mubr.bf16.mxu0 %v13669_v56  ;;  %9821 = vmatpush1.bf16.msra.mxu1 %v12330_v17  ;;  %v12443_v4 = vcombine.high %v3146_v24, %v3154_v32  ;;  %v12459_v7 = vcombine.high %v3162_v18, %v3170_v61 }
 0x61a   :  { %9852 = vmatprep.mubr.bf16.mxu1 %v13669_v56  ;;  %9650 = vmatprep.subr.bf16.mxu0 %v12345_v23  ;;  %v12376_v56 = vcombine.low %v3081_v38, %v3089_v39  ;;  %v3145_v23 = vld [vmem:[#allocation9 + $0x1bb0] sm:$0xff] }
 0x61b   :  { %9822 = vmatprep.subr.bf16.mxu1 %v12347_v30  ;;  %v12440_v57 = vcombine.low %v3145_v23, %v3153_v25 }
 0x61c   :  { %9651 = vmatpush1.bf16.msra.mxu0 %v12344_v33 }
 0x61d   :  { %9823 = vmatpush1.bf16.msra.mxu1 %v12346_v34  ;;  %9652 = vmatprep.subr.bf16.mxu0 %v12361_v35 }
 0x61e   :  { %9824 = vmatprep.subr.bf16.mxu1 %v12363_v36  ;;  %v12424_v36 = vcombine.low %v3129_v2, %v3137_v3  ;;  %v12457_v3 = vcombine.high %v3161_v19, %v3169_v58 }
 0x620   :  { %9653 = vmatpush1.bf16.msra.mxu0 %v12360_v47  ;;  %v12441_v47 = vcombine.high %v3145_v23, %v3153_v25  ;;  %v3193_v25 = vld [vmem:[#allocation9 + $0x1d30] sm:$0xff] }
 0x621   :  { %9825 = vmatpush1.bf16.msra.mxu1 %v12362_v42  ;;  %9654 = vmatprep.subr.bf16.mxu0 %v12377_v50 }
 0x622   :  { %9826 = vmatprep.subr.bf16.mxu1 %v12379_v55 }
 0x624   :  { %9655 = vmatpush1.bf16.msra.mxu0 %v12376_v56 }
 0x625   :  { %9827 = vmatpush1.bf16.msra.mxu1 %v12378_v59  ;;  %9656 = vmatprep.subr.bf16.mxu0 %v12393_v21 }
 0x626   :  { %9828 = vmatprep.subr.bf16.mxu1 %v12395_v60  ;;  %v12442_v60 = vcombine.low %v3146_v24, %v3154_v32 }
 0x628   :  { %9657 = vmatpush1.bf16.msra.mxu0 %v12392_v63 }
 0x629   :  { %9829 = vmatpush1.bf16.msra.mxu1 %v12394_v1  ;;  %9658 = vmatprep.subr.bf16.mxu0 %v12409_v0 }
 0x62a   :  { %v9338_v17 = vpop.f32.mrb[20].mxu0  ;;  %9830 = vmatprep.subr.bf16.mxu1 %v12411_v29 }
 0x62b   :  { %v12909_v27 = vadd.f32 %v9338_v17, %v3322_v5  ;;  %v9510_v30 = vpop.f32.mrb[20].mxu1  ;;  %v9340_v31 = vpop.f32.mrb[21].mxu0  ;;  %v12458_v17 = vcombine.low %v3162_v18, %v3170_v61 }
 0x62c   :  { %v12913_v33 = vadd.f32 %v9510_v30, %v3330_v8  ;;  %v12910_v22 = vadd.f32 %v9340_v31, %v3326_v9  ;;  %v9512_v34 = vpop.f32.mrb[21].mxu1  ;;  %v9342_v35 = vpop.f32.mrb[22].mxu0  ;;  %9659 = vmatpush1.bf16.msra.mxu0 %v12408_v10  ;;  %v3194_v30 = vld [vmem:[#allocation9 + $0x1d38] sm:$0xff] }
 0x62d   :  { %v12914_v38 = vadd.f32 %v9512_v34, %v3334_v11  ;;  %v12911_v39 = vadd.f32 %v9342_v35, %v3322_v5  ;;  %v9514_v54 = vpop.f32.mrb[22].mxu1  ;;  %9831 = vmatpush1.bf16.msra.mxu1 %v12410_v12  ;;  %v9344_v46 = vpop.f32.mrb[23].mxu0  ;;  %9660 = vmatprep.subr.bf16.mxu0 %v12425_v14  ;;  %v9871_v56 = vmax.f32 %v12909_v27, 0.0  ;;  %v3186_v12 = vld [vmem:[#allocation9 + $0x1cf8] sm:$0xff]  ;;  %v12456_v14 = vcombine.low %v3161_v19, %v3169_v58  ;;  %v3201_v27 = vld [vmem:[#allocation9 + $0x1d70] sm:$0xff] }
 0x62e   :  { %v12915_v42 = vadd.f32 %v9514_v54, %v3330_v8  ;;  %v12912_v50 = vadd.f32 %v9344_v46, %v3326_v9  ;;  %v9516_v55 = vpop.f32.mrb[23].mxu1  ;;  %9832 = vmatprep.subr.bf16.mxu1 %v12427_v20  ;;  %v9873_v62 = vmax.f32 %v12913_v33, 0.0  ;;  %v9872_v28 = vmax.f32 %v12910_v22, 0.0  ;;  %v3177_v8 = vld [vmem:[#allocation9 + $0x1cb0] sm:$0xff]  ;;  %v3202_v31 = vld [vmem:[#allocation9 + $0x1d78] sm:$0xff] }
 0x62f   :  { %v9887_v59 = vmax.f32 %v12911_v39, 0.0  ;;  %v12916_v21 = vadd.f32 %v9516_v55, %v3334_v11  ;;  %v9874_v0 = vmax.f32 %v12914_v38, 0.0  ;;  %v3185_v9 = vld [vmem:[#allocation9 + $0x1cf0] sm:$0xff]  ;;  %v3178_v11 = vld [vmem:[#allocation9 + $0x1cb8] sm:$0xff]  ;;  %v12489_v33 = vcombine.high %v3193_v25, %v3201_v27 }
 0x630   :  { %v9889_v63 = vmax.f32 %v12915_v42, 0.0  ;;  %v9888_v1 = vmax.f32 %v12912_v50, 0.0  ;;  %9661 = vmatpush1.bf16.msra.mxu0 %v12424_v36  ;;  %v12473_v20 = vcombine.high %v3177_v8, %v3185_v9  ;;  %v12475_v23 = vcombine.high %v3178_v11, %v3186_v12  ;;  %v3209_v34 = vld [vmem:[#allocation9 + $0x1db0] sm:$0xff]  ;;  %v3210_v36 = vld [vmem:[#allocation9 + $0x1db8] sm:$0xff] }
 0x631   :  { %v13759_v29 = vpack.c.bf16 %v9887_v59, %v9871_v56  ;;  %v9890_v2 = vmax.f32 %v12916_v21, 0.0  ;;  %9833 = vmatpush1.bf16.msra.mxu1 %v12426_v26  ;;  %9662 = vmatprep.subr.bf16.mxu0 %v12441_v47  ;;  %v12472_v24 = vcombine.low %v3177_v8, %v3185_v9  ;;  %v12474_v32 = vcombine.low %v3178_v11, %v3186_v12  ;;  %v3217_v35 = vld [vmem:[#allocation9 + $0x1df0] sm:$0xff]  ;;  %v3218_v26 = vld [vmem:[#allocation9 + $0x1df8] sm:$0xff] }
 0x632   :  { %v13761_v5 = vpack.c.bf16 %v9889_v63, %v9873_v62  ;;  %v13763_v6 = vpack.c.bf16 %v9888_v1, %v9872_v28  ;;  %9834 = vmatprep.subr.bf16.mxu1 %v12443_v4  ;;  %v12491_v22 = vcombine.high %v3194_v30, %v3202_v31  ;;  %v12488_v38 = vcombine.low %v3193_v25, %v3201_v27  ;;  %v3225_v47 = vld [vmem:[#allocation9 + $0x1e30] sm:$0xff]  ;;  %v3226_v50 = vld [vmem:[#allocation9 + $0x1e38] sm:$0xff] }
 0x633   :  { %v13765_v10 = vpack.c.bf16 %v9890_v2, %v9874_v0  ;;  %v12490_v39 = vcombine.low %v3194_v30, %v3202_v31  ;;  %v12505_v54 = vcombine.high %v3209_v34, %v3217_v35  ;;  %v12507_v46 = vcombine.high %v3210_v36, %v3218_v26  ;;  %v3233_v42 = vld [vmem:[#allocation9 + $0x1e70] sm:$0xff]  ;;  %v3234_v55 = vld [vmem:[#allocation9 + $0x1e78] sm:$0xff] }
 0x634   :  { %9663 = vmatpush1.bf16.msra.mxu0 %v12440_v57  ;;  %v12504_v57 = vcombine.low %v3209_v34, %v3217_v35  ;;  %v12506_v4 = vcombine.low %v3210_v36, %v3218_v26  ;;  %v12521_v19 = vcombine.high %v3225_v47, %v3233_v42  ;;  %v12523_v58 = vcombine.high %v3226_v50, %v3234_v55  ;;  %v3241_v56 = vld [vmem:[#allocation9 + $0x1eb0] sm:$0xff]  ;;  %v3242_v21 = vld [vmem:[#allocation9 + $0x1eb8] sm:$0xff] }
 0x635   :  { %9835 = vmatpush1.bf16.msra.mxu1 %v12442_v60  ;;  %9664 = vmatprep.subr.bf16.mxu0 %v12457_v3  ;;  %v3249_v59 = vld [vmem:[#allocation9 + $0x1ef0] sm:$0xff]  ;;  %v3250_v60 = vld [vmem:[#allocation9 + $0x1ef8] sm:$0xff]  ;;  %v12520_v18 = vcombine.low %v3225_v47, %v3233_v42  ;;  %v12522_v61 = vcombine.low %v3226_v50, %v3234_v55  ;;  %v13078_v47 = vld [vmem:[#allocation12 + $0x58] sm:$0xff]  }
 0x636   :  { %9836 = vmatprep.subr.bf16.mxu1 %v12459_v7  ;;  %v12537_v62 = vcombine.high %v3241_v56, %v3249_v59  ;;  %v12539_v28 = vcombine.high %v3242_v21, %v3250_v60  ;;  %v3257_v63 = vld [vmem:[#allocation9 + $0x1f30] sm:$0xff]  ;;  %v3258_v0 = vld [vmem:[#allocation9 + $0x1f38] sm:$0xff]  ;;  %v12536_v3 = vcombine.low %v3241_v56, %v3249_v59  ;;  %v12538_v7 = vcombine.low %v3242_v21, %v3250_v60  ;;  %v13080_v42 = vld [vmem:[#allocation12 + $0x18] sm:$0xff]  }
 0x637   :  { %v3265_v1 = vld [vmem:[#allocation9 + $0x1f70] sm:$0xff]  ;;  %v3266_v2 = vld [vmem:[#allocation9 + $0x1f78] sm:$0xff]  ;;  %v13090_v59 = vld [vmem:[#allocation12 + $0x70] sm:$0xff]  }
 0x638   :  { %9665 = vmatpush1.bf16.msra.mxu0 %v12456_v14  ;;  %v12553_v8 = vcombine.high %v3257_v63, %v3265_v1  ;;  %v12555_v9 = vcombine.high %v3258_v0, %v3266_v2  ;;  %v3273_v11 = vld [vmem:[#allocation9 + $0x1fb0] sm:$0xff]  ;;  %v3274_v14 = vld [vmem:[#allocation9 + $0x1fb8] sm:$0xff]  ;;  %v13091_v21 = vld [vmem:[#allocation12 + $0xf0] sm:$0xff]  }
 0x639   :  { %9837 = vmatpush1.bf16.msra.mxu1 %v12458_v17  ;;  %9666 = vmatprep.subr.bf16.mxu0 %v12473_v20  ;;  %v3281_v12 = vld [vmem:[#allocation9 + $0x1ff0] sm:$0xff]  ;;  %v3282_v17 = vld [vmem:[#allocation9 + $0x1ff8] sm:$0xff]  ;;  %v12552_v20 = vcombine.low %v3257_v63, %v3265_v1  ;;  %v13092_v60 = vld [vmem:[#allocation12 + $0x30] sm:$0xff]  }
 0x63a   :  { %9838 = vmatprep.subr.bf16.mxu1 %v12475_v23  ;;  %v12554_v23 = vcombine.low %v3258_v0, %v3266_v2  ;;  %v12569_v25 = vcombine.high %v3273_v11, %v3281_v12  ;;  %v12571_v27 = vcombine.high %v3274_v14, %v3282_v17  ;;  %v12568_v30 = vcombine.low %v3273_v11, %v3281_v12  ;;  %v13070_v34 = vld [vmem:[#allocation12 + $0x48] sm:$0xff]   ;;  %v13082_v50 = vld [vmem:[#allocation12 + $0x60] sm:$0xff]   ;;  %v13097_v63 = vld [vmem:[#allocation12 + $0xb8] sm:$0xff]  }
 0x63b   :  { %v12570_v31 = vcombine.low %v3274_v14, %v3282_v17  ;;  %v13071_v35 = vld [vmem:[#allocation12 + $0xc8] sm:$0xff]   ;;  %v13083_v55 = vld [vmem:[#allocation12 + $0xe0] sm:$0xff]   ;;  %v13106_v12 = vld [vmem:[#allocation12 + $0x150] sm:$0xff]  }
 0x63c   :  { %9667 = vmatpush1.bf16.msra.mxu0 %v12472_v24  ;;  %v13066_v24 = vld [vmem:[#allocation12 + $0x40] sm:$0xff]   ;;  %v13072_v36 = vld [vmem:[#allocation12 + $0x8] sm:$0xff]   ;;  %v13107_v14 = vld [vmem:[#allocation12 + $0x1d0] sm:$0xff]  }
 0x63d   :  { %9839 = vmatpush1.bf16.msra.mxu1 %v12474_v32  ;;  %9668 = vmatprep.subr.bf16.mxu0 %v12489_v33  ;;  %v13067_v32 = vld [vmem:[#allocation12 + $0xc0] sm:$0xff]   ;;  %v13073_v26 = vld [vmem:[#allocation12 + $0x88] sm:$0xff]   ;;  %v13108_v17 = vld [vmem:[#allocation12 + $0x110] sm:$0xff]  }
 0x63e   :  { %9840 = vmatprep.subr.bf16.mxu1 %v12491_v22  ;;  %v13068_v33 = vld [vmem:[#allocation12] sm:$0xff]   ;;  %v13089_v56 = vld [vmem:[#allocation12 + $0xa8] sm:$0xff]  }
 0x63f   :  { %v13069_v22 = vld [vmem:[#allocation12 + $0x80] sm:$0xff]   ;;  %v13105_v11 = vld [vmem:[#allocation12 + $0x188] sm:$0xff]  }
 0x640   :  { %9669 = vmatpush1.bf16.msra.mxu0 %v12488_v38  ;;  %v13074_v38 = vld [vmem:[#allocation12 + $0x50] sm:$0xff]   ;;  %v13098_v1 = vld [vmem:[#allocation12 + $0x140] sm:$0xff]  }
 0x641   :  { %9841 = vmatpush1.bf16.msra.mxu1 %v12490_v39  ;;  %9670 = vmatprep.subr.bf16.mxu0 %v12505_v54  ;;  %v13075_v39 = vld [vmem:[#allocation12 + $0xd0] sm:$0xff]   ;;  %v13099_v0 = vld [vmem:[#allocation12 + $0x1c0] sm:$0xff]  }
 0x642   :  { %9842 = vmatprep.subr.bf16.mxu1 %v12507_v46  ;;  %v13076_v54 = vld [vmem:[#allocation12 + $0x10] sm:$0xff]   ;;  %v13100_v2 = vld [vmem:[#allocation12 + $0x100] sm:$0xff]  }
 0x643   :  { %v13077_v46 = vld [vmem:[#allocation12 + $0x90] sm:$0xff]  }
 0x644   :  { %9671 = vmatpush1.bf16.msra.mxu0 %v12504_v57  ;;  %v13085_v57 = vld [vmem:[#allocation12 + $0xa0] sm:$0xff]  }
 0x645   :  { %9843 = vmatpush1.bf16.msra.mxu1 %v12506_v4  ;;  %9672 = vmatprep.subr.bf16.mxu0 %v12521_v19  ;;  %v13086_v4 = vld [vmem:[#allocation12 + $0x68] sm:$0xff]  }
 0x646   :  { %9844 = vmatprep.subr.bf16.mxu1 %v12523_v58  ;;  %v13087_v19 = vld [vmem:[#allocation12 + $0xe8] sm:$0xff]  }
 0x647   :  { %v13088_v58 = vld [vmem:[#allocation12 + $0x28] sm:$0xff]  }
 0x648   :  { %9673 = vmatpush1.bf16.msra.mxu0 %v12520_v18  ;;  %v13093_v18 = vld [vmem:[#allocation12 + $0xb0] sm:$0xff]  }
 0x649   :  { %9845 = vmatpush1.bf16.msra.mxu1 %v12522_v61  ;;  %9674 = vmatprep.subr.bf16.mxu0 %v12537_v62  ;;  %v13094_v61 = vld [vmem:[#allocation12 + $0x78] sm:$0xff]  }
 0x64a   :  { %9846 = vmatprep.subr.bf16.mxu1 %v12539_v28  ;;  %v13095_v62 = vld [vmem:[#allocation12 + $0xf8] sm:$0xff]  }
 0x64b   :  { %v13096_v28 = vld [vmem:[#allocation12 + $0x38] sm:$0xff]  }
 0x64c   :  { %9675 = vmatpush1.bf16.msra.mxu0 %v12536_v3  ;;  %v13101_v3 = vld [vmem:[#allocation12 + $0x180] sm:$0xff]  }
 0x64d   :  { %9847 = vmatpush1.bf16.msra.mxu1 %v12538_v7  ;;  %9676 = vmatprep.subr.bf16.mxu0 %v12553_v8  ;;  %v13102_v7 = vld [vmem:[#allocation12 + $0x148] sm:$0xff]  }
 0x64e   :  { %9848 = vmatprep.subr.bf16.mxu1 %v12555_v9  ;;  %v13103_v8 = vld [vmem:[#allocation12 + $0x1c8] sm:$0xff]  }
 0x64f   :  { %v13104_v9 = vld [vmem:[#allocation12 + $0x108] sm:$0xff]  }
 0x650   :  { %9677 = vmatpush1.bf16.msra.mxu0 %v12552_v20  ;;  %v13110_v20 = vld [vmem:[#allocation12 + $0x158] sm:$0xff]  }
 0x651   :  { %9849 = vmatpush1.bf16.msra.mxu1 %v12554_v23  ;;  %9678 = vmatprep.subr.bf16.mxu0 %v12569_v25  ;;  %v13112_v23 = vld [vmem:[#allocation12 + $0x118] sm:$0xff]   ;;  %v13114_v25 = vld [vmem:[#allocation12 + $0x160] sm:$0xff]  }
 0x652   :  { %9850 = vmatprep.subr.bf16.mxu1 %v12571_v27  ;;  %v13115_v27 = vld [vmem:[#allocation12 + $0x1e0] sm:$0xff]  }
 0x654   :  { %9679 = vmatpush1.bf16.msra.mxu0 %v12568_v30  ;;  %v13117_v30 = vld [vmem:[#allocation12 + $0x1a0] sm:$0xff]  }
 0x655   :  { %9851 = vmatpush1.bf16.msra.mxu1 %v12570_v31  ;;  %12701 = vmatprep.subr.bf16.mxu0 %v13066_v24  ;;  %v13118_v31 = vld [vmem:[#allocation12 + $0x168] sm:$0xff]  }
 0x656   :  { %12723 = vmatprep.subr.bf16.mxu1 %v13067_v32  ;;  %v13119_v24 = vld [vmem:[#allocation12 + $0x1e8] sm:$0xff]  }
 0x657   :  { %9681 = vmatmul.mubr.bf16.vlgmr.msra.gmra.mrb[24].mxu0 %v13665_v52  ;;  %v13120_v32 = vld [vmem:[#allocation12 + $0x128] sm:$0xff]  }
 0x658   :  { %9853 = vmatmul.mubr.bf16.vlgmr.msra.gmra.mrb[24].mxu1 %v13665_v52  ;;  %12702 = vmatpush3.bf16.msra.mxu0 %v13068_v33  ;;  %v13079_v52 = vld [vmem:[#allocation12 + $0xd8] sm:$0xff]   ;;  %v13121_v33 = vld [vmem:[#allocation12 + $0x1a8] sm:$0xff]  }
 0x659   :  { %10974 = vmatprep.mubr.bf16.mxu0 %v13701_v15  ;;  %12724 = vmatpush3.bf16.msra.mxu1 %v13069_v22  ;;  %v13081_v15 = vld [vmem:[#allocation12 + $0x98] sm:$0xff]   ;;  %v13122_v22 = vld [vmem:[#allocation12 + $0x170] sm:$0xff]  }
 0x65a   :  { %11015 = vmatprep.mubr.bf16.mxu1 %v13703_v16  ;;  %12703 = vmatprep.subr.bf16.mxu0 %v13070_v34  ;;  %v13084_v16 = vld [vmem:[#allocation12 + $0x20] sm:$0xff]   ;;  %v13123_v34 = vld [vmem:[#allocation12 + $0x1f0] sm:$0xff]  }
 0x65b   :  { %12725 = vmatprep.subr.bf16.mxu1 %v13071_v35  ;;  %v13124_v35 = vld [vmem:[#allocation12 + $0x130] sm:$0xff]  }
 0x65c   :  { %12704 = vmatpush3.bf16.msra.mxu0 %v13072_v36  ;;  %v13125_v36 = vld [vmem:[#allocation12 + $0x1b0] sm:$0xff]  }
 0x65d   :  { %12726 = vmatpush3.bf16.msra.mxu1 %v13073_v26  ;;  %12705 = vmatprep.subr.bf16.mxu0 %v13074_v38  ;;  %v13126_v26 = vld [vmem:[#allocation12 + $0x178] sm:$0xff]  }
 0x65e   :  { %12727 = vmatprep.subr.bf16.mxu1 %v13075_v39  ;;  %v13127_v38 = vld [vmem:[#allocation12 + $0x1f8] sm:$0xff]  }
 0x65f   :  { %v13128_v39 = vld [vmem:[#allocation12 + $0x138] sm:$0xff]  }
 0x660   :  { %12706 = vmatpush3.bf16.msra.mxu0 %v13076_v54  ;;  %v13129_v54 = vld [vmem:[#allocation12 + $0x1b8] sm:$0xff]  }
 0x661   :  { %12728 = vmatpush3.bf16.msra.mxu1 %v13077_v46  ;;  %12707 = vmatprep.subr.bf16.mxu0 %v13078_v47  ;;  %v13130_v46 = vld [vmem:[#allocation12 + $0x240] sm:$0xff]  }
 0x662   :  { %12729 = vmatprep.subr.bf16.mxu1 %v13079_v52  ;;  %v13131_v47 = vld [vmem:[#allocation12 + $0x2c0] sm:$0xff]  }
 0x663   :  { %v13132_v52 = vld [vmem:[#allocation12 + $0x200] sm:$0xff]  }
 0x664   :  { %12708 = vmatpush3.bf16.msra.mxu0 %v13080_v42  ;;  %v13133_v42 = vld [vmem:[#allocation12 + $0x280] sm:$0xff]  }
 0x665   :  { %12730 = vmatpush3.bf16.msra.mxu1 %v13081_v15  ;;  %12709 = vmatprep.subr.bf16.mxu0 %v13082_v50  ;;  %v13134_v15 = vld [vmem:[#allocation12 + $0x248] sm:$0xff]  }
 0x666   :  { %12731 = vmatprep.subr.bf16.mxu1 %v13083_v55  ;;  %v13135_v50 = vld [vmem:[#allocation12 + $0x2c8] sm:$0xff]  }
 0x667   :  { %v13136_v55 = vld [vmem:[#allocation12 + $0x208] sm:$0xff]  }
 0x668   :  { %12710 = vmatpush3.bf16.msra.mxu0 %v13084_v16  ;;  %v13137_v16 = vld [vmem:[#allocation12 + $0x288] sm:$0xff]  }
 0x669   :  { %12732 = vmatpush3.bf16.msra.mxu1 %v13085_v57  ;;  %12711 = vmatprep.subr.bf16.mxu0 %v13086_v4  ;;  %v13138_v57 = vld [vmem:[#allocation12 + $0x250] sm:$0xff]  }
 0x66a   :  { %12733 = vmatprep.subr.bf16.mxu1 %v13087_v19  ;;  %v13139_v4 = vld [vmem:[#allocation12 + $0x2d0] sm:$0xff]  }
 0x66b   :  { %v13140_v19 = vld [vmem:[#allocation12 + $0x210] sm:$0xff]  }
 0x66c   :  { %12712 = vmatpush3.bf16.msra.mxu0 %v13088_v58  ;;  %v13142_v58 = vld [vmem:[#allocation12 + $0x258] sm:$0xff]  }
 0x66d   :  { %12734 = vmatpush3.bf16.msra.mxu1 %v13089_v56  ;;  %12713 = vmatprep.subr.bf16.mxu0 %v13090_v59  ;;  %v13144_v56 = vld [vmem:[#allocation12 + $0x218] sm:$0xff]   ;;  %v13146_v59 = vld [vmem:[#allocation12 + $0x260] sm:$0xff]  }
 0x66e   :  { %12735 = vmatprep.subr.bf16.mxu1 %v13091_v21  ;;  %v13147_v21 = vld [vmem:[#allocation12 + $0x2e0] sm:$0xff]  }
 0x670   :  { %12714 = vmatpush3.bf16.msra.mxu0 %v13092_v60  ;;  %v13149_v60 = vld [vmem:[#allocation12 + $0x2a0] sm:$0xff]  }
 0x671   :  { %12736 = vmatpush3.bf16.msra.mxu1 %v13093_v18  ;;  %12715 = vmatprep.subr.bf16.mxu0 %v13094_v61  ;;  %v13150_v18 = vld [vmem:[#allocation12 + $0x268] sm:$0xff]  }
 0x672   :  { %12737 = vmatprep.subr.bf16.mxu1 %v13095_v62  ;;  %v13151_v61 = vld [vmem:[#allocation12 + $0x2e8] sm:$0xff]  }
 0x673   :  { %v13152_v62 = vld [vmem:[#allocation12 + $0x228] sm:$0xff]  }
 0x674   :  { %12716 = vmatpush3.bf16.msra.mxu0 %v13096_v28  ;;  %v13153_v28 = vld [vmem:[#allocation12 + $0x2a8] sm:$0xff]  }
 0x675   :  { %12738 = vmatpush3.bf16.msra.mxu1 %v13097_v63  ;;  %12745 = vmatprep.subr.bf16.mxu0 %v13098_v1  ;;  %v13154_v63 = vld [vmem:[#allocation12 + $0x270] sm:$0xff]  }
 0x676   :  { %12767 = vmatprep.subr.bf16.mxu1 %v13099_v0  ;;  %v13155_v1 = vld [vmem:[#allocation12 + $0x2f0] sm:$0xff]  }
 0x677   :  { %10975 = vmatmul.mubr.bf16.vlgmr.msra.gmra.mrb[28].mxu0 %v13697_v51  ;;  %v13109_v51 = vld [vmem:[#allocation12 + $0x190] sm:$0xff]  }
 0x678   :  { %11016 = vmatmul.mubr.bf16.vlgmr.msra.gmra.mrb[28].mxu1 %v13699_v13  ;;  %12746 = vmatpush3.bf16.msra.mxu0 %v13100_v2  ;;  %v13111_v13 = vld [vmem:[#allocation12 + $0x1d8] sm:$0xff]   ;;  %v13156_v0 = vld [vmem:[#allocation12 + $0x230] sm:$0xff]  }
 0x679   :  { %11056 = vmatprep.mubr.bf16.mxu0 %v13729_v45  ;;  %12768 = vmatpush3.bf16.msra.mxu1 %v13101_v3  ;;  %v13113_v45 = vld [vmem:[#allocation12 + $0x198] sm:$0xff]   ;;  %v13157_v2 = vld [vmem:[#allocation12 + $0x2b0] sm:$0xff]  }
 0x67a   :  { %11097 = vmatprep.mubr.bf16.mxu1 %v13731_v49  ;;  %12747 = vmatprep.subr.bf16.mxu0 %v13102_v7  ;;  %v13116_v49 = vld [vmem:[#allocation12 + $0x120] sm:$0xff]   ;;  %v13158_v3 = vld [vmem:[#allocation12 + $0x278] sm:$0xff]  }
 0x67b   :  { %12769 = vmatprep.subr.bf16.mxu1 %v13103_v8  ;;  %v13159_v7 = vld [vmem:[#allocation12 + $0x2f8] sm:$0xff]  }
 0x67c   :  { %12748 = vmatpush3.bf16.msra.mxu0 %v13104_v9  ;;  %v13160_v8 = vld [vmem:[#allocation12 + $0x238] sm:$0xff]  }
 0x67d   :  { %12770 = vmatpush3.bf16.msra.mxu1 %v13105_v11  ;;  %12749 = vmatprep.subr.bf16.mxu0 %v13106_v12  ;;  %v13161_v9 = vld [vmem:[#allocation12 + $0x2b8] sm:$0xff]   ;;  %v13162_v11 = vld [vmem:[#allocation12 + $0x340] sm:$0xff]  }
 0x67e   :  { %12771 = vmatprep.subr.bf16.mxu1 %v13107_v14  ;;  %v13163_v12 = vld [vmem:[#allocation12 + $0x3c0] sm:$0xff]  }
 0x67f   :  { %v13164_v14 = vld [vmem:[#allocation12 + $0x300] sm:$0xff]  }
 0x680   :  { %12750 = vmatpush3.bf16.msra.mxu0 %v13108_v17  ;;  %v13165_v17 = vld [vmem:[#allocation12 + $0x380] sm:$0xff]  }
 0x681   :  { %12772 = vmatpush3.bf16.msra.mxu1 %v13109_v51  ;;  %12751 = vmatprep.subr.bf16.mxu0 %v13110_v20  ;;  %v13166_v51 = vld [vmem:[#allocation12 + $0x348] sm:$0xff]  }
 0x682   :  { %12773 = vmatprep.subr.bf16.mxu1 %v13111_v13  ;;  %v13167_v20 = vld [vmem:[#allocation12 + $0x3c8] sm:$0xff]  }
 0x683   :  { %v13168_v13 = vld [vmem:[#allocation12 + $0x308] sm:$0xff]  }
 0x684   :  { %12752 = vmatpush3.bf16.msra.mxu0 %v13112_v23  ;;  %v13169_v23 = vld [vmem:[#allocation12 + $0x388] sm:$0xff]  }
 0x685   :  { %12774 = vmatpush3.bf16.msra.mxu1 %v13113_v45  ;;  %12753 = vmatprep.subr.bf16.mxu0 %v13114_v25  ;;  %v13170_v45 = vld [vmem:[#allocation12 + $0x350] sm:$0xff]  }
 0x686   :  { %12775 = vmatprep.subr.bf16.mxu1 %v13115_v27  ;;  %v13171_v25 = vld [vmem:[#allocation12 + $0x3d0] sm:$0xff]  }
 0x687   :  { %v13172_v27 = vld [vmem:[#allocation12 + $0x310] sm:$0xff]  }
 0x688   :  { %12754 = vmatpush3.bf16.msra.mxu0 %v13116_v49  ;;  %v13173_v49 = vld [vmem:[#allocation12 + $0x390] sm:$0xff]  }
 0x689   :  { %12776 = vmatpush3.bf16.msra.mxu1 %v13117_v30  ;;  %12755 = vmatprep.subr.bf16.mxu0 %v13118_v31  ;;  %v13174_v30 = vld [vmem:[#allocation12 + $0x358] sm:$0xff]  }
 0x68a   :  { %12777 = vmatprep.subr.bf16.mxu1 %v13119_v24  ;;  %v13175_v31 = vld [vmem:[#allocation12 + $0x3d8] sm:$0xff]   ;;  %v13178_v24 = vld [vmem:[#allocation12 + $0x360] sm:$0xff]  }
 0x68c   :  { %12756 = vmatpush3.bf16.msra.mxu0 %v13120_v32  ;;  %v13179_v32 = vld [vmem:[#allocation12 + $0x3e0] sm:$0xff]  }
 0x68d   :  { %12778 = vmatpush3.bf16.msra.mxu1 %v13121_v33  ;;  %12757 = vmatprep.subr.bf16.mxu0 %v13122_v22  ;;  %v13180_v33 = vld [vmem:[#allocation12 + $0x320] sm:$0xff]  }
 0x68e   :  { %12779 = vmatprep.subr.bf16.mxu1 %v13123_v34  ;;  %v13181_v22 = vld [vmem:[#allocation12 + $0x3a0] sm:$0xff]   ;;  %v13182_v34 = vld [vmem:[#allocation12 + $0x368] sm:$0xff]  }
 0x690   :  { %12758 = vmatpush3.bf16.msra.mxu0 %v13124_v35  ;;  %v13183_v35 = vld [vmem:[#allocation12 + $0x3e8] sm:$0xff]  }
 0x691   :  { %12780 = vmatpush3.bf16.msra.mxu1 %v13125_v36  ;;  %12759 = vmatprep.subr.bf16.mxu0 %v13126_v26  ;;  %v13184_v36 = vld [vmem:[#allocation12 + $0x328] sm:$0xff]  }
 0x692   :  { %12781 = vmatprep.subr.bf16.mxu1 %v13127_v38  ;;  %v13185_v26 = vld [vmem:[#allocation12 + $0x3a8] sm:$0xff]   ;;  %v13186_v38 = vld [vmem:[#allocation12 + $0x370] sm:$0xff]  }
 0x694   :  { %12760 = vmatpush3.bf16.msra.mxu0 %v13128_v39  ;;  %v13187_v39 = vld [vmem:[#allocation12 + $0x3f0] sm:$0xff]  }
 0x695   :  { %12782 = vmatpush3.bf16.msra.mxu1 %v13129_v54  ;;  %12789 = vmatprep.subr.bf16.mxu0 %v13130_v46  ;;  %v13188_v54 = vld [vmem:[#allocation12 + $0x330] sm:$0xff]  }
 0x696   :  { %12811 = vmatprep.subr.bf16.mxu1 %v13131_v47  ;;  %v13189_v46 = vld [vmem:[#allocation12 + $0x3b0] sm:$0xff]   ;;  %v13190_v47 = vld [vmem:[#allocation12 + $0x378] sm:$0xff]  }
 0x697   :  { %11057 = vmatmul.mubr.bf16.vlgmr.msra.gmra.mrb[32].mxu0 %v13725_v37  ;;  %v13141_v37 = vld [vmem:[#allocation12 + $0x290] sm:$0xff]  }
 0x698   :  { %11098 = vmatmul.mubr.bf16.vlgmr.msra.gmra.mrb[32].mxu1 %v13727_v40  ;;  %12790 = vmatpush3.bf16.msra.mxu0 %v13132_v52  ;;  %v13143_v40 = vld [vmem:[#allocation12 + $0x2d8] sm:$0xff]  }
 0x699   :  { %11138 = vmatprep.mubr.bf16.mxu0 %v13763_v6  ;;  %12812 = vmatpush3.bf16.msra.mxu1 %v13133_v42  ;;  %v13145_v6 = vld [vmem:[#allocation12 + $0x298] sm:$0xff]  }
 0x69a   :  { %11179 = vmatprep.mubr.bf16.mxu1 %v13765_v10  ;;  %12791 = vmatprep.subr.bf16.mxu0 %v13134_v15  ;;  %v13148_v10 = vld [vmem:[#allocation12 + $0x220] sm:$0xff]   ;;  %v13191_v52 = vld [vmem:[#allocation12 + $0x3f8] sm:$0xff]  }
 0x69b   :  { %12813 = vmatprep.subr.bf16.mxu1 %v13135_v50  ;;  %v13192_v42 = vld [vmem:[#allocation12 + $0x338] sm:$0xff]   ;;  %v3338_v50 = vrot.slane %v13749_v53, %v13644_v41 }
 0x69c   :  { %12792 = vmatpush3.bf16.msra.mxu0 %v13136_v55  ;;  %v13193_v15 = vld [vmem:[#allocation12 + $0x3b8] sm:$0xff]   ;;  %v3346_v55 = vrot.slane %v13749_v53, %v13647_v43 }
 0x69d   :  { %12814 = vmatpush3.bf16.msra.mxu1 %v13137_v16  ;;  %12793 = vmatprep.subr.bf16.mxu0 %v13138_v57  ;;  %v3342_v16 = vrot.slane %v13749_v53, %v13650_v44  ;;  %v3350_v57 = vrot.slane %v13749_v53, %v13653_v48 }
 0x69e   :  { %12815 = vmatprep.subr.bf16.mxu1 %v13139_v4 }
 0x6a0   :  { %12794 = vmatpush3.bf16.msra.mxu0 %v13140_v19 }
 0x6a1   :  { %12816 = vmatpush3.bf16.msra.mxu1 %v13141_v37  ;;  %12795 = vmatprep.subr.bf16.mxu0 %v13142_v58 }
 0x6a2   :  { %12817 = vmatprep.subr.bf16.mxu1 %v13143_v40 }
 0x6a4   :  { %12796 = vmatpush3.bf16.msra.mxu0 %v13144_v56 }
 0x6a5   :  { %12818 = vmatpush3.bf16.msra.mxu1 %v13145_v6  ;;  %12797 = vmatprep.subr.bf16.mxu0 %v13146_v59 }
 0x6a6   :  { %12819 = vmatprep.subr.bf16.mxu1 %v13147_v21 }
 0x6a8   :  { %12798 = vmatpush3.bf16.msra.mxu0 %v13148_v10 }
 0x6a9   :  { %12820 = vmatpush3.bf16.msra.mxu1 %v13149_v60  ;;  %12799 = vmatprep.subr.bf16.mxu0 %v13150_v18 }
 0x6aa   :  { %12821 = vmatprep.subr.bf16.mxu1 %v13151_v61 }
 0x6ac   :  { %12800 = vmatpush3.bf16.msra.mxu0 %v13152_v62 }
 0x6ad   :  { %12822 = vmatpush3.bf16.msra.mxu1 %v13153_v28  ;;  %12801 = vmatprep.subr.bf16.mxu0 %v13154_v63 }
 0x6ae   :  { %12823 = vmatprep.subr.bf16.mxu1 %v13155_v1 }
 0x6b0   :  { %12802 = vmatpush3.bf16.msra.mxu0 %v13156_v0 }
 0x6b1   :  { %12824 = vmatpush3.bf16.msra.mxu1 %v13157_v2  ;;  %12803 = vmatprep.subr.bf16.mxu0 %v13158_v3 }
 0x6b2   :  { %12825 = vmatprep.subr.bf16.mxu1 %v13159_v7 }
 0x6b4   :  { %12804 = vmatpush3.bf16.msra.mxu0 %v13160_v8 }
 0x6b5   :  { %12826 = vmatpush3.bf16.msra.mxu1 %v13161_v9  ;;  %12833 = vmatprep.subr.bf16.mxu0 %v13162_v11 }
 0x6b6   :  { %12855 = vmatprep.subr.bf16.mxu1 %v13163_v12 }
 0x6b7   :  { %11139 = vmatmul.mubr.bf16.vlgmr.msra.gmra.mrb[36].mxu0 %v13759_v29  ;;  %v13176_v29 = vld [vmem:[#allocation12 + $0x318] sm:$0xff]  }
 0x6b8   :  { %11180 = vmatmul.mubr.bf16.vlgmr.msra.gmra.mrb[36].mxu1 %v13761_v5  ;;  %12834 = vmatpush3.bf16.msra.mxu0 %v13164_v14  ;;  %v13177_v5 = vld [vmem:[#allocation12 + $0x398] sm:$0xff]   ;;  %v12572_v14 = vld [vmem:[#allocation13] ss:$0 sm:$0xff] }
 0x6b9   :  { %12856 = vmatpush3.bf16.msra.mxu1 %v13165_v17  ;;  %12835 = vmatprep.subr.bf16.mxu0 %v13166_v51 }
 0x6ba   :  { %12857 = vmatprep.subr.bf16.mxu1 %v13167_v20 }
 0x6bc   :  { %12836 = vmatpush3.bf16.msra.mxu0 %v13168_v13 }
 0x6bd   :  { %12858 = vmatpush3.bf16.msra.mxu1 %v13169_v23  ;;  %12837 = vmatprep.subr.bf16.mxu0 %v13170_v45 }
 0x6be   :  { %12859 = vmatprep.subr.bf16.mxu1 %v13171_v25 }
 0x6c0   :  { %12838 = vmatpush3.bf16.msra.mxu0 %v13172_v27 }
 0x6c1   :  { %12860 = vmatpush3.bf16.msra.mxu1 %v13173_v49  ;;  %12839 = vmatprep.subr.bf16.mxu0 %v13174_v30 }
 0x6c2   :  { %12861 = vmatprep.subr.bf16.mxu1 %v13175_v31 }
 0x6c4   :  { %12840 = vmatpush3.bf16.msra.mxu0 %v13176_v29 }
 0x6c5   :  { %12862 = vmatpush3.bf16.msra.mxu1 %v13177_v5  ;;  %12841 = vmatprep.subr.bf16.mxu0 %v13178_v24 }
 0x6c6   :  { %12863 = vmatprep.subr.bf16.mxu1 %v13179_v32 }
 0x6c8   :  { %12842 = vmatpush3.bf16.msra.mxu0 %v13180_v33 }
 0x6c9   :  { %12864 = vmatpush3.bf16.msra.mxu1 %v13181_v22  ;;  %12843 = vmatprep.subr.bf16.mxu0 %v13182_v34 }
 0x6ca   :  { %12865 = vmatprep.subr.bf16.mxu1 %v13183_v35 }
 0x6cc   :  { %12844 = vmatpush3.bf16.msra.mxu0 %v13184_v36 }
 0x6cd   :  { %12866 = vmatpush3.bf16.msra.mxu1 %v13185_v26  ;;  %12845 = vmatprep.subr.bf16.mxu0 %v13186_v38 }
 0x6ce   :  { %12867 = vmatprep.subr.bf16.mxu1 %v13187_v39 }
 0x6d0   :  { %12846 = vmatpush3.bf16.msra.mxu0 %v13188_v54 }
 0x6d1   :  { %12868 = vmatpush3.bf16.msra.mxu1 %v13189_v46  ;;  %12847 = vmatprep.subr.bf16.mxu0 %v13190_v47 }
 0x6d2   :  { %12869 = vmatprep.subr.bf16.mxu1 %v13191_v52 }
 0x6d4   :  { %12848 = vmatpush3.bf16.msra.mxu0 %v13192_v42 }
 0x6d5   :  { %12870 = vmatpush3.bf16.msra.mxu1 %v13193_v15 }
 0x72a   :  { %v9682_v4 = vpop.f32.mrb[24].mxu0 }
 0x72b   :  { %v12917_v19 = vadd.f32 %v9682_v4, %v3338_v50  ;;  %v9854_v37 = vpop.f32.mrb[24].mxu1  ;;  %v9684_v58 = vpop.f32.mrb[25].mxu0 }
 0x72c   :  { %v12921_v40 = vadd.f32 %v9854_v37, %v3346_v55  ;;  %v12918_v56 = vadd.f32 %v9684_v58, %v3342_v16  ;;  %v9856_v6 = vpop.f32.mrb[25].mxu1  ;;  %v9686_v59 = vpop.f32.mrb[26].mxu0 }
 0x72d   :  { %v12922_v21 = vadd.f32 %v9856_v6, %v3350_v57  ;;  %v12919_v10 = vadd.f32 %v9686_v59, %v3338_v50  ;;  %v9858_v41 = vpop.f32.mrb[26].mxu1  ;;  %v9688_v60 = vpop.f32.mrb[27].mxu0  ;;  %v9875_v62 = vmax.f32 %v12917_v19, 0.0 }
 0x72e   :  { %v12923_v18 = vadd.f32 %v9858_v41, %v3346_v55  ;;  %v12920_v43 = vadd.f32 %v9688_v60, %v3342_v16  ;;  %v9860_v61 = vpop.f32.mrb[27].mxu1  ;;  %v9877_v63 = vmax.f32 %v12921_v40, 0.0  ;;  %v9876_v48 = vmax.f32 %v12918_v56, 0.0 }
 0x72f   :  { %v9891_v44 = vmax.f32 %v12919_v10, 0.0  ;;  %v12924_v28 = vadd.f32 %v9860_v61, %v3350_v57  ;;  %v9878_v0 = vmax.f32 %v12922_v21, 0.0 }
 0x730   :  { %v9893_v53 = vmax.f32 %v12923_v18, 0.0  ;;  %v9892_v1 = vmax.f32 %v12920_v43, 0.0 }
 0x731   :  { %v9907_v2 = vpack.c.bf16 %v9891_v44, %v9875_v62  ;;  %v9894_v3 = vmax.f32 %v12924_v28, 0.0 }
 0x732   :  { %v9909_v7 = vpack.c.bf16 %v9893_v53, %v9877_v63  ;;  %v9908_v8 = vpack.c.bf16 %v9892_v1, %v9876_v48 }
 0x733   :  { %v9910_v9 = vpack.c.bf16 %v9894_v3, %v9878_v0 }
 0x734   :  { %11220 = vmatprep.mubr.bf16.mxu0 %v9908_v8 }
 0x735   :  { %11261 = vmatprep.mubr.bf16.mxu1 %v9910_v9  ;;  %11221 = vmatmul.mubr.bf16.vlgmr.msra.gmra.mrb[40].mxu0 %v9907_v2 }
 0x736   :  { %11262 = vmatmul.mubr.bf16.vlgmr.msra.gmra.mrb[40].mxu1 %v9909_v7 }
 0x74a   :  { %v12717_v11 = vpop.f32.mrb[28].mxu0 }
 0x74b   :  { %v12739_v12 = vpop.f32.mrb[28].mxu1  ;;  %v12718_v17 = vpop.f32.mrb[29].mxu0 }
 0x74c   :  { %v12719_v51 = vadd.f32 %v12718_v17, %v12717_v11  ;;  %v12740_v20 = vpop.f32.mrb[29].mxu1  ;;  %v12720_v13 = vpop.f32.mrb[30].mxu0 }
 0x74d   :  { %v12741_v23 = vadd.f32 %v12740_v20, %v12739_v12  ;;  %v12742_v45 = vpop.f32.mrb[30].mxu1  ;;  %v12721_v25 = vpop.f32.mrb[31].mxu0 }
 0x74e   :  { %v10977_v27 = vadd.f32 %v12719_v51, %v12572_v14  ;;  %v12722_v49 = vadd.f32 %v12721_v25, %v12720_v13  ;;  %v12743_v30 = vpop.f32.mrb[31].mxu1 }
 0x74f   :  { %v12744_v31 = vadd.f32 %v12743_v30, %v12742_v45 }
 0x750   :  { %v11018_v29 = vadd.f32 %v12741_v23, %v10977_v27  ;;  %v10980_v5 = vadd.f32 %v12722_v49, %v12572_v14 }
 0x752   :  { %v11021_v24 = vadd.f32 %v12744_v31, %v10980_v5 }
 0x76a   :  { %v12761_v32 = vpop.f32.mrb[32].mxu0 }
 0x76b   :  { %v12783_v33 = vpop.f32.mrb[32].mxu1  ;;  %v12762_v22 = vpop.f32.mrb[33].mxu0 }
 0x76c   :  { %v12763_v34 = vadd.f32 %v12762_v22, %v12761_v32  ;;  %v12784_v35 = vpop.f32.mrb[33].mxu1  ;;  %v12764_v36 = vpop.f32.mrb[34].mxu0 }
 0x76d   :  { %v12785_v26 = vadd.f32 %v12784_v35, %v12783_v33  ;;  %v12786_v38 = vpop.f32.mrb[34].mxu1  ;;  %v12765_v39 = vpop.f32.mrb[35].mxu0 }
 0x76e   :  { %v11059_v54 = vadd.f32 %v12763_v34, %v11018_v29  ;;  %v12766_v46 = vadd.f32 %v12765_v39, %v12764_v36  ;;  %v12787_v47 = vpop.f32.mrb[35].mxu1 }
 0x76f   :  { %v12788_v52 = vadd.f32 %v12787_v47, %v12786_v38 }
 0x770   :  { %v11100_v42 = vadd.f32 %v12785_v26, %v11059_v54  ;;  %v11062_v15 = vadd.f32 %v12766_v46, %v11021_v24 }
 0x772   :  { %v11103_v50 = vadd.f32 %v12788_v52, %v11062_v15 }
 0x78a   :  { %v12805_v55 = vpop.f32.mrb[36].mxu0 }
 0x78b   :  { %v12827_v16 = vpop.f32.mrb[36].mxu1  ;;  %v12806_v57 = vpop.f32.mrb[37].mxu0 }
 0x78c   :  { %v12807_v4 = vadd.f32 %v12806_v57, %v12805_v55  ;;  %v12828_v19 = vpop.f32.mrb[37].mxu1  ;;  %v12808_v37 = vpop.f32.mrb[38].mxu0 }
 0x78d   :  { %v12829_v58 = vadd.f32 %v12828_v19, %v12827_v16  ;;  %v12830_v40 = vpop.f32.mrb[38].mxu1  ;;  %v12809_v56 = vpop.f32.mrb[39].mxu0 }
 0x78e   :  { %v11141_v6 = vadd.f32 %v12807_v4, %v11100_v42  ;;  %v12810_v59 = vadd.f32 %v12809_v56, %v12808_v37  ;;  %v12831_v21 = vpop.f32.mrb[39].mxu1 }
 0x78f   :  { %v12832_v10 = vadd.f32 %v12831_v21, %v12830_v40 }
 0x790   :  { %v11182_v41 = vadd.f32 %v12829_v58, %v11141_v6  ;;  %v11144_v60 = vadd.f32 %v12810_v59, %v11103_v50 }
 0x792   :  { %v11185_v18 = vadd.f32 %v12832_v10, %v11144_v60 }
 0x808   :  { %v12849_v43 = vpop.f32.mrb[40].mxu0 }
 0x809   :  { %v12871_v61 = vpop.f32.mrb[40].mxu1  ;;  %v12850_v62 = vpop.f32.mrb[41].mxu0 }
 0x80a   :  { %v12851_v44 = vadd.f32 %v12850_v62, %v12849_v43  ;;  %v12872_v28 = vpop.f32.mrb[41].mxu1  ;;  %v12852_v63 = vpop.f32.mrb[42].mxu0 }
 0x80b   :  { %v12873_v48 = vadd.f32 %v12872_v28, %v12871_v61  ;;  %v12874_v53 = vpop.f32.mrb[42].mxu1  ;;  %v12853_v1 = vpop.f32.mrb[43].mxu0 }
 0x80c   :  { %v11223_v0 = vadd.f32 %v12851_v44, %v11182_v41  ;;  %v12854_v2 = vadd.f32 %v12853_v1, %v12852_v63  ;;  %v12875_v3 = vpop.f32.mrb[43].mxu1 }
 0x80d   :  { %v12876_v7 = vadd.f32 %v12875_v3, %v12874_v53 }
 0x80e   :  { %v11264_v8 = vadd.f32 %v12873_v48, %v11223_v0  ;;  %v11226_v9 = vadd.f32 %v12854_v2, %v11185_v18 }
 0x810   :  { %11270 = vst [vmem:[%s13804_s9] sm:$0xff] %v11264_v8  ;;  %v11267_v11 = vadd.f32 %v12876_v7, %v11226_v9 }
 0x812   :  { %11271 = vst [vmem:[%s13804_s9 + $0x8] sm:$0xff] %v11267_v11 }
 0x813   :  { %11276 = vsyncpa [#allocation3], 1 }
 0x814   :  { %11277 = vsyncpa [#allocation5], 1 }
 0x815   :  { %11278 = vsyncpa [#allocation8], 1 }
 0x816   :  { %11279 = vsyncpa [#allocation11], 1 }
 0x817   :  { %11280 = vsyncpa [#allocation14], 1 }

</bundles_post_ra>
